<compile_context>
chip_gen: v7x
topology: tpu7x:2x2x1
jax: 0.10.0
libtpu: 0.0.40
codegen_flags: <defaults>
</compile_context>

<pallas_src>
import jax
import jax.numpy as jnp
from jax.experimental import pallas as pl
from jax.experimental.pallas import tpu as pltpu

NOISE_SIZE = 100
NOISE_PAD = 128          # zero-padded K for layer 1 (128-lane aligned)
HIDDEN1 = 256
HIDDEN2 = 512
HIDDEN3 = 1024
IMG_SIZE = 32
NUM_CHANNEL = 3
OUT_SIZE = IMG_SIZE * IMG_SIZE * NUM_CHANNEL  # 3072


def _round_up(x, m):
    return (x + m - 1) // m * m


def _device_kind():
    try:
        return jax.devices()[0].device_kind.lower()
    except Exception:
        return ""


def _batch_plan(B, kind):
    """Pick (tile_b, padded_B).

    Prefers plans with no batch padding (no out[:B] slice) and, on v7x
    (2 TensorCores), at least 2 batch tiles so the "parallel" grid axis can
    be sharded across both cores.
    """
    max_tile = 512 if ("v5" in kind or "v6" in kind) else 256
    want_tiles = 2 if "v7" in kind else 1
    candidates = [t for t in (512, 256, 128, 64, 32, 16, 8) if t <= max_tile]
    for t in candidates:                      # no pad + enough tiles
        if B % t == 0 and B // t >= want_tiles:
            return t, B
    for t in candidates:                      # no pad
        if B % t == 0:
            return t, B
    if B <= max_tile:                         # one full-dim tile, no pad
        return B, B
    return max_tile, _round_up(B, max_tile)   # rare: pad batch + slice output


def _generator_kernel(x_ref,
                      w1_ref, b1_ref,
                      w2_ref, b2_ref,
                      w3_ref, b3_ref,
                      w4_ref, b4_ref,
                      out_ref):
    """Fused 4-layer MLP on one batch tile.

    Matmul operands are bf16 (native MXU path), accumulation and all
    elementwise math (bias add, ReLU, tanh) are f32; the final result is
    written back in bf16 to halve output HBM traffic.
    """
    x = x_ref[...].astype(jnp.bfloat16)  # (tile_b, NOISE_PAD)

    h = jnp.dot(x, w1_ref[...], preferred_element_type=jnp.float32) + b1_ref[...]
    h = jnp.maximum(h, 0.0).astype(jnp.bfloat16)

    h = jnp.dot(h, w2_ref[...], preferred_element_type=jnp.float32) + b2_ref[...]
    h = jnp.maximum(h, 0.0).astype(jnp.bfloat16)

    h = jnp.dot(h, w3_ref[...], preferred_element_type=jnp.float32) + b3_ref[...]
    h = jnp.maximum(h, 0.0).astype(jnp.bfloat16)

    # TODO(synk): for grid=(1,) latency-bound tiny batches, stream w4 in
    # OUT_SIZE chunks (pltpu.emit_pipeline) to overlap its ~6 MiB DMA with
    # layers 1-3 instead of requiring it fully resident before this matmul.
    h = jnp.dot(h, w4_ref[...], preferred_element_type=jnp.float32) + b4_ref[...]
    out_ref[...] = jnp.tanh(h).astype(out_ref.dtype)


def prepare_params(params):
    """One-time conversion from PyTorch-convention f32 ((out,in) W, (out,) b)
    to kernel layout: bf16 (in, out) weights (layer-1 K zero-padded to 128)
    and f32 (1, out) bias rows."""
    prepped = []
    for i, (w, b) in enumerate(params):
        wt = w.T  # (in, out)
        if i == 0:
            wt = jnp.pad(wt, ((0, NOISE_PAD - NOISE_SIZE), (0, 0)))
        prepped.append((wt.astype(jnp.bfloat16),
                        b.reshape(1, -1).astype(jnp.float32)))
    return tuple(prepped)


@jax.jit
def generator_forward(x, prepped_params):
    """x: (B, NOISE_SIZE) float32 -> (B, OUT_SIZE) bfloat16.

    (Callers that truly need f32 can up-cast outside; keeping the kernel
    output bf16 halves the dominant HBM writeback stream.)
    """
    (w1, b1), (w2, b2), (w3, b3), (w4, b4) = prepped_params
    B = x.shape[0]
    kind = _device_kind()
    tile_b, Bp = _batch_plan(B, kind)

    # Noise cols 100 -> 128 (tiny) and, only when unavoidable, batch rows to a
    # tile multiple.  x stays f32 and is cast to bf16 inside the kernel.
    xp = jnp.pad(x, ((0, Bp - B), (0, NOISE_PAD - NOISE_SIZE)))

    grid = (Bp // tile_b,)

    def batch_tile(ncols):
        return pl.BlockSpec((tile_b, ncols), lambda i: (i, 0))

    # Whole-array VMEM residency: DMA'd once before the grid loop and kept
    # single-buffered across all batch tiles (constant operands).
    resident = pl.BlockSpec(memory_space=pltpu.MemorySpace.VMEM)

    in_specs = [
        batch_tile(NOISE_PAD),
        resident, resident,   # w1, b1
        resident, resident,   # w2, b2
        resident, resident,   # w3, b3
        resident, resident,   # w4, b4
    ]

    if "v7" in kind:
        vmem_limit = 48 << 20      # 64 MiB physical per TensorCore -> headroom
    elif "v5" in kind or "v6" in kind:
        vmem_limit = 96 << 20      # 128 MiB physical
    else:
        vmem_limit = 64 << 20

    out = pl.pallas_call(
        _generator_kernel,
        out_shape=jax.ShapeDtypeStruct((Bp, OUT_SIZE), jnp.bfloat16),
        grid=grid,
        in_specs=in_specs,
        out_specs=batch_tile(OUT_SIZE),
        compiler_params=pltpu.CompilerParams(
            dimension_semantics=("parallel",),
            vmem_limit_bytes=vmem_limit,
        ),
    )(xp, w1, b1, w2, b2, w3, b3, w4, b4)

    return out if Bp == B else out[:B]


def init_params(key):
    """PyTorch nn.Linear default init: U(-1/sqrt(fan_in), 1/sqrt(fan_in))
    for weight (out, in) and bias (out,), all f32."""
    dims = [(NOISE_SIZE, HIDDEN1), (HIDDEN1, HIDDEN2),
            (HIDDEN2, HIDDEN3), (HIDDEN3, OUT_SIZE)]
    params = []
    for (fan_in, fan_out) in dims:
        key, kw, kb = jax.random.split(key, 3)
        bound = 1.0 / (fan_in ** 0.5)
        w = jax.random.uniform(kw, (fan_out, fan_in), jnp.float32, -bound, bound)
        b = jax.random.uniform(kb, (fan_out,), jnp.float32, -bound, bound)
        params.append((w, b))
    return params


def _reference_forward(x, prepped_params):
    """Same math as the kernel (bf16 operands, f32 accumulation, bf16 out)
    in plain JAX."""
    h = jnp.pad(x, ((0, 0), (0, NOISE_PAD - NOISE_SIZE))).astype(jnp.bfloat16)
    for i, (w, b) in enumerate(prepped_params):
        h = jnp.dot(h, w, preferred_element_type=jnp.float32) + b
        if i < 3:
            h = jnp.maximum(h, 0.0).astype(jnp.bfloat16)
        else:
            h = jnp.tanh(h).astype(jnp.bfloat16)
    return h


if __name__ == "__main__":
    key = jax.random.PRNGKey(0)
    kx, kp = jax.random.split(key)

    batch = 2
    x = jax.random.normal(kx, (batch, NOISE_SIZE), jnp.float32)
    params = init_params(kp)
    prepped = prepare_params(params)

    out = generator_forward(x, prepped)
    out = jax.block_until_ready(out)

    ref = _reference_forward(x, prepped)
    assert out.shape == (batch, OUT_SIZE), out.shape
    assert out.dtype == jnp.bfloat16, out.dtype
    assert jnp.allclose(out.astype(jnp.float32), ref.astype(jnp.float32),
                        atol=2e-2, rtol=2e-2), "mismatch vs reference"

    print("KERNEL_OK")
</pallas_src>

<mosaic_0001>
module attributes {stable_mosaic.version = 11 : i64} {
  func.func @_generator_kernel(%arg0: i32, %arg1: memref<2x128xf32, #tpu.memory_space<vmem>>, %arg2: memref<128x256xbf16, #tpu.memory_space<vmem>>, %arg3: memref<1x256xf32, #tpu.memory_space<vmem>>, %arg4: memref<256x512xbf16, #tpu.memory_space<vmem>>, %arg5: memref<1x512xf32, #tpu.memory_space<vmem>>, %arg6: memref<512x1024xbf16, #tpu.memory_space<vmem>>, %arg7: memref<1x1024xf32, #tpu.memory_space<vmem>>, %arg8: memref<1024x3072xbf16, #tpu.memory_space<vmem>>, %arg9: memref<1x3072xf32, #tpu.memory_space<vmem>>, %arg10: memref<2x3072xbf16, #tpu.memory_space<vmem>>) attributes {dimension_semantics = [#tpu.dimension_semantics<parallel>], iteration_bounds = array<i64: 1>, scalar_prefetch = 0 : i64, scratch_operands = 0 : i64, tpu.core_type = #tpu.core_type<tc>, window_params = [{transform_indices = @transform_0, window_bounds = array<i64: 2, 128>}, {pipeline_mode = #tpu.pipeline_mode<synchronous>, transform_indices = @transform_1, window_bounds = array<i64: 128, 256>}, {pipeline_mode = #tpu.pipeline_mode<synchronous>, transform_indices = @transform_2, window_bounds = array<i64: 1, 256>}, {pipeline_mode = #tpu.pipeline_mode<synchronous>, transform_indices = @transform_3, window_bounds = array<i64: 256, 512>}, {pipeline_mode = #tpu.pipeline_mode<synchronous>, transform_indices = @transform_4, window_bounds = array<i64: 1, 512>}, {pipeline_mode = #tpu.pipeline_mode<synchronous>, transform_indices = @transform_5, window_bounds = array<i64: 512, 1024>}, {pipeline_mode = #tpu.pipeline_mode<synchronous>, transform_indices = @transform_6, window_bounds = array<i64: 1, 1024>}, {pipeline_mode = #tpu.pipeline_mode<synchronous>, transform_indices = @transform_7, window_bounds = array<i64: 1024, 3072>}, {pipeline_mode = #tpu.pipeline_mode<synchronous>, transform_indices = @transform_8, window_bounds = array<i64: 1, 3072>}, {transform_indices = @transform_9, window_bounds = array<i64: 2, 3072>}]} {
    %c0 = arith.constant 0 : index
    %c0_0 = arith.constant 0 : index
    %0 = vector.load %arg1[%c0, %c0_0] : memref<2x128xf32, #tpu.memory_space<vmem>>, vector<2x128xf32>
    %1 = arith.truncf %0 : vector<2x128xf32> to vector<2x128xbf16>
    %c0_1 = arith.constant 0 : index
    %c0_2 = arith.constant 0 : index
    %2 = vector.load %arg2[%c0_1, %c0_2] : memref<128x256xbf16, #tpu.memory_space<vmem>>, vector<128x256xbf16>
    %cst = arith.constant dense<0.000000e+00> : vector<2x256xf32>
    %3 = tpu.matmul %1, %2, %cst {dimension_numbers = #tpu.dot_dimension_numbers<[1], [0], [0], [1], [0, 0, 1, 1], [], []>} : vector<2x128xbf16>, vector<128x256xbf16>, vector<2x256xf32> -> vector<2x256xf32>
    %c0_3 = arith.constant 0 : index
    %c0_4 = arith.constant 0 : index
    %4 = vector.load %arg3[%c0_3, %c0_4] : memref<1x256xf32, #tpu.memory_space<vmem>>, vector<1x256xf32>
    %5 = vector.broadcast %4 : vector<1x256xf32> to vector<2x256xf32>
    %6 = arith.addf %3, %5 : vector<2x256xf32>
    %cst_5 = arith.constant 0.000000e+00 : f32
    %7 = vector.broadcast %cst_5 : f32 to vector<2x256xf32>
    %8 = arith.maximumf %6, %7 : vector<2x256xf32>
    %9 = arith.truncf %8 : vector<2x256xf32> to vector<2x256xbf16>
    %c0_6 = arith.constant 0 : index
    %c0_7 = arith.constant 0 : index
    %10 = vector.load %arg4[%c0_6, %c0_7] : memref<256x512xbf16, #tpu.memory_space<vmem>>, vector<256x512xbf16>
    %cst_8 = arith.constant dense<0.000000e+00> : vector<2x512xf32>
    %11 = tpu.matmul %9, %10, %cst_8 {dimension_numbers = #tpu.dot_dimension_numbers<[1], [0], [0], [1], [0, 0, 1, 1], [], []>} : vector<2x256xbf16>, vector<256x512xbf16>, vector<2x512xf32> -> vector<2x512xf32>
    %c0_9 = arith.constant 0 : index
    %c0_10 = arith.constant 0 : index
    %12 = vector.load %arg5[%c0_9, %c0_10] : memref<1x512xf32, #tpu.memory_space<vmem>>, vector<1x512xf32>
    %13 = vector.broadcast %12 : vector<1x512xf32> to vector<2x512xf32>
    %14 = arith.addf %11, %13 : vector<2x512xf32>
    %cst_11 = arith.constant 0.000000e+00 : f32
    %15 = vector.broadcast %cst_11 : f32 to vector<2x512xf32>
    %16 = arith.maximumf %14, %15 : vector<2x512xf32>
    %17 = arith.truncf %16 : vector<2x512xf32> to vector<2x512xbf16>
    %c0_12 = arith.constant 0 : index
    %c0_13 = arith.constant 0 : index
    %18 = vector.load %arg6[%c0_12, %c0_13] : memref<512x1024xbf16, #tpu.memory_space<vmem>>, vector<512x1024xbf16>
    %cst_14 = arith.constant dense<0.000000e+00> : vector<2x1024xf32>
    %19 = tpu.matmul %17, %18, %cst_14 {dimension_numbers = #tpu.dot_dimension_numbers<[1], [0], [0], [1], [0, 0, 1, 1], [], []>} : vector<2x512xbf16>, vector<512x1024xbf16>, vector<2x1024xf32> -> vector<2x1024xf32>
    %c0_15 = arith.constant 0 : index
    %c0_16 = arith.constant 0 : index
    %20 = vector.load %arg7[%c0_15, %c0_16] : memref<1x1024xf32, #tpu.memory_space<vmem>>, vector<1x1024xf32>
    %21 = vector.broadcast %20 : vector<1x1024xf32> to vector<2x1024xf32>
    %22 = arith.addf %19, %21 : vector<2x1024xf32>
    %cst_17 = arith.constant 0.000000e+00 : f32
    %23 = vector.broadcast %cst_17 : f32 to vector<2x1024xf32>
    %24 = arith.maximumf %22, %23 : vector<2x1024xf32>
    %25 = arith.truncf %24 : vector<2x1024xf32> to vector<2x1024xbf16>
    %c0_18 = arith.constant 0 : index
    %c0_19 = arith.constant 0 : index
    %26 = vector.load %arg8[%c0_18, %c0_19] : memref<1024x3072xbf16, #tpu.memory_space<vmem>>, vector<1024x3072xbf16>
    %cst_20 = arith.constant dense<0.000000e+00> : vector<2x3072xf32>
    %27 = tpu.matmul %25, %26, %cst_20 {dimension_numbers = #tpu.dot_dimension_numbers<[1], [0], [0], [1], [0, 0, 1, 1], [], []>} : vector<2x1024xbf16>, vector<1024x3072xbf16>, vector<2x3072xf32> -> vector<2x3072xf32>
    %c0_21 = arith.constant 0 : index
    %c0_22 = arith.constant 0 : index
    %28 = vector.load %arg9[%c0_21, %c0_22] : memref<1x3072xf32, #tpu.memory_space<vmem>>, vector<1x3072xf32>
    %29 = vector.broadcast %28 : vector<1x3072xf32> to vector<2x3072xf32>
    %30 = arith.addf %27, %29 : vector<2x3072xf32>
    %31 = math.tanh %30 : vector<2x3072xf32>
    %32 = arith.truncf %31 : vector<2x3072xf32> to vector<2x3072xbf16>
    %c0_23 = arith.constant 0 : index
    %c0_24 = arith.constant 0 : index
    %33 = vector.load %arg10[%c0_23, %c0_24] : memref<2x3072xbf16, #tpu.memory_space<vmem>>, vector<2x3072xbf16>
    tpu.vector_store %arg10[%c0_23, %c0_24], %32 {strides = array<i32>} : memref<2x3072xbf16, #tpu.memory_space<vmem>>, vector<2x3072xbf16>,
    return
  }
  func.func @transform_0(%arg0: i32) -> (i32, i32) {
    %c0_i32 = arith.constant 0 : i32
    %c0_i32_0 = arith.constant 0 : i32
    return %arg0, %c0_i32 : i32, i32
  }
  func.func @transform_1(%arg0: i32) -> (i32, i32) {
    %c0_i32 = arith.constant 0 : i32
    %c0_i32_0 = arith.constant 0 : i32
    %c0_i32_1 = arith.constant 0 : i32
    return %c0_i32, %c0_i32_0 : i32, i32
  }
  func.func @transform_2(%arg0: i32) -> (i32, i32) {
    %c0_i32 = arith.constant 0 : i32
    %c0_i32_0 = arith.constant 0 : i32
    %c0_i32_1 = arith.constant 0 : i32
    return %c0_i32, %c0_i32_0 : i32, i32
  }
  func.func @transform_3(%arg0: i32) -> (i32, i32) {
    %c0_i32 = arith.constant 0 : i32
    %c0_i32_0 = arith.constant 0 : i32
    %c0_i32_1 = arith.constant 0 : i32
    return %c0_i32, %c0_i32_0 : i32, i32
  }
  func.func @transform_4(%arg0: i32) -> (i32, i32) {
    %c0_i32 = arith.constant 0 : i32
    %c0_i32_0 = arith.constant 0 : i32
    %c0_i32_1 = arith.constant 0 : i32
    return %c0_i32, %c0_i32_0 : i32, i32
  }
  func.func @transform_5(%arg0: i32) -> (i32, i32) {
    %c0_i32 = arith.constant 0 : i32
    %c0_i32_0 = arith.constant 0 : i32
    %c0_i32_1 = arith.constant 0 : i32
    return %c0_i32, %c0_i32_0 : i32, i32
  }
  func.func @transform_6(%arg0: i32) -> (i32, i32) {
    %c0_i32 = arith.constant 0 : i32
    %c0_i32_0 = arith.constant 0 : i32
    %c0_i32_1 = arith.constant 0 : i32
    return %c0_i32, %c0_i32_0 : i32, i32
  }
  func.func @transform_7(%arg0: i32) -> (i32, i32) {
    %c0_i32 = arith.constant 0 : i32
    %c0_i32_0 = arith.constant 0 : i32
    %c0_i32_1 = arith.constant 0 : i32
    return %c0_i32, %c0_i32_0 : i32, i32
  }
  func.func @transform_8(%arg0: i32) -> (i32, i32) {
    %c0_i32 = arith.constant 0 : i32
    %c0_i32_0 = arith.constant 0 : i32
    %c0_i32_1 = arith.constant 0 : i32
    return %c0_i32, %c0_i32_0 : i32, i32
  }
  func.func @transform_9(%arg0: i32) -> (i32, i32) {
    %c0_i32 = arith.constant 0 : i32
    %c0_i32_0 = arith.constant 0 : i32
    return %arg0, %c0_i32 : i32, i32
  }
}

</mosaic_0001>

<bundles_post_ra>
// kernel: generator_forward.1
= control target key start
LH: loop header
LB: loop body
LE: loop exit
PB: predicated region body
PF: predicated region fallthrough
CT: control target
= control target key end

     0   :  { %14 = vsyncpa [#allocation3], 0  ;;  %s17244_s0 = inlined_call_operand.hbm [shape: f32[2,128], index: 0, kind: input, shape index: {}]   ;;  %s17245_s1 = inlined_call_operand.hbm [shape: bf16[128,256], index: 1, kind: input, shape index: {}]   ;;  %s17246_s2 = inlined_call_operand.hbm [shape: f32[1,256], index: 2, kind: input, shape index: {}]   ;;  %s17247_s3 = inlined_call_operand.hbm [shape: bf16[256,512], index: 3, kind: input, shape index: {}]   ;;  %s17248_s4 = inlined_call_operand.hbm [shape: f32[1,512], index: 4, kind: input, shape index: {}]   ;;  %s17249_s5 = inlined_call_operand.hbm [shape: bf16[512,1024], index: 5, kind: input, shape index: {}]   ;;  %s17250_s6 = inlined_call_operand.hbm [shape: f32[1,1024], index: 6, kind: input, shape index: {}]   ;;  %s17251_s7 = inlined_call_operand.hbm [shape: bf16[1024,3072], index: 7, kind: input, shape index: {}]   ;;  %s17252_s8 = inlined_call_operand.hbm [shape: f32[1,3072], index: 8, kind: input, shape index: {}]   ;;  %s17253_s9 = inlined_call_operand.hbm [shape: bf16[2,3072], index: 9, kind: output, shape index: {}]  }
   0x1   :  { %15 = vsyncpa [#allocation6], 0 }
   0x2   :  { %16 = vsyncpa [#allocation9], 0 }
   0x3   :  { %17 = vsyncpa [#allocation12], 0 }
   0x4   :  { %18 = vsyncpa [#allocation15], 0 }
   0x5   :  { %19 = vsyncpa [#allocation4], 0  ;;  %s16772_s30 = smov [#allocation5]   ;;  %s16540_s13 = scalar_lea.hbm %s17245_s1, 2048 }
   0x6   :  { %s35_s10 = sshll.u32 %s16772_s30, 4  ;;  %p16541_p0 = scmp.ne.s32.totalorder %s17245_s1, %s16540_s13  ;;  %s36_s10 = int_to_ptr.vmem [resolvable:$true] %s35_s10 }
   0x7   :  { %p16544_p1 = scmp.lt.u32.totalorder %s16540_s13, %s17245_s1 }
   0x9   :  { %p16546_p2 = pnand %p16544_p1, %p16541_p0 }
   0xb   :  { %16549 = shalt.err (!%p16546_p2)
}
   0xc   :  { %s16550_s18 = scalar_lea.vmem %s36_s10, 2048  ;;  %p16555_p4 = scmp.lt.s32.totalorder %s36_s10, %s36_s10 }
   0xd   :  { %p16551_p3 = scmp.ne.s32.totalorder %s36_s10, %s16550_s18  ;;  %p16556_p5 = scmp.lt.s32.totalorder %s16550_s18, %s16550_s18 }
   0xf   :  { %p16557_p6 = por %p16556_p5, %p16555_p4 }
  0x11   :  { %p16558_p7 = pnand %p16557_p6, %p16551_p3 }
  0x13   :  { %16561 = shalt.err (!%p16558_p7)
}
  0x14   :  { %s16773_s19 = smov 128   ;;  %s16774_s20 = smov 8  }
  0x15   :  { %41 = dma.hbm_to_vmem [thread:$0]  %s17245_s1, 2048, %s36_s10, [#allocation6], %s16773_s19, %s16773_s19, %s16774_s20  }
  0x16   :  { %s16775_s23 = smov [#allocation8]   ;;  %s16562_s27 = scalar_lea.hbm %s17247_s3, 8192 }
  0x17   :  { %s57_s24 = sshll.u32 %s16775_s23, 4  ;;  %p16563_p8 = scmp.ne.s32.totalorder %s17247_s3, %s16562_s27  ;;  %s58_s24 = int_to_ptr.vmem [resolvable:$true] %s57_s24 }
  0x18   :  { %p16566_p9 = scmp.lt.u32.totalorder %s16562_s27, %s17247_s3 }
  0x1a   :  { %p16568_p10 = pnand %p16566_p9, %p16563_p8 }
  0x1c   :  { %16571 = shalt.err (!%p16568_p10)
}
  0x1d   :  { %s16572_s12 = scalar_lea.vmem %s58_s24, 8192  ;;  %p16577_p12 = scmp.lt.s32.totalorder %s58_s24, %s58_s24 }
  0x1e   :  { %p16573_p11 = scmp.ne.s32.totalorder %s58_s24, %s16572_s12  ;;  %p16578_p13 = scmp.lt.s32.totalorder %s16572_s12, %s16572_s12 }
  0x20   :  { %p16579_p0 = por %p16578_p13, %p16577_p12 }
  0x22   :  { %p16580_p1 = pnand %p16579_p0, %p16573_p11 }
  0x24   :  { %16583 = shalt.err (!%p16580_p1)
}
  0x25   :  { %s16776_s1 = smov 256   ;;  %s16777_s10 = smov 16  }
  0x26   :  { %63 = dma.hbm_to_vmem [thread:$0]  %s17247_s3, 8192, %s58_s24, [#allocation9], %s16776_s1, %s16776_s1, %s16777_s10  }
  0x27   :  { %s16778_s15 = smov [#allocation11]   ;;  %s16584_s19 = scalar_lea.hbm %s17249_s5, 32768 }
  0x28   :  { %s79_s16 = sshll.u32 %s16778_s15, 4  ;;  %p16585_p2 = scmp.ne.s32.totalorder %s17249_s5, %s16584_s19  ;;  %s80_s16 = int_to_ptr.vmem [resolvable:$true] %s79_s16 }
  0x29   :  { %p16588_p3 = scmp.lt.u32.totalorder %s16584_s19, %s17249_s5 }
  0x2b   :  { %p16590_p4 = pnand %p16588_p3, %p16585_p2 }
  0x2d   :  { %16593 = shalt.err (!%p16590_p4)
}
  0x2e   :  { %s16594_s25 = scalar_lea.vmem %s80_s16, 32768  ;;  %p16599_p6 = scmp.lt.s32.totalorder %s80_s16, %s80_s16 }
  0x2f   :  { %p16595_p5 = scmp.ne.s32.totalorder %s80_s16, %s16594_s25  ;;  %p16600_p7 = scmp.lt.s32.totalorder %s16594_s25, %s16594_s25 }
  0x31   :  { %p16601_p8 = por %p16600_p7, %p16599_p6 }
  0x33   :  { %p16602_p9 = pnand %p16601_p8, %p16595_p5 }
  0x35   :  { %16605 = shalt.err (!%p16602_p9)
}
  0x36   :  { %s16779_s3 = smov 512   ;;  %s16780_s24 = smov 32  }
  0x37   :  { %85 = dma.hbm_to_vmem [thread:$0]  %s17249_s5, 32768, %s80_s16, [#allocation12], %s16779_s3, %s16779_s3, %s16780_s24  }
  0x38   :  { %s16781_s28 = smov [#allocation14]   ;;  %s16606_s12 = scalar_lea.hbm %s17251_s7, 196608 }
  0x39   :  { %s101_s29 = sshll.u32 %s16781_s28, 4  ;;  %p16607_p10 = scmp.ne.s32.totalorder %s17251_s7, %s16606_s12  ;;  %s102_s29 = int_to_ptr.vmem [resolvable:$true] %s101_s29 }
  0x3a   :  { %p16610_p11 = scmp.lt.u32.totalorder %s16606_s12, %s17251_s7 }
  0x3c   :  { %p16612_p12 = pnand %p16610_p11, %p16607_p10 }
  0x3e   :  { %16615 = shalt.err (!%p16612_p12)
}
  0x3f   :  { %s16616_s15 = scalar_lea.vmem %s102_s29, 196608  ;;  %p16621_p0 = scmp.lt.s32.totalorder %s102_s29, %s102_s29 }
  0x40   :  { %p16617_p13 = scmp.ne.s32.totalorder %s102_s29, %s16616_s15  ;;  %p16622_p1 = scmp.lt.s32.totalorder %s16616_s15, %s16616_s15 }
  0x42   :  { %p16623_p2 = por %p16622_p1, %p16621_p0 }
  0x44   :  { %p16624_p3 = pnand %p16623_p2, %p16617_p13 }
  0x46   :  { %16627 = shalt.err (!%p16624_p3)
}
  0x47   :  { %s16782_s5 = smov 1536   ;;  %s16783_s16 = smov 96  }
  0x48   :  { %107 = dma.hbm_to_vmem [thread:$0]  %s17251_s7, 196608, %s102_s29, [#allocation15], %s16782_s5, %s16782_s5, %s16783_s16  }
  0x49   :  { %s16784_s19 = smov [#allocation2]   ;;  %s16785_s21 = smov [#allocation7]  }
  0x4a   :  { %s26_s20 = sshll.u32 %s16784_s19, 4  ;;  %s48_s22 = sshll.u32 %s16785_s21, 4  ;;  %s27_s20 = int_to_ptr.vmem [resolvable:$true] %s26_s20  ;;  %s49_s22 = int_to_ptr.vmem [resolvable:$true] %s48_s22 }
  0x4b   :  { %s16628_s3 = scalar_lea.hbm %s17244_s0, 32 }
  0x4c   :  { %p16629_p4 = scmp.ne.s32.totalorder %s17244_s0, %s16628_s3  ;;  %p16632_p5 = scmp.lt.u32.totalorder %s16628_s3, %s17244_s0 }
  0x4e   :  { %p16634_p6 = pnand %p16632_p5, %p16629_p4 }
  0x50   :  { %16637 = shalt.err (!%p16634_p6)
}
  0x51   :  { %s16638_s7 = scalar_lea.vmem %s27_s20, 32  ;;  %p16643_p8 = scmp.lt.s32.totalorder %s27_s20, %s27_s20 }
  0x52   :  { %p16639_p7 = scmp.ne.s32.totalorder %s27_s20, %s16638_s7  ;;  %p16644_p9 = scmp.lt.s32.totalorder %s16638_s7, %s16638_s7 }
  0x54   :  { %p16645_p10 = por %p16644_p9, %p16643_p8 }
  0x56   :  { %p16646_p11 = pnand %p16645_p10, %p16639_p7 }
  0x58   :  { %16649 = shalt.err (!%p16646_p11)
}
  0x59   :  { %29 = dma.hbm_to_vmem [thread:$0]  %s17244_s0, 32, %s27_s20, [#allocation3]  }
  0x5a   :  { %s16650_s1 = scalar_lea.hbm %s17246_s2, 32 }
  0x5b   :  { %p16651_p12 = scmp.ne.s32.totalorder %s17246_s2, %s16650_s1  ;;  %p16654_p13 = scmp.lt.u32.totalorder %s16650_s1, %s17246_s2 }
  0x5d   :  { %p16656_p0 = pnand %p16654_p13, %p16651_p12 }
  0x5f   :  { %16659 = shalt.err (!%p16656_p0)
}
  0x60   :  { %s16660_s5 = scalar_lea.vmem %s49_s22, 32  ;;  %p16665_p2 = scmp.lt.s32.totalorder %s49_s22, %s49_s22 }
  0x61   :  { %p16661_p1 = scmp.ne.s32.totalorder %s49_s22, %s16660_s5  ;;  %p16666_p3 = scmp.lt.s32.totalorder %s16660_s5, %s16660_s5 }
  0x63   :  { %p16667_p4 = por %p16666_p3, %p16665_p2 }
  0x65   :  { %p16668_p5 = pnand %p16667_p4, %p16661_p1 }
  0x67   :  { %16671 = shalt.err (!%p16668_p5)
}
  0x68   :  { %51 = dma.hbm_to_vmem [thread:$0]  %s17246_s2, 32, %s49_s22, [#allocation6]  }
  0x69   :  { %s16786_s17 = smov [#allocation10]   ;;  %s16787_s19 = smov [#allocation13]  }
  0x6a   :  { %s70_s18 = sshll.u32 %s16786_s17, 4  ;;  %s92_s20 = sshll.u32 %s16787_s19, 4  ;;  %s71_s18 = int_to_ptr.vmem [resolvable:$true] %s70_s18  ;;  %s93_s20 = int_to_ptr.vmem [resolvable:$true] %s92_s20 }
  0x6b   :  { %s16672_s25 = scalar_lea.hbm %s17248_s4, 64 }
  0x6c   :  { %p16673_p6 = scmp.ne.s32.totalorder %s17248_s4, %s16672_s25  ;;  %p16676_p7 = scmp.lt.u32.totalorder %s16672_s25, %s17248_s4 }
  0x6e   :  { %p16678_p8 = pnand %p16676_p7, %p16673_p6 }
  0x70   :  { %16681 = shalt.err (!%p16678_p8)
}
  0x71   :  { %s16682_s2 = scalar_lea.vmem %s71_s18, 64  ;;  %p16687_p10 = scmp.lt.s32.totalorder %s71_s18, %s71_s18 }
  0x72   :  { %p16683_p9 = scmp.ne.s32.totalorder %s71_s18, %s16682_s2  ;;  %p16688_p11 = scmp.lt.s32.totalorder %s16682_s2, %s16682_s2 }
  0x74   :  { %p16689_p12 = por %p16688_p11, %p16687_p10 }
  0x76   :  { %p16690_p13 = pnand %p16689_p12, %p16683_p9 }
  0x78   :  { %16693 = shalt.err (!%p16690_p13)
}
  0x79   :  { %73 = dma.hbm_to_vmem [thread:$0]  %s17248_s4, 64, %s71_s18, [#allocation9]  }
  0x7a   :  { %s16694_s30 = scalar_lea.hbm %s17250_s6, 128 }
  0x7b   :  { %p16695_p0 = scmp.ne.s32.totalorder %s17250_s6, %s16694_s30  ;;  %p16698_p1 = scmp.lt.u32.totalorder %s16694_s30, %s17250_s6 }
  0x7d   :  { %p16700_p2 = pnand %p16698_p1, %p16695_p0 }
  0x7f   :  { %16703 = shalt.err (!%p16700_p2)
}
  0x80   :  { %s16704_s13 = scalar_lea.vmem %s93_s20, 128  ;;  %p16709_p4 = scmp.lt.s32.totalorder %s93_s20, %s93_s20 }
  0x81   :  { %p16705_p3 = scmp.ne.s32.totalorder %s93_s20, %s16704_s13  ;;  %p16710_p5 = scmp.lt.s32.totalorder %s16704_s13, %s16704_s13 }
  0x83   :  { %p16711_p6 = por %p16710_p5, %p16709_p4 }
  0x85   :  { %p16712_p7 = pnand %p16711_p6, %p16705_p3 }
  0x87   :  { %16715 = shalt.err (!%p16712_p7)
}
  0x88   :  { %95 = dma.hbm_to_vmem [thread:$0]  %s17250_s6, 128, %s93_s20, [#allocation12]  }
  0x89   :  { %s16788_s15 = smov [#allocation16]   ;;  %s16716_s17 = scalar_lea.hbm %s17252_s8, 384 }
  0x8a   :  { %s114_s5 = sshll.u32 %s16788_s15, 4  ;;  %p16717_p8 = scmp.ne.s32.totalorder %s17252_s8, %s16716_s17  ;;  %s115_s5 = int_to_ptr.vmem [resolvable:$true] %s114_s5 }
  0x8b   :  { %p16720_p9 = scmp.lt.u32.totalorder %s16716_s17, %s17252_s8 }
  0x8d   :  { %p16722_p10 = pnand %p16720_p9, %p16717_p8 }
  0x8f   :  { %16725 = shalt.err (!%p16722_p10)
}
  0x90   :  { %s16726_s25 = scalar_lea.vmem %s115_s5, 384  ;;  %p16731_p12 = scmp.lt.s32.totalorder %s115_s5, %s115_s5 }
  0x91   :  { %p16727_p11 = scmp.ne.s32.totalorder %s115_s5, %s16726_s25  ;;  %p16732_p13 = scmp.lt.s32.totalorder %s16726_s25, %s16726_s25 }
  0x93   :  { %p16733_p0 = por %p16732_p13, %p16731_p12 }
  0x95   :  { %p16734_p1 = pnand %p16733_p0, %p16727_p11 }
  0x97   :  { %16737 = shalt.err (!%p16734_p1)
}
  0x98   :  { %117 = dma.hbm_to_vmem [thread:$0]  %s17252_s8, 384, %s115_s5, [#allocation15]  }
  0x99   :  { %16760 = dma.done.wait [#allocation3], 32  }
  0x9a   :  { %16761 = vsyncadd [#allocation3], 4294967264 }
  0x9b   :  { %16762 = dma.done.wait [#allocation6], 2080  }
  0x9c   :  { %16763 = vsyncadd [#allocation6], 4294965216 }
  0x9d   :  { %16764 = dma.done.wait [#allocation9], 8256  }
  0x9e   :  { %16765 = vsyncadd [#allocation9], 4294959040 }
  0x9f   :  { %16766 = dma.done.wait [#allocation12], 32896  }
  0xa0   :  { %16767 = vsyncadd [#allocation12], 4294934400 }
  0xa1   :  { %16768 = dma.done.wait [#allocation15], 196992  }
  0xa2   :  { %16769 = vsyncadd [#allocation15], 4294770304  ;;  %v16789_v0 = vmov 0   ;;  %v16369_v1 = vld [vmem:[#allocation5 + $0x4] ss:$8 sps:$4 sm:$0xff]   ;;  %s16791_s8 = smov [#allocation17]  }
  0xa3   :  { %288 = vmatprep.mubr.bf16.mxu0 %v16789_v0  ;;  %v16371_v2 = vld [vmem:[#allocation5] ss:$8 sps:$4 sm:$0xff]   ;;  %256 = vmatprep.subr.bf16.mxu0 %v16369_v1  ;;  %v16372_v3 = vld [vmem:[#allocation5 + $0x14] ss:$8 sps:$4 sm:$0xff]   ;;  %v16374_v4 = vld [vmem:[#allocation5 + $0x10] ss:$8 sps:$4 sm:$0xff]  }
  0xa4   :  { %257 = vmatpush1.bf16.msra.mxu0 %v16371_v2  ;;  %v16375_v5 = vld [vmem:[#allocation5 + $0x24] ss:$8 sps:$4 sm:$0xff]   ;;  %v16377_v6 = vld [vmem:[#allocation5 + $0x20] ss:$8 sps:$4 sm:$0xff]   ;;  %v16378_v7 = vld [vmem:[#allocation5 + $0x34] ss:$8 sps:$4 sm:$0xff]  }
  0xa5   :  { %258 = vmatprep.subr.bf16.mxu0 %v16372_v3  ;;  %v16380_v8 = vld [vmem:[#allocation5 + $0x30] ss:$8 sps:$4 sm:$0xff]   ;;  %v16381_v10 = vld [vmem:[#allocation5 + $0x44] ss:$8 sps:$4 sm:$0xff]   ;;  %v16383_v13 = vld [vmem:[#allocation5 + $0x40] ss:$8 sps:$4 sm:$0xff]  }
  0xa6   :  { %v16393_v9 = vld [vmem:[#allocation8 + $0x4] ss:$16 sps:$4 sm:$0xff]   ;;  %v16398_v11 = vld [vmem:[#allocation8] ss:$16 sps:$4 sm:$0xff]   ;;  %v146_v26 = vld [vmem:[#allocation2] sm:$0x3] }
  0xa7   :  { %707 = vmatprep.subr.bf16.mxu1 %v16393_v9  ;;  %v16399_v12 = vld [vmem:[#allocation8 + $0x24] ss:$16 sps:$4 sm:$0xff]   ;;  %v16404_v15 = vld [vmem:[#allocation8 + $0x20] ss:$16 sps:$4 sm:$0xff]   ;;  %v16397_v27 = vld [vmem:[#allocation8 + $0xc] ss:$16 sps:$4 sm:$0xff]   ;;  %v147_v30 = vpack.c.bf16 %v146_v26, %v146_v26 }
  0xa8   :  { %259 = vmatpush1.bf16.msra.mxu0 %v16374_v4  ;;  %v16384_v14 = vld [vmem:[#allocation5 + $0x54] ss:$8 sps:$4 sm:$0xff]   ;;  %708 = vmatpush1.bf16.msra.mxu1 %v16398_v11  ;;  %v16386_v17 = vld [vmem:[#allocation5 + $0x50] ss:$8 sps:$4 sm:$0xff]   ;;  %v16387_v18 = vld [vmem:[#allocation5 + $0x64] ss:$8 sps:$4 sm:$0xff]  }
  0xa9   :  { %260 = vmatprep.subr.bf16.mxu0 %v16375_v5  ;;  %709 = vmatprep.subr.bf16.mxu1 %v16399_v12  ;;  %v16405_v16 = vld [vmem:[#allocation8 + $0x44] ss:$16 sps:$4 sm:$0xff]   ;;  %v16410_v19 = vld [vmem:[#allocation8 + $0x40] ss:$16 sps:$4 sm:$0xff]   ;;  %v16395_v31 = vld [vmem:[#allocation8 + $0x8] ss:$16 sps:$4 sm:$0xff]  }
  0xaa   :  { %v16411_v20 = vld [vmem:[#allocation8 + $0x64] ss:$16 sps:$4 sm:$0xff]   ;;  %v16416_v23 = vld [vmem:[#allocation8 + $0x60] ss:$16 sps:$4 sm:$0xff]   ;;  %v16403_v32 = vld [vmem:[#allocation8 + $0x2c] ss:$16 sps:$4 sm:$0xff]  }
  0xab   :  { %v16389_v21 = vld [vmem:[#allocation5 + $0x60] ss:$8 sps:$4 sm:$0xff]   ;;  %v16390_v22 = vld [vmem:[#allocation5 + $0x74] ss:$8 sps:$4 sm:$0xff]   ;;  %v16392_v25 = vld [vmem:[#allocation5 + $0x70] ss:$8 sps:$4 sm:$0xff]  }
  0xac   :  { %261 = vmatpush1.bf16.msra.mxu0 %v16377_v6  ;;  %710 = vmatpush1.bf16.msra.mxu1 %v16404_v15  ;;  %v16417_v24 = vld [vmem:[#allocation8 + $0x84] ss:$16 sps:$4 sm:$0xff]   ;;  %v16422_v28 = vld [vmem:[#allocation8 + $0x80] ss:$16 sps:$4 sm:$0xff]   ;;  %v16401_v35 = vld [vmem:[#allocation8 + $0x28] ss:$16 sps:$4 sm:$0xff]  }
  0xad   :  { %262 = vmatprep.subr.bf16.mxu0 %v16378_v7  ;;  %711 = vmatprep.subr.bf16.mxu1 %v16405_v16  ;;  %v16423_v29 = vld [vmem:[#allocation8 + $0xa4] ss:$16 sps:$4 sm:$0xff]   ;;  %v16428_v33 = vld [vmem:[#allocation8 + $0xa0] ss:$16 sps:$4 sm:$0xff]   ;;  %v16409_v36 = vld [vmem:[#allocation8 + $0x4c] ss:$16 sps:$4 sm:$0xff]  }
  0xae   :  { %v16429_v34 = vld [vmem:[#allocation8 + $0xc4] ss:$16 sps:$4 sm:$0xff]   ;;  %v16434_v37 = vld [vmem:[#allocation8 + $0xc0] ss:$16 sps:$4 sm:$0xff]   ;;  %v16407_v39 = vld [vmem:[#allocation8 + $0x48] ss:$16 sps:$4 sm:$0xff]  }
  0xaf   :  { %v16435_v38 = vld [vmem:[#allocation8 + $0xe4] ss:$16 sps:$4 sm:$0xff]   ;;  %v16415_v40 = vld [vmem:[#allocation8 + $0x6c] ss:$16 sps:$4 sm:$0xff]   ;;  %v16440_v41 = vld [vmem:[#allocation8 + $0xe0] ss:$16 sps:$4 sm:$0xff]  }
  0xb0   :  { %263 = vmatpush1.bf16.msra.mxu0 %v16380_v8  ;;  %712 = vmatpush1.bf16.msra.mxu1 %v16410_v19  ;;  %v16441_v42 = vld [vmem:[#allocation8 + $0x104] ss:$16 sps:$4 sm:$0xff]   ;;  %v16413_v43 = vld [vmem:[#allocation8 + $0x68] ss:$16 sps:$4 sm:$0xff]   ;;  %v16421_v44 = vld [vmem:[#allocation8 + $0x8c] ss:$16 sps:$4 sm:$0xff]  }
  0xb1   :  { %264 = vmatprep.subr.bf16.mxu0 %v16381_v10  ;;  %713 = vmatprep.subr.bf16.mxu1 %v16411_v20  ;;  %v16446_v45 = vld [vmem:[#allocation8 + $0x100] ss:$16 sps:$4 sm:$0xff]   ;;  %v16447_v46 = vld [vmem:[#allocation8 + $0x124] ss:$16 sps:$4 sm:$0xff]   ;;  %v16419_v47 = vld [vmem:[#allocation8 + $0x88] ss:$16 sps:$4 sm:$0xff]  }
  0xb2   :  { %v16452_v48 = vld [vmem:[#allocation8 + $0x120] ss:$16 sps:$4 sm:$0xff]   ;;  %v16427_v49 = vld [vmem:[#allocation8 + $0xac] ss:$16 sps:$4 sm:$0xff]   ;;  %v16453_v50 = vld [vmem:[#allocation8 + $0x144] ss:$16 sps:$4 sm:$0xff]  }
  0xb3   :  { %v16425_v51 = vld [vmem:[#allocation8 + $0xa8] ss:$16 sps:$4 sm:$0xff]   ;;  %v16458_v52 = vld [vmem:[#allocation8 + $0x140] ss:$16 sps:$4 sm:$0xff]   ;;  %v16433_v53 = vld [vmem:[#allocation8 + $0xcc] ss:$16 sps:$4 sm:$0xff]  }
  0xb4   :  { %265 = vmatpush1.bf16.msra.mxu0 %v16383_v13  ;;  %714 = vmatpush1.bf16.msra.mxu1 %v16416_v23  ;;  %v16459_v54 = vld [vmem:[#allocation8 + $0x164] ss:$16 sps:$4 sm:$0xff]   ;;  %v16431_v55 = vld [vmem:[#allocation8 + $0xc8] ss:$16 sps:$4 sm:$0xff]   ;;  %v16464_v56 = vld [vmem:[#allocation8 + $0x160] ss:$16 sps:$4 sm:$0xff]  }
  0xb5   :  { %266 = vmatprep.subr.bf16.mxu0 %v16384_v14  ;;  %715 = vmatprep.subr.bf16.mxu1 %v16417_v24  ;;  %v16439_v57 = vld [vmem:[#allocation8 + $0xec] ss:$16 sps:$4 sm:$0xff]   ;;  %v16465_v58 = vld [vmem:[#allocation8 + $0x184] ss:$16 sps:$4 sm:$0xff]   ;;  %v16437_v59 = vld [vmem:[#allocation8 + $0xe8] ss:$16 sps:$4 sm:$0xff]  }
  0xb6   :  { %v16470_v60 = vld [vmem:[#allocation8 + $0x180] ss:$16 sps:$4 sm:$0xff]   ;;  %v16445_v61 = vld [vmem:[#allocation8 + $0x10c] ss:$16 sps:$4 sm:$0xff]   ;;  %v16471_v62 = vld [vmem:[#allocation8 + $0x1a4] ss:$16 sps:$4 sm:$0xff]  }
  0xb7   :  { %v16443_v63 = vld [vmem:[#allocation8 + $0x108] ss:$16 sps:$4 sm:$0xff]   ;;  %v16476_v0 = vld [vmem:[#allocation8 + $0x1a0] ss:$16 sps:$4 sm:$0xff]   ;;  %v16451_v1 = vld [vmem:[#allocation8 + $0x12c] ss:$16 sps:$4 sm:$0xff]  }
  0xb8   :  { %267 = vmatpush1.bf16.msra.mxu0 %v16386_v17  ;;  %716 = vmatpush1.bf16.msra.mxu1 %v16422_v28  ;;  %v16449_v2 = vld [vmem:[#allocation8 + $0x128] ss:$16 sps:$4 sm:$0xff]   ;;  %v16457_v3 = vld [vmem:[#allocation8 + $0x14c] ss:$16 sps:$4 sm:$0xff]   ;;  %v16477_v11 = vld [vmem:[#allocation8 + $0x1c4] ss:$16 sps:$4 sm:$0xff]  }
  0xb9   :  { %268 = vmatprep.subr.bf16.mxu0 %v16387_v18  ;;  %717 = vmatprep.subr.bf16.mxu1 %v16423_v29  ;;  %v16455_v4 = vld [vmem:[#allocation8 + $0x148] ss:$16 sps:$4 sm:$0xff]   ;;  %v16463_v5 = vld [vmem:[#allocation8 + $0x16c] ss:$16 sps:$4 sm:$0xff]   ;;  %v16482_v14 = vld [vmem:[#allocation8 + $0x1c0] ss:$16 sps:$4 sm:$0xff]  }
  0xba   :  { %v16461_v6 = vld [vmem:[#allocation8 + $0x168] ss:$16 sps:$4 sm:$0xff]   ;;  %v16469_v7 = vld [vmem:[#allocation8 + $0x18c] ss:$16 sps:$4 sm:$0xff]   ;;  %v16483_v15 = vld [vmem:[#allocation8 + $0x1e4] ss:$16 sps:$4 sm:$0xff]  }
  0xbb   :  { %v16467_v8 = vld [vmem:[#allocation8 + $0x188] ss:$16 sps:$4 sm:$0xff]   ;;  %v16475_v9 = vld [vmem:[#allocation8 + $0x1ac] ss:$16 sps:$4 sm:$0xff]   ;;  %v16488_v18 = vld [vmem:[#allocation8 + $0x1e0] ss:$16 sps:$4 sm:$0xff]  }
  0xbc   :  { %269 = vmatpush1.bf16.msra.mxu0 %v16389_v21  ;;  %718 = vmatpush1.bf16.msra.mxu1 %v16428_v33  ;;  %v16473_v10 = vld [vmem:[#allocation8 + $0x1a8] ss:$16 sps:$4 sm:$0xff]   ;;  %v16481_v12 = vld [vmem:[#allocation8 + $0x1cc] ss:$16 sps:$4 sm:$0xff]   ;;  %s14260_s3 = sshll.u32 %s16791_s8, 4  ;;  %s14261_s3 = int_to_ptr.vmem [resolvable:$true] %s14260_s3 }
  0xbd   :  { %270 = vmatprep.subr.bf16.mxu0 %v16390_v22  ;;  %719 = vmatprep.subr.bf16.mxu1 %v16429_v34  ;;  %v16479_v13 = vld [vmem:[#allocation8 + $0x1c8] ss:$16 sps:$4 sm:$0xff]   ;;  %v16487_v16 = vld [vmem:[#allocation8 + $0x1ec] ss:$16 sps:$4 sm:$0xff]   ;;  %s16738_s24 = scalar_lea.vmem %s14261_s3, 384  ;;  %p16743_p3 = scmp.lt.s32.totalorder %s14261_s3, %s14261_s3 }
  0xbe   :  { %v16485_v17 = vld [vmem:[#allocation8 + $0x1e8] ss:$16 sps:$4 sm:$0xff]   ;;  %v798_v21 = vld [vmem:[#allocation11 + $0x8] sm:$0xff]  ;;  %p16739_p2 = scmp.ne.s32.totalorder %s14261_s3, %s16738_s24  ;;  %p16744_p4 = scmp.lt.s32.totalorder %s16738_s24, %s16738_s24 }
  0xbf   :  { %v797_v19 = vld [vmem:[#allocation11] sm:$0xff]  ;;  %v802_v24 = vld [vmem:[#allocation11 + $0x28] sm:$0xff] }
  0xc0   :  { %271 = vmatpush1.bf16.msra.mxu0 %v16392_v25  ;;  %720 = vmatpush1.bf16.msra.mxu1 %v16434_v37  ;;  %v801_v20 = vld [vmem:[#allocation11 + $0x20] sm:$0xff]  ;;  %v14355_v25 = vcombine.low %v798_v21, %v802_v24  ;;  %v14356_v26 = vcombine.high %v798_v21, %v802_v24  ;;  %v850_v21 = vld [vmem:[#allocation11 + $0x1a8] sm:$0xff]  ;;  %p16745_p5 = por %p16744_p4, %p16743_p3 }
  0xc1   :  { %748 = vmatprep.subr.bf16.mxu0 %v16397_v27  ;;  %721 = vmatprep.subr.bf16.mxu1 %v16435_v38  ;;  %v14353_v22 = vcombine.low %v797_v19, %v801_v20  ;;  %v14354_v23 = vcombine.high %v797_v19, %v801_v20  ;;  %v166_v27 = vlaneseq  ;;  %v849_v19 = vld [vmem:[#allocation11 + $0x1a0] sm:$0xff]  ;;  %v846_v20 = vld [vmem:[#allocation11 + $0x188] sm:$0xff] }
  0xc2   :  { %p16746_p6 = pnand %p16745_p5, %p16739_p2 }
  0xc3   :  { %289 = vmatmul.mubr.bf16.vlgmr.msra.gmra.mrb[0].mxu0 %v147_v30  ;;  %v16950_v28 = vshrl.u32 %v166_v27, 7  ;;  %v164_v30 = vld [vmem:[#allocation7] sm:$0x3]  ;;  %v857_v27 = vld [vmem:[#allocation11 + $0x1e0] sm:$0xff] }
  0xc4   :  { %749 = vmatpush1.bf16.msra.mxu0 %v16395_v31  ;;  %722 = vmatpush1.bf16.msra.mxu1 %v16440_v41  ;;  %v805_v41 = vld [vmem:[#allocation11 + $0x40] sm:$0xff] }
  0xc5   :  { %750 = vmatprep.subr.bf16.mxu0 %v16403_v32  ;;  %723 = vmatprep.subr.bf16.mxu1 %v16441_v42  ;;  %v16953_v29 = vsub.s32 0, %v16950_v28  ;;  %v16956_v31 = vsub.s32 1, %v16950_v28 }
  0xc7   :  { %v169_v32 = vrot.slane %v164_v30, %v16953_v29  ;;  %v173_v33 = vrot.slane %v164_v30, %v16956_v31  ;;  %v854_v30 = vld [vmem:[#allocation11 + $0x1c8] sm:$0xff] }
  0xc8   :  { %751 = vmatpush1.bf16.msra.mxu0 %v16401_v35  ;;  %724 = vmatpush1.bf16.msra.mxu1 %v16446_v45  ;;  %v810_v45 = vld [vmem:[#allocation11 + $0x68] sm:$0xff] }
  0xc9   :  { %752 = vmatprep.subr.bf16.mxu0 %v16409_v36  ;;  %725 = vmatprep.subr.bf16.mxu1 %v16447_v46 }
  0xcc   :  { %753 = vmatpush1.bf16.msra.mxu0 %v16407_v39  ;;  %726 = vmatpush1.bf16.msra.mxu1 %v16452_v48 }
  0xcd   :  { %754 = vmatprep.subr.bf16.mxu0 %v16415_v40  ;;  %727 = vmatprep.subr.bf16.mxu1 %v16453_v50  ;;  %v813_v50 = vld [vmem:[#allocation11 + $0x80] sm:$0xff] }
  0xd0   :  { %755 = vmatpush1.bf16.msra.mxu0 %v16413_v43  ;;  %728 = vmatpush1.bf16.msra.mxu1 %v16458_v52  ;;  %v809_v43 = vld [vmem:[#allocation11 + $0x60] sm:$0xff]  ;;  %v814_v52 = vld [vmem:[#allocation11 + $0x88] sm:$0xff] }
  0xd1   :  { %756 = vmatprep.subr.bf16.mxu0 %v16421_v44  ;;  %729 = vmatprep.subr.bf16.mxu1 %v16459_v54  ;;  %v806_v44 = vld [vmem:[#allocation11 + $0x48] sm:$0xff]  ;;  %v14362_v48 = vcombine.high %v805_v41, %v809_v43  ;;  %v14361_v54 = vcombine.low %v805_v41, %v809_v43 }
  0xd4   :  { %757 = vmatpush1.bf16.msra.mxu0 %v16419_v47  ;;  %730 = vmatpush1.bf16.msra.mxu1 %v16464_v56 }
  0xd5   :  { %758 = vmatprep.subr.bf16.mxu0 %v16427_v49  ;;  %731 = vmatprep.subr.bf16.mxu1 %v16465_v58  ;;  %v14364_v49 = vcombine.high %v806_v44, %v810_v45  ;;  %v821_v58 = vld [vmem:[#allocation11 + $0xc0] sm:$0xff] }
  0xd8   :  { %759 = vmatpush1.bf16.msra.mxu0 %v16425_v51  ;;  %732 = vmatpush1.bf16.msra.mxu1 %v16470_v60  ;;  %v817_v51 = vld [vmem:[#allocation11 + $0xa0] sm:$0xff]  ;;  %v822_v60 = vld [vmem:[#allocation11 + $0xc8] sm:$0xff] }
  0xd9   :  { %760 = vmatprep.subr.bf16.mxu0 %v16433_v53  ;;  %733 = vmatprep.subr.bf16.mxu1 %v16471_v62  ;;  %v818_v53 = vld [vmem:[#allocation11 + $0xa8] sm:$0xff]  ;;  %v14370_v56 = vcombine.high %v813_v50, %v817_v51  ;;  %v14369_v62 = vcombine.low %v813_v50, %v817_v51 }
  0xdc   :  { %761 = vmatpush1.bf16.msra.mxu0 %v16431_v55  ;;  %734 = vmatpush1.bf16.msra.mxu1 %v16476_v0  ;;  %v14363_v55 = vcombine.low %v806_v44, %v810_v45  ;;  %v869_v45 = vld [vmem:[#allocation11 + $0x240] sm:$0xff] }
  0xdd   :  { %762 = vmatprep.subr.bf16.mxu0 %v16439_v57  ;;  %735 = vmatprep.subr.bf16.mxu1 %v16477_v11  ;;  %v14372_v57 = vcombine.high %v814_v52, %v818_v53  ;;  %v841_v11 = vld [vmem:[#allocation11 + $0x160] sm:$0xff] }
  0xe0   :  { %763 = vmatpush1.bf16.msra.mxu0 %v16437_v59  ;;  %736 = vmatpush1.bf16.msra.mxu1 %v16482_v14  ;;  %v825_v59 = vld [vmem:[#allocation11 + $0xe0] sm:$0xff] }
  0xe1   :  { %764 = vmatprep.subr.bf16.mxu0 %v16445_v61  ;;  %737 = vmatprep.subr.bf16.mxu1 %v16483_v15  ;;  %v826_v61 = vld [vmem:[#allocation11 + $0xe8] sm:$0xff]  ;;  %v14378_v0 = vcombine.high %v821_v58, %v825_v59 }
  0xe4   :  { %765 = vmatpush1.bf16.msra.mxu0 %v16443_v63  ;;  %738 = vmatpush1.bf16.msra.mxu1 %v16488_v18  ;;  %v14371_v63 = vcombine.low %v814_v52, %v818_v53  ;;  %v845_v18 = vld [vmem:[#allocation11 + $0x180] sm:$0xff] }
  0xe5   :  { %766 = vmatprep.subr.bf16.mxu0 %v16451_v1  ;;  %2375 = vmatprep.subr.bf16.mxu1 %v14354_v23  ;;  %v14380_v1 = vcombine.high %v822_v60, %v826_v61  ;;  %v14402_v24 = vcombine.high %v845_v18, %v849_v19  ;;  %v877_v53 = vld [vmem:[#allocation11 + $0x280] sm:$0xff] }
  0xe8   :  { %767 = vmatpush1.bf16.msra.mxu0 %v16449_v2  ;;  %v829_v2 = vld [vmem:[#allocation11 + $0x100] sm:$0xff] }
  0xe9   :  { %768 = vmatprep.subr.bf16.mxu0 %v16457_v3  ;;  %v833_v3 = vld [vmem:[#allocation11 + $0x120] sm:$0xff] }
  0xea   :  { %v14385_v14 = vcombine.low %v829_v2, %v833_v3 }
  0xec   :  { %769 = vmatpush1.bf16.msra.mxu0 %v16455_v4  ;;  %v830_v4 = vld [vmem:[#allocation11 + $0x108] sm:$0xff] }
  0xed   :  { %770 = vmatprep.subr.bf16.mxu0 %v16463_v5  ;;  %v834_v5 = vld [vmem:[#allocation11 + $0x128] sm:$0xff] }
  0xee   :  { %v14387_v15 = vcombine.low %v830_v4, %v834_v5 }
  0xf0   :  { %771 = vmatpush1.bf16.msra.mxu0 %v16461_v6  ;;  %v14377_v6 = vcombine.low %v821_v58, %v825_v59 }
  0xf1   :  { %772 = vmatprep.subr.bf16.mxu0 %v16469_v7  ;;  %v14379_v7 = vcombine.low %v822_v60, %v826_v61  ;;  %v885_v61 = vld [vmem:[#allocation11 + $0x2c0] sm:$0xff] }
  0xf4   :  { %773 = vmatpush1.bf16.msra.mxu0 %v16467_v8  ;;  %v14386_v8 = vcombine.high %v829_v2, %v833_v3 }
  0xf5   :  { %774 = vmatprep.subr.bf16.mxu0 %v16475_v9  ;;  %v14388_v9 = vcombine.high %v830_v4, %v834_v5  ;;  %v893_v5 = vld [vmem:[#allocation11 + $0x300] sm:$0xff] }
  0xf8   :  { %775 = vmatpush1.bf16.msra.mxu0 %v16473_v10  ;;  %v837_v10 = vld [vmem:[#allocation11 + $0x140] sm:$0xff] }
  0xf9   :  { %776 = vmatprep.subr.bf16.mxu0 %v16481_v12  ;;  %v838_v12 = vld [vmem:[#allocation11 + $0x148] sm:$0xff] }
  0xfc   :  { %777 = vmatpush1.bf16.msra.mxu0 %v16479_v13  ;;  %v842_v13 = vld [vmem:[#allocation11 + $0x168] sm:$0xff] }
  0xfd   :  { %778 = vmatprep.subr.bf16.mxu0 %v16487_v16  ;;  %v14394_v16 = vcombine.high %v837_v10, %v841_v11  ;;  %v14395_v23 = vcombine.low %v838_v12, %v842_v13 }
 0x100   :  { %779 = vmatpush1.bf16.msra.mxu0 %v16485_v17  ;;  %v14396_v17 = vcombine.high %v838_v12, %v842_v13  ;;  %v901_v13 = vld [vmem:[#allocation11 + $0x340] sm:$0xff] }
 0x101   :  { %2457 = vmatprep.subr.bf16.mxu0 %v14356_v26  ;;  %v853_v26 = vld [vmem:[#allocation11 + $0x1c0] sm:$0xff] }
 0x102   :  { %v14409_v41 = vcombine.low %v853_v26, %v857_v27 }
 0x196   :  { %v290_v34 = vpop.f32.mrb[0].mxu0 }
 0x197   :  { %v291_v35 = vadd.f32 %v290_v34, %v169_v32  ;;  %v292_v36 = vpop.f32.mrb[1].mxu0  ;;  %v858_v32 = vld [vmem:[#allocation11 + $0x1e8] sm:$0xff]  ;;  %v14403_v34 = vcombine.low %v846_v20, %v850_v21 }
 0x198   :  { %v293_v37 = vadd.f32 %v292_v36, %v173_v33  ;;  %v294_v38 = vpop.f32.mrb[2].mxu0  ;;  %v14401_v33 = vcombine.low %v845_v18, %v849_v19  ;;  %v14412_v36 = vcombine.high %v854_v30, %v858_v32 }
 0x199   :  { %v297_v39 = vmax.f32 %v291_v35, 0.0  ;;  %v295_v40 = vpop.f32.mrb[3].mxu0  ;;  %v14410_v35 = vcombine.high %v853_v26, %v857_v27  ;;  %v865_v38 = vld [vmem:[#allocation11 + $0x220] sm:$0xff]  ;;  %v914_v27 = vld [vmem:[#allocation11 + $0x3a8] sm:$0xff] }
 0x19a   :  { %v298_v42 = vmax.f32 %v293_v37, 0.0  ;;  %v861_v37 = vld [vmem:[#allocation11 + $0x200] sm:$0xff]  ;;  %v866_v40 = vld [vmem:[#allocation11 + $0x228] sm:$0xff] }
 0x19b   :  { %v299_v47 = vpack.c.bf16 %v297_v39, %v297_v39  ;;  %v862_v39 = vld [vmem:[#allocation11 + $0x208] sm:$0xff]  ;;  %v14418_v43 = vcombine.high %v861_v37, %v865_v38 }
 0x19c   :  { %v300_v46 = vpack.c.bf16 %v298_v42, %v298_v42  ;;  %v14411_v42 = vcombine.low %v854_v30, %v858_v32  ;;  %v14420_v44 = vcombine.high %v862_v39, %v866_v40  ;;  %v14419_v50 = vcombine.low %v862_v39, %v866_v40 }
 0x19e   :  { %739 = vmatprep.mubr.bf16.mxu1 %v300_v46  ;;  %780 = vmatprep.mubr.bf16.mxu0 %v300_v46  ;;  %v873_v46 = vld [vmem:[#allocation11 + $0x260] sm:$0xff] }
 0x19f   :  { %740 = vmatmul.mubr.bf16.vlgmr.msra.gmra.mrb[0].mxu1 %v299_v47  ;;  %781 = vmatmul.mubr.bf16.vlgmr.msra.gmra.mrb[4].mxu0 %v299_v47  ;;  %v870_v47 = vld [vmem:[#allocation11 + $0x248] sm:$0xff]  ;;  %v14426_v51 = vcombine.high %v869_v45, %v873_v46 }
 0x1a0   :  { %2376 = vmatpush1.bf16.msra.mxu1 %v14353_v22  ;;  %2458 = vmatpush1.bf16.msra.mxu0 %v14355_v25  ;;  %v14393_v22 = vcombine.low %v837_v10, %v841_v11  ;;  %v14404_v25 = vcombine.high %v846_v20, %v850_v21 }
 0x1a1   :  { %2377 = vmatprep.subr.bf16.mxu1 %v14362_v48  ;;  %2459 = vmatprep.subr.bf16.mxu0 %v14364_v49  ;;  %v874_v48 = vld [vmem:[#allocation11 + $0x268] sm:$0xff]  ;;  %v14417_v49 = vcombine.low %v861_v37, %v865_v38 }
 0x1a2   :  { %v14428_v52 = vcombine.high %v870_v47, %v874_v48  ;;  %v14427_v58 = vcombine.low %v870_v47, %v874_v48  ;;  %v922_v38 = vld [vmem:[#allocation11 + $0x3e8] sm:$0xff] }
 0x1a4   :  { %2378 = vmatpush1.bf16.msra.mxu1 %v14361_v54  ;;  %2460 = vmatpush1.bf16.msra.mxu0 %v14363_v55  ;;  %v881_v54 = vld [vmem:[#allocation11 + $0x2a0] sm:$0xff]  ;;  %v878_v55 = vld [vmem:[#allocation11 + $0x288] sm:$0xff] }
 0x1a5   :  { %2379 = vmatprep.subr.bf16.mxu1 %v14370_v56  ;;  %2461 = vmatprep.subr.bf16.mxu0 %v14372_v57  ;;  %v882_v56 = vld [vmem:[#allocation11 + $0x2a8] sm:$0xff]  ;;  %v14425_v57 = vcombine.low %v869_v45, %v873_v46  ;;  %v14434_v59 = vcombine.high %v877_v53, %v881_v54 }
 0x1a6   :  { %v14436_v60 = vcombine.high %v878_v55, %v882_v56  ;;  %v14435_v2 = vcombine.low %v878_v55, %v882_v56  ;;  %v930_v46 = vld [vmem:[#allocation11 + $0x428] sm:$0xff] }
 0x1a8   :  { %2380 = vmatpush1.bf16.msra.mxu1 %v14369_v62  ;;  %2462 = vmatpush1.bf16.msra.mxu0 %v14371_v63  ;;  %v889_v62 = vld [vmem:[#allocation11 + $0x2e0] sm:$0xff]  ;;  %v886_v63 = vld [vmem:[#allocation11 + $0x2c8] sm:$0xff] }
 0x1a9   :  { %2381 = vmatprep.subr.bf16.mxu1 %v14378_v0  ;;  %2463 = vmatprep.subr.bf16.mxu0 %v14380_v1  ;;  %v890_v0 = vld [vmem:[#allocation11 + $0x2e8] sm:$0xff]  ;;  %v14433_v1 = vcombine.low %v877_v53, %v881_v54  ;;  %v14442_v3 = vcombine.high %v885_v61, %v889_v62 }
 0x1aa   :  { %v14444_v4 = vcombine.high %v886_v63, %v890_v0  ;;  %v14443_v10 = vcombine.low %v886_v63, %v890_v0 }
 0x1ac   :  { %2382 = vmatpush1.bf16.msra.mxu1 %v14377_v6  ;;  %2464 = vmatpush1.bf16.msra.mxu0 %v14379_v7  ;;  %v897_v6 = vld [vmem:[#allocation11 + $0x320] sm:$0xff]  ;;  %v894_v7 = vld [vmem:[#allocation11 + $0x308] sm:$0xff] }
 0x1ad   :  { %2383 = vmatprep.subr.bf16.mxu1 %v14386_v8  ;;  %2465 = vmatprep.subr.bf16.mxu0 %v14388_v9  ;;  %v898_v8 = vld [vmem:[#allocation11 + $0x328] sm:$0xff]  ;;  %v14441_v9 = vcombine.low %v885_v61, %v889_v62  ;;  %v14450_v11 = vcombine.high %v893_v5, %v897_v6 }
 0x1ae   :  { %v14452_v12 = vcombine.high %v894_v7, %v898_v8  ;;  %v14451_v18 = vcombine.low %v894_v7, %v898_v8  ;;  %v934_v7 = vld [vmem:[#allocation11 + $0x448] sm:$0xff] }
 0x1af   :  { %v938_v8 = vld [vmem:[#allocation11 + $0x468] sm:$0xff] }
 0x1b0   :  { %2384 = vmatpush1.bf16.msra.mxu1 %v14385_v14  ;;  %2466 = vmatpush1.bf16.msra.mxu0 %v14387_v15  ;;  %v905_v14 = vld [vmem:[#allocation11 + $0x360] sm:$0xff]  ;;  %v902_v15 = vld [vmem:[#allocation11 + $0x348] sm:$0xff] }
 0x1b1   :  { %2385 = vmatprep.subr.bf16.mxu1 %v14394_v16  ;;  %2467 = vmatprep.subr.bf16.mxu0 %v14396_v17  ;;  %v906_v16 = vld [vmem:[#allocation11 + $0x368] sm:$0xff]  ;;  %v14449_v17 = vcombine.low %v893_v5, %v897_v6  ;;  %v14458_v19 = vcombine.high %v901_v13, %v905_v14  ;;  %v14457_v21 = vcombine.low %v901_v13, %v905_v14  ;;  %v937_v6 = vld [vmem:[#allocation11 + $0x460] sm:$0xff] }
 0x1b2   :  { %v14460_v20 = vcombine.high %v902_v15, %v906_v16  ;;  %v14492_v13 = vcombine.high %v934_v7, %v938_v8  ;;  %v945_v14 = vld [vmem:[#allocation11 + $0x4a0] sm:$0xff] }
 0x1b4   :  { %2386 = vmatpush1.bf16.msra.mxu1 %v14393_v22  ;;  %2468 = vmatpush1.bf16.msra.mxu0 %v14395_v23  ;;  %v14459_v22 = vcombine.low %v902_v15, %v906_v16  ;;  %v909_v23 = vld [vmem:[#allocation11 + $0x380] sm:$0xff]  ;;  %v942_v15 = vld [vmem:[#allocation11 + $0x488] sm:$0xff] }
 0x1b5   :  { %2387 = vmatprep.subr.bf16.mxu1 %v14402_v24  ;;  %2469 = vmatprep.subr.bf16.mxu0 %v14404_v25  ;;  %v913_v24 = vld [vmem:[#allocation11 + $0x3a0] sm:$0xff]  ;;  %v910_v25 = vld [vmem:[#allocation11 + $0x388] sm:$0xff] }
 0x1b6   :  { %v14466_v26 = vcombine.high %v909_v23, %v913_v24  ;;  %v14465_v30 = vcombine.low %v909_v23, %v913_v24  ;;  %v14467_v32 = vcombine.low %v910_v25, %v914_v27  ;;  %v946_v16 = vld [vmem:[#allocation11 + $0x4a8] sm:$0xff]  ;;  %v953_v23 = vld [vmem:[#allocation11 + $0x4e0] sm:$0xff] }
 0x1b7   :  { %v950_v24 = vld [vmem:[#allocation11 + $0x4c8] sm:$0xff] }
 0x1b8   :  { %2388 = vmatpush1.bf16.msra.mxu1 %v14401_v33  ;;  %2470 = vmatpush1.bf16.msra.mxu0 %v14403_v34  ;;  %v14468_v33 = vcombine.high %v910_v25, %v914_v27  ;;  %v917_v34 = vld [vmem:[#allocation11 + $0x3c0] sm:$0xff]  ;;  %v954_v25 = vld [vmem:[#allocation11 + $0x4e8] sm:$0xff]  ;;  %v14499_v27 = vcombine.low %v942_v15, %v946_v16 }
 0x1b9   :  { %2389 = vmatprep.subr.bf16.mxu1 %v14410_v35  ;;  %2471 = vmatprep.subr.bf16.mxu0 %v14412_v36  ;;  %v921_v35 = vld [vmem:[#allocation11 + $0x3e0] sm:$0xff]  ;;  %v918_v36 = vld [vmem:[#allocation11 + $0x3c8] sm:$0xff] }
 0x1ba   :  { %v14474_v37 = vcombine.high %v917_v34, %v921_v35  ;;  %v14473_v39 = vcombine.low %v917_v34, %v921_v35  ;;  %v14475_v40 = vcombine.low %v918_v36, %v922_v38  ;;  %v961_v34 = vld [vmem:[#allocation11 + $0x520] sm:$0xff]  ;;  %v958_v35 = vld [vmem:[#allocation11 + $0x508] sm:$0xff] }
 0x1bc   :  { %2390 = vmatpush1.bf16.msra.mxu1 %v14409_v41  ;;  %2472 = vmatpush1.bf16.msra.mxu0 %v14411_v42  ;;  %v14476_v41 = vcombine.high %v918_v36, %v922_v38  ;;  %v925_v42 = vld [vmem:[#allocation11 + $0x400] sm:$0xff]  ;;  %v962_v36 = vld [vmem:[#allocation11 + $0x528] sm:$0xff]  ;;  %v14507_v38 = vcombine.low %v950_v24, %v954_v25 }
 0x1bd   :  { %2391 = vmatprep.subr.bf16.mxu1 %v14418_v43  ;;  %2473 = vmatprep.subr.bf16.mxu0 %v14420_v44  ;;  %v929_v43 = vld [vmem:[#allocation11 + $0x420] sm:$0xff]  ;;  %v926_v44 = vld [vmem:[#allocation11 + $0x408] sm:$0xff] }
 0x1be   :  { %v14482_v45 = vcombine.high %v925_v42, %v929_v43  ;;  %v14481_v47 = vcombine.low %v925_v42, %v929_v43  ;;  %v14483_v48 = vcombine.low %v926_v44, %v930_v46  ;;  %v969_v42 = vld [vmem:[#allocation11 + $0x560] sm:$0xff]  ;;  %v966_v43 = vld [vmem:[#allocation11 + $0x548] sm:$0xff] }
 0x1c0   :  { %2392 = vmatpush1.bf16.msra.mxu1 %v14417_v49  ;;  %2474 = vmatpush1.bf16.msra.mxu0 %v14419_v50  ;;  %v14484_v49 = vcombine.high %v926_v44, %v930_v46  ;;  %v16960_v50 = vld [vmem:[#allocation10] sm:$0xf]  ;;  %v970_v44 = vld [vmem:[#allocation11 + $0x568] sm:$0xff]  ;;  %v14515_v46 = vcombine.low %v958_v35, %v962_v36 }
 0x1c1   :  { %2393 = vmatprep.subr.bf16.mxu1 %v14426_v51  ;;  %2475 = vmatprep.subr.bf16.mxu0 %v14428_v52  ;;  %v16963_v51 = vsub.s32 3, %v16950_v28  ;;  %v370_v52 = vrot.slane %v16960_v50, %v16953_v29  ;;  %v374_v53 = vrot.slane %v16960_v50, %v16956_v31 }
 0x1c3   :  { %v382_v54 = vrot.slane %v16960_v50, %v16963_v51 }
 0x1c4   :  { %2394 = vmatpush1.bf16.msra.mxu1 %v14425_v57  ;;  %2476 = vmatpush1.bf16.msra.mxu0 %v14427_v58 }
 0x1c5   :  { %2395 = vmatprep.subr.bf16.mxu1 %v14434_v59  ;;  %2477 = vmatprep.subr.bf16.mxu0 %v14436_v60 }
 0x1c8   :  { %2396 = vmatpush1.bf16.msra.mxu1 %v14433_v1  ;;  %2478 = vmatpush1.bf16.msra.mxu0 %v14435_v2 }
 0x1c9   :  { %2397 = vmatprep.subr.bf16.mxu1 %v14442_v3  ;;  %2479 = vmatprep.subr.bf16.mxu0 %v14444_v4  ;;  %v933_v4 = vld [vmem:[#allocation11 + $0x440] sm:$0xff] }
 0x1cc   :  { %2398 = vmatpush1.bf16.msra.mxu1 %v14441_v9  ;;  %2480 = vmatpush1.bf16.msra.mxu0 %v14443_v10 }
 0x1cd   :  { %2399 = vmatprep.subr.bf16.mxu1 %v14450_v11  ;;  %2481 = vmatprep.subr.bf16.mxu0 %v14452_v12  ;;  %v941_v11 = vld [vmem:[#allocation11 + $0x480] sm:$0xff]  ;;  %v14490_v12 = vcombine.high %v933_v4, %v937_v6 }
 0x1d0   :  { %2400 = vmatpush1.bf16.msra.mxu1 %v14449_v17  ;;  %2482 = vmatpush1.bf16.msra.mxu0 %v14451_v18  ;;  %v14489_v18 = vcombine.low %v933_v4, %v937_v6  ;;  %v989_v4 = vld [vmem:[#allocation11 + $0x600] sm:$0xff]  ;;  %v990_v6 = vld [vmem:[#allocation11 + $0x608] sm:$0xff] }
 0x1d1   :  { %2401 = vmatprep.subr.bf16.mxu1 %v14458_v19  ;;  %2483 = vmatprep.subr.bf16.mxu0 %v14460_v20  ;;  %v14491_v19 = vcombine.low %v934_v7, %v938_v8  ;;  %v14498_v20 = vcombine.high %v941_v11, %v945_v14  ;;  %v994_v7 = vld [vmem:[#allocation11 + $0x628] sm:$0xff] }
 0x1d4   :  { %2402 = vmatpush1.bf16.msra.mxu1 %v14457_v21  ;;  %2484 = vmatpush1.bf16.msra.mxu0 %v14459_v22  ;;  %v14500_v21 = vcombine.high %v942_v15, %v946_v16  ;;  %v949_v22 = vld [vmem:[#allocation11 + $0x4c0] sm:$0xff]  ;;  %v998_v16 = vld [vmem:[#allocation11 + $0x648] sm:$0xff] }
 0x1d5   :  { %2403 = vmatprep.subr.bf16.mxu1 %v14466_v26  ;;  %2485 = vmatprep.subr.bf16.mxu0 %v14468_v33  ;;  %v14497_v26 = vcombine.low %v941_v11, %v945_v14  ;;  %v957_v33 = vld [vmem:[#allocation11 + $0x500] sm:$0xff] }
 0x1d6   :  { %v997_v14 = vld [vmem:[#allocation11 + $0x640] sm:$0xff] }
 0x1d7   :  { %v1001_v15 = vld [vmem:[#allocation11 + $0x660] sm:$0xff] }
 0x1d8   :  { %2404 = vmatpush1.bf16.msra.mxu1 %v14465_v30  ;;  %2486 = vmatpush1.bf16.msra.mxu0 %v14467_v32  ;;  %v14506_v30 = vcombine.high %v949_v22, %v953_v23  ;;  %v14508_v32 = vcombine.high %v950_v24, %v954_v25  ;;  %v1009_v24 = vld [vmem:[#allocation11 + $0x6a0] sm:$0xff]  ;;  %v1006_v25 = vld [vmem:[#allocation11 + $0x688] sm:$0xff] }
 0x1d9   :  { %2405 = vmatprep.subr.bf16.mxu1 %v14474_v37  ;;  %2487 = vmatprep.subr.bf16.mxu0 %v14476_v41  ;;  %v14505_v37 = vcombine.low %v949_v22, %v953_v23  ;;  %v965_v41 = vld [vmem:[#allocation11 + $0x540] sm:$0xff] }
 0x1da   :  { %v1005_v23 = vld [vmem:[#allocation11 + $0x680] sm:$0xff] }
 0x1dc   :  { %2406 = vmatpush1.bf16.msra.mxu1 %v14473_v39  ;;  %2488 = vmatpush1.bf16.msra.mxu0 %v14475_v40  ;;  %v14514_v39 = vcombine.high %v957_v33, %v961_v34  ;;  %v14516_v40 = vcombine.high %v958_v35, %v962_v36  ;;  %v1017_v35 = vld [vmem:[#allocation11 + $0x6e0] sm:$0xff]  ;;  %v1014_v36 = vld [vmem:[#allocation11 + $0x6c8] sm:$0xff] }
 0x1dd   :  { %2416 = vmatprep.subr.bf16.mxu1 %v14482_v45  ;;  %2498 = vmatprep.subr.bf16.mxu0 %v14484_v49  ;;  %v14513_v45 = vcombine.low %v957_v33, %v961_v34  ;;  %v973_v49 = vld [vmem:[#allocation11 + $0x580] sm:$0xff] }
 0x1de   :  { %v1013_v34 = vld [vmem:[#allocation11 + $0x6c0] sm:$0xff] }
 0x272   :  { %v741_v55 = vpop.f32.mrb[0].mxu1  ;;  %v16971_v56 = vpop.f32.mrb[4].mxu0 }
 0x273   :  { %v742_v57 = vadd.f32 %v741_v55, %v370_v52  ;;  %v743_v58 = vpop.f32.mrb[1].mxu1  ;;  %v784_v59 = vpop.f32.mrb[5].mxu0  ;;  %v977_v52 = vld [vmem:[#allocation11 + $0x5a0] sm:$0xff]  ;;  %v14521_v55 = vcombine.low %v965_v41, %v969_v42 }
 0x274   :  { %v744_v60 = vadd.f32 %v743_v58, %v374_v53  ;;  %v785_v61 = vadd.f32 %v784_v59, %v382_v54  ;;  %v745_v62 = vpop.f32.mrb[2].mxu1  ;;  %v786_v63 = vpop.f32.mrb[6].mxu0  ;;  %v974_v53 = vld [vmem:[#allocation11 + $0x588] sm:$0xff]  ;;  %v14530_v58 = vcombine.high %v973_v49, %v977_v52 }
 0x275   :  { %v789_v0 = vmax.f32 %v742_v57, 0.0  ;;  %v746_v1 = vpop.f32.mrb[3].mxu1  ;;  %v787_v2 = vpop.f32.mrb[7].mxu0  ;;  %v978_v54 = vld [vmem:[#allocation11 + $0x5a8] sm:$0xff]  ;;  %v14523_v57 = vcombine.low %v966_v43, %v970_v44 }
 0x276   :  { %v790_v3 = vmax.f32 %v744_v60, 0.0  ;;  %v792_v5 = vmax.f32 %v785_v61, 0.0  ;;  %v14532_v59 = vcombine.high %v974_v53, %v978_v54  ;;  %v981_v60 = vld [vmem:[#allocation11 + $0x5c0] sm:$0xff]  ;;  %v982_v62 = vld [vmem:[#allocation11 + $0x5c8] sm:$0xff]  ;;  %v14531_v1 = vcombine.low %v974_v53, %v978_v54 }
 0x277   :  { %v16975_v10 = vpack.c.bf16 %v789_v0, %v789_v0  ;;  %v985_v61 = vld [vmem:[#allocation11 + $0x5e0] sm:$0xff]  ;;  %v986_v63 = vld [vmem:[#allocation11 + $0x5e8] sm:$0xff]  ;;  %v14529_v0 = vcombine.low %v973_v49, %v977_v52 }
 0x278   :  { %v16973_v9 = vpack.c.bf16 %v790_v3, %v790_v3  ;;  %v16979_v17 = vpack.c.bf16 %v792_v5, %v792_v5  ;;  %v14538_v2 = vcombine.high %v981_v60, %v985_v61  ;;  %v14540_v3 = vcombine.high %v982_v62, %v986_v63  ;;  %v993_v5 = vld [vmem:[#allocation11 + $0x620] sm:$0xff]  ;;  %v1030_v54 = vld [vmem:[#allocation11 + $0x748] sm:$0xff] }
 0x279   :  { %v14537_v8 = vcombine.low %v981_v60, %v985_v61  ;;  %v14539_v11 = vcombine.low %v982_v62, %v986_v63  ;;  %v1029_v52 = vld [vmem:[#allocation11 + $0x740] sm:$0xff] }
 0x27a   :  { %2407 = vmatprep.mubr.bf16.mxu1 %v16973_v9  ;;  %2489 = vmatprep.mubr.bf16.mxu0 %v16973_v9  ;;  %v1033_v53 = vld [vmem:[#allocation11 + $0x760] sm:$0xff] }
 0x27b   :  { %2408 = vmatmul.mubr.bf16.vlgmr.msra.gmra.mrb[4].mxu1 %v16975_v10  ;;  %2490 = vmatmul.mubr.bf16.vlgmr.msra.gmra.mrb[8].mxu0 %v16975_v10  ;;  %v14586_v60 = vcombine.high %v1029_v52, %v1033_v53  ;;  %v1037_v62 = vld [vmem:[#allocation11 + $0x780] sm:$0xff] }
 0x27c   :  { %2417 = vmatpush1.bf16.msra.mxu1 %v14481_v47  ;;  %2499 = vmatpush1.bf16.msra.mxu0 %v14483_v48  ;;  %v14522_v47 = vcombine.high %v965_v41, %v969_v42  ;;  %v14524_v48 = vcombine.high %v966_v43, %v970_v44  ;;  %v1021_v42 = vld [vmem:[#allocation11 + $0x700] sm:$0xff]  ;;  %v1022_v44 = vld [vmem:[#allocation11 + $0x708] sm:$0xff] }
 0x27d   :  { %2448 = vmatprep.mubr.bf16.mxu1 %v16979_v17  ;;  %2530 = vmatprep.mubr.bf16.mxu0 %v16979_v17  ;;  %v1025_v43 = vld [vmem:[#allocation11 + $0x720] sm:$0xff] }
 0x27e   :  { %2418 = vmatprep.subr.bf16.mxu1 %v14490_v12  ;;  %2500 = vmatprep.subr.bf16.mxu0 %v14492_v13  ;;  %v14546_v12 = vcombine.high %v989_v4, %v993_v5  ;;  %v14548_v13 = vcombine.high %v990_v6, %v994_v7  ;;  %v1041_v63 = vld [vmem:[#allocation11 + $0x7a0] sm:$0xff] }
 0x280   :  { %2419 = vmatpush1.bf16.msra.mxu1 %v14489_v18  ;;  %2501 = vmatpush1.bf16.msra.mxu0 %v14491_v19  ;;  %v1002_v18 = vld [vmem:[#allocation11 + $0x668] sm:$0xff]  ;;  %v14545_v19 = vcombine.low %v989_v4, %v993_v5  ;;  %v14594_v5 = vcombine.high %v1037_v62, %v1041_v63 }
 0x281   :  { %2420 = vmatprep.subr.bf16.mxu1 %v14498_v20  ;;  %2502 = vmatprep.subr.bf16.mxu0 %v14500_v21  ;;  %v14547_v20 = vcombine.low %v990_v6, %v994_v7  ;;  %v14554_v21 = vcombine.high %v997_v14, %v1001_v15  ;;  %v14556_v22 = vcombine.high %v998_v16, %v1002_v18  ;;  %v1045_v7 = vld [vmem:[#allocation11 + $0x7c0] sm:$0xff] }
 0x284   :  { %2421 = vmatpush1.bf16.msra.mxu1 %v14497_v26  ;;  %2503 = vmatpush1.bf16.msra.mxu0 %v14499_v27  ;;  %v1010_v26 = vld [vmem:[#allocation11 + $0x6a8] sm:$0xff]  ;;  %v14553_v27 = vcombine.low %v997_v14, %v1001_v15 }
 0x285   :  { %2422 = vmatprep.subr.bf16.mxu1 %v14506_v30  ;;  %2504 = vmatprep.subr.bf16.mxu0 %v14508_v32  ;;  %v14555_v30 = vcombine.low %v998_v16, %v1002_v18  ;;  %v14562_v32 = vcombine.high %v1005_v23, %v1009_v24  ;;  %v14564_v33 = vcombine.high %v1006_v25, %v1010_v26 }
 0x288   :  { %2423 = vmatpush1.bf16.msra.mxu1 %v14505_v37  ;;  %2505 = vmatpush1.bf16.msra.mxu0 %v14507_v38  ;;  %v1018_v37 = vld [vmem:[#allocation11 + $0x6e8] sm:$0xff]  ;;  %v14561_v38 = vcombine.low %v1005_v23, %v1009_v24 }
 0x289   :  { %2424 = vmatprep.subr.bf16.mxu1 %v14514_v39  ;;  %2506 = vmatprep.subr.bf16.mxu0 %v14516_v40  ;;  %v14563_v39 = vcombine.low %v1006_v25, %v1010_v26  ;;  %v14570_v40 = vcombine.high %v1013_v34, %v1017_v35  ;;  %v14572_v41 = vcombine.high %v1014_v36, %v1018_v37 }
 0x28c   :  { %2425 = vmatpush1.bf16.msra.mxu1 %v14513_v45  ;;  %2507 = vmatpush1.bf16.msra.mxu0 %v14515_v46  ;;  %v1026_v45 = vld [vmem:[#allocation11 + $0x728] sm:$0xff]  ;;  %v14569_v46 = vcombine.low %v1013_v34, %v1017_v35 }
 0x28d   :  { %2426 = vmatprep.subr.bf16.mxu1 %v14522_v47  ;;  %2508 = vmatprep.subr.bf16.mxu0 %v14524_v48  ;;  %v14571_v47 = vcombine.low %v1014_v36, %v1018_v37  ;;  %v14578_v48 = vcombine.high %v1021_v42, %v1025_v43  ;;  %v14580_v49 = vcombine.high %v1022_v44, %v1026_v45 }
 0x290   :  { %2427 = vmatpush1.bf16.msra.mxu1 %v14521_v55  ;;  %2509 = vmatpush1.bf16.msra.mxu0 %v14523_v57  ;;  %v1034_v55 = vld [vmem:[#allocation11 + $0x768] sm:$0xff]  ;;  %v14577_v57 = vcombine.low %v1021_v42, %v1025_v43 }
 0x291   :  { %2428 = vmatprep.subr.bf16.mxu1 %v14530_v58  ;;  %2510 = vmatprep.subr.bf16.mxu0 %v14532_v59  ;;  %v14579_v58 = vcombine.low %v1022_v44, %v1026_v45  ;;  %v16986_v59 = vsub.s32 2, %v16950_v28  ;;  %v14588_v61 = vcombine.high %v1030_v54, %v1034_v55 }
 0x293   :  { %v378_v4 = vrot.slane %v16960_v50, %v16986_v59  ;;  %v803_v50 = vld [vmem:[#allocation11 + $0x30] sm:$0xff] }
 0x294   :  { %2429 = vmatpush1.bf16.msra.mxu1 %v14529_v0  ;;  %2511 = vmatpush1.bf16.msra.mxu0 %v14531_v1  ;;  %v1038_v0 = vld [vmem:[#allocation11 + $0x788] sm:$0xff] }
 0x295   :  { %2430 = vmatprep.subr.bf16.mxu1 %v14538_v2  ;;  %2512 = vmatprep.subr.bf16.mxu0 %v14540_v3  ;;  %v1042_v1 = vld [vmem:[#allocation11 + $0x7a8] sm:$0xff]  ;;  %v14585_v2 = vcombine.low %v1029_v52, %v1033_v53  ;;  %v14587_v3 = vcombine.low %v1030_v54, %v1034_v55  ;;  %v783_v15 = vadd.f32 %v16971_v56, %v378_v4  ;;  %v808_v56 = vld [vmem:[#allocation11 + $0x58] sm:$0xff] }
 0x296   :  { %v14596_v6 = vcombine.high %v1038_v0, %v1042_v1  ;;  %v14595_v14 = vcombine.low %v1038_v0, %v1042_v1  ;;  %v839_v1 = vld [vmem:[#allocation11 + $0x150] sm:$0xff]  ;;  %v844_v4 = vld [vmem:[#allocation11 + $0x178] sm:$0xff] }
 0x297   :  { %v791_v24 = vmax.f32 %v783_v15, 0.0 }
 0x298   :  { %2431 = vmatpush1.bf16.msra.mxu1 %v14537_v8  ;;  %2513 = vmatpush1.bf16.msra.mxu0 %v14539_v11  ;;  %v1049_v8 = vld [vmem:[#allocation11 + $0x7e0] sm:$0xff]  ;;  %v1046_v11 = vld [vmem:[#allocation11 + $0x7c8] sm:$0xff] }
 0x299   :  { %2432 = vmatprep.subr.bf16.mxu1 %v14546_v12  ;;  %2514 = vmatprep.subr.bf16.mxu0 %v14548_v13  ;;  %v1050_v12 = vld [vmem:[#allocation11 + $0x7e8] sm:$0xff]  ;;  %v14593_v13 = vcombine.low %v1037_v62, %v1041_v63  ;;  %v14602_v16 = vcombine.high %v1045_v7, %v1049_v8  ;;  %v16991_v34 = vpack.c.bf16 %v791_v24, %v791_v24 }
 0x29a   :  { %v14604_v18 = vcombine.high %v1046_v11, %v1050_v12  ;;  %v14603_v23 = vcombine.low %v1046_v11, %v1050_v12  ;;  %v847_v11 = vld [vmem:[#allocation11 + $0x190] sm:$0xff] }
 0x29b   :  { %v851_v12 = vld [vmem:[#allocation11 + $0x1b0] sm:$0xff] }
 0x29c   :  { %2433 = vmatpush1.bf16.msra.mxu1 %v14545_v19  ;;  %2515 = vmatpush1.bf16.msra.mxu0 %v14547_v20  ;;  %v799_v19 = vld [vmem:[#allocation11 + $0x10] sm:$0xff]  ;;  %v800_v20 = vld [vmem:[#allocation11 + $0x18] sm:$0xff] }
 0x29d   :  { %2434 = vmatprep.subr.bf16.mxu1 %v14554_v21  ;;  %2516 = vmatprep.subr.bf16.mxu0 %v14556_v22  ;;  %v804_v21 = vld [vmem:[#allocation11 + $0x38] sm:$0xff]  ;;  %v14601_v22 = vcombine.low %v1045_v7, %v1049_v8  ;;  %v14358_v25 = vcombine.high %v799_v19, %v803_v50 }
 0x29e   :  { %v14360_v26 = vcombine.high %v800_v20, %v804_v21  ;;  %v14359_v35 = vcombine.low %v800_v20, %v804_v21  ;;  %v859_v20 = vld [vmem:[#allocation11 + $0x1f0] sm:$0xff]  ;;  %v856_v21 = vld [vmem:[#allocation11 + $0x1d8] sm:$0xff] }
 0x2a0   :  { %2435 = vmatpush1.bf16.msra.mxu1 %v14553_v27  ;;  %2517 = vmatpush1.bf16.msra.mxu0 %v14555_v30  ;;  %v807_v27 = vld [vmem:[#allocation11 + $0x50] sm:$0xff] }
 0x2a1   :  { %2436 = vmatprep.subr.bf16.mxu1 %v14562_v32  ;;  %2518 = vmatprep.subr.bf16.mxu0 %v14564_v33  ;;  %v811_v30 = vld [vmem:[#allocation11 + $0x70] sm:$0xff]  ;;  %v812_v32 = vld [vmem:[#allocation11 + $0x78] sm:$0xff]  ;;  %v14357_v33 = vcombine.low %v799_v19, %v803_v50 }
 0x2a2   :  { %v14366_v36 = vcombine.high %v807_v27, %v811_v30  ;;  %v14368_v37 = vcombine.high %v808_v56, %v812_v32  ;;  %v14365_v42 = vcombine.low %v807_v27, %v811_v30  ;;  %v14367_v43 = vcombine.low %v808_v56, %v812_v32  ;;  %v855_v50 = vld [vmem:[#allocation11 + $0x1d0] sm:$0xff]  ;;  %v864_v56 = vld [vmem:[#allocation11 + $0x218] sm:$0xff] }
 0x2a3   :  { %v863_v27 = vld [vmem:[#allocation11 + $0x210] sm:$0xff]  ;;  %v868_v32 = vld [vmem:[#allocation11 + $0x238] sm:$0xff] }
 0x2a4   :  { %2437 = vmatpush1.bf16.msra.mxu1 %v14561_v38  ;;  %2519 = vmatpush1.bf16.msra.mxu0 %v14563_v39  ;;  %v815_v38 = vld [vmem:[#allocation11 + $0x90] sm:$0xff] }
 0x2a5   :  { %2438 = vmatprep.subr.bf16.mxu1 %v14570_v40  ;;  %2520 = vmatprep.subr.bf16.mxu0 %v14572_v41  ;;  %v819_v39 = vld [vmem:[#allocation11 + $0xb0] sm:$0xff]  ;;  %v816_v40 = vld [vmem:[#allocation11 + $0x98] sm:$0xff] }
 0x2a6   :  { %v820_v41 = vld [vmem:[#allocation11 + $0xb8] sm:$0xff]  ;;  %v14374_v44 = vcombine.high %v815_v38, %v819_v39  ;;  %v14373_v52 = vcombine.low %v815_v38, %v819_v39  ;;  %v867_v30 = vld [vmem:[#allocation11 + $0x230] sm:$0xff] }
 0x2a7   :  { %v14376_v45 = vcombine.high %v816_v40, %v820_v41  ;;  %v14375_v53 = vcombine.low %v816_v40, %v820_v41  ;;  %v871_v38 = vld [vmem:[#allocation11 + $0x250] sm:$0xff]  ;;  %v872_v40 = vld [vmem:[#allocation11 + $0x258] sm:$0xff] }
 0x2a8   :  { %2439 = vmatpush1.bf16.msra.mxu1 %v14569_v46  ;;  %2521 = vmatpush1.bf16.msra.mxu0 %v14571_v47  ;;  %v823_v46 = vld [vmem:[#allocation11 + $0xd0] sm:$0xff]  ;;  %v876_v41 = vld [vmem:[#allocation11 + $0x278] sm:$0xff] }
 0x2a9   :  { %2440 = vmatprep.subr.bf16.mxu1 %v14578_v48  ;;  %2522 = vmatprep.subr.bf16.mxu0 %v14580_v49  ;;  %v827_v47 = vld [vmem:[#allocation11 + $0xf0] sm:$0xff]  ;;  %v824_v48 = vld [vmem:[#allocation11 + $0xd8] sm:$0xff] }
 0x2aa   :  { %v828_v49 = vld [vmem:[#allocation11 + $0xf8] sm:$0xff]  ;;  %v14382_v54 = vcombine.high %v823_v46, %v827_v47  ;;  %v875_v39 = vld [vmem:[#allocation11 + $0x270] sm:$0xff] }
 0x2ab   :  { %v14384_v55 = vcombine.high %v824_v48, %v828_v49  ;;  %v14383_v62 = vcombine.low %v824_v48, %v828_v49  ;;  %v880_v48 = vld [vmem:[#allocation11 + $0x298] sm:$0xff] }
 0x2ac   :  { %2441 = vmatpush1.bf16.msra.mxu1 %v14577_v57  ;;  %2523 = vmatpush1.bf16.msra.mxu0 %v14579_v58  ;;  %v831_v57 = vld [vmem:[#allocation11 + $0x110] sm:$0xff]  ;;  %v884_v49 = vld [vmem:[#allocation11 + $0x2b8] sm:$0xff] }
 0x2ad   :  { %2442 = vmatprep.subr.bf16.mxu1 %v14586_v60  ;;  %2524 = vmatprep.subr.bf16.mxu0 %v14588_v61  ;;  %v835_v58 = vld [vmem:[#allocation11 + $0x130] sm:$0xff]  ;;  %v836_v60 = vld [vmem:[#allocation11 + $0x138] sm:$0xff]  ;;  %v14381_v61 = vcombine.low %v823_v46, %v827_v47 }
 0x2ae   :  { %v14390_v63 = vcombine.high %v831_v57, %v835_v58  ;;  %v879_v46 = vld [vmem:[#allocation11 + $0x290] sm:$0xff] }
 0x2af   :  { %v883_v47 = vld [vmem:[#allocation11 + $0x2b0] sm:$0xff] }
 0x2b0   :  { %2443 = vmatpush1.bf16.msra.mxu1 %v14585_v2  ;;  %2525 = vmatpush1.bf16.msra.mxu0 %v14587_v3  ;;  %v843_v2 = vld [vmem:[#allocation11 + $0x170] sm:$0xff]  ;;  %v840_v3 = vld [vmem:[#allocation11 + $0x158] sm:$0xff] }
 0x2b1   :  { %2444 = vmatprep.subr.bf16.mxu1 %v14594_v5  ;;  %2526 = vmatprep.subr.bf16.mxu0 %v14596_v6  ;;  %v14389_v5 = vcombine.low %v831_v57, %v835_v58  ;;  %v14398_v7 = vcombine.high %v839_v1, %v843_v2  ;;  %v14400_v8 = vcombine.high %v840_v3, %v844_v4  ;;  %v887_v57 = vld [vmem:[#allocation11 + $0x2d0] sm:$0xff] }
 0x2b2   :  { %v14397_v15 = vcombine.low %v839_v1, %v843_v2  ;;  %v891_v58 = vld [vmem:[#allocation11 + $0x2f0] sm:$0xff] }
 0x2b3   :  { %v895_v1 = vld [vmem:[#allocation11 + $0x310] sm:$0xff] }
 0x2b4   :  { %2445 = vmatpush1.bf16.msra.mxu1 %v14593_v13  ;;  %2527 = vmatpush1.bf16.msra.mxu0 %v14595_v14  ;;  %v848_v13 = vld [vmem:[#allocation11 + $0x198] sm:$0xff]  ;;  %v899_v2 = vld [vmem:[#allocation11 + $0x330] sm:$0xff] }
 0x2b5   :  { %2446 = vmatprep.subr.bf16.mxu1 %v14602_v16  ;;  %2528 = vmatprep.subr.bf16.mxu0 %v14604_v18  ;;  %v852_v14 = vld [vmem:[#allocation11 + $0x1b8] sm:$0xff]  ;;  %v14399_v16 = vcombine.low %v840_v3, %v844_v4  ;;  %v14406_v18 = vcombine.high %v847_v11, %v851_v12 }
 0x2b6   :  { %v14408_v19 = vcombine.high %v848_v13, %v852_v14  ;;  %v14407_v24 = vcombine.low %v848_v13, %v852_v14  ;;  %v896_v3 = vld [vmem:[#allocation11 + $0x318] sm:$0xff] }
 0x2b7   :  { %v900_v4 = vld [vmem:[#allocation11 + $0x338] sm:$0xff] }
 0x2b8   :  { %2447 = vmatpush1.bf16.msra.mxu1 %v14601_v22  ;;  %2529 = vmatpush1.bf16.msra.mxu0 %v14603_v23  ;;  %v860_v22 = vld [vmem:[#allocation11 + $0x1f8] sm:$0xff]  ;;  %v14405_v23 = vcombine.low %v847_v11, %v851_v12  ;;  %v903_v11 = vld [vmem:[#allocation11 + $0x350] sm:$0xff] }
 0x2b9   :  { %2539 = vmatprep.subr.bf16.mxu1 %v14358_v25  ;;  %2621 = vmatprep.subr.bf16.mxu0 %v14360_v26  ;;  %v14414_v25 = vcombine.high %v855_v50, %v859_v20  ;;  %v14416_v26 = vcombine.high %v856_v21, %v860_v22  ;;  %v907_v12 = vld [vmem:[#allocation11 + $0x370] sm:$0xff]  ;;  %v904_v13 = vld [vmem:[#allocation11 + $0x358] sm:$0xff] }
 0x2ba   :  { %v908_v14 = vld [vmem:[#allocation11 + $0x378] sm:$0xff] }
 0x2bb   :  { %2449 = vmatmul.mubr.bf16.vlgmr.msra.gmra.mrb[4].mxu1 %v16991_v34  ;;  %2531 = vmatmul.mubr.bf16.vlgmr.msra.gmra.mrb[8].mxu0 %v16991_v34 }
 0x2bc   :  { %2540 = vmatpush1.bf16.msra.mxu1 %v14357_v33  ;;  %2571 = vmatprep.mubr.bf16.mxu1 %v16973_v9  ;;  %v14413_v33 = vcombine.low %v855_v50, %v859_v20  ;;  %v911_v50 = vld [vmem:[#allocation11 + $0x390] sm:$0xff] }
 0x2bd   :  { %2622 = vmatpush1.bf16.msra.mxu0 %v14359_v35  ;;  %2653 = vmatprep.mubr.bf16.mxu0 %v16973_v9  ;;  %v832_v9 = vld [vmem:[#allocation11 + $0x118] sm:$0xff]  ;;  %v14415_v35 = vcombine.low %v856_v21, %v860_v22  ;;  %v915_v20 = vld [vmem:[#allocation11 + $0x3b0] sm:$0xff] }
 0x2be   :  { %2541 = vmatprep.subr.bf16.mxu1 %v14366_v36  ;;  %2623 = vmatprep.subr.bf16.mxu0 %v14368_v37  ;;  %v14392_v0 = vcombine.high %v832_v9, %v836_v60  ;;  %v14391_v6 = vcombine.low %v832_v9, %v836_v60  ;;  %v14422_v36 = vcombine.high %v863_v27, %v867_v30  ;;  %v888_v9 = vld [vmem:[#allocation11 + $0x2d8] sm:$0xff] }
 0x2bf   :  { %v14424_v37 = vcombine.high %v864_v56, %v868_v32  ;;  %v892_v60 = vld [vmem:[#allocation11 + $0x2f8] sm:$0xff] }
 0x2c0   :  { %2542 = vmatpush1.bf16.msra.mxu1 %v14365_v42  ;;  %v14421_v42 = vcombine.low %v863_v27, %v867_v30  ;;  %v912_v21 = vld [vmem:[#allocation11 + $0x398] sm:$0xff]  ;;  %v919_v27 = vld [vmem:[#allocation11 + $0x3d0] sm:$0xff] }
 0x2c1   :  { %2624 = vmatpush1.bf16.msra.mxu0 %v14367_v43  ;;  %2543 = vmatprep.subr.bf16.mxu1 %v14374_v44  ;;  %v14423_v43 = vcombine.low %v864_v56, %v868_v32  ;;  %v14430_v44 = vcombine.high %v871_v38, %v875_v39  ;;  %v916_v22 = vld [vmem:[#allocation11 + $0x3b8] sm:$0xff]  ;;  %v923_v30 = vld [vmem:[#allocation11 + $0x3f0] sm:$0xff] }
 0x2c2   :  { %2625 = vmatprep.subr.bf16.mxu0 %v14376_v45  ;;  %v14432_v45 = vcombine.high %v872_v40, %v876_v41  ;;  %v920_v56 = vld [vmem:[#allocation11 + $0x3d8] sm:$0xff] }
 0x2c3   :  { %v924_v32 = vld [vmem:[#allocation11 + $0x3f8] sm:$0xff] }
 0x2c4   :  { %2544 = vmatpush1.bf16.msra.mxu1 %v14373_v52  ;;  %v14429_v52 = vcombine.low %v871_v38, %v875_v39  ;;  %v927_v38 = vld [vmem:[#allocation11 + $0x410] sm:$0xff] }
 0x2c5   :  { %2626 = vmatpush1.bf16.msra.mxu0 %v14375_v53  ;;  %2545 = vmatprep.subr.bf16.mxu1 %v14382_v54  ;;  %v14431_v53 = vcombine.low %v872_v40, %v876_v41  ;;  %v14438_v54 = vcombine.high %v879_v46, %v883_v47  ;;  %v931_v39 = vld [vmem:[#allocation11 + $0x430] sm:$0xff]  ;;  %v928_v40 = vld [vmem:[#allocation11 + $0x418] sm:$0xff] }
 0x2c6   :  { %2627 = vmatprep.subr.bf16.mxu0 %v14384_v55  ;;  %v14440_v55 = vcombine.high %v880_v48, %v884_v49  ;;  %v932_v41 = vld [vmem:[#allocation11 + $0x438] sm:$0xff] }
 0x2c8   :  { %2546 = vmatpush1.bf16.msra.mxu1 %v14381_v61  ;;  %v14437_v61 = vcombine.low %v879_v46, %v883_v47  ;;  %v935_v46 = vld [vmem:[#allocation11 + $0x450] sm:$0xff] }
 0x2c9   :  { %2628 = vmatpush1.bf16.msra.mxu0 %v14383_v62  ;;  %2547 = vmatprep.subr.bf16.mxu1 %v14390_v63  ;;  %v14439_v62 = vcombine.low %v880_v48, %v884_v49  ;;  %v14446_v63 = vcombine.high %v887_v57, %v891_v58  ;;  %v939_v47 = vld [vmem:[#allocation11 + $0x470] sm:$0xff]  ;;  %v14485_v48 = vcombine.low %v927_v38, %v931_v39  ;;  %v936_v49 = vld [vmem:[#allocation11 + $0x458] sm:$0xff] }
 0x2ca   :  { %2629 = vmatprep.subr.bf16.mxu0 %v14392_v0  ;;  %v14448_v0 = vcombine.high %v888_v9, %v892_v60 }
 0x2cc   :  { %2548 = vmatpush1.bf16.msra.mxu1 %v14389_v5  ;;  %v14445_v5 = vcombine.low %v887_v57, %v891_v58  ;;  %v947_v57 = vld [vmem:[#allocation11 + $0x4b0] sm:$0xff] }
 0x2cd   :  { %2630 = vmatpush1.bf16.msra.mxu0 %v14391_v6  ;;  %2549 = vmatprep.subr.bf16.mxu1 %v14398_v7  ;;  %v14447_v6 = vcombine.low %v888_v9, %v892_v60  ;;  %v14454_v7 = vcombine.high %v895_v1, %v899_v2  ;;  %v944_v9 = vld [vmem:[#allocation11 + $0x498] sm:$0xff] }
 0x2ce   :  { %2631 = vmatprep.subr.bf16.mxu0 %v14400_v8  ;;  %v14456_v8 = vcombine.high %v896_v3, %v900_v4  ;;  %v948_v60 = vld [vmem:[#allocation11 + $0x4b8] sm:$0xff] }
 0x2d0   :  { %2550 = vmatpush1.bf16.msra.mxu1 %v14397_v15  ;;  %v14453_v15 = vcombine.low %v895_v1, %v899_v2  ;;  %v951_v1 = vld [vmem:[#allocation11 + $0x4d0] sm:$0xff] }
 0x2d1   :  { %2632 = vmatpush1.bf16.msra.mxu0 %v14399_v16  ;;  %2551 = vmatprep.subr.bf16.mxu1 %v14406_v18  ;;  %v14455_v16 = vcombine.low %v896_v3, %v900_v4  ;;  %v14462_v18 = vcombine.high %v903_v11, %v907_v12  ;;  %v955_v2 = vld [vmem:[#allocation11 + $0x4f0] sm:$0xff]  ;;  %v952_v3 = vld [vmem:[#allocation11 + $0x4d8] sm:$0xff] }
 0x2d2   :  { %2633 = vmatprep.subr.bf16.mxu0 %v14408_v19  ;;  %v14464_v19 = vcombine.high %v904_v13, %v908_v14  ;;  %v956_v4 = vld [vmem:[#allocation11 + $0x4f8] sm:$0xff] }
 0x2d4   :  { %2552 = vmatpush1.bf16.msra.mxu1 %v14405_v23  ;;  %v14461_v23 = vcombine.low %v903_v11, %v907_v12  ;;  %v963_v11 = vld [vmem:[#allocation11 + $0x530] sm:$0xff]  ;;  %v960_v12 = vld [vmem:[#allocation11 + $0x518] sm:$0xff] }
 0x2d5   :  { %2634 = vmatpush1.bf16.msra.mxu0 %v14407_v24  ;;  %2553 = vmatprep.subr.bf16.mxu1 %v14414_v25  ;;  %v14463_v24 = vcombine.low %v904_v13, %v908_v14  ;;  %v14470_v25 = vcombine.high %v911_v50, %v915_v20  ;;  %v964_v13 = vld [vmem:[#allocation11 + $0x538] sm:$0xff]  ;;  %v14511_v14 = vcombine.low %v952_v3, %v956_v4 }
 0x2d6   :  { %2635 = vmatprep.subr.bf16.mxu0 %v14416_v26  ;;  %v14472_v26 = vcombine.high %v912_v21, %v916_v22 }
 0x2d8   :  { %2554 = vmatpush1.bf16.msra.mxu1 %v14413_v33  ;;  %v14469_v33 = vcombine.low %v911_v50, %v915_v20  ;;  %v968_v50 = vld [vmem:[#allocation11 + $0x558] sm:$0xff] }
 0x2d9   :  { %2636 = vmatpush1.bf16.msra.mxu0 %v14415_v35  ;;  %2555 = vmatprep.subr.bf16.mxu1 %v14422_v36  ;;  %v14471_v35 = vcombine.low %v912_v21, %v916_v22  ;;  %v14478_v36 = vcombine.high %v919_v27, %v923_v30  ;;  %v972_v20 = vld [vmem:[#allocation11 + $0x578] sm:$0xff]  ;;  %v14519_v22 = vcombine.low %v960_v12, %v964_v13 }
 0x2da   :  { %2637 = vmatprep.subr.bf16.mxu0 %v14424_v37  ;;  %v14480_v37 = vcombine.high %v920_v56, %v924_v32 }
 0x2dc   :  { %2556 = vmatpush1.bf16.msra.mxu1 %v14421_v42  ;;  %v14477_v42 = vcombine.low %v919_v27, %v923_v30  ;;  %v976_v27 = vld [vmem:[#allocation11 + $0x598] sm:$0xff] }
 0x2dd   :  { %2638 = vmatpush1.bf16.msra.mxu0 %v14423_v43  ;;  %2557 = vmatprep.subr.bf16.mxu1 %v14430_v44  ;;  %v14479_v43 = vcombine.low %v920_v56, %v924_v32  ;;  %v14486_v44 = vcombine.high %v927_v38, %v931_v39  ;;  %v980_v30 = vld [vmem:[#allocation11 + $0x5b8] sm:$0xff]  ;;  %v14527_v32 = vcombine.low %v968_v50, %v972_v20 }
 0x2de   :  { %2639 = vmatprep.subr.bf16.mxu0 %v14432_v45  ;;  %v14488_v45 = vcombine.high %v928_v40, %v932_v41  ;;  %v984_v38 = vld [vmem:[#allocation11 + $0x5d8] sm:$0xff] }
 0x2df   :  { %v988_v39 = vld [vmem:[#allocation11 + $0x5f8] sm:$0xff] }
 0x2e0   :  { %2558 = vmatpush1.bf16.msra.mxu1 %v14429_v52  ;;  %v940_v52 = vld [vmem:[#allocation11 + $0x478] sm:$0xff] }
 0x2e1   :  { %2640 = vmatpush1.bf16.msra.mxu0 %v14431_v53  ;;  %2559 = vmatprep.subr.bf16.mxu1 %v14438_v54  ;;  %v14487_v53 = vcombine.low %v928_v40, %v932_v41  ;;  %v14494_v54 = vcombine.high %v935_v46, %v939_v47  ;;  %v14496_v58 = vcombine.high %v936_v49, %v940_v52 }
 0x2e2   :  { %2641 = vmatprep.subr.bf16.mxu0 %v14440_v55  ;;  %v943_v55 = vld [vmem:[#allocation11 + $0x490] sm:$0xff]  ;;  %v14535_v41 = vcombine.low %v976_v27, %v980_v30 }
 0x2e4   :  { %2560 = vmatpush1.bf16.msra.mxu1 %v14437_v61  ;;  %v14493_v61 = vcombine.low %v935_v46, %v939_v47  ;;  %v992_v46 = vld [vmem:[#allocation11 + $0x618] sm:$0xff] }
 0x2e5   :  { %2642 = vmatpush1.bf16.msra.mxu0 %v14439_v62  ;;  %2561 = vmatprep.subr.bf16.mxu1 %v14446_v63  ;;  %v14495_v62 = vcombine.low %v936_v49, %v940_v52  ;;  %v14502_v63 = vcombine.high %v943_v55, %v947_v57  ;;  %v996_v47 = vld [vmem:[#allocation11 + $0x638] sm:$0xff]  ;;  %v14543_v49 = vcombine.low %v984_v38, %v988_v39 }
 0x2e6   :  { %2643 = vmatprep.subr.bf16.mxu0 %v14448_v0  ;;  %v14504_v0 = vcombine.high %v944_v9, %v948_v60 }
 0x2e8   :  { %2562 = vmatpush1.bf16.msra.mxu1 %v14445_v5  ;;  %v14501_v5 = vcombine.low %v943_v55, %v947_v57  ;;  %v1003_v55 = vld [vmem:[#allocation11 + $0x670] sm:$0xff]  ;;  %v1000_v57 = vld [vmem:[#allocation11 + $0x658] sm:$0xff] }
 0x2e9   :  { %2644 = vmatpush1.bf16.msra.mxu0 %v14447_v6  ;;  %2563 = vmatprep.subr.bf16.mxu1 %v14454_v7  ;;  %v14510_v6 = vcombine.high %v951_v1, %v955_v2  ;;  %v14512_v7 = vcombine.high %v952_v3, %v956_v4 }
 0x2ea   :  { %2645 = vmatprep.subr.bf16.mxu0 %v14456_v8  ;;  %v959_v8 = vld [vmem:[#allocation11 + $0x510] sm:$0xff] }
 0x2eb   :  { %v14517_v21 = vcombine.low %v959_v8, %v963_v11 }
 0x2ec   :  { %2564 = vmatpush1.bf16.msra.mxu1 %v14453_v15  ;;  %v14518_v15 = vcombine.high %v959_v8, %v963_v11  ;;  %v1016_v8 = vld [vmem:[#allocation11 + $0x6d8] sm:$0xff] }
 0x2ed   :  { %2646 = vmatpush1.bf16.msra.mxu0 %v14455_v16  ;;  %2565 = vmatprep.subr.bf16.mxu1 %v14462_v18  ;;  %v14520_v16 = vcombine.high %v960_v12, %v964_v13  ;;  %v967_v18 = vld [vmem:[#allocation11 + $0x550] sm:$0xff]  ;;  %v1020_v11 = vld [vmem:[#allocation11 + $0x6f8] sm:$0xff] }
 0x2ee   :  { %2647 = vmatprep.subr.bf16.mxu0 %v14464_v19  ;;  %v971_v19 = vld [vmem:[#allocation11 + $0x570] sm:$0xff] }
 0x2ef   :  { %v14525_v56 = vcombine.low %v967_v18, %v971_v19 }
 0x2f0   :  { %2566 = vmatpush1.bf16.msra.mxu1 %v14461_v23  ;;  %v14526_v23 = vcombine.high %v967_v18, %v971_v19  ;;  %v1024_v18 = vld [vmem:[#allocation11 + $0x718] sm:$0xff] }
 0x2f1   :  { %2648 = vmatpush1.bf16.msra.mxu0 %v14463_v24  ;;  %2567 = vmatprep.subr.bf16.mxu1 %v14470_v25  ;;  %v14528_v24 = vcombine.high %v968_v50, %v972_v20  ;;  %v975_v25 = vld [vmem:[#allocation11 + $0x590] sm:$0xff]  ;;  %v1028_v19 = vld [vmem:[#allocation11 + $0x738] sm:$0xff]  ;;  %v14575_v20 = vcombine.low %v1016_v8, %v1020_v11 }
 0x2f2   :  { %2649 = vmatprep.subr.bf16.mxu0 %v14472_v26  ;;  %v979_v26 = vld [vmem:[#allocation11 + $0x5b0] sm:$0xff] }
 0x2f3   :  { %v14533_v40 = vcombine.low %v975_v25, %v979_v26 }
 0x2f4   :  { %2568 = vmatpush1.bf16.msra.mxu1 %v14469_v33  ;;  %v14534_v33 = vcombine.high %v975_v25, %v979_v26  ;;  %v1032_v25 = vld [vmem:[#allocation11 + $0x758] sm:$0xff] }
 0x2f5   :  { %2650 = vmatpush1.bf16.msra.mxu0 %v14471_v35  ;;  %2569 = vmatprep.subr.bf16.mxu1 %v14478_v36  ;;  %v14536_v35 = vcombine.high %v976_v27, %v980_v30  ;;  %v983_v36 = vld [vmem:[#allocation11 + $0x5d0] sm:$0xff]  ;;  %v1036_v26 = vld [vmem:[#allocation11 + $0x778] sm:$0xff]  ;;  %v14583_v30 = vcombine.low %v1024_v18, %v1028_v19 }
 0x2f6   :  { %2651 = vmatprep.subr.bf16.mxu0 %v14480_v37  ;;  %v987_v37 = vld [vmem:[#allocation11 + $0x5f0] sm:$0xff] }
 0x2f8   :  { %2570 = vmatpush1.bf16.msra.mxu1 %v14477_v42  ;;  %v14542_v42 = vcombine.high %v983_v36, %v987_v37 }
 0x2f9   :  { %2652 = vmatpush1.bf16.msra.mxu0 %v14479_v43  ;;  %2580 = vmatprep.subr.bf16.mxu1 %v14486_v44  ;;  %v14544_v43 = vcombine.high %v984_v38, %v988_v39  ;;  %v991_v44 = vld [vmem:[#allocation11 + $0x610] sm:$0xff]  ;;  %v14591_v39 = vcombine.low %v1032_v25, %v1036_v26 }
 0x2fa   :  { %2662 = vmatprep.subr.bf16.mxu0 %v14488_v45  ;;  %v995_v45 = vld [vmem:[#allocation11 + $0x630] sm:$0xff] }
 0x2fb   :  { %2572 = vmatmul.mubr.bf16.vlgmr.msra.gmra.mrb[8].mxu1 %v16975_v10  ;;  %v14550_v52 = vcombine.high %v991_v44, %v995_v45 }
 0x2fc   :  { %2654 = vmatmul.mubr.bf16.vlgmr.msra.gmra.mrb[12].mxu0 %v16975_v10  ;;  %2581 = vmatpush1.bf16.msra.mxu1 %v14485_v48  ;;  %v14503_v10 = vcombine.low %v944_v9, %v948_v60  ;;  %v14541_v48 = vcombine.low %v983_v36, %v987_v37  ;;  %v14549_v9 = vcombine.low %v991_v44, %v995_v45  ;;  %v1040_v36 = vld [vmem:[#allocation11 + $0x798] sm:$0xff] }
 0x2fd   :  { %2612 = vmatprep.mubr.bf16.mxu1 %v16979_v17  ;;  %2663 = vmatpush1.bf16.msra.mxu0 %v14487_v53  ;;  %v14552_v53 = vcombine.high %v992_v46, %v996_v47  ;;  %v14551_v60 = vcombine.low %v992_v46, %v996_v47  ;;  %v1044_v37 = vld [vmem:[#allocation11 + $0x7b8] sm:$0xff] }
 0x2fe   :  { %2694 = vmatprep.mubr.bf16.mxu0 %v16979_v17  ;;  %2582 = vmatprep.subr.bf16.mxu1 %v14494_v54  ;;  %v14509_v17 = vcombine.low %v951_v1, %v955_v2  ;;  %v999_v54 = vld [vmem:[#allocation11 + $0x650] sm:$0xff]  ;;  %v1008_v1 = vld [vmem:[#allocation11 + $0x698] sm:$0xff]  ;;  %v14599_v47 = vcombine.low %v1040_v36, %v1044_v37 }
 0x2ff   :  { %2664 = vmatprep.subr.bf16.mxu0 %v14496_v58  ;;  %v1004_v58 = vld [vmem:[#allocation11 + $0x678] sm:$0xff]  ;;  %v14557_v3 = vcombine.low %v999_v54, %v1003_v55 }
 0x300   :  { %2583 = vmatpush1.bf16.msra.mxu1 %v14493_v61  ;;  %v14558_v61 = vcombine.high %v999_v54, %v1003_v55  ;;  %v1012_v2 = vld [vmem:[#allocation11 + $0x6b8] sm:$0xff]  ;;  %v14559_v4 = vcombine.low %v1000_v57, %v1004_v58  ;;  %v2720_v54 = vld [vmem:[#allocation14 + $0x8] sm:$0xff] }
 0x301   :  { %2665 = vmatpush1.bf16.msra.mxu0 %v14495_v62  ;;  %2584 = vmatprep.subr.bf16.mxu1 %v14502_v63  ;;  %v14560_v62 = vcombine.high %v1000_v57, %v1004_v58  ;;  %v1007_v63 = vld [vmem:[#allocation11 + $0x690] sm:$0xff]  ;;  %v14567_v13 = vcombine.low %v1008_v1, %v1012_v2  ;;  %v1048_v44 = vld [vmem:[#allocation11 + $0x7d8] sm:$0xff] }
 0x302   :  { %2666 = vmatprep.subr.bf16.mxu0 %v14504_v0  ;;  %v1011_v0 = vld [vmem:[#allocation11 + $0x6b0] sm:$0xff]  ;;  %v1052_v45 = vld [vmem:[#allocation11 + $0x7f8] sm:$0xff] }
 0x303   :  { %v14565_v12 = vcombine.low %v1007_v63, %v1011_v0  ;;  %v2732_v55 = vld [vmem:[#allocation14 + $0x68] sm:$0xff]  ;;  %v14607_v58 = vcombine.low %v1048_v44, %v1052_v45 }
 0x304   :  { %2585 = vmatpush1.bf16.msra.mxu1 %v14501_v5  ;;  %v14566_v5 = vcombine.high %v1007_v63, %v1011_v0  ;;  %v2744_v63 = vld [vmem:[#allocation14 + $0xc8] sm:$0xff] }
 0x305   :  { %2667 = vmatpush1.bf16.msra.mxu0 %v14503_v10  ;;  %2586 = vmatprep.subr.bf16.mxu1 %v14510_v6  ;;  %v14568_v10 = vcombine.high %v1008_v1, %v1012_v2  ;;  %v1015_v6 = vld [vmem:[#allocation11 + $0x6d0] sm:$0xff]  ;;  %v14611_v2 = vcombine.low %v2720_v54, %v2732_v55 }
 0x306   :  { %2668 = vmatprep.subr.bf16.mxu0 %v14512_v7  ;;  %v1019_v7 = vld [vmem:[#allocation11 + $0x6f0] sm:$0xff] }
 0x307   :  { %v14573_v50 = vcombine.low %v1015_v6, %v1019_v7  ;;  %v2756_v0 = vld [vmem:[#allocation14 + $0x128] sm:$0xff] }
 0x308   :  { %2587 = vmatpush1.bf16.msra.mxu1 %v14509_v17  ;;  %v14574_v17 = vcombine.high %v1015_v6, %v1019_v7  ;;  %v2768_v6 = vld [vmem:[#allocation14 + $0x188] sm:$0xff] }
 0x309   :  { %2669 = vmatpush1.bf16.msra.mxu0 %v14511_v14  ;;  %2588 = vmatprep.subr.bf16.mxu1 %v14518_v15  ;;  %v14576_v14 = vcombine.high %v1016_v8, %v1020_v11  ;;  %v1023_v15 = vld [vmem:[#allocation11 + $0x710] sm:$0xff]  ;;  %v14635_v11 = vcombine.low %v2744_v63, %v2756_v0 }
 0x30a   :  { %2670 = vmatprep.subr.bf16.mxu0 %v14520_v16  ;;  %v1027_v16 = vld [vmem:[#allocation11 + $0x730] sm:$0xff] }
 0x30b   :  { %v14581_v27 = vcombine.low %v1023_v15, %v1027_v16  ;;  %v2780_v7 = vld [vmem:[#allocation14 + $0x1e8] sm:$0xff] }
 0x30c   :  { %2589 = vmatpush1.bf16.msra.mxu1 %v14517_v21  ;;  %v14582_v21 = vcombine.high %v1023_v15, %v1027_v16  ;;  %v2792_v15 = vld [vmem:[#allocation14 + $0x248] sm:$0xff] }
 0x30d   :  { %2671 = vmatpush1.bf16.msra.mxu0 %v14519_v22  ;;  %2590 = vmatprep.subr.bf16.mxu1 %v14526_v23  ;;  %v14584_v22 = vcombine.high %v1024_v18, %v1028_v19  ;;  %v1031_v23 = vld [vmem:[#allocation11 + $0x750] sm:$0xff]  ;;  %v14659_v19 = vcombine.low %v2768_v6, %v2780_v7 }
 0x30e   :  { %2672 = vmatprep.subr.bf16.mxu0 %v14528_v24  ;;  %v1035_v24 = vld [vmem:[#allocation11 + $0x770] sm:$0xff] }
 0x30f   :  { %v14589_v38 = vcombine.low %v1031_v23, %v1035_v24  ;;  %v2804_v16 = vld [vmem:[#allocation14 + $0x2a8] sm:$0xff] }
 0x310   :  { %2591 = vmatpush1.bf16.msra.mxu1 %v14525_v56  ;;  %v14590_v56 = vcombine.high %v1031_v23, %v1035_v24  ;;  %v2828_v23 = vld [vmem:[#allocation14 + $0x368] sm:$0xff] }
 0x311   :  { %2673 = vmatpush1.bf16.msra.mxu0 %v14527_v32  ;;  %2592 = vmatprep.subr.bf16.mxu1 %v14534_v33  ;;  %v14592_v32 = vcombine.high %v1032_v25, %v1036_v26  ;;  %v1039_v33 = vld [vmem:[#allocation11 + $0x790] sm:$0xff]  ;;  %v14683_v25 = vcombine.low %v2792_v15, %v2804_v16 }
 0x312   :  { %2674 = vmatprep.subr.bf16.mxu0 %v14536_v35  ;;  %v1043_v35 = vld [vmem:[#allocation11 + $0x7b0] sm:$0xff] }
 0x313   :  { %v14597_v46 = vcombine.low %v1039_v33, %v1043_v35 }
 0x314   :  { %2593 = vmatpush1.bf16.msra.mxu1 %v14533_v40  ;;  %v14598_v40 = vcombine.high %v1039_v33, %v1043_v35  ;;  %v2852_v33 = vld [vmem:[#allocation14 + $0x428] sm:$0xff] }
 0x315   :  { %2675 = vmatpush1.bf16.msra.mxu0 %v14535_v41  ;;  %2594 = vmatprep.subr.bf16.mxu1 %v14542_v42  ;;  %v14600_v41 = vcombine.high %v1040_v36, %v1044_v37  ;;  %v1047_v42 = vld [vmem:[#allocation11 + $0x7d0] sm:$0xff] }
 0x316   :  { %2676 = vmatprep.subr.bf16.mxu0 %v14544_v43  ;;  %v1051_v43 = vld [vmem:[#allocation11 + $0x7f0] sm:$0xff] }
 0x317   :  { %v14605_v57 = vcombine.low %v1047_v42, %v1051_v43 }
 0x318   :  { %2595 = vmatpush1.bf16.msra.mxu1 %v14541_v48  ;;  %v14606_v48 = vcombine.high %v1047_v42, %v1051_v43  ;;  %v2876_v42 = vld [vmem:[#allocation14 + $0x4e8] sm:$0xff] }
 0x319   :  { %2677 = vmatpush1.bf16.msra.mxu0 %v14543_v49  ;;  %2596 = vmatprep.subr.bf16.mxu1 %v14550_v52  ;;  %v14608_v49 = vcombine.high %v1048_v44, %v1052_v45  ;;  %v2719_v52 = vld [vmem:[#allocation14] sm:$0xff] }
 0x31a   :  { %2678 = vmatprep.subr.bf16.mxu0 %v14552_v53  ;;  %v2731_v53 = vld [vmem:[#allocation14 + $0x60] sm:$0xff] }
 0x31b   :  { %v14609_v1 = vcombine.low %v2719_v52, %v2731_v53 }
 0x31c   :  { %2597 = vmatpush1.bf16.msra.mxu1 %v14549_v9  ;;  %v14610_v9 = vcombine.high %v2719_v52, %v2731_v53  ;;  %v2900_v52 = vld [vmem:[#allocation14 + $0x5a8] sm:$0xff] }
 0x31d   :  { %2679 = vmatpush1.bf16.msra.mxu0 %v14551_v60  ;;  %2598 = vmatprep.subr.bf16.mxu1 %v14558_v61  ;;  %v14612_v60 = vcombine.high %v2720_v54, %v2732_v55  ;;  %v2743_v61 = vld [vmem:[#allocation14 + $0xc0] sm:$0xff] }
 0x31e   :  { %2680 = vmatprep.subr.bf16.mxu0 %v14560_v62  ;;  %v2755_v62 = vld [vmem:[#allocation14 + $0x120] sm:$0xff] }
 0x31f   :  { %v14633_v8 = vcombine.low %v2743_v61, %v2755_v62 }
 0x320   :  { %2599 = vmatpush1.bf16.msra.mxu1 %v14557_v3  ;;  %v14634_v3 = vcombine.high %v2743_v61, %v2755_v62  ;;  %v2924_v61 = vld [vmem:[#allocation14 + $0x668] sm:$0xff] }
 0x321   :  { %2681 = vmatpush1.bf16.msra.mxu0 %v14559_v4  ;;  %2600 = vmatprep.subr.bf16.mxu1 %v14566_v5  ;;  %v14636_v4 = vcombine.high %v2744_v63, %v2756_v0  ;;  %v2767_v5 = vld [vmem:[#allocation14 + $0x180] sm:$0xff] }
 0x322   :  { %2682 = vmatprep.subr.bf16.mxu0 %v14568_v10  ;;  %v2779_v10 = vld [vmem:[#allocation14 + $0x1e0] sm:$0xff] }
 0x323   :  { %v14657_v18 = vcombine.low %v2767_v5, %v2779_v10 }
 0x324   :  { %2601 = vmatpush1.bf16.msra.mxu1 %v14565_v12  ;;  %v14658_v12 = vcombine.high %v2767_v5, %v2779_v10  ;;  %v2948_v5 = vld [vmem:[#allocation14 + $0x728] sm:$0xff] }
 0x325   :  { %2683 = vmatpush1.bf16.msra.mxu0 %v14567_v13  ;;  %2602 = vmatprep.subr.bf16.mxu1 %v14574_v17  ;;  %v14660_v13 = vcombine.high %v2768_v6, %v2780_v7  ;;  %v2791_v17 = vld [vmem:[#allocation14 + $0x240] sm:$0xff] }
 0x326   :  { %2684 = vmatprep.subr.bf16.mxu0 %v14576_v14  ;;  %v2803_v14 = vld [vmem:[#allocation14 + $0x2a0] sm:$0xff] }
 0x327   :  { %v14681_v24 = vcombine.low %v2791_v17, %v2803_v14 }
 0x328   :  { %2603 = vmatpush1.bf16.msra.mxu1 %v14573_v50  ;;  %v14682_v50 = vcombine.high %v2791_v17, %v2803_v14  ;;  %v2972_v17 = vld [vmem:[#allocation14 + $0x7e8] sm:$0xff] }
 0x329   :  { %2685 = vmatpush1.bf16.msra.mxu0 %v14575_v20  ;;  %2604 = vmatprep.subr.bf16.mxu1 %v14582_v21  ;;  %v2815_v20 = vld [vmem:[#allocation14 + $0x300] sm:$0xff] }
 0x32a   :  { %2686 = vmatprep.subr.bf16.mxu0 %v14584_v22  ;;  %v2827_v21 = vld [vmem:[#allocation14 + $0x360] sm:$0xff]  ;;  %v2816_v22 = vld [vmem:[#allocation14 + $0x308] sm:$0xff] }
 0x32b   :  { %v14706_v26 = vcombine.high %v2815_v20, %v2827_v21  ;;  %v14705_v35 = vcombine.low %v2815_v20, %v2827_v21  ;;  %v14707_v36 = vcombine.low %v2816_v22, %v2828_v23  ;;  %v2996_v20 = vld [vmem:[#allocation14 + $0x8a8] sm:$0xff] }
 0x32c   :  { %2605 = vmatpush1.bf16.msra.mxu1 %v14581_v27  ;;  %v14708_v27 = vcombine.high %v2816_v22, %v2828_v23 }
 0x32d   :  { %2687 = vmatpush1.bf16.msra.mxu0 %v14583_v30  ;;  %2606 = vmatprep.subr.bf16.mxu1 %v14590_v56  ;;  %v2839_v30 = vld [vmem:[#allocation14 + $0x3c0] sm:$0xff] }
 0x32e   :  { %2688 = vmatprep.subr.bf16.mxu0 %v14592_v32  ;;  %v2851_v56 = vld [vmem:[#allocation14 + $0x420] sm:$0xff]  ;;  %v2840_v32 = vld [vmem:[#allocation14 + $0x3c8] sm:$0xff] }
 0x32f   :  { %v14730_v37 = vcombine.high %v2839_v30, %v2851_v56  ;;  %v14729_v43 = vcombine.low %v2839_v30, %v2851_v56  ;;  %v14731_v44 = vcombine.low %v2840_v32, %v2852_v33  ;;  %v3020_v30 = vld [vmem:[#allocation14 + $0x968] sm:$0xff] }
 0x330   :  { %2607 = vmatpush1.bf16.msra.mxu1 %v14589_v38  ;;  %v14732_v38 = vcombine.high %v2840_v32, %v2852_v33 }
 0x331   :  { %2689 = vmatpush1.bf16.msra.mxu0 %v14591_v39  ;;  %2608 = vmatprep.subr.bf16.mxu1 %v14598_v40  ;;  %v2863_v39 = vld [vmem:[#allocation14 + $0x480] sm:$0xff] }
 0x332   :  { %2690 = vmatprep.subr.bf16.mxu0 %v14600_v41  ;;  %v2875_v40 = vld [vmem:[#allocation14 + $0x4e0] sm:$0xff]  ;;  %v2864_v41 = vld [vmem:[#allocation14 + $0x488] sm:$0xff] }
 0x333   :  { %v14754_v45 = vcombine.high %v2863_v39, %v2875_v40  ;;  %v14753_v53 = vcombine.low %v2863_v39, %v2875_v40  ;;  %v14755_v54 = vcombine.low %v2864_v41, %v2876_v42  ;;  %v3044_v39 = vld [vmem:[#allocation14 + $0xa28] sm:$0xff] }
 0x334   :  { %2609 = vmatpush1.bf16.msra.mxu1 %v14597_v46  ;;  %v14756_v46 = vcombine.high %v2864_v41, %v2876_v42 }
 0x335   :  { %2691 = vmatpush1.bf16.msra.mxu0 %v14599_v47  ;;  %2610 = vmatprep.subr.bf16.mxu1 %v14606_v48  ;;  %v2887_v47 = vld [vmem:[#allocation14 + $0x540] sm:$0xff] }
 0x336   :  { %2692 = vmatprep.subr.bf16.mxu0 %v14608_v49  ;;  %v2899_v48 = vld [vmem:[#allocation14 + $0x5a0] sm:$0xff]  ;;  %v2888_v49 = vld [vmem:[#allocation14 + $0x548] sm:$0xff] }
 0x337   :  { %v14778_v55 = vcombine.high %v2887_v47, %v2899_v48  ;;  %v14777_v62 = vcombine.low %v2887_v47, %v2899_v48  ;;  %v14779_v63 = vcombine.low %v2888_v49, %v2900_v52  ;;  %v3068_v47 = vld [vmem:[#allocation14 + $0xae8] sm:$0xff] }
 0x338   :  { %2611 = vmatpush1.bf16.msra.mxu1 %v14605_v57  ;;  %v14780_v57 = vcombine.high %v2888_v49, %v2900_v52 }
 0x339   :  { %2693 = vmatpush1.bf16.msra.mxu0 %v14607_v58  ;;  %12061 = vmatprep.subr.bf16.mxu1 %v14610_v9  ;;  %v2911_v58 = vld [vmem:[#allocation14 + $0x600] sm:$0xff] }
 0x33a   :  { %12225 = vmatprep.subr.bf16.mxu0 %v14612_v60  ;;  %v2923_v9 = vld [vmem:[#allocation14 + $0x660] sm:$0xff]  ;;  %v2912_v60 = vld [vmem:[#allocation14 + $0x608] sm:$0xff] }
 0x33b   :  { %2613 = vmatmul.mubr.bf16.vlgmr.msra.gmra.mrb[8].mxu1 %v16991_v34  ;;  %v14802_v0 = vcombine.high %v2911_v58, %v2923_v9  ;;  %v14801_v10 = vcombine.low %v2911_v58, %v2923_v9  ;;  %v14803_v6 = vcombine.low %v2912_v60, %v2924_v61  ;;  %v3092_v58 = vld [vmem:[#allocation14 + $0xba8] sm:$0xff] }
 0x33c   :  { %2695 = vmatmul.mubr.bf16.vlgmr.msra.gmra.mrb[12].mxu0 %v16991_v34  ;;  %12062 = vmatpush1.bf16.msra.mxu1 %v14609_v1  ;;  %v14684_v34 = vcombine.high %v2792_v15, %v2804_v16  ;;  %v14804_v1 = vcombine.high %v2912_v60, %v2924_v61 }
 0x33d   :  { %12226 = vmatpush1.bf16.msra.mxu0 %v14611_v2  ;;  %12063 = vmatprep.subr.bf16.mxu1 %v14634_v3  ;;  %v2935_v2 = vld [vmem:[#allocation14 + $0x6c0] sm:$0xff] }
 0x33e   :  { %12227 = vmatprep.subr.bf16.mxu0 %v14636_v4  ;;  %v2947_v3 = vld [vmem:[#allocation14 + $0x720] sm:$0xff]  ;;  %v2936_v4 = vld [vmem:[#allocation14 + $0x6c8] sm:$0xff] }
 0x33f   :  { %v14826_v7 = vcombine.high %v2935_v2, %v2947_v3  ;;  %v14825_v14 = vcombine.low %v2935_v2, %v2947_v3  ;;  %v14827_v15 = vcombine.low %v2936_v4, %v2948_v5  ;;  %v3116_v2 = vld [vmem:[#allocation14 + $0xc68] sm:$0xff] }
 0x340   :  { %12064 = vmatpush1.bf16.msra.mxu1 %v14633_v8  ;;  %v14828_v8 = vcombine.high %v2936_v4, %v2948_v5 }
 0x341   :  { %12228 = vmatpush1.bf16.msra.mxu0 %v14635_v11  ;;  %12065 = vmatprep.subr.bf16.mxu1 %v14658_v12  ;;  %v2959_v11 = vld [vmem:[#allocation14 + $0x780] sm:$0xff] }
 0x342   :  { %12229 = vmatprep.subr.bf16.mxu0 %v14660_v13  ;;  %v2971_v12 = vld [vmem:[#allocation14 + $0x7e0] sm:$0xff]  ;;  %v2960_v13 = vld [vmem:[#allocation14 + $0x788] sm:$0xff] }
 0x343   :  { %v14850_v16 = vcombine.high %v2959_v11, %v2971_v12  ;;  %v14849_v21 = vcombine.low %v2959_v11, %v2971_v12  ;;  %v14851_v22 = vcombine.low %v2960_v13, %v2972_v17 }
 0x344   :  { %12066 = vmatpush1.bf16.msra.mxu1 %v14657_v18  ;;  %v14852_v18 = vcombine.high %v2960_v13, %v2972_v17 }
 0x345   :  { %12230 = vmatpush1.bf16.msra.mxu0 %v14659_v19  ;;  %12067 = vmatprep.subr.bf16.mxu1 %v14682_v50  ;;  %v2983_v19 = vld [vmem:[#allocation14 + $0x840] sm:$0xff] }
 0x346   :  { %12231 = vmatprep.subr.bf16.mxu0 %v14684_v34  ;;  %v2995_v50 = vld [vmem:[#allocation14 + $0x8a0] sm:$0xff]  ;;  %v2984_v34 = vld [vmem:[#allocation14 + $0x848] sm:$0xff] }
 0x347   :  { %v14874_v23 = vcombine.high %v2983_v19, %v2995_v50  ;;  %v14873_v56 = vcombine.low %v2983_v19, %v2995_v50  ;;  %v14875_v32 = vcombine.low %v2984_v34, %v2996_v20 }
 0x348   :  { %12068 = vmatpush1.bf16.msra.mxu1 %v14681_v24  ;;  %v14876_v24 = vcombine.high %v2984_v34, %v2996_v20 }
 0x349   :  { %12232 = vmatpush1.bf16.msra.mxu0 %v14683_v25  ;;  %12069 = vmatprep.subr.bf16.mxu1 %v14706_v26  ;;  %v3007_v25 = vld [vmem:[#allocation14 + $0x900] sm:$0xff] }
 0x34a   :  { %12233 = vmatprep.subr.bf16.mxu0 %v14708_v27  ;;  %v3019_v26 = vld [vmem:[#allocation14 + $0x960] sm:$0xff]  ;;  %v3008_v27 = vld [vmem:[#allocation14 + $0x908] sm:$0xff] }
 0x34b   :  { %v14898_v33 = vcombine.high %v3007_v25, %v3019_v26  ;;  %v14897_v40 = vcombine.low %v3007_v25, %v3019_v26  ;;  %v14899_v41 = vcombine.low %v3008_v27, %v3020_v30  ;;  %v3139_v25 = vld [vmem:[#allocation14 + $0xd20] sm:$0xff]  ;;  %v3128_v26 = vld [vmem:[#allocation14 + $0xcc8] sm:$0xff] }
 0x34c   :  { %12070 = vmatpush1.bf16.msra.mxu1 %v14705_v35  ;;  %v14900_v35 = vcombine.high %v3008_v27, %v3020_v30  ;;  %v3140_v27 = vld [vmem:[#allocation14 + $0xd28] sm:$0xff] }
 0x34d   :  { %12234 = vmatpush1.bf16.msra.mxu0 %v14707_v36  ;;  %12071 = vmatprep.subr.bf16.mxu1 %v14730_v37  ;;  %v3031_v36 = vld [vmem:[#allocation14 + $0x9c0] sm:$0xff] }
 0x34e   :  { %12235 = vmatprep.subr.bf16.mxu0 %v14732_v38  ;;  %v3043_v37 = vld [vmem:[#allocation14 + $0xa20] sm:$0xff]  ;;  %v3032_v38 = vld [vmem:[#allocation14 + $0x9c8] sm:$0xff] }
 0x34f   :  { %v14922_v42 = vcombine.high %v3031_v36, %v3043_v37  ;;  %v14921_v48 = vcombine.low %v3031_v36, %v3043_v37  ;;  %v14923_v49 = vcombine.low %v3032_v38, %v3044_v39  ;;  %v15020_v37 = vcombine.high %v3128_v26, %v3140_v27 }
 0x350   :  { %12072 = vmatpush1.bf16.msra.mxu1 %v14729_v43  ;;  %v14924_v43 = vcombine.high %v3032_v38, %v3044_v39  ;;  %v3163_v38 = vld [vmem:[#allocation14 + $0xde0] sm:$0xff]  ;;  %v3152_v39 = vld [vmem:[#allocation14 + $0xd88] sm:$0xff] }
 0x351   :  { %12236 = vmatpush1.bf16.msra.mxu0 %v14731_v44  ;;  %12073 = vmatprep.subr.bf16.mxu1 %v14754_v45  ;;  %v3055_v44 = vld [vmem:[#allocation14 + $0xa80] sm:$0xff] }
 0x352   :  { %12237 = vmatprep.subr.bf16.mxu0 %v14756_v46  ;;  %v3067_v45 = vld [vmem:[#allocation14 + $0xae0] sm:$0xff]  ;;  %v3056_v46 = vld [vmem:[#allocation14 + $0xa88] sm:$0xff] }
 0x353   :  { %v14946_v52 = vcombine.high %v3055_v44, %v3067_v45  ;;  %v14945_v9 = vcombine.low %v3055_v44, %v3067_v45  ;;  %v14947_v60 = vcombine.low %v3056_v46, %v3068_v47 }
 0x354   :  { %12074 = vmatpush1.bf16.msra.mxu1 %v14753_v53  ;;  %v14948_v53 = vcombine.high %v3056_v46, %v3068_v47  ;;  %v3175_v46 = vld [vmem:[#allocation14 + $0xe40] sm:$0xff] }
 0x355   :  { %12238 = vmatpush1.bf16.msra.mxu0 %v14755_v54  ;;  %12075 = vmatprep.subr.bf16.mxu1 %v14778_v55  ;;  %v3079_v54 = vld [vmem:[#allocation14 + $0xb40] sm:$0xff] }
 0x356   :  { %12239 = vmatprep.subr.bf16.mxu0 %v14780_v57  ;;  %v3091_v55 = vld [vmem:[#allocation14 + $0xba0] sm:$0xff]  ;;  %v3080_v57 = vld [vmem:[#allocation14 + $0xb48] sm:$0xff] }
 0x357   :  { %v14970_v61 = vcombine.high %v3079_v54, %v3091_v55  ;;  %v14969_v3 = vcombine.low %v3079_v54, %v3091_v55  ;;  %v14971_v4 = vcombine.low %v3080_v57, %v3092_v58  ;;  %v3187_v47 = vld [vmem:[#allocation14 + $0xea0] sm:$0xff] }
 0x358   :  { %12076 = vmatpush1.bf16.msra.mxu1 %v14777_v62  ;;  %v14972_v62 = vcombine.high %v3080_v57, %v3092_v58  ;;  %v15066_v54 = vcombine.high %v3175_v46, %v3187_v47  ;;  %v3199_v57 = vld [vmem:[#allocation14 + $0xf00] sm:$0xff] }
 0x359   :  { %12240 = vmatpush1.bf16.msra.mxu0 %v14779_v63  ;;  %12077 = vmatprep.subr.bf16.mxu1 %v14802_v0  ;;  %v3103_v63 = vld [vmem:[#allocation14 + $0xc00] sm:$0xff] }
 0x35a   :  { %12241 = vmatprep.subr.bf16.mxu0 %v14804_v1  ;;  %v3115_v0 = vld [vmem:[#allocation14 + $0xc60] sm:$0xff]  ;;  %v3104_v1 = vld [vmem:[#allocation14 + $0xc08] sm:$0xff] }
 0x35b   :  { %v14994_v5 = vcombine.high %v3103_v63, %v3115_v0  ;;  %v3211_v58 = vld [vmem:[#allocation14 + $0xf60] sm:$0xff] }
 0x35c   :  { %12078 = vmatpush1.bf16.msra.mxu1 %v14801_v10  ;;  %v14996_v10 = vcombine.high %v3104_v1, %v3116_v2 }
 0x35d   :  { %12242 = vmatpush1.bf16.msra.mxu0 %v14803_v6  ;;  %12079 = vmatprep.subr.bf16.mxu1 %v14826_v7  ;;  %v17003_v6 = vld [vmem:[#allocation13] sm:$0xff] }
 0x35e   :  { %12243 = vmatprep.subr.bf16.mxu0 %v14828_v8  ;;  %v1058_v7 = vrot.slane %v17003_v6, %v16953_v29  ;;  %v1062_v8 = vrot.slane %v17003_v6, %v16956_v31  ;;  %v1070_v11 = vrot.slane %v17003_v6, %v16963_v51 }
 0x360   :  { %12080 = vmatpush1.bf16.msra.mxu1 %v14825_v14 }
 0x361   :  { %12244 = vmatpush1.bf16.msra.mxu0 %v14827_v15  ;;  %12081 = vmatprep.subr.bf16.mxu1 %v14850_v16 }
 0x362   :  { %12245 = vmatprep.subr.bf16.mxu0 %v14852_v18 }
 0x364   :  { %12082 = vmatpush1.bf16.msra.mxu1 %v14849_v21 }
 0x365   :  { %12246 = vmatpush1.bf16.msra.mxu0 %v14851_v22  ;;  %12083 = vmatprep.subr.bf16.mxu1 %v14874_v23  ;;  %v3127_v23 = vld [vmem:[#allocation14 + $0xcc0] sm:$0xff] }
 0x366   :  { %12247 = vmatprep.subr.bf16.mxu0 %v14876_v24  ;;  %v15018_v36 = vcombine.high %v3127_v23, %v3139_v25 }
 0x368   :  { %12084 = vmatpush1.bf16.msra.mxu1 %v14873_v56  ;;  %v14993_v56 = vcombine.low %v3103_v63, %v3115_v0  ;;  %v15090_v63 = vcombine.high %v3199_v57, %v3211_v58 }
 0x369   :  { %12248 = vmatpush1.bf16.msra.mxu0 %v14875_v32  ;;  %12085 = vmatprep.subr.bf16.mxu1 %v14898_v33  ;;  %v14995_v32 = vcombine.low %v3104_v1, %v3116_v2  ;;  %v3223_v1 = vld [vmem:[#allocation14 + $0xfc0] sm:$0xff] }
 0x36a   :  { %12249 = vmatprep.subr.bf16.mxu0 %v14900_v35  ;;  %v3151_v35 = vld [vmem:[#allocation14 + $0xd80] sm:$0xff] }
 0x36b   :  { %v15042_v44 = vcombine.high %v3151_v35, %v3163_v38  ;;  %v3235_v2 = vld [vmem:[#allocation14 + $0x1020] sm:$0xff] }
 0x36c   :  { %12086 = vmatpush1.bf16.msra.mxu1 %v14897_v40  ;;  %v3164_v40 = vld [vmem:[#allocation14 + $0xde8] sm:$0xff] }
 0x36d   :  { %12250 = vmatpush1.bf16.msra.mxu0 %v14899_v41  ;;  %12087 = vmatprep.subr.bf16.mxu1 %v14922_v42  ;;  %v15017_v42 = vcombine.low %v3127_v23, %v3139_v25  ;;  %v15044_v45 = vcombine.high %v3152_v39, %v3164_v40 }
 0x36e   :  { %12251 = vmatprep.subr.bf16.mxu0 %v14924_v43  ;;  %v15019_v43 = vcombine.low %v3128_v26, %v3140_v27  ;;  %v3295_v26 = vld [vmem:[#allocation14 + $0x1200] sm:$0xff] }
 0x36f   :  { %v3307_v27 = vld [vmem:[#allocation14 + $0x1260] sm:$0xff] }
 0x370   :  { %12088 = vmatpush1.bf16.msra.mxu1 %v14921_v48  ;;  %v3176_v48 = vld [vmem:[#allocation14 + $0xe48] sm:$0xff] }
 0x371   :  { %12252 = vmatpush1.bf16.msra.mxu0 %v14923_v49  ;;  %12089 = vmatprep.subr.bf16.mxu1 %v14946_v52  ;;  %v3188_v49 = vld [vmem:[#allocation14 + $0xea8] sm:$0xff]  ;;  %v15041_v52 = vcombine.low %v3151_v35, %v3163_v38 }
 0x372   :  { %12253 = vmatprep.subr.bf16.mxu0 %v14948_v53  ;;  %v15043_v53 = vcombine.low %v3152_v39, %v3164_v40  ;;  %v15068_v55 = vcombine.high %v3176_v48, %v3188_v49  ;;  %v3319_v39 = vld [vmem:[#allocation14 + $0x12c0] sm:$0xff] }
 0x373   :  { %v3331_v40 = vld [vmem:[#allocation14 + $0x1320] sm:$0xff] }
 0x374   :  { %12090 = vmatpush1.bf16.msra.mxu1 %v14945_v9  ;;  %v3200_v9 = vld [vmem:[#allocation14 + $0xf08] sm:$0xff] }
 0x375   :  { %12254 = vmatpush1.bf16.msra.mxu0 %v14947_v60  ;;  %12091 = vmatprep.subr.bf16.mxu1 %v14970_v61  ;;  %v3212_v60 = vld [vmem:[#allocation14 + $0xf68] sm:$0xff]  ;;  %v15065_v61 = vcombine.low %v3175_v46, %v3187_v47  ;;  %v15210_v46 = vcombine.high %v3319_v39, %v3331_v40 }
 0x376   :  { %12255 = vmatprep.subr.bf16.mxu0 %v14972_v62  ;;  %v15067_v62 = vcombine.low %v3176_v48, %v3188_v49  ;;  %v15092_v0 = vcombine.high %v3200_v9, %v3212_v60  ;;  %v3343_v48 = vld [vmem:[#allocation14 + $0x1380] sm:$0xff] }
 0x377   :  { %v3355_v49 = vld [vmem:[#allocation14 + $0x13e0] sm:$0xff] }
 0x378   :  { %12092 = vmatpush1.bf16.msra.mxu1 %v14969_v3  ;;  %v3224_v3 = vld [vmem:[#allocation14 + $0xfc8] sm:$0xff] }
 0x379   :  { %12256 = vmatpush1.bf16.msra.mxu0 %v14971_v4  ;;  %12102 = vmatprep.subr.bf16.mxu1 %v14994_v5  ;;  %v3236_v4 = vld [vmem:[#allocation14 + $0x1028] sm:$0xff]  ;;  %v15089_v5 = vcombine.low %v3199_v57, %v3211_v58  ;;  %v15234_v57 = vcombine.high %v3343_v48, %v3355_v49 }
 0x37a   :  { %12266 = vmatprep.subr.bf16.mxu0 %v14996_v10  ;;  %v15091_v10 = vcombine.low %v3200_v9, %v3212_v60  ;;  %v3367_v9 = vld [vmem:[#allocation14 + $0x1440] sm:$0xff] }
 0x37b   :  { %v3379_v60 = vld [vmem:[#allocation14 + $0x14a0] sm:$0xff] }
 0x38e   :  { %v2450_v12 = vpop.f32.mrb[4].mxu1  ;;  %v17011_v13 = vpop.f32.mrb[8].mxu0 }
 0x38f   :  { %v16157_v17 = vadd.f32 %v2450_v12, %v1058_v7  ;;  %v2452_v14 = vpop.f32.mrb[5].mxu1  ;;  %v2534_v15 = vpop.f32.mrb[9].mxu0  ;;  %v15114_v7 = vcombine.high %v3223_v1, %v3235_v2  ;;  %v3259_v12 = vld [vmem:[#allocation14 + $0x10e0] sm:$0xff] }
 0x390   :  { %v16158_v16 = vadd.f32 %v2452_v14, %v1062_v8  ;;  %v16160_v18 = vadd.f32 %v2534_v15, %v1070_v11  ;;  %v2454_v19 = vpop.f32.mrb[6].mxu1  ;;  %v2536_v50 = vpop.f32.mrb[10].mxu0  ;;  %v15116_v8 = vcombine.high %v3224_v3, %v3236_v4  ;;  %v3247_v11 = vld [vmem:[#allocation14 + $0x1080] sm:$0xff]  ;;  %v3260_v14 = vld [vmem:[#allocation14 + $0x10e8] sm:$0xff]  ;;  %v15113_v15 = vcombine.low %v3223_v1, %v3235_v2 }
 0x391   :  { %v2703_v34 = vmax.f32 %v16157_v17, 0.0  ;;  %v2455_v20 = vpop.f32.mrb[7].mxu1  ;;  %v2537_v21 = vpop.f32.mrb[11].mxu0  ;;  %v3248_v17 = vld [vmem:[#allocation14 + $0x1088] sm:$0xff]  ;;  %v3271_v50 = vld [vmem:[#allocation14 + $0x1140] sm:$0xff]  ;;  %v15258_v1 = vcombine.high %v3367_v9, %v3379_v60 }
 0x392   :  { %v2704_v22 = vmax.f32 %v16158_v16, 0.0  ;;  %v2706_v24 = vmax.f32 %v16160_v18, 0.0  ;;  %v15115_v16 = vcombine.low %v3224_v3, %v3236_v4  ;;  %v15138_v18 = vcombine.high %v3247_v11, %v3259_v12  ;;  %v3272_v20 = vld [vmem:[#allocation14 + $0x1148] sm:$0xff]  ;;  %v3391_v3 = vld [vmem:[#allocation14 + $0x1500] sm:$0xff] }
 0x393   :  { %v17015_v33 = vpack.c.bf16 %v2703_v34, %v2703_v34  ;;  %v15140_v19 = vcombine.high %v3248_v17, %v3260_v14  ;;  %v3283_v34 = vld [vmem:[#allocation14 + $0x11a0] sm:$0xff]  ;;  %v3284_v21 = vld [vmem:[#allocation14 + $0x11a8] sm:$0xff]  ;;  %v15139_v23 = vcombine.low %v3248_v17, %v3260_v14 }
 0x394   :  { %v17013_v30 = vpack.c.bf16 %v2704_v22, %v2704_v22  ;;  %v17019_v41 = vpack.c.bf16 %v2706_v24, %v2706_v24  ;;  %v15137_v22 = vcombine.low %v3247_v11, %v3259_v12  ;;  %v15162_v24 = vcombine.high %v3271_v50, %v3283_v34  ;;  %v3403_v4 = vld [vmem:[#allocation14 + $0x1560] sm:$0xff] }
 0x395   :  { %v15164_v25 = vcombine.high %v3272_v20, %v3284_v21  ;;  %v15161_v35 = vcombine.low %v3271_v50, %v3283_v34  ;;  %v15282_v11 = vcombine.high %v3391_v3, %v3403_v4  ;;  %v3415_v17 = vld [vmem:[#allocation14 + $0x15c0] sm:$0xff] }
 0x396   :  { %12093 = vmatprep.mubr.bf16.mxu1 %v17013_v30  ;;  %12257 = vmatprep.mubr.bf16.mxu0 %v17013_v30  ;;  %v3427_v14 = vld [vmem:[#allocation14 + $0x1620] sm:$0xff] }
 0x397   :  { %12094 = vmatmul.mubr.bf16.vlgmr.msra.gmra.mrb[12].mxu1 %v17015_v33  ;;  %12258 = vmatmul.mubr.bf16.vlgmr.msra.gmra.mrb[16].mxu0 %v17015_v33  ;;  %v15306_v50 = vcombine.high %v3415_v17, %v3427_v14 }
 0x398   :  { %12103 = vmatpush1.bf16.msra.mxu1 %v14993_v56  ;;  %12267 = vmatpush1.bf16.msra.mxu0 %v14995_v32  ;;  %v3296_v56 = vld [vmem:[#allocation14 + $0x1208] sm:$0xff] }
 0x399   :  { %12134 = vmatprep.mubr.bf16.mxu1 %v17019_v41  ;;  %12298 = vmatprep.mubr.bf16.mxu0 %v17019_v41  ;;  %v3308_v32 = vld [vmem:[#allocation14 + $0x1268] sm:$0xff] }
 0x39a   :  { %12104 = vmatprep.subr.bf16.mxu1 %v15018_v36  ;;  %12268 = vmatprep.subr.bf16.mxu0 %v15020_v37  ;;  %v15163_v36 = vcombine.low %v3272_v20, %v3284_v21  ;;  %v15186_v37 = vcombine.high %v3295_v26, %v3307_v27  ;;  %v15188_v38 = vcombine.high %v3296_v56, %v3308_v32  ;;  %v3439_v20 = vld [vmem:[#allocation14 + $0x1680] sm:$0xff] }
 0x39b   :  { %v3451_v21 = vld [vmem:[#allocation14 + $0x16e0] sm:$0xff] }
 0x39c   :  { %12105 = vmatpush1.bf16.msra.mxu1 %v15017_v42  ;;  %12269 = vmatpush1.bf16.msra.mxu0 %v15019_v43  ;;  %v3320_v42 = vld [vmem:[#allocation14 + $0x12c8] sm:$0xff] }
 0x39d   :  { %12106 = vmatprep.subr.bf16.mxu1 %v15042_v44  ;;  %12270 = vmatprep.subr.bf16.mxu0 %v15044_v45  ;;  %v3332_v43 = vld [vmem:[#allocation14 + $0x1328] sm:$0xff]  ;;  %v15185_v44 = vcombine.low %v3295_v26, %v3307_v27  ;;  %v15187_v45 = vcombine.low %v3296_v56, %v3308_v32  ;;  %v1066_v26 = vrot.slane %v17003_v6, %v16986_v59  ;;  %v3463_v32 = vld [vmem:[#allocation14 + $0x1740] sm:$0xff] }
 0x39e   :  { %v15212_v47 = vcombine.high %v3320_v42, %v3332_v43  ;;  %v15330_v27 = vcombine.high %v3439_v20, %v3451_v21 }
 0x3a0   :  { %12107 = vmatpush1.bf16.msra.mxu1 %v15041_v52  ;;  %12271 = vmatpush1.bf16.msra.mxu0 %v15043_v53  ;;  %v3344_v52 = vld [vmem:[#allocation14 + $0x1388] sm:$0xff] }
 0x3a1   :  { %12108 = vmatprep.subr.bf16.mxu1 %v15066_v54  ;;  %12272 = vmatprep.subr.bf16.mxu0 %v15068_v55  ;;  %v3356_v53 = vld [vmem:[#allocation14 + $0x13e8] sm:$0xff]  ;;  %v15209_v54 = vcombine.low %v3319_v39, %v3331_v40  ;;  %v15211_v55 = vcombine.low %v3320_v42, %v3332_v43  ;;  %v16159_v40 = vadd.f32 %v17011_v13, %v1066_v26  ;;  %v3619_v26 = vld [vmem:[#allocation14 + $0x1c20] sm:$0xff] }
 0x3a2   :  { %v15236_v58 = vcombine.high %v3344_v52, %v3356_v53  ;;  %v3512_v13 = vld [vmem:[#allocation14 + $0x18c8] sm:$0xff] }
 0x3a4   :  { %12109 = vmatpush1.bf16.msra.mxu1 %v15065_v61  ;;  %12273 = vmatpush1.bf16.msra.mxu0 %v15067_v62  ;;  %v3368_v61 = vld [vmem:[#allocation14 + $0x1448] sm:$0xff] }
 0x3a5   :  { %12110 = vmatprep.subr.bf16.mxu1 %v15090_v63  ;;  %12274 = vmatprep.subr.bf16.mxu0 %v15092_v0  ;;  %v3380_v62 = vld [vmem:[#allocation14 + $0x14a8] sm:$0xff]  ;;  %v15233_v63 = vcombine.low %v3343_v48, %v3355_v49  ;;  %v15235_v0 = vcombine.low %v3344_v52, %v3356_v53  ;;  %v2705_v52 = vmax.f32 %v16159_v40, 0.0 }
 0x3a6   :  { %v15260_v2 = vcombine.high %v3368_v61, %v3380_v62  ;;  %v3632_v40 = vld [vmem:[#allocation14 + $0x1c88] sm:$0xff] }
 0x3a8   :  { %12111 = vmatpush1.bf16.msra.mxu1 %v15089_v5  ;;  %12275 = vmatpush1.bf16.msra.mxu0 %v15091_v10  ;;  %v3392_v5 = vld [vmem:[#allocation14 + $0x1508] sm:$0xff] }
 0x3a9   :  { %12112 = vmatprep.subr.bf16.mxu1 %v15114_v7  ;;  %12276 = vmatprep.subr.bf16.mxu0 %v15116_v8  ;;  %v3404_v10 = vld [vmem:[#allocation14 + $0x1568] sm:$0xff]  ;;  %v15257_v7 = vcombine.low %v3367_v9, %v3379_v60  ;;  %v15259_v8 = vcombine.low %v3368_v61, %v3380_v62  ;;  %v17028_v61 = vpack.c.bf16 %v2705_v52, %v2705_v52 }
 0x3aa   :  { %v15284_v12 = vcombine.high %v3392_v5, %v3404_v10  ;;  %v3668_v52 = vld [vmem:[#allocation14 + $0x1da8] sm:$0xff] }
 0x3ac   :  { %12113 = vmatpush1.bf16.msra.mxu1 %v15113_v15  ;;  %12277 = vmatpush1.bf16.msra.mxu0 %v15115_v16  ;;  %v3416_v15 = vld [vmem:[#allocation14 + $0x15c8] sm:$0xff] }
 0x3ad   :  { %12114 = vmatprep.subr.bf16.mxu1 %v15138_v18  ;;  %12278 = vmatprep.subr.bf16.mxu0 %v15140_v19  ;;  %v3428_v16 = vld [vmem:[#allocation14 + $0x1628] sm:$0xff]  ;;  %v15281_v18 = vcombine.low %v3391_v3, %v3403_v4  ;;  %v15283_v19 = vcombine.low %v3392_v5, %v3404_v10 }
 0x3ae   :  { %v15308_v34 = vcombine.high %v3416_v15, %v3428_v16  ;;  %v3548_v3 = vld [vmem:[#allocation14 + $0x19e8] sm:$0xff] }
 0x3b0   :  { %12115 = vmatpush1.bf16.msra.mxu1 %v15137_v22  ;;  %12279 = vmatpush1.bf16.msra.mxu0 %v15139_v23  ;;  %v3440_v22 = vld [vmem:[#allocation14 + $0x1688] sm:$0xff] }
 0x3b1   :  { %12116 = vmatprep.subr.bf16.mxu1 %v15162_v24  ;;  %12280 = vmatprep.subr.bf16.mxu0 %v15164_v25  ;;  %v3452_v23 = vld [vmem:[#allocation14 + $0x16e8] sm:$0xff]  ;;  %v15305_v24 = vcombine.low %v3415_v17, %v3427_v14  ;;  %v15307_v25 = vcombine.low %v3416_v15, %v3428_v16 }
 0x3b2   :  { %v15332_v56 = vcombine.high %v3440_v22, %v3452_v23  ;;  %v15331_v39 = vcombine.low %v3440_v22, %v3452_v23  ;;  %v3572_v17 = vld [vmem:[#allocation14 + $0x1aa8] sm:$0xff] }
 0x3b4   :  { %12117 = vmatpush1.bf16.msra.mxu1 %v15161_v35  ;;  %12281 = vmatpush1.bf16.msra.mxu0 %v15163_v36  ;;  %v3475_v35 = vld [vmem:[#allocation14 + $0x17a0] sm:$0xff]  ;;  %v3464_v36 = vld [vmem:[#allocation14 + $0x1748] sm:$0xff] }
 0x3b5   :  { %12118 = vmatprep.subr.bf16.mxu1 %v15186_v37  ;;  %12282 = vmatprep.subr.bf16.mxu0 %v15188_v38  ;;  %v3476_v37 = vld [vmem:[#allocation14 + $0x17a8] sm:$0xff]  ;;  %v15329_v38 = vcombine.low %v3439_v20, %v3451_v21  ;;  %v15354_v42 = vcombine.high %v3463_v32, %v3475_v35  ;;  %v15353_v48 = vcombine.low %v3463_v32, %v3475_v35 }
 0x3b6   :  { %v15356_v43 = vcombine.high %v3464_v36, %v3476_v37  ;;  %v15355_v49 = vcombine.low %v3464_v36, %v3476_v37  ;;  %v3596_v20 = vld [vmem:[#allocation14 + $0x1b68] sm:$0xff] }
 0x3b8   :  { %12119 = vmatpush1.bf16.msra.mxu1 %v15185_v44  ;;  %12283 = vmatpush1.bf16.msra.mxu0 %v15187_v45  ;;  %v3487_v44 = vld [vmem:[#allocation14 + $0x1800] sm:$0xff] }
 0x3b9   :  { %12120 = vmatprep.subr.bf16.mxu1 %v15210_v46  ;;  %12284 = vmatprep.subr.bf16.mxu0 %v15212_v47  ;;  %v3499_v45 = vld [vmem:[#allocation14 + $0x1860] sm:$0xff]  ;;  %v3488_v46 = vld [vmem:[#allocation14 + $0x1808] sm:$0xff] }
 0x3ba   :  { %v3500_v47 = vld [vmem:[#allocation14 + $0x1868] sm:$0xff]  ;;  %v15378_v53 = vcombine.high %v3487_v44, %v3499_v45  ;;  %v15377_v9 = vcombine.low %v3487_v44, %v3499_v45 }
 0x3bb   :  { %v15379_v60 = vcombine.low %v3488_v46, %v3500_v47 }
 0x3bc   :  { %12121 = vmatpush1.bf16.msra.mxu1 %v15209_v54  ;;  %12285 = vmatpush1.bf16.msra.mxu0 %v15211_v55  ;;  %v15380_v54 = vcombine.high %v3488_v46, %v3500_v47  ;;  %v3511_v55 = vld [vmem:[#allocation14 + $0x18c0] sm:$0xff] }
 0x3bd   :  { %12122 = vmatprep.subr.bf16.mxu1 %v15234_v57  ;;  %12286 = vmatprep.subr.bf16.mxu0 %v15236_v58  ;;  %v3523_v57 = vld [vmem:[#allocation14 + $0x1920] sm:$0xff]  ;;  %v3524_v58 = vld [vmem:[#allocation14 + $0x1928] sm:$0xff] }
 0x3be   :  { %v15402_v62 = vcombine.high %v3511_v55, %v3523_v57  ;;  %v15401_v4 = vcombine.low %v3511_v55, %v3523_v57  ;;  %v15403_v5 = vcombine.low %v3512_v13, %v3524_v58  ;;  %v3655_v47 = vld [vmem:[#allocation14 + $0x1d40] sm:$0xff] }
 0x3c0   :  { %12123 = vmatpush1.bf16.msra.mxu1 %v15233_v63  ;;  %12287 = vmatpush1.bf16.msra.mxu0 %v15235_v0  ;;  %v15404_v63 = vcombine.high %v3512_v13, %v3524_v58  ;;  %v3535_v0 = vld [vmem:[#allocation14 + $0x1980] sm:$0xff] }
 0x3c1   :  { %12124 = vmatprep.subr.bf16.mxu1 %v15258_v1  ;;  %12288 = vmatprep.subr.bf16.mxu0 %v15260_v2  ;;  %v3547_v1 = vld [vmem:[#allocation14 + $0x19e0] sm:$0xff]  ;;  %v3536_v2 = vld [vmem:[#allocation14 + $0x1988] sm:$0xff] }
 0x3c2   :  { %v15426_v10 = vcombine.high %v3535_v0, %v3547_v1  ;;  %v15425_v14 = vcombine.low %v3535_v0, %v3547_v1  ;;  %v15427_v15 = vcombine.low %v3536_v2, %v3548_v3  ;;  %v3679_v13 = vld [vmem:[#allocation14 + $0x1e00] sm:$0xff] }
 0x3c3   :  { %v3691_v58 = vld [vmem:[#allocation14 + $0x1e60] sm:$0xff] }
 0x3c4   :  { %12125 = vmatpush1.bf16.msra.mxu1 %v15257_v7  ;;  %12289 = vmatpush1.bf16.msra.mxu0 %v15259_v8  ;;  %v15428_v7 = vcombine.high %v3536_v2, %v3548_v3  ;;  %v3559_v8 = vld [vmem:[#allocation14 + $0x1a40] sm:$0xff]  ;;  %v15570_v0 = vcombine.high %v3679_v13, %v3691_v58 }
 0x3c5   :  { %12126 = vmatprep.subr.bf16.mxu1 %v15282_v11  ;;  %12290 = vmatprep.subr.bf16.mxu0 %v15284_v12  ;;  %v3571_v11 = vld [vmem:[#allocation14 + $0x1aa0] sm:$0xff]  ;;  %v3560_v12 = vld [vmem:[#allocation14 + $0x1a48] sm:$0xff] }
 0x3c6   :  { %v15450_v16 = vcombine.high %v3559_v8, %v3571_v11  ;;  %v15449_v21 = vcombine.low %v3559_v8, %v3571_v11  ;;  %v15451_v22 = vcombine.low %v3560_v12, %v3572_v17  ;;  %v3703_v2 = vld [vmem:[#allocation14 + $0x1ec0] sm:$0xff] }
 0x3c7   :  { %v3715_v3 = vld [vmem:[#allocation14 + $0x1f20] sm:$0xff] }
 0x3c8   :  { %12127 = vmatpush1.bf16.msra.mxu1 %v15281_v18  ;;  %12291 = vmatpush1.bf16.msra.mxu0 %v15283_v19  ;;  %v15452_v18 = vcombine.high %v3560_v12, %v3572_v17  ;;  %v3583_v19 = vld [vmem:[#allocation14 + $0x1b00] sm:$0xff]  ;;  %v15594_v8 = vcombine.high %v3703_v2, %v3715_v3 }
 0x3c9   :  { %12128 = vmatprep.subr.bf16.mxu1 %v15306_v50  ;;  %12292 = vmatprep.subr.bf16.mxu0 %v15308_v34  ;;  %v3595_v50 = vld [vmem:[#allocation14 + $0x1b60] sm:$0xff]  ;;  %v3584_v34 = vld [vmem:[#allocation14 + $0x1b08] sm:$0xff] }
 0x3ca   :  { %v15474_v23 = vcombine.high %v3583_v19, %v3595_v50  ;;  %v15473_v32 = vcombine.low %v3583_v19, %v3595_v50  ;;  %v15475_v35 = vcombine.low %v3584_v34, %v3596_v20  ;;  %v3727_v12 = vld [vmem:[#allocation14 + $0x1f80] sm:$0xff] }
 0x3cb   :  { %v3739_v17 = vld [vmem:[#allocation14 + $0x1fe0] sm:$0xff] }
 0x3cc   :  { %12129 = vmatpush1.bf16.msra.mxu1 %v15305_v24  ;;  %12293 = vmatpush1.bf16.msra.mxu0 %v15307_v25  ;;  %v15476_v24 = vcombine.high %v3584_v34, %v3596_v20  ;;  %v3607_v25 = vld [vmem:[#allocation14 + $0x1bc0] sm:$0xff]  ;;  %v15618_v19 = vcombine.high %v3727_v12, %v3739_v17 }
 0x3cd   :  { %12130 = vmatprep.subr.bf16.mxu1 %v15330_v27  ;;  %12294 = vmatprep.subr.bf16.mxu0 %v15332_v56  ;;  %v3608_v27 = vld [vmem:[#allocation14 + $0x1bc8] sm:$0xff]  ;;  %v15498_v36 = vcombine.high %v3607_v25, %v3619_v26  ;;  %v3751_v34 = vld [vmem:[#allocation14 + $0x2040] sm:$0xff] }
 0x3ce   :  { %v3620_v56 = vld [vmem:[#allocation14 + $0x1c28] sm:$0xff]  ;;  %v3763_v20 = vld [vmem:[#allocation14 + $0x20a0] sm:$0xff] }
 0x3cf   :  { %v15500_v37 = vcombine.high %v3608_v27, %v3620_v56  ;;  %v15499_v44 = vcombine.low %v3608_v27, %v3620_v56  ;;  %v3775_v27 = vld [vmem:[#allocation14 + $0x2100] sm:$0xff] }
 0x3d0   :  { %12131 = vmatpush1.bf16.msra.mxu1 %v15329_v38  ;;  %12295 = vmatpush1.bf16.msra.mxu0 %v15331_v39  ;;  %v3631_v38 = vld [vmem:[#allocation14 + $0x1c80] sm:$0xff] }
 0x3d1   :  { %12132 = vmatprep.subr.bf16.mxu1 %v15354_v42  ;;  %12296 = vmatprep.subr.bf16.mxu0 %v15356_v43  ;;  %v3643_v39 = vld [vmem:[#allocation14 + $0x1ce0] sm:$0xff]  ;;  %v3644_v42 = vld [vmem:[#allocation14 + $0x1ce8] sm:$0xff]  ;;  %v15497_v43 = vcombine.low %v3607_v25, %v3619_v26  ;;  %v15642_v25 = vcombine.high %v3751_v34, %v3763_v20 }
 0x3d2   :  { %v15522_v45 = vcombine.high %v3631_v38, %v3643_v39  ;;  %v15524_v46 = vcombine.high %v3632_v40, %v3644_v42  ;;  %v3787_v56 = vld [vmem:[#allocation14 + $0x2160] sm:$0xff] }
 0x3d4   :  { %12133 = vmatpush1.bf16.msra.mxu1 %v15353_v48  ;;  %12297 = vmatpush1.bf16.msra.mxu0 %v15355_v49  ;;  %v3667_v48 = vld [vmem:[#allocation14 + $0x1da0] sm:$0xff]  ;;  %v3656_v49 = vld [vmem:[#allocation14 + $0x1d48] sm:$0xff] }
 0x3d5   :  { %12143 = vmatprep.subr.bf16.mxu1 %v15378_v53  ;;  %12307 = vmatprep.subr.bf16.mxu0 %v15380_v54  ;;  %v15521_v53 = vcombine.low %v3631_v38, %v3643_v39  ;;  %v15523_v54 = vcombine.low %v3632_v40, %v3644_v42  ;;  %v15546_v55 = vcombine.high %v3655_v47, %v3667_v48  ;;  %v3799_v40 = vld [vmem:[#allocation14 + $0x21c0] sm:$0xff] }
 0x3d6   :  { %v15548_v57 = vcombine.high %v3656_v49, %v3668_v52  ;;  %v15666_v38 = vcombine.high %v3775_v27, %v3787_v56  ;;  %v3811_v42 = vld [vmem:[#allocation14 + $0x2220] sm:$0xff] }
 0x3d7   :  { %12135 = vmatmul.mubr.bf16.vlgmr.msra.gmra.mrb[12].mxu1 %v17028_v61  ;;  %12299 = vmatmul.mubr.bf16.vlgmr.msra.gmra.mrb[16].mxu0 %v17028_v61 }
 0x3d8   :  { %12144 = vmatpush1.bf16.msra.mxu1 %v15377_v9  ;;  %12308 = vmatpush1.bf16.msra.mxu0 %v15379_v60  ;;  %v3680_v9 = vld [vmem:[#allocation14 + $0x1e08] sm:$0xff] }
 0x3d9   :  { %12145 = vmatprep.subr.bf16.mxu1 %v15402_v62  ;;  %12309 = vmatprep.subr.bf16.mxu0 %v15404_v63  ;;  %v3692_v60 = vld [vmem:[#allocation14 + $0x1e68] sm:$0xff]  ;;  %v15545_v62 = vcombine.low %v3655_v47, %v3667_v48  ;;  %v15547_v63 = vcombine.low %v3656_v49, %v3668_v52  ;;  %v15690_v47 = vcombine.high %v3799_v40, %v3811_v42  ;;  %v3823_v49 = vld [vmem:[#allocation14 + $0x2280] sm:$0xff] }
 0x3da   :  { %v15572_v1 = vcombine.high %v3680_v9, %v3692_v60  ;;  %v3835_v52 = vld [vmem:[#allocation14 + $0x22e0] sm:$0xff] }
 0x3dc   :  { %12146 = vmatpush1.bf16.msra.mxu1 %v15401_v4  ;;  %12310 = vmatpush1.bf16.msra.mxu0 %v15403_v5  ;;  %v3704_v4 = vld [vmem:[#allocation14 + $0x1ec8] sm:$0xff] }
 0x3dd   :  { %12147 = vmatprep.subr.bf16.mxu1 %v15426_v10  ;;  %12311 = vmatprep.subr.bf16.mxu0 %v15428_v7  ;;  %v3716_v5 = vld [vmem:[#allocation14 + $0x1f28] sm:$0xff]  ;;  %v15569_v10 = vcombine.low %v3679_v13, %v3691_v58  ;;  %v15571_v7 = vcombine.low %v3680_v9, %v3692_v60  ;;  %v17036_v58 = vsub.s32 5, %v16950_v28  ;;  %v15714_v9 = vcombine.high %v3823_v49, %v3835_v52 }
 0x3de   :  { %v15596_v11 = vcombine.high %v3704_v4, %v3716_v5 }
 0x3e0   :  { %12148 = vmatpush1.bf16.msra.mxu1 %v15425_v14  ;;  %12312 = vmatpush1.bf16.msra.mxu0 %v15427_v15  ;;  %v3728_v14 = vld [vmem:[#allocation14 + $0x1f88] sm:$0xff] }
 0x3e1   :  { %12149 = vmatprep.subr.bf16.mxu1 %v15450_v16  ;;  %12313 = vmatprep.subr.bf16.mxu0 %v15452_v18  ;;  %v3740_v15 = vld [vmem:[#allocation14 + $0x1fe8] sm:$0xff]  ;;  %v15593_v16 = vcombine.low %v3703_v2, %v3715_v3  ;;  %v15595_v18 = vcombine.low %v3704_v4, %v3716_v5  ;;  %v15713_v4 = vcombine.low %v3823_v49, %v3835_v52  ;;  %v3931_v49 = vld [vmem:[#allocation14 + $0x25e0] sm:$0xff] }
 0x3e2   :  { %v15620_v50 = vcombine.high %v3728_v14, %v3740_v15  ;;  %v3860_v2 = vld [vmem:[#allocation14 + $0x23a8] sm:$0xff] }
 0x3e3   :  { %v3920_v52 = vld [vmem:[#allocation14 + $0x2588] sm:$0xff] }
 0x3e4   :  { %12150 = vmatpush1.bf16.msra.mxu1 %v15449_v21  ;;  %12314 = vmatpush1.bf16.msra.mxu0 %v15451_v22  ;;  %v3752_v21 = vld [vmem:[#allocation14 + $0x2048] sm:$0xff] }
 0x3e5   :  { %12151 = vmatprep.subr.bf16.mxu1 %v15474_v23  ;;  %12315 = vmatprep.subr.bf16.mxu0 %v15476_v24  ;;  %v3764_v22 = vld [vmem:[#allocation14 + $0x20a8] sm:$0xff]  ;;  %v15617_v23 = vcombine.low %v3727_v12, %v3739_v17  ;;  %v15619_v24 = vcombine.low %v3728_v14, %v3740_v15  ;;  %v3871_v12 = vld [vmem:[#allocation14 + $0x2400] sm:$0xff] }
 0x3e6   :  { %v15644_v26 = vcombine.high %v3752_v21, %v3764_v22  ;;  %v3883_v14 = vld [vmem:[#allocation14 + $0x2460] sm:$0xff]  ;;  %v3872_v15 = vld [vmem:[#allocation14 + $0x2408] sm:$0xff] }
 0x3e8   :  { %12152 = vmatpush1.bf16.msra.mxu1 %v15473_v32  ;;  %12316 = vmatpush1.bf16.msra.mxu0 %v15475_v35  ;;  %v3776_v32 = vld [vmem:[#allocation14 + $0x2108] sm:$0xff] }
 0x3e9   :  { %12153 = vmatprep.subr.bf16.mxu1 %v15498_v36  ;;  %12317 = vmatprep.subr.bf16.mxu0 %v15500_v37  ;;  %v3788_v35 = vld [vmem:[#allocation14 + $0x2168] sm:$0xff]  ;;  %v15641_v36 = vcombine.low %v3751_v34, %v3763_v20  ;;  %v15643_v37 = vcombine.low %v3752_v21, %v3764_v22 }
 0x3ea   :  { %v15668_v39 = vcombine.high %v3776_v32, %v3788_v35 }
 0x3ec   :  { %12154 = vmatpush1.bf16.msra.mxu1 %v15497_v43  ;;  %12318 = vmatpush1.bf16.msra.mxu0 %v15499_v44  ;;  %v3800_v43 = vld [vmem:[#allocation14 + $0x21c8] sm:$0xff] }
 0x3ed   :  { %12155 = vmatprep.subr.bf16.mxu1 %v15522_v45  ;;  %12319 = vmatprep.subr.bf16.mxu0 %v15524_v46  ;;  %v3812_v44 = vld [vmem:[#allocation14 + $0x2228] sm:$0xff]  ;;  %v15665_v45 = vcombine.low %v3775_v27, %v3787_v56  ;;  %v15667_v46 = vcombine.low %v3776_v32, %v3788_v35  ;;  %v15762_v27 = vcombine.high %v3871_v12, %v3883_v14 }
 0x3ee   :  { %v15692_v48 = vcombine.high %v3800_v43, %v3812_v44  ;;  %v15691_v13 = vcombine.low %v3800_v43, %v3812_v44  ;;  %v15761_v43 = vcombine.low %v3871_v12, %v3883_v14  ;;  %v3980_v12 = vld [vmem:[#allocation14 + $0x2768] sm:$0xff] }
 0x3f0   :  { %12156 = vmatpush1.bf16.msra.mxu1 %v15521_v53  ;;  %12320 = vmatpush1.bf16.msra.mxu0 %v15523_v54  ;;  %v3824_v53 = vld [vmem:[#allocation14 + $0x2288] sm:$0xff] }
 0x3f1   :  { %12157 = vmatprep.subr.bf16.mxu1 %v15546_v55  ;;  %12321 = vmatprep.subr.bf16.mxu0 %v15548_v57  ;;  %v3836_v54 = vld [vmem:[#allocation14 + $0x22e8] sm:$0xff]  ;;  %v17033_v55 = vsub.s32 4, %v16950_v28  ;;  %v15689_v57 = vcombine.low %v3799_v40, %v3811_v42 }
 0x3f2   :  { %v15716_v60 = vcombine.high %v3824_v53, %v3836_v54  ;;  %v15715_v5 = vcombine.low %v3824_v53, %v3836_v54  ;;  %v3908_v40 = vld [vmem:[#allocation14 + $0x2528] sm:$0xff] }
 0x3f3   :  { %v1074_v3 = vrot.slane %v17003_v6, %v17033_v55  ;;  %v3932_v53 = vld [vmem:[#allocation14 + $0x25e8] sm:$0xff] }
 0x3f4   :  { %12158 = vmatpush1.bf16.msra.mxu1 %v15545_v62  ;;  %12322 = vmatpush1.bf16.msra.mxu0 %v15547_v63  ;;  %v17039_v62 = vsub.s32 7, %v16950_v28  ;;  %v3847_v63 = vld [vmem:[#allocation14 + $0x2340] sm:$0xff] }
 0x3f5   :  { %12159 = vmatprep.subr.bf16.mxu1 %v15570_v0  ;;  %12323 = vmatprep.subr.bf16.mxu0 %v15572_v1  ;;  %v3859_v0 = vld [vmem:[#allocation14 + $0x23a0] sm:$0xff]  ;;  %v3848_v1 = vld [vmem:[#allocation14 + $0x2348] sm:$0xff] }
 0x3f6   :  { %v15737_v22 = vcombine.low %v3847_v63, %v3859_v0 }
 0x3f8   :  { %12160 = vmatpush1.bf16.msra.mxu1 %v15569_v10  ;;  %12324 = vmatpush1.bf16.msra.mxu0 %v15571_v7  ;;  %v1078_v10 = vrot.slane %v17003_v6, %v17036_v58  ;;  %v1086_v7 = vrot.slane %v17003_v6, %v17039_v62 }
 0x3f9   :  { %12161 = vmatprep.subr.bf16.mxu1 %v15594_v8  ;;  %12325 = vmatprep.subr.bf16.mxu0 %v15596_v11  ;;  %v15738_v8 = vcombine.high %v3847_v63, %v3859_v0  ;;  %v15740_v11 = vcombine.high %v3848_v1, %v3860_v2  ;;  %v3943_v63 = vld [vmem:[#allocation14 + $0x2640] sm:$0xff] }
 0x3fa   :  { %v3955_v0 = vld [vmem:[#allocation14 + $0x26a0] sm:$0xff] }
 0x3fc   :  { %12162 = vmatpush1.bf16.msra.mxu1 %v15593_v16  ;;  %12326 = vmatpush1.bf16.msra.mxu0 %v15595_v18  ;;  %v3884_v16 = vld [vmem:[#allocation14 + $0x2468] sm:$0xff] }
 0x3fd   :  { %12163 = vmatprep.subr.bf16.mxu1 %v15618_v19  ;;  %12327 = vmatprep.subr.bf16.mxu0 %v15620_v50  ;;  %v15764_v56 = vcombine.high %v3872_v15, %v3884_v16  ;;  %v15763_v44 = vcombine.low %v3872_v15, %v3884_v16 }
 0x400   :  { %12164 = vmatpush1.bf16.msra.mxu1 %v15617_v23  ;;  %12328 = vmatpush1.bf16.msra.mxu0 %v15619_v24  ;;  %v15739_v23 = vcombine.low %v3848_v1, %v3860_v2  ;;  %v3944_v1 = vld [vmem:[#allocation14 + $0x2648] sm:$0xff] }
 0x401   :  { %12165 = vmatprep.subr.bf16.mxu1 %v15642_v25  ;;  %12329 = vmatprep.subr.bf16.mxu0 %v15644_v26  ;;  %v3956_v2 = vld [vmem:[#allocation14 + $0x26a8] sm:$0xff] }
 0x402   :  { %v15835_v14 = vcombine.low %v3944_v1, %v3956_v2 }
 0x404   :  { %12166 = vmatpush1.bf16.msra.mxu1 %v15641_v36  ;;  %12330 = vmatpush1.bf16.msra.mxu0 %v15643_v37  ;;  %v3895_v36 = vld [vmem:[#allocation14 + $0x24c0] sm:$0xff] }
 0x405   :  { %12167 = vmatprep.subr.bf16.mxu1 %v15666_v38  ;;  %12331 = vmatprep.subr.bf16.mxu0 %v15668_v39  ;;  %v3907_v38 = vld [vmem:[#allocation14 + $0x2520] sm:$0xff]  ;;  %v3896_v39 = vld [vmem:[#allocation14 + $0x24c8] sm:$0xff] }
 0x408   :  { %12168 = vmatpush1.bf16.msra.mxu1 %v15665_v45  ;;  %12332 = vmatpush1.bf16.msra.mxu0 %v15667_v46  ;;  %v3919_v46 = vld [vmem:[#allocation14 + $0x2580] sm:$0xff] }
 0x409   :  { %12169 = vmatprep.subr.bf16.mxu1 %v15690_v47  ;;  %12333 = vmatprep.subr.bf16.mxu0 %v15692_v48  ;;  %v15786_v47 = vcombine.high %v3895_v36, %v3907_v38  ;;  %v15788_v48 = vcombine.high %v3896_v39, %v3908_v40 }
 0x40c   :  { %12170 = vmatpush1.bf16.msra.mxu1 %v15689_v57  ;;  %12334 = vmatpush1.bf16.msra.mxu0 %v15691_v13  ;;  %v15785_v57 = vcombine.low %v3895_v36, %v3907_v38  ;;  %v15787_v13 = vcombine.low %v3896_v39, %v3908_v40  ;;  %v4051_v38 = vld [vmem:[#allocation14 + $0x29a0] sm:$0xff]  ;;  %v4040_v39 = vld [vmem:[#allocation14 + $0x2948] sm:$0xff] }
 0x40d   :  { %12171 = vmatprep.subr.bf16.mxu1 %v15714_v9  ;;  %12335 = vmatprep.subr.bf16.mxu0 %v15716_v60  ;;  %v15810_v9 = vcombine.high %v3919_v46, %v3931_v49  ;;  %v15812_v60 = vcombine.high %v3920_v52, %v3932_v53  ;;  %v4052_v40 = vld [vmem:[#allocation14 + $0x29a8] sm:$0xff] }
 0x40e   :  { %v2614_v17 = vpop.f32.mrb[8].mxu1 }
 0x40f   :  { %v16161_v18 = vadd.f32 %v2614_v17, %v1074_v3  ;;  %v17047_v19 = vpop.f32.mrb[12].mxu0  ;;  %v2616_v50 = vpop.f32.mrb[9].mxu1  ;;  %v15809_v3 = vcombine.low %v3919_v46, %v3931_v49  ;;  %v15833_v17 = vcombine.low %v3943_v63, %v3955_v0  ;;  %v4075_v49 = vld [vmem:[#allocation14 + $0x2a60] sm:$0xff] }
 0x410   :  { %v16162_v34 = vadd.f32 %v2616_v50, %v1078_v10  ;;  %v2698_v20 = vpop.f32.mrb[13].mxu0  ;;  %12172 = vmatpush1.bf16.msra.mxu1 %v15713_v4  ;;  %12336 = vmatpush1.bf16.msra.mxu0 %v15715_v5  ;;  %v2618_v21 = vpop.f32.mrb[10].mxu1  ;;  %v15811_v4 = vcombine.low %v3920_v52, %v3932_v53  ;;  %v15834_v5 = vcombine.high %v3943_v63, %v3955_v0  ;;  %v4003_v50 = vld [vmem:[#allocation14 + $0x2820] sm:$0xff]  ;;  %v4064_v52 = vld [vmem:[#allocation14 + $0x2a08] sm:$0xff] }
 0x411   :  { %v2707_v24 = vmax.f32 %v16161_v18, 0.0  ;;  %v16164_v6 = vadd.f32 %v2698_v20, %v1086_v7  ;;  %v2700_v25 = vpop.f32.mrb[14].mxu0  ;;  %v2619_v26 = vpop.f32.mrb[11].mxu1  ;;  %12173 = vmatprep.subr.bf16.mxu1 %v15738_v8  ;;  %12337 = vmatprep.subr.bf16.mxu0 %v15740_v11  ;;  %v15836_v10 = vcombine.high %v3944_v1, %v3956_v2  ;;  %v3967_v7 = vld [vmem:[#allocation14 + $0x2700] sm:$0xff]  ;;  %v3968_v11 = vld [vmem:[#allocation14 + $0x2708] sm:$0xff] }
 0x412   :  { %v2708_v32 = vmax.f32 %v16162_v34, 0.0  ;;  %v2701_v35 = vpop.f32.mrb[15].mxu0  ;;  %v3979_v8 = vld [vmem:[#allocation14 + $0x2760] sm:$0xff]  ;;  %v15860_v16 = vcombine.high %v3968_v11, %v3980_v12  ;;  %v3992_v34 = vld [vmem:[#allocation14 + $0x27c8] sm:$0xff] }
 0x413   :  { %v2710_v37 = vmax.f32 %v16164_v6, 0.0  ;;  %v17051_v45 = vpack.c.bf16 %v2707_v24, %v2707_v24  ;;  %v15858_v15 = vcombine.high %v3967_v7, %v3979_v8  ;;  %v3991_v18 = vld [vmem:[#allocation14 + $0x27c0] sm:$0xff]  ;;  %v4004_v20 = vld [vmem:[#allocation14 + $0x2828] sm:$0xff]  ;;  %v15857_v21 = vcombine.low %v3967_v7, %v3979_v8 }
 0x414   :  { %v17049_v42 = vpack.c.bf16 %v2708_v32, %v2708_v32  ;;  %12174 = vmatpush1.bf16.msra.mxu1 %v15737_v22  ;;  %12338 = vmatpush1.bf16.msra.mxu0 %v15739_v23  ;;  %v15859_v22 = vcombine.low %v3968_v11, %v3980_v12  ;;  %v15882_v23 = vcombine.high %v3991_v18, %v4003_v50  ;;  %v4015_v6 = vld [vmem:[#allocation14 + $0x2880] sm:$0xff]  ;;  %v4016_v26 = vld [vmem:[#allocation14 + $0x2888] sm:$0xff] }
 0x415   :  { %12184 = vmatprep.subr.bf16.mxu1 %v15762_v27  ;;  %12348 = vmatprep.subr.bf16.mxu0 %v15764_v56  ;;  %v17055_v54 = vpack.c.bf16 %v2710_v37, %v2710_v37  ;;  %v15884_v24 = vcombine.high %v3992_v34, %v4004_v20  ;;  %v4027_v25 = vld [vmem:[#allocation14 + $0x28e0] sm:$0xff]  ;;  %v4028_v27 = vld [vmem:[#allocation14 + $0x28e8] sm:$0xff]  ;;  %v15881_v56 = vcombine.low %v3991_v18, %v4003_v50 }
 0x416   :  { %12175 = vmatprep.mubr.bf16.mxu1 %v17049_v42  ;;  %12339 = vmatprep.mubr.bf16.mxu0 %v17049_v42  ;;  %v15883_v32 = vcombine.low %v3992_v34, %v4004_v20  ;;  %v15906_v35 = vcombine.high %v4015_v6, %v4027_v25  ;;  %v15908_v36 = vcombine.high %v4016_v26, %v4028_v27  ;;  %v4039_v37 = vld [vmem:[#allocation14 + $0x2940] sm:$0xff]  ;;  %v4076_v53 = vld [vmem:[#allocation14 + $0x2a68] sm:$0xff] }
 0x417   :  { %12176 = vmatmul.mubr.bf16.vlgmr.msra.gmra.mrb[12].mxu1 %v17051_v45  ;;  %12340 = vmatmul.mubr.bf16.vlgmr.msra.gmra.mrb[16].mxu0 %v17051_v45  ;;  %v15930_v46 = vcombine.high %v4039_v37, %v4051_v38  ;;  %v4087_v63 = vld [vmem:[#allocation14 + $0x2ac0] sm:$0xff]  ;;  %v4088_v1 = vld [vmem:[#allocation14 + $0x2ac8] sm:$0xff] }
 0x418   :  { %12185 = vmatpush1.bf16.msra.mxu1 %v15761_v43  ;;  %12349 = vmatpush1.bf16.msra.mxu0 %v15763_v44  ;;  %v15905_v43 = vcombine.low %v4015_v6, %v4027_v25  ;;  %v15907_v44 = vcombine.low %v4016_v26, %v4028_v27  ;;  %v4099_v0 = vld [vmem:[#allocation14 + $0x2b20] sm:$0xff]  ;;  %v4100_v2 = vld [vmem:[#allocation14 + $0x2b28] sm:$0xff] }
 0x419   :  { %12216 = vmatprep.mubr.bf16.mxu1 %v17055_v54  ;;  %12380 = vmatprep.mubr.bf16.mxu0 %v17055_v54  ;;  %v4111_v7 = vld [vmem:[#allocation14 + $0x2b80] sm:$0xff]  ;;  %v4112_v11 = vld [vmem:[#allocation14 + $0x2b88] sm:$0xff] }
 0x41a   :  { %12186 = vmatprep.subr.bf16.mxu1 %v15786_v47  ;;  %12350 = vmatprep.subr.bf16.mxu0 %v15788_v48  ;;  %v15932_v47 = vcombine.high %v4040_v39, %v4052_v40  ;;  %v4063_v48 = vld [vmem:[#allocation14 + $0x2a00] sm:$0xff]  ;;  %v4124_v12 = vld [vmem:[#allocation14 + $0x2be8] sm:$0xff] }
 0x41b   :  { %v4123_v8 = vld [vmem:[#allocation14 + $0x2be0] sm:$0xff]  ;;  %v4136_v34 = vld [vmem:[#allocation14 + $0x2c48] sm:$0xff] }
 0x41c   :  { %12187 = vmatpush1.bf16.msra.mxu1 %v15785_v57  ;;  %12351 = vmatpush1.bf16.msra.mxu0 %v15787_v13  ;;  %v15929_v57 = vcombine.low %v4039_v37, %v4051_v38  ;;  %v15931_v13 = vcombine.low %v4040_v39, %v4052_v40  ;;  %v4135_v18 = vld [vmem:[#allocation14 + $0x2c40] sm:$0xff]  ;;  %v4148_v20 = vld [vmem:[#allocation14 + $0x2ca8] sm:$0xff] }
 0x41d   :  { %12188 = vmatprep.subr.bf16.mxu1 %v15810_v9  ;;  %12352 = vmatprep.subr.bf16.mxu0 %v15812_v60  ;;  %v15954_v9 = vcombine.high %v4063_v48, %v4075_v49  ;;  %v15956_v60 = vcombine.high %v4064_v52, %v4076_v53  ;;  %v4147_v50 = vld [vmem:[#allocation14 + $0x2ca0] sm:$0xff]  ;;  %v4160_v26 = vld [vmem:[#allocation14 + $0x2d08] sm:$0xff] }
 0x41e   :  { %v4159_v6 = vld [vmem:[#allocation14 + $0x2d00] sm:$0xff]  ;;  %v4172_v27 = vld [vmem:[#allocation14 + $0x2d68] sm:$0xff] }
 0x41f   :  { %v4171_v25 = vld [vmem:[#allocation14 + $0x2d60] sm:$0xff]  ;;  %v4184_v39 = vld [vmem:[#allocation14 + $0x2dc8] sm:$0xff] }
 0x420   :  { %12189 = vmatpush1.bf16.msra.mxu1 %v15809_v3  ;;  %12353 = vmatpush1.bf16.msra.mxu0 %v15811_v4  ;;  %v15953_v3 = vcombine.low %v4063_v48, %v4075_v49  ;;  %v15955_v4 = vcombine.low %v4064_v52, %v4076_v53  ;;  %v4183_v37 = vld [vmem:[#allocation14 + $0x2dc0] sm:$0xff]  ;;  %v4196_v40 = vld [vmem:[#allocation14 + $0x2e28] sm:$0xff] }
 0x421   :  { %12190 = vmatprep.subr.bf16.mxu1 %v15834_v5  ;;  %12354 = vmatprep.subr.bf16.mxu0 %v15836_v10  ;;  %v15978_v5 = vcombine.high %v4087_v63, %v4099_v0  ;;  %v15980_v10 = vcombine.high %v4088_v1, %v4100_v2  ;;  %v4195_v38 = vld [vmem:[#allocation14 + $0x2e20] sm:$0xff]  ;;  %v16076_v48 = vcombine.high %v4184_v39, %v4196_v40  ;;  %v4208_v53 = vld [vmem:[#allocation14 + $0x2e88] sm:$0xff] }
 0x422   :  { %v4207_v49 = vld [vmem:[#allocation14 + $0x2e80] sm:$0xff] }
 0x423   :  { %v4219_v52 = vld [vmem:[#allocation14 + $0x2ee0] sm:$0xff] }
 0x424   :  { %12191 = vmatpush1.bf16.msra.mxu1 %v15833_v17  ;;  %12355 = vmatpush1.bf16.msra.mxu0 %v15835_v14  ;;  %v15977_v17 = vcombine.low %v4087_v63, %v4099_v0  ;;  %v15979_v14 = vcombine.low %v4088_v1, %v4100_v2  ;;  %v16098_v0 = vcombine.high %v4207_v49, %v4219_v52  ;;  %v4231_v2 = vld [vmem:[#allocation14 + $0x2f40] sm:$0xff] }
 0x425   :  { %12192 = vmatprep.subr.bf16.mxu1 %v15858_v15  ;;  %12356 = vmatprep.subr.bf16.mxu0 %v15860_v16  ;;  %v16002_v15 = vcombine.high %v4111_v7, %v4123_v8  ;;  %v16004_v16 = vcombine.high %v4112_v11, %v4124_v12 }
 0x428   :  { %12193 = vmatpush1.bf16.msra.mxu1 %v15857_v21  ;;  %12357 = vmatpush1.bf16.msra.mxu0 %v15859_v22  ;;  %v16001_v21 = vcombine.low %v4111_v7, %v4123_v8  ;;  %v16003_v22 = vcombine.low %v4112_v11, %v4124_v12 }
 0x429   :  { %12194 = vmatprep.subr.bf16.mxu1 %v15882_v23  ;;  %12358 = vmatprep.subr.bf16.mxu0 %v15884_v24  ;;  %v16026_v23 = vcombine.high %v4135_v18, %v4147_v50  ;;  %v16028_v24 = vcombine.high %v4136_v34, %v4148_v20 }
 0x42c   :  { %12195 = vmatpush1.bf16.msra.mxu1 %v15881_v56  ;;  %12359 = vmatpush1.bf16.msra.mxu0 %v15883_v32  ;;  %v16025_v56 = vcombine.low %v4135_v18, %v4147_v50  ;;  %v16027_v32 = vcombine.low %v4136_v34, %v4148_v20 }
 0x42d   :  { %12196 = vmatprep.subr.bf16.mxu1 %v15906_v35  ;;  %12360 = vmatprep.subr.bf16.mxu0 %v15908_v36  ;;  %v16050_v35 = vcombine.high %v4159_v6, %v4171_v25  ;;  %v16052_v36 = vcombine.high %v4160_v26, %v4172_v27 }
 0x430   :  { %12197 = vmatpush1.bf16.msra.mxu1 %v15905_v43  ;;  %12361 = vmatpush1.bf16.msra.mxu0 %v15907_v44  ;;  %v16049_v43 = vcombine.low %v4159_v6, %v4171_v25  ;;  %v16051_v44 = vcombine.low %v4160_v26, %v4172_v27 }
 0x431   :  { %12198 = vmatprep.subr.bf16.mxu1 %v15930_v46  ;;  %12362 = vmatprep.subr.bf16.mxu0 %v15932_v47  ;;  %v17062_v46 = vsub.s32 6, %v16950_v28  ;;  %v16074_v47 = vcombine.high %v4183_v37, %v4195_v38 }
 0x434   :  { %12199 = vmatpush1.bf16.msra.mxu1 %v15929_v57  ;;  %12363 = vmatpush1.bf16.msra.mxu0 %v15931_v13  ;;  %v4220_v57 = vld [vmem:[#allocation14 + $0x2ee8] sm:$0xff]  ;;  %v16073_v13 = vcombine.low %v4183_v37, %v4195_v38  ;;  %v2782_v37 = vld [vmem:[#allocation14 + $0x1f8] sm:$0xff] }
 0x435   :  { %12200 = vmatprep.subr.bf16.mxu1 %v15954_v9  ;;  %12364 = vmatprep.subr.bf16.mxu0 %v15956_v60  ;;  %v16075_v9 = vcombine.low %v4184_v39, %v4196_v40  ;;  %v16537_v60 = vld [vmem:[#allocation13] sm:$0xff]  ;;  %v16100_v1 = vcombine.high %v4208_v53, %v4220_v57  ;;  %v16099_v7 = vcombine.low %v4208_v53, %v4220_v57 }
 0x436   :  { %v1082_v63 = vrot.slane %v16537_v60, %v17062_v46  ;;  %v2829_v60 = vld [vmem:[#allocation14 + $0x370] sm:$0xff] }
 0x438   :  { %12201 = vmatpush1.bf16.msra.mxu1 %v15953_v3  ;;  %12365 = vmatpush1.bf16.msra.mxu0 %v15955_v4  ;;  %v4243_v3 = vld [vmem:[#allocation14 + $0x2fa0] sm:$0xff]  ;;  %v4232_v4 = vld [vmem:[#allocation14 + $0x2f48] sm:$0xff]  ;;  %v16163_v8 = vadd.f32 %v17047_v19, %v1082_v63  ;;  %v2746_v19 = vld [vmem:[#allocation14 + $0xd8] sm:$0xff] }
 0x439   :  { %12202 = vmatprep.subr.bf16.mxu1 %v15978_v5  ;;  %12366 = vmatprep.subr.bf16.mxu0 %v15980_v10  ;;  %v4244_v5 = vld [vmem:[#allocation14 + $0x2fa8] sm:$0xff]  ;;  %v16097_v10 = vcombine.low %v4207_v49, %v4219_v52  ;;  %v16122_v11 = vcombine.high %v4231_v2, %v4243_v3  ;;  %v16121_v18 = vcombine.low %v4231_v2, %v4243_v3  ;;  %v2806_v49 = vld [vmem:[#allocation14 + $0x2b8] sm:$0xff] }
 0x43a   :  { %v16124_v12 = vcombine.high %v4232_v4, %v4244_v5  ;;  %v16123_v50 = vcombine.low %v4232_v4, %v4244_v5  ;;  %v2709_v34 = vmax.f32 %v16163_v8, 0.0  ;;  %v2818_v63 = vld [vmem:[#allocation14 + $0x318] sm:$0xff]  ;;  %v2841_v5 = vld [vmem:[#allocation14 + $0x3d0] sm:$0xff] }
 0x43b   :  { %v2854_v8 = vld [vmem:[#allocation14 + $0x438] sm:$0xff] }
 0x43c   :  { %12203 = vmatpush1.bf16.msra.mxu1 %v15977_v17  ;;  %12367 = vmatpush1.bf16.msra.mxu0 %v15979_v14  ;;  %v2721_v17 = vld [vmem:[#allocation14 + $0x10] sm:$0xff]  ;;  %v17066_v25 = vpack.c.bf16 %v2709_v34, %v2709_v34 }
 0x43d   :  { %12204 = vmatprep.subr.bf16.mxu1 %v16002_v15  ;;  %12368 = vmatprep.subr.bf16.mxu0 %v16004_v16  ;;  %v2733_v14 = vld [vmem:[#allocation14 + $0x70] sm:$0xff]  ;;  %v2722_v15 = vld [vmem:[#allocation14 + $0x18] sm:$0xff] }
 0x43e   :  { %v2734_v16 = vld [vmem:[#allocation14 + $0x78] sm:$0xff]  ;;  %v14614_v20 = vcombine.high %v2721_v17, %v2733_v14  ;;  %v14613_v6 = vcombine.low %v2721_v17, %v2733_v14 }
 0x43f   :  { %v14615_v26 = vcombine.low %v2722_v15, %v2734_v16 }
 0x440   :  { %12205 = vmatpush1.bf16.msra.mxu1 %v16001_v21  ;;  %12369 = vmatpush1.bf16.msra.mxu0 %v16003_v22  ;;  %v14616_v21 = vcombine.high %v2722_v15, %v2734_v16  ;;  %v2745_v22 = vld [vmem:[#allocation14 + $0xd0] sm:$0xff] }
 0x441   :  { %12206 = vmatprep.subr.bf16.mxu1 %v16026_v23  ;;  %12370 = vmatprep.subr.bf16.mxu0 %v16028_v24  ;;  %v2757_v23 = vld [vmem:[#allocation14 + $0x130] sm:$0xff]  ;;  %v2758_v24 = vld [vmem:[#allocation14 + $0x138] sm:$0xff] }
 0x442   :  { %v14638_v27 = vcombine.high %v2745_v22, %v2757_v23  ;;  %v14637_v38 = vcombine.low %v2745_v22, %v2757_v23  ;;  %v14639_v39 = vcombine.low %v2746_v19, %v2758_v24  ;;  %v2865_v15 = vld [vmem:[#allocation14 + $0x490] sm:$0xff] }
 0x443   :  { %v2877_v16 = vld [vmem:[#allocation14 + $0x4f0] sm:$0xff] }
 0x444   :  { %12207 = vmatpush1.bf16.msra.mxu1 %v16025_v56  ;;  %12371 = vmatpush1.bf16.msra.mxu0 %v16027_v32  ;;  %v14640_v56 = vcombine.high %v2746_v19, %v2758_v24  ;;  %v2769_v32 = vld [vmem:[#allocation14 + $0x190] sm:$0xff]  ;;  %v2890_v24 = vld [vmem:[#allocation14 + $0x558] sm:$0xff] }
 0x445   :  { %12208 = vmatprep.subr.bf16.mxu1 %v16050_v35  ;;  %12372 = vmatprep.subr.bf16.mxu0 %v16052_v36  ;;  %v2781_v35 = vld [vmem:[#allocation14 + $0x1f0] sm:$0xff]  ;;  %v2770_v36 = vld [vmem:[#allocation14 + $0x198] sm:$0xff] }
 0x446   :  { %v14662_v40 = vcombine.high %v2769_v32, %v2781_v35  ;;  %v14661_v52 = vcombine.low %v2769_v32, %v2781_v35  ;;  %v14663_v53 = vcombine.low %v2770_v36, %v2782_v37  ;;  %v2889_v23 = vld [vmem:[#allocation14 + $0x550] sm:$0xff] }
 0x447   :  { %v2901_v19 = vld [vmem:[#allocation14 + $0x5b0] sm:$0xff] }
 0x448   :  { %12209 = vmatpush1.bf16.msra.mxu1 %v16049_v43  ;;  %12373 = vmatpush1.bf16.msra.mxu0 %v16051_v44  ;;  %v14664_v43 = vcombine.high %v2770_v36, %v2782_v37  ;;  %v2793_v44 = vld [vmem:[#allocation14 + $0x250] sm:$0xff]  ;;  %v2914_v37 = vld [vmem:[#allocation14 + $0x618] sm:$0xff] }
 0x449   :  { %12210 = vmatprep.subr.bf16.mxu1 %v16074_v47  ;;  %12374 = vmatprep.subr.bf16.mxu0 %v16076_v48  ;;  %v2805_v47 = vld [vmem:[#allocation14 + $0x2b0] sm:$0xff]  ;;  %v2794_v48 = vld [vmem:[#allocation14 + $0x258] sm:$0xff] }
 0x44a   :  { %v14686_v57 = vcombine.high %v2793_v44, %v2805_v47  ;;  %v14687_v2 = vcombine.low %v2794_v48, %v2806_v49  ;;  %v2913_v35 = vld [vmem:[#allocation14 + $0x610] sm:$0xff] }
 0x44b   :  { %v2925_v36 = vld [vmem:[#allocation14 + $0x670] sm:$0xff] }
 0x44c   :  { %12211 = vmatpush1.bf16.msra.mxu1 %v16073_v13  ;;  %12375 = vmatpush1.bf16.msra.mxu0 %v16075_v9  ;;  %v14688_v13 = vcombine.high %v2794_v48, %v2806_v49  ;;  %v2817_v9 = vld [vmem:[#allocation14 + $0x310] sm:$0xff]  ;;  %v2938_v49 = vld [vmem:[#allocation14 + $0x6d8] sm:$0xff] }
 0x44d   :  { %12212 = vmatprep.subr.bf16.mxu1 %v16098_v0  ;;  %12376 = vmatprep.subr.bf16.mxu0 %v16100_v1  ;;  %v2830_v0 = vld [vmem:[#allocation14 + $0x378] sm:$0xff]  ;;  %v14685_v1 = vcombine.low %v2793_v44, %v2805_v47  ;;  %v14710_v3 = vcombine.high %v2817_v9, %v2829_v60  ;;  %v2937_v47 = vld [vmem:[#allocation14 + $0x6d0] sm:$0xff] }
 0x44e   :  { %v14712_v4 = vcombine.high %v2818_v63, %v2830_v0  ;;  %v2949_v48 = vld [vmem:[#allocation14 + $0x730] sm:$0xff] }
 0x450   :  { %12213 = vmatpush1.bf16.msra.mxu1 %v16097_v10  ;;  %12377 = vmatpush1.bf16.msra.mxu0 %v16099_v7  ;;  %v2853_v10 = vld [vmem:[#allocation14 + $0x430] sm:$0xff]  ;;  %v2842_v7 = vld [vmem:[#allocation14 + $0x3d8] sm:$0xff] }
 0x451   :  { %12214 = vmatprep.subr.bf16.mxu1 %v16122_v11  ;;  %12378 = vmatprep.subr.bf16.mxu0 %v16124_v12  ;;  %v14709_v11 = vcombine.low %v2817_v9, %v2829_v60  ;;  %v14711_v12 = vcombine.low %v2818_v63, %v2830_v0  ;;  %v14734_v17 = vcombine.high %v2841_v5, %v2853_v10  ;;  %v2961_v60 = vld [vmem:[#allocation14 + $0x790] sm:$0xff]  ;;  %v2962_v0 = vld [vmem:[#allocation14 + $0x798] sm:$0xff] }
 0x452   :  { %v14736_v14 = vcombine.high %v2842_v7, %v2854_v8  ;;  %v14733_v34 = vcombine.low %v2841_v5, %v2853_v10  ;;  %v2973_v63 = vld [vmem:[#allocation14 + $0x7f0] sm:$0xff] }
 0x453   :  { %v2985_v10 = vld [vmem:[#allocation14 + $0x850] sm:$0xff] }
 0x454   :  { %12215 = vmatpush1.bf16.msra.mxu1 %v16121_v18  ;;  %12379 = vmatpush1.bf16.msra.mxu0 %v16123_v50  ;;  %v2866_v18 = vld [vmem:[#allocation14 + $0x498] sm:$0xff] }
 0x455   :  { %12389 = vmatprep.subr.bf16.mxu1 %v14614_v20  ;;  %12553 = vmatprep.subr.bf16.mxu0 %v14616_v21  ;;  %v2878_v50 = vld [vmem:[#allocation14 + $0x4f8] sm:$0xff]  ;;  %v14735_v20 = vcombine.low %v2842_v7, %v2854_v8  ;;  %v14758_v21 = vcombine.high %v2865_v15, %v2877_v16  ;;  %v2997_v7 = vld [vmem:[#allocation14 + $0x8b0] sm:$0xff] }
 0x456   :  { %v14760_v22 = vcombine.high %v2866_v18, %v2878_v50  ;;  %v2986_v8 = vld [vmem:[#allocation14 + $0x858] sm:$0xff] }
 0x457   :  { %12217 = vmatmul.mubr.bf16.vlgmr.msra.gmra.mrb[12].mxu1 %v17066_v25  ;;  %12381 = vmatmul.mubr.bf16.vlgmr.msra.gmra.mrb[16].mxu0 %v17066_v25 }
 0x458   :  { %12390 = vmatpush1.bf16.msra.mxu1 %v14613_v6  ;;  %12421 = vmatprep.mubr.bf16.mxu1 %v17013_v30  ;;  %v2902_v6 = vld [vmem:[#allocation14 + $0x5b8] sm:$0xff] }
 0x459   :  { %12554 = vmatpush1.bf16.msra.mxu0 %v14615_v26  ;;  %12585 = vmatprep.mubr.bf16.mxu0 %v17013_v30  ;;  %v14757_v26 = vcombine.low %v2865_v15, %v2877_v16  ;;  %v14784_v32 = vcombine.high %v2890_v24, %v2902_v6  ;;  %v3009_v16 = vld [vmem:[#allocation14 + $0x910] sm:$0xff] }
 0x45a   :  { %12391 = vmatprep.subr.bf16.mxu1 %v14638_v27  ;;  %12555 = vmatprep.subr.bf16.mxu0 %v14640_v56  ;;  %v14759_v27 = vcombine.low %v2866_v18, %v2878_v50  ;;  %v14782_v56 = vcombine.high %v2889_v23, %v2901_v19  ;;  %v3021_v18 = vld [vmem:[#allocation14 + $0x970] sm:$0xff]  ;;  %v3010_v50 = vld [vmem:[#allocation14 + $0x918] sm:$0xff] }
 0x45c   :  { %12392 = vmatpush1.bf16.msra.mxu1 %v14637_v38  ;;  %v2926_v38 = vld [vmem:[#allocation14 + $0x678] sm:$0xff] }
 0x45d   :  { %12556 = vmatpush1.bf16.msra.mxu0 %v14639_v39  ;;  %12393 = vmatprep.subr.bf16.mxu1 %v14662_v40  ;;  %v14781_v39 = vcombine.low %v2889_v23, %v2901_v19  ;;  %v14783_v40 = vcombine.low %v2890_v24, %v2902_v6  ;;  %v14808_v44 = vcombine.high %v2914_v37, %v2926_v38  ;;  %v3033_v19 = vld [vmem:[#allocation14 + $0x9d0] sm:$0xff]  ;;  %v3034_v6 = vld [vmem:[#allocation14 + $0x9d8] sm:$0xff] }
 0x45e   :  { %12557 = vmatprep.subr.bf16.mxu0 %v14664_v43  ;;  %v14806_v43 = vcombine.high %v2913_v35, %v2925_v36  ;;  %v3045_v24 = vld [vmem:[#allocation14 + $0xa30] sm:$0xff] }
 0x460   :  { %12394 = vmatpush1.bf16.msra.mxu1 %v14661_v52  ;;  %v2950_v52 = vld [vmem:[#allocation14 + $0x738] sm:$0xff] }
 0x461   :  { %12558 = vmatpush1.bf16.msra.mxu0 %v14663_v53  ;;  %12395 = vmatprep.subr.bf16.mxu1 %v14686_v57  ;;  %v14805_v53 = vcombine.low %v2913_v35, %v2925_v36  ;;  %v14807_v57 = vcombine.low %v2914_v37, %v2926_v38  ;;  %v14832_v9 = vcombine.high %v2938_v49, %v2950_v52  ;;  %v3057_v36 = vld [vmem:[#allocation14 + $0xa90] sm:$0xff]  ;;  %v3058_v38 = vld [vmem:[#allocation14 + $0xa98] sm:$0xff] }
 0x462   :  { %12559 = vmatprep.subr.bf16.mxu0 %v14688_v13  ;;  %v14830_v13 = vcombine.high %v2937_v47, %v2949_v48  ;;  %v3069_v37 = vld [vmem:[#allocation14 + $0xaf0] sm:$0xff] }
 0x464   :  { %12396 = vmatpush1.bf16.msra.mxu1 %v14685_v1  ;;  %v2974_v1 = vld [vmem:[#allocation14 + $0x7f8] sm:$0xff] }
 0x465   :  { %12560 = vmatpush1.bf16.msra.mxu0 %v14687_v2  ;;  %12397 = vmatprep.subr.bf16.mxu1 %v14710_v3  ;;  %v14829_v2 = vcombine.low %v2937_v47, %v2949_v48  ;;  %v14831_v3 = vcombine.low %v2938_v49, %v2950_v52  ;;  %v14856_v5 = vcombine.high %v2962_v0, %v2974_v1  ;;  %v3081_v48 = vld [vmem:[#allocation14 + $0xb50] sm:$0xff]  ;;  %v3082_v52 = vld [vmem:[#allocation14 + $0xb58] sm:$0xff] }
 0x466   :  { %12561 = vmatprep.subr.bf16.mxu0 %v14712_v4  ;;  %v14854_v4 = vcombine.high %v2961_v60, %v2973_v63  ;;  %v3093_v49 = vld [vmem:[#allocation14 + $0xbb0] sm:$0xff] }
 0x468   :  { %12398 = vmatpush1.bf16.msra.mxu1 %v14709_v11  ;;  %v2998_v11 = vld [vmem:[#allocation14 + $0x8b8] sm:$0xff] }
 0x469   :  { %12562 = vmatpush1.bf16.msra.mxu0 %v14711_v12  ;;  %12399 = vmatprep.subr.bf16.mxu1 %v14734_v17  ;;  %v14853_v12 = vcombine.low %v2961_v60, %v2973_v63  ;;  %v14855_v17 = vcombine.low %v2962_v0, %v2974_v1  ;;  %v14880_v15 = vcombine.high %v2986_v8, %v2998_v11  ;;  %v3105_v63 = vld [vmem:[#allocation14 + $0xc10] sm:$0xff]  ;;  %v3106_v1 = vld [vmem:[#allocation14 + $0xc18] sm:$0xff] }
 0x46a   :  { %12563 = vmatprep.subr.bf16.mxu0 %v14736_v14  ;;  %v14878_v14 = vcombine.high %v2985_v10, %v2997_v7  ;;  %v3117_v0 = vld [vmem:[#allocation14 + $0xc70] sm:$0xff] }
 0x46c   :  { %12400 = vmatpush1.bf16.msra.mxu1 %v14733_v34  ;;  %v3022_v34 = vld [vmem:[#allocation14 + $0x978] sm:$0xff] }
 0x46d   :  { %12564 = vmatpush1.bf16.msra.mxu0 %v14735_v20  ;;  %12401 = vmatprep.subr.bf16.mxu1 %v14758_v21  ;;  %v14877_v20 = vcombine.low %v2985_v10, %v2997_v7  ;;  %v14879_v21 = vcombine.low %v2986_v8, %v2998_v11  ;;  %v14904_v23 = vcombine.high %v3010_v50, %v3022_v34  ;;  %v3129_v7 = vld [vmem:[#allocation14 + $0xcd0] sm:$0xff] }
 0x46e   :  { %12565 = vmatprep.subr.bf16.mxu0 %v14760_v22  ;;  %v14902_v22 = vcombine.high %v3009_v16, %v3021_v18  ;;  %v3141_v8 = vld [vmem:[#allocation14 + $0xd30] sm:$0xff]  ;;  %v14997_v11 = vcombine.low %v3105_v63, %v3117_v0 }
 0x470   :  { %12402 = vmatpush1.bf16.msra.mxu1 %v14757_v26  ;;  %v3046_v26 = vld [vmem:[#allocation14 + $0xa38] sm:$0xff] }
 0x471   :  { %12566 = vmatpush1.bf16.msra.mxu0 %v14759_v27  ;;  %12403 = vmatprep.subr.bf16.mxu1 %v14782_v56  ;;  %v14901_v27 = vcombine.low %v3009_v16, %v3021_v18  ;;  %v14903_v56 = vcombine.low %v3010_v50, %v3022_v34  ;;  %v14928_v35 = vcombine.high %v3034_v6, %v3046_v26  ;;  %v3153_v16 = vld [vmem:[#allocation14 + $0xd90] sm:$0xff]  ;;  %v3154_v34 = vld [vmem:[#allocation14 + $0xd98] sm:$0xff] }
 0x472   :  { %12567 = vmatprep.subr.bf16.mxu0 %v14784_v32  ;;  %v14926_v32 = vcombine.high %v3033_v19, %v3045_v24  ;;  %v3165_v18 = vld [vmem:[#allocation14 + $0xdf0] sm:$0xff] }
 0x474   :  { %12404 = vmatpush1.bf16.msra.mxu1 %v14781_v39  ;;  %v3070_v39 = vld [vmem:[#allocation14 + $0xaf8] sm:$0xff] }
 0x475   :  { %12568 = vmatpush1.bf16.msra.mxu0 %v14783_v40  ;;  %12405 = vmatprep.subr.bf16.mxu1 %v14806_v43  ;;  %v14925_v40 = vcombine.low %v3033_v19, %v3045_v24  ;;  %v14927_v43 = vcombine.low %v3034_v6, %v3046_v26  ;;  %v14952_v47 = vcombine.high %v3058_v38, %v3070_v39  ;;  %v3177_v24 = vld [vmem:[#allocation14 + $0xe50] sm:$0xff]  ;;  %v3178_v26 = vld [vmem:[#allocation14 + $0xe58] sm:$0xff] }
 0x476   :  { %12569 = vmatprep.subr.bf16.mxu0 %v14808_v44  ;;  %v14950_v44 = vcombine.high %v3057_v36, %v3069_v37  ;;  %v3189_v6 = vld [vmem:[#allocation14 + $0xeb0] sm:$0xff] }
 0x478   :  { %12406 = vmatpush1.bf16.msra.mxu1 %v14805_v53  ;;  %v3094_v53 = vld [vmem:[#allocation14 + $0xbb8] sm:$0xff] }
 0x479   :  { %12570 = vmatpush1.bf16.msra.mxu0 %v14807_v57  ;;  %12407 = vmatprep.subr.bf16.mxu1 %v14830_v13  ;;  %v14949_v57 = vcombine.low %v3057_v36, %v3069_v37  ;;  %v14951_v13 = vcombine.low %v3058_v38, %v3070_v39  ;;  %v14976_v60 = vcombine.high %v3082_v52, %v3094_v53  ;;  %v3201_v37 = vld [vmem:[#allocation14 + $0xf10] sm:$0xff]  ;;  %v3202_v39 = vld [vmem:[#allocation14 + $0xf18] sm:$0xff] }
 0x47a   :  { %12571 = vmatprep.subr.bf16.mxu0 %v14832_v9  ;;  %v14974_v9 = vcombine.high %v3081_v48, %v3093_v49  ;;  %v3213_v38 = vld [vmem:[#allocation14 + $0xf70] sm:$0xff] }
 0x47c   :  { %12408 = vmatpush1.bf16.msra.mxu1 %v14829_v2  ;;  %v3118_v2 = vld [vmem:[#allocation14 + $0xc78] sm:$0xff] }
 0x47d   :  { %12572 = vmatpush1.bf16.msra.mxu0 %v14831_v3  ;;  %12409 = vmatprep.subr.bf16.mxu1 %v14854_v4  ;;  %v14973_v3 = vcombine.low %v3081_v48, %v3093_v49  ;;  %v14975_v4 = vcombine.low %v3082_v52, %v3094_v53  ;;  %v15000_v10 = vcombine.high %v3106_v1, %v3118_v2  ;;  %v3225_v49 = vld [vmem:[#allocation14 + $0xfd0] sm:$0xff]  ;;  %v3226_v53 = vld [vmem:[#allocation14 + $0xfd8] sm:$0xff] }
 0x47e   :  { %12573 = vmatprep.subr.bf16.mxu0 %v14856_v5  ;;  %v14998_v5 = vcombine.high %v3105_v63, %v3117_v0  ;;  %v3237_v52 = vld [vmem:[#allocation14 + $0x1030] sm:$0xff] }
 0x47f   :  { %v3249_v0 = vld [vmem:[#allocation14 + $0x1090] sm:$0xff] }
 0x480   :  { %12410 = vmatpush1.bf16.msra.mxu1 %v14853_v12  ;;  %v3130_v12 = vld [vmem:[#allocation14 + $0xcd8] sm:$0xff] }
 0x481   :  { %12574 = vmatpush1.bf16.msra.mxu0 %v14855_v17  ;;  %12411 = vmatprep.subr.bf16.mxu1 %v14878_v14  ;;  %v3142_v17 = vld [vmem:[#allocation14 + $0xd38] sm:$0xff]  ;;  %v14999_v14 = vcombine.low %v3106_v1, %v3118_v2  ;;  %v3261_v1 = vld [vmem:[#allocation14 + $0x10f0] sm:$0xff] }
 0x482   :  { %12575 = vmatprep.subr.bf16.mxu0 %v14880_v15  ;;  %v15022_v15 = vcombine.high %v3129_v7, %v3141_v8  ;;  %v15024_v50 = vcombine.high %v3130_v12, %v3142_v17  ;;  %v3250_v2 = vld [vmem:[#allocation14 + $0x1098] sm:$0xff] }
 0x484   :  { %12412 = vmatpush1.bf16.msra.mxu1 %v14877_v20  ;;  %v3166_v20 = vld [vmem:[#allocation14 + $0xdf8] sm:$0xff] }
 0x485   :  { %12576 = vmatpush1.bf16.msra.mxu0 %v14879_v21  ;;  %12413 = vmatprep.subr.bf16.mxu1 %v14902_v22  ;;  %v15021_v21 = vcombine.low %v3129_v7, %v3141_v8  ;;  %v15023_v22 = vcombine.low %v3130_v12, %v3142_v17  ;;  %v15048_v19 = vcombine.high %v3154_v34, %v3166_v20  ;;  %v3273_v8 = vld [vmem:[#allocation14 + $0x1150] sm:$0xff]  ;;  %v3274_v12 = vld [vmem:[#allocation14 + $0x1158] sm:$0xff] }
 0x486   :  { %12577 = vmatprep.subr.bf16.mxu0 %v14904_v23  ;;  %v15046_v23 = vcombine.high %v3153_v16, %v3165_v18  ;;  %v3286_v17 = vld [vmem:[#allocation14 + $0x11b8] sm:$0xff] }
 0x488   :  { %12414 = vmatpush1.bf16.msra.mxu1 %v14901_v27  ;;  %v3190_v27 = vld [vmem:[#allocation14 + $0xeb8] sm:$0xff] }
 0x489   :  { %12578 = vmatpush1.bf16.msra.mxu0 %v14903_v56  ;;  %12415 = vmatprep.subr.bf16.mxu1 %v14926_v32  ;;  %v15045_v56 = vcombine.low %v3153_v16, %v3165_v18  ;;  %v15047_v32 = vcombine.low %v3154_v34, %v3166_v20  ;;  %v15072_v36 = vcombine.high %v3178_v26, %v3190_v27  ;;  %v3309_v34 = vld [vmem:[#allocation14 + $0x1270] sm:$0xff]  ;;  %v3298_v20 = vld [vmem:[#allocation14 + $0x1218] sm:$0xff] }
 0x48a   :  { %12579 = vmatprep.subr.bf16.mxu0 %v14928_v35  ;;  %v15070_v35 = vcombine.high %v3177_v24, %v3189_v6  ;;  %v15168_v18 = vcombine.high %v3274_v12, %v3286_v17 }
 0x48c   :  { %12416 = vmatpush1.bf16.msra.mxu1 %v14925_v40  ;;  %v3214_v40 = vld [vmem:[#allocation14 + $0xf78] sm:$0xff] }
 0x48d   :  { %12580 = vmatpush1.bf16.msra.mxu0 %v14927_v43  ;;  %12417 = vmatprep.subr.bf16.mxu1 %v14950_v44  ;;  %v15069_v43 = vcombine.low %v3177_v24, %v3189_v6  ;;  %v15071_v44 = vcombine.low %v3178_v26, %v3190_v27  ;;  %v15096_v48 = vcombine.high %v3202_v39, %v3214_v40  ;;  %v3321_v6 = vld [vmem:[#allocation14 + $0x12d0] sm:$0xff]  ;;  %v3322_v27 = vld [vmem:[#allocation14 + $0x12d8] sm:$0xff] }
 0x48e   :  { %12581 = vmatprep.subr.bf16.mxu0 %v14952_v47  ;;  %v15094_v47 = vcombine.high %v3201_v37, %v3213_v38  ;;  %v3333_v26 = vld [vmem:[#allocation14 + $0x1330] sm:$0xff] }
 0x490   :  { %12418 = vmatpush1.bf16.msra.mxu1 %v14949_v57  ;;  %v3238_v57 = vld [vmem:[#allocation14 + $0x1038] sm:$0xff] }
 0x491   :  { %12582 = vmatpush1.bf16.msra.mxu0 %v14951_v13  ;;  %12419 = vmatprep.subr.bf16.mxu1 %v14974_v9  ;;  %v15093_v13 = vcombine.low %v3201_v37, %v3213_v38  ;;  %v15095_v9 = vcombine.low %v3202_v39, %v3214_v40  ;;  %v15120_v63 = vcombine.high %v3226_v53, %v3238_v57  ;;  %v3345_v38 = vld [vmem:[#allocation14 + $0x1390] sm:$0xff]  ;;  %v3346_v40 = vld [vmem:[#allocation14 + $0x1398] sm:$0xff] }
 0x492   :  { %12583 = vmatprep.subr.bf16.mxu0 %v14976_v60  ;;  %v15118_v60 = vcombine.high %v3225_v49, %v3237_v52  ;;  %v3357_v39 = vld [vmem:[#allocation14 + $0x13f0] sm:$0xff] }
 0x494   :  { %12420 = vmatpush1.bf16.msra.mxu1 %v14973_v3  ;;  %v3262_v3 = vld [vmem:[#allocation14 + $0x10f8] sm:$0xff] }
 0x495   :  { %12584 = vmatpush1.bf16.msra.mxu0 %v14975_v4  ;;  %12430 = vmatprep.subr.bf16.mxu1 %v14998_v5  ;;  %v15117_v4 = vcombine.low %v3225_v49, %v3237_v52  ;;  %v15119_v5 = vcombine.low %v3226_v53, %v3238_v57  ;;  %v15144_v7 = vcombine.high %v3250_v2, %v3262_v3  ;;  %v3369_v52 = vld [vmem:[#allocation14 + $0x1450] sm:$0xff]  ;;  %v3370_v57 = vld [vmem:[#allocation14 + $0x1458] sm:$0xff] }
 0x496   :  { %12594 = vmatprep.subr.bf16.mxu0 %v15000_v10  ;;  %v15142_v10 = vcombine.high %v3249_v0, %v3261_v1  ;;  %v3381_v53 = vld [vmem:[#allocation14 + $0x14b0] sm:$0xff] }
 0x497   :  { %12422 = vmatmul.mubr.bf16.vlgmr.msra.gmra.mrb[16].mxu1 %v17015_v33 }
 0x498   :  { %12586 = vmatmul.mubr.bf16.vlgmr.msra.gmra.mrb[20].mxu0 %v17015_v33  ;;  %12431 = vmatpush1.bf16.msra.mxu1 %v14997_v11  ;;  %v3285_v11 = vld [vmem:[#allocation14 + $0x11b0] sm:$0xff] }
 0x499   :  { %12462 = vmatprep.mubr.bf16.mxu1 %v17019_v41  ;;  %12595 = vmatpush1.bf16.msra.mxu0 %v14999_v14  ;;  %v15141_v14 = vcombine.low %v3249_v0, %v3261_v1  ;;  %v15166_v16 = vcombine.high %v3273_v8, %v3285_v11  ;;  %v3393_v1 = vld [vmem:[#allocation14 + $0x1510] sm:$0xff] }
 0x49a   :  { %12626 = vmatprep.mubr.bf16.mxu0 %v17019_v41  ;;  %12432 = vmatprep.subr.bf16.mxu1 %v15022_v15  ;;  %v15143_v15 = vcombine.low %v3250_v2, %v3262_v3  ;;  %v3405_v2 = vld [vmem:[#allocation14 + $0x1570] sm:$0xff]  ;;  %v3394_v3 = vld [vmem:[#allocation14 + $0x1518] sm:$0xff] }
 0x49b   :  { %12596 = vmatprep.subr.bf16.mxu0 %v15024_v50  ;;  %v3297_v50 = vld [vmem:[#allocation14 + $0x1210] sm:$0xff] }
 0x49c   :  { %12433 = vmatpush1.bf16.msra.mxu1 %v15021_v21  ;;  %v3310_v21 = vld [vmem:[#allocation14 + $0x1278] sm:$0xff] }
 0x49d   :  { %12597 = vmatpush1.bf16.msra.mxu0 %v15023_v22  ;;  %12434 = vmatprep.subr.bf16.mxu1 %v15046_v23  ;;  %v15165_v22 = vcombine.low %v3273_v8, %v3285_v11  ;;  %v15167_v23 = vcombine.low %v3274_v12, %v3286_v17  ;;  %v15192_v24 = vcombine.high %v3298_v20, %v3310_v21  ;;  %v3417_v11 = vld [vmem:[#allocation14 + $0x15d0] sm:$0xff]  ;;  %v3418_v17 = vld [vmem:[#allocation14 + $0x15d8] sm:$0xff] }
 0x49e   :  { %12598 = vmatprep.subr.bf16.mxu0 %v15048_v19  ;;  %v15190_v19 = vcombine.high %v3297_v50, %v3309_v34  ;;  %v3429_v12 = vld [vmem:[#allocation14 + $0x1630] sm:$0xff] }
 0x4a0   :  { %12435 = vmatpush1.bf16.msra.mxu1 %v15045_v56  ;;  %v3334_v56 = vld [vmem:[#allocation14 + $0x1338] sm:$0xff] }
 0x4a1   :  { %12599 = vmatpush1.bf16.msra.mxu0 %v15047_v32  ;;  %12436 = vmatprep.subr.bf16.mxu1 %v15070_v35  ;;  %v15189_v32 = vcombine.low %v3297_v50, %v3309_v34  ;;  %v15191_v35 = vcombine.low %v3298_v20, %v3310_v21  ;;  %v15216_v37 = vcombine.high %v3322_v27, %v3334_v56  ;;  %v3441_v34 = vld [vmem:[#allocation14 + $0x1690] sm:$0xff]  ;;  %v3442_v21 = vld [vmem:[#allocation14 + $0x1698] sm:$0xff] }
 0x4a2   :  { %12600 = vmatprep.subr.bf16.mxu0 %v15072_v36  ;;  %v15214_v36 = vcombine.high %v3321_v6, %v3333_v26  ;;  %v3453_v20 = vld [vmem:[#allocation14 + $0x16f0] sm:$0xff] }
 0x4a4   :  { %12437 = vmatpush1.bf16.msra.mxu1 %v15069_v43  ;;  %v3358_v43 = vld [vmem:[#allocation14 + $0x13f8] sm:$0xff] }
 0x4a5   :  { %12601 = vmatpush1.bf16.msra.mxu0 %v15071_v44  ;;  %12438 = vmatprep.subr.bf16.mxu1 %v15094_v47  ;;  %v15213_v44 = vcombine.low %v3321_v6, %v3333_v26  ;;  %v15215_v47 = vcombine.low %v3322_v27, %v3334_v56  ;;  %v15240_v49 = vcombine.high %v3346_v40, %v3358_v43  ;;  %v3465_v26 = vld [vmem:[#allocation14 + $0x1750] sm:$0xff]  ;;  %v3466_v56 = vld [vmem:[#allocation14 + $0x1758] sm:$0xff] }
 0x4a6   :  { %12602 = vmatprep.subr.bf16.mxu0 %v15096_v48  ;;  %v15238_v48 = vcombine.high %v3345_v38, %v3357_v39  ;;  %v3477_v27 = vld [vmem:[#allocation14 + $0x17b0] sm:$0xff] }
 0x4a8   :  { %12439 = vmatpush1.bf16.msra.mxu1 %v15093_v13  ;;  %v3382_v13 = vld [vmem:[#allocation14 + $0x14b8] sm:$0xff] }
 0x4a9   :  { %12603 = vmatpush1.bf16.msra.mxu0 %v15095_v9  ;;  %12440 = vmatprep.subr.bf16.mxu1 %v15118_v60  ;;  %v15237_v9 = vcombine.low %v3345_v38, %v3357_v39  ;;  %v15239_v60 = vcombine.low %v3346_v40, %v3358_v43  ;;  %v15264_v0 = vcombine.high %v3370_v57, %v3382_v13  ;;  %v3489_v39 = vld [vmem:[#allocation14 + $0x1810] sm:$0xff]  ;;  %v3490_v43 = vld [vmem:[#allocation14 + $0x1818] sm:$0xff] }
 0x4aa   :  { %12604 = vmatprep.subr.bf16.mxu0 %v15120_v63  ;;  %v15262_v63 = vcombine.high %v3369_v52, %v3381_v53  ;;  %v3501_v40 = vld [vmem:[#allocation14 + $0x1870] sm:$0xff] }
 0x4ac   :  { %12441 = vmatpush1.bf16.msra.mxu1 %v15117_v4  ;;  %v3406_v4 = vld [vmem:[#allocation14 + $0x1578] sm:$0xff] }
 0x4ad   :  { %12605 = vmatpush1.bf16.msra.mxu0 %v15119_v5  ;;  %12442 = vmatprep.subr.bf16.mxu1 %v15142_v10  ;;  %v15261_v5 = vcombine.low %v3369_v52, %v3381_v53  ;;  %v15263_v10 = vcombine.low %v3370_v57, %v3382_v13  ;;  %v15288_v8 = vcombine.high %v3394_v3, %v3406_v4  ;;  %v3513_v53 = vld [vmem:[#allocation14 + $0x18d0] sm:$0xff] }
 0x4ae   :  { %12606 = vmatprep.subr.bf16.mxu0 %v15144_v7  ;;  %v15286_v7 = vcombine.high %v3393_v1, %v3405_v2  ;;  %v3525_v57 = vld [vmem:[#allocation14 + $0x1930] sm:$0xff]  ;;  %v15381_v13 = vcombine.low %v3489_v39, %v3501_v40 }
 0x4b0   :  { %12443 = vmatpush1.bf16.msra.mxu1 %v15141_v14  ;;  %v3430_v14 = vld [vmem:[#allocation14 + $0x1638] sm:$0xff] }
 0x4b1   :  { %12607 = vmatpush1.bf16.msra.mxu0 %v15143_v15  ;;  %12444 = vmatprep.subr.bf16.mxu1 %v15166_v16  ;;  %v15285_v15 = vcombine.low %v3393_v1, %v3405_v2  ;;  %v15287_v16 = vcombine.low %v3394_v3, %v3406_v4  ;;  %v15312_v50 = vcombine.high %v3418_v17, %v3430_v14  ;;  %v3537_v1 = vld [vmem:[#allocation14 + $0x1990] sm:$0xff]  ;;  %v3538_v4 = vld [vmem:[#allocation14 + $0x1998] sm:$0xff] }
 0x4b2   :  { %12608 = vmatprep.subr.bf16.mxu0 %v15168_v18  ;;  %v15310_v18 = vcombine.high %v3417_v11, %v3429_v12  ;;  %v3549_v2 = vld [vmem:[#allocation14 + $0x19f0] sm:$0xff] }
 0x4b4   :  { %12445 = vmatpush1.bf16.msra.mxu1 %v15165_v22  ;;  %v3454_v22 = vld [vmem:[#allocation14 + $0x16f8] sm:$0xff] }
 0x4b5   :  { %12609 = vmatpush1.bf16.msra.mxu0 %v15167_v23  ;;  %12446 = vmatprep.subr.bf16.mxu1 %v15190_v19  ;;  %v15309_v23 = vcombine.low %v3417_v11, %v3429_v12  ;;  %v15311_v19 = vcombine.low %v3418_v17, %v3430_v14  ;;  %v15336_v6 = vcombine.high %v3442_v21, %v3454_v22  ;;  %v3561_v12 = vld [vmem:[#allocation14 + $0x1a50] sm:$0xff]  ;;  %v3562_v14 = vld [vmem:[#allocation14 + $0x1a58] sm:$0xff] }
 0x4b6   :  { %12610 = vmatprep.subr.bf16.mxu0 %v15192_v24  ;;  %v15334_v24 = vcombine.high %v3441_v34, %v3453_v20  ;;  %v3573_v17 = vld [vmem:[#allocation14 + $0x1ab0] sm:$0xff] }
 0x4b8   :  { %12447 = vmatpush1.bf16.msra.mxu1 %v15189_v32  ;;  %v3478_v32 = vld [vmem:[#allocation14 + $0x17b8] sm:$0xff] }
 0x4b9   :  { %12611 = vmatpush1.bf16.msra.mxu0 %v15191_v35  ;;  %12448 = vmatprep.subr.bf16.mxu1 %v15214_v36  ;;  %v15333_v35 = vcombine.low %v3441_v34, %v3453_v20  ;;  %v15335_v36 = vcombine.low %v3442_v21, %v3454_v22  ;;  %v15360_v38 = vcombine.high %v3466_v56, %v3478_v32  ;;  %v3585_v20 = vld [vmem:[#allocation14 + $0x1b10] sm:$0xff]  ;;  %v3586_v22 = vld [vmem:[#allocation14 + $0x1b18] sm:$0xff] }
 0x4ba   :  { %12612 = vmatprep.subr.bf16.mxu0 %v15216_v37  ;;  %v15358_v37 = vcombine.high %v3465_v26, %v3477_v27  ;;  %v3597_v21 = vld [vmem:[#allocation14 + $0x1b70] sm:$0xff] }
 0x4bc   :  { %12449 = vmatpush1.bf16.msra.mxu1 %v15213_v44  ;;  %v3502_v44 = vld [vmem:[#allocation14 + $0x1878] sm:$0xff] }
 0x4bd   :  { %12613 = vmatpush1.bf16.msra.mxu0 %v15215_v47  ;;  %12450 = vmatprep.subr.bf16.mxu1 %v15238_v48  ;;  %v15357_v47 = vcombine.low %v3465_v26, %v3477_v27  ;;  %v15359_v48 = vcombine.low %v3466_v56, %v3478_v32  ;;  %v15384_v52 = vcombine.high %v3490_v43, %v3502_v44  ;;  %v3609_v27 = vld [vmem:[#allocation14 + $0x1bd0] sm:$0xff]  ;;  %v3610_v32 = vld [vmem:[#allocation14 + $0x1bd8] sm:$0xff] }
 0x4be   :  { %12614 = vmatprep.subr.bf16.mxu0 %v15240_v49  ;;  %v15382_v49 = vcombine.high %v3489_v39, %v3501_v40  ;;  %v3621_v56 = vld [vmem:[#allocation14 + $0x1c30] sm:$0xff] }
 0x4bf   :  { %v3633_v40 = vld [vmem:[#allocation14 + $0x1c90] sm:$0xff] }
 0x4c0   :  { %12451 = vmatpush1.bf16.msra.mxu1 %v15237_v9  ;;  %v3514_v9 = vld [vmem:[#allocation14 + $0x18d8] sm:$0xff] }
 0x4c1   :  { %12615 = vmatpush1.bf16.msra.mxu0 %v15239_v60  ;;  %12452 = vmatprep.subr.bf16.mxu1 %v15262_v63  ;;  %v3526_v60 = vld [vmem:[#allocation14 + $0x1938] sm:$0xff]  ;;  %v15383_v63 = vcombine.low %v3490_v43, %v3502_v44  ;;  %v3645_v43 = vld [vmem:[#allocation14 + $0x1cf0] sm:$0xff] }
 0x4c2   :  { %12616 = vmatprep.subr.bf16.mxu0 %v15264_v0  ;;  %v15406_v0 = vcombine.high %v3513_v53, %v3525_v57  ;;  %v15408_v3 = vcombine.high %v3514_v9, %v3526_v60  ;;  %v3634_v44 = vld [vmem:[#allocation14 + $0x1c98] sm:$0xff] }
 0x4c4   :  { %12453 = vmatpush1.bf16.msra.mxu1 %v15261_v5  ;;  %v3550_v5 = vld [vmem:[#allocation14 + $0x19f8] sm:$0xff] }
 0x4c5   :  { %12617 = vmatpush1.bf16.msra.mxu0 %v15263_v10  ;;  %12454 = vmatprep.subr.bf16.mxu1 %v15286_v7  ;;  %v15405_v10 = vcombine.low %v3513_v53, %v3525_v57  ;;  %v15407_v7 = vcombine.low %v3514_v9, %v3526_v60  ;;  %v15432_v11 = vcombine.high %v3538_v4, %v3550_v5  ;;  %v3657_v57 = vld [vmem:[#allocation14 + $0x1d50] sm:$0xff]  ;;  %v3658_v9 = vld [vmem:[#allocation14 + $0x1d58] sm:$0xff] }
 0x4c6   :  { %12618 = vmatprep.subr.bf16.mxu0 %v15288_v8  ;;  %v15430_v8 = vcombine.high %v3537_v1, %v3549_v2  ;;  %v3670_v60 = vld [vmem:[#allocation14 + $0x1db8] sm:$0xff] }
 0x4c8   :  { %12455 = vmatpush1.bf16.msra.mxu1 %v15285_v15  ;;  %v3574_v15 = vld [vmem:[#allocation14 + $0x1ab8] sm:$0xff] }
 0x4c9   :  { %12619 = vmatpush1.bf16.msra.mxu0 %v15287_v16  ;;  %12456 = vmatprep.subr.bf16.mxu1 %v15310_v18  ;;  %v15429_v16 = vcombine.low %v3537_v1, %v3549_v2  ;;  %v15431_v18 = vcombine.low %v3538_v4, %v3550_v5  ;;  %v15456_v34 = vcombine.high %v3562_v14, %v3574_v15  ;;  %v3693_v4 = vld [vmem:[#allocation14 + $0x1e70] sm:$0xff]  ;;  %v3682_v5 = vld [vmem:[#allocation14 + $0x1e18] sm:$0xff] }
 0x4ca   :  { %12620 = vmatprep.subr.bf16.mxu0 %v15312_v50  ;;  %v15454_v50 = vcombine.high %v3561_v12, %v3573_v17  ;;  %v15552_v2 = vcombine.high %v3658_v9, %v3670_v60 }
 0x4cc   :  { %12457 = vmatpush1.bf16.msra.mxu1 %v15309_v23  ;;  %v3598_v23 = vld [vmem:[#allocation14 + $0x1b78] sm:$0xff] }
 0x4cd   :  { %12621 = vmatpush1.bf16.msra.mxu0 %v15311_v19  ;;  %12458 = vmatprep.subr.bf16.mxu1 %v15334_v24  ;;  %v15453_v19 = vcombine.low %v3561_v12, %v3573_v17  ;;  %v15455_v24 = vcombine.low %v3562_v14, %v3574_v15  ;;  %v15480_v26 = vcombine.high %v3586_v22, %v3598_v23  ;;  %v3705_v17 = vld [vmem:[#allocation14 + $0x1ed0] sm:$0xff]  ;;  %v3706_v15 = vld [vmem:[#allocation14 + $0x1ed8] sm:$0xff] }
 0x4ce   :  { %12622 = vmatprep.subr.bf16.mxu0 %v15336_v6  ;;  %v15478_v6 = vcombine.high %v3585_v20, %v3597_v21  ;;  %v3717_v14 = vld [vmem:[#allocation14 + $0x1f30] sm:$0xff] }
 0x4d0   :  { %12459 = vmatpush1.bf16.msra.mxu1 %v15333_v35  ;;  %v3622_v35 = vld [vmem:[#allocation14 + $0x1c38] sm:$0xff] }
 0x4d1   :  { %12623 = vmatpush1.bf16.msra.mxu0 %v15335_v36  ;;  %12460 = vmatprep.subr.bf16.mxu1 %v15358_v37  ;;  %v15477_v36 = vcombine.low %v3585_v20, %v3597_v21  ;;  %v15479_v37 = vcombine.low %v3586_v22, %v3598_v23  ;;  %v15504_v39 = vcombine.high %v3610_v32, %v3622_v35  ;;  %v3729_v21 = vld [vmem:[#allocation14 + $0x1f90] sm:$0xff]  ;;  %v3730_v23 = vld [vmem:[#allocation14 + $0x1f98] sm:$0xff] }
 0x4d2   :  { %12624 = vmatprep.subr.bf16.mxu0 %v15360_v38  ;;  %v15502_v38 = vcombine.high %v3609_v27, %v3621_v56  ;;  %v3741_v22 = vld [vmem:[#allocation14 + $0x1ff0] sm:$0xff] }
 0x4d4   :  { %12461 = vmatpush1.bf16.msra.mxu1 %v15357_v47  ;;  %v3646_v47 = vld [vmem:[#allocation14 + $0x1cf8] sm:$0xff] }
 0x4d5   :  { %12625 = vmatpush1.bf16.msra.mxu0 %v15359_v48  ;;  %12471 = vmatprep.subr.bf16.mxu1 %v15382_v49  ;;  %v15501_v48 = vcombine.low %v3609_v27, %v3621_v56  ;;  %v15503_v49 = vcombine.low %v3610_v32, %v3622_v35  ;;  %v15528_v53 = vcombine.high %v3634_v44, %v3646_v47  ;;  %v3753_v56 = vld [vmem:[#allocation14 + $0x2050] sm:$0xff]  ;;  %v3754_v35 = vld [vmem:[#allocation14 + $0x2058] sm:$0xff] }
 0x4d6   :  { %12635 = vmatprep.subr.bf16.mxu0 %v15384_v52  ;;  %v15526_v52 = vcombine.high %v3633_v40, %v3645_v43  ;;  %v3765_v32 = vld [vmem:[#allocation14 + $0x20b0] sm:$0xff] }
 0x4d7   :  { %12463 = vmatmul.mubr.bf16.vlgmr.msra.gmra.mrb[16].mxu1 %v17028_v61 }
 0x4d8   :  { %12627 = vmatmul.mubr.bf16.vlgmr.msra.gmra.mrb[20].mxu0 %v17028_v61  ;;  %12472 = vmatpush1.bf16.msra.mxu1 %v15381_v13  ;;  %v3669_v13 = vld [vmem:[#allocation14 + $0x1db0] sm:$0xff] }
 0x4d9   :  { %12503 = vmatprep.mubr.bf16.mxu1 %v17049_v42  ;;  %12636 = vmatpush1.bf16.msra.mxu0 %v15383_v63  ;;  %v15525_v63 = vcombine.low %v3633_v40, %v3645_v43  ;;  %v15550_v1 = vcombine.high %v3657_v57, %v3669_v13  ;;  %v3777_v43 = vld [vmem:[#allocation14 + $0x2110] sm:$0xff] }
 0x4da   :  { %12667 = vmatprep.mubr.bf16.mxu0 %v17049_v42  ;;  %12473 = vmatprep.subr.bf16.mxu1 %v15406_v0  ;;  %v15527_v0 = vcombine.low %v3634_v44, %v3646_v47  ;;  %v3789_v44 = vld [vmem:[#allocation14 + $0x2170] sm:$0xff]  ;;  %v3778_v47 = vld [vmem:[#allocation14 + $0x2118] sm:$0xff] }
 0x4db   :  { %12637 = vmatprep.subr.bf16.mxu0 %v15408_v3  ;;  %v3681_v3 = vld [vmem:[#allocation14 + $0x1e10] sm:$0xff] }
 0x4dc   :  { %12474 = vmatpush1.bf16.msra.mxu1 %v15405_v10  ;;  %v3694_v10 = vld [vmem:[#allocation14 + $0x1e78] sm:$0xff] }
 0x4dd   :  { %12638 = vmatpush1.bf16.msra.mxu0 %v15407_v7  ;;  %12475 = vmatprep.subr.bf16.mxu1 %v15430_v8  ;;  %v15549_v7 = vcombine.low %v3657_v57, %v3669_v13  ;;  %v15551_v8 = vcombine.low %v3658_v9, %v3670_v60  ;;  %v15576_v12 = vcombine.high %v3682_v5, %v3694_v10  ;;  %v3801_v13 = vld [vmem:[#allocation14 + $0x21d0] sm:$0xff]  ;;  %v3802_v60 = vld [vmem:[#allocation14 + $0x21d8] sm:$0xff] }
 0x4de   :  { %12639 = vmatprep.subr.bf16.mxu0 %v15432_v11  ;;  %v15574_v11 = vcombine.high %v3681_v3, %v3693_v4  ;;  %v3813_v9 = vld [vmem:[#allocation14 + $0x2230] sm:$0xff] }
 0x4e0   :  { %12476 = vmatpush1.bf16.msra.mxu1 %v15429_v16  ;;  %v3718_v16 = vld [vmem:[#allocation14 + $0x1f38] sm:$0xff] }
 0x4e1   :  { %12640 = vmatpush1.bf16.msra.mxu0 %v15431_v18  ;;  %12477 = vmatprep.subr.bf16.mxu1 %v15454_v50  ;;  %v15573_v18 = vcombine.low %v3681_v3, %v3693_v4  ;;  %v15575_v50 = vcombine.low %v3682_v5, %v3694_v10  ;;  %v15600_v20 = vcombine.high %v3706_v15, %v3718_v16  ;;  %v3825_v4 = vld [vmem:[#allocation14 + $0x2290] sm:$0xff]  ;;  %v3826_v10 = vld [vmem:[#allocation14 + $0x2298] sm:$0xff] }
 0x4e2   :  { %12641 = vmatprep.subr.bf16.mxu0 %v15456_v34  ;;  %v15598_v34 = vcombine.high %v3705_v17, %v3717_v14  ;;  %v3837_v5 = vld [vmem:[#allocation14 + $0x22f0] sm:$0xff] }
 0x4e4   :  { %12478 = vmatpush1.bf16.msra.mxu1 %v15453_v19  ;;  %v3742_v19 = vld [vmem:[#allocation14 + $0x1ff8] sm:$0xff] }
 0x4e5   :  { %12642 = vmatpush1.bf16.msra.mxu0 %v15455_v24  ;;  %12479 = vmatprep.subr.bf16.mxu1 %v15478_v6  ;;  %v15597_v24 = vcombine.low %v3705_v17, %v3717_v14  ;;  %v15599_v6 = vcombine.low %v3706_v15, %v3718_v16  ;;  %v15624_v27 = vcombine.high %v3730_v23, %v3742_v19  ;;  %v3849_v14 = vld [vmem:[#allocation14 + $0x2350] sm:$0xff]  ;;  %v3850_v16 = vld [vmem:[#allocation14 + $0x2358] sm:$0xff] }
 0x4e6   :  { %12643 = vmatprep.subr.bf16.mxu0 %v15480_v26  ;;  %v15622_v26 = vcombine.high %v3729_v21, %v3741_v22  ;;  %v3861_v15 = vld [vmem:[#allocation14 + $0x23b0] sm:$0xff] }
 0x4e8   :  { %12480 = vmatpush1.bf16.msra.mxu1 %v15477_v36  ;;  %v3766_v36 = vld [vmem:[#allocation14 + $0x20b8] sm:$0xff] }
 0x4e9   :  { %12644 = vmatpush1.bf16.msra.mxu0 %v15479_v37  ;;  %12481 = vmatprep.subr.bf16.mxu1 %v15502_v38  ;;  %v15621_v37 = vcombine.low %v3729_v21, %v3741_v22  ;;  %v15623_v38 = vcombine.low %v3730_v23, %v3742_v19  ;;  %v15648_v40 = vcombine.high %v3754_v35, %v3766_v36  ;;  %v3873_v22 = vld [vmem:[#allocation14 + $0x2410] sm:$0xff]  ;;  %v3874_v19 = vld [vmem:[#allocation14 + $0x2418] sm:$0xff] }
 0x4ea   :  { %12645 = vmatprep.subr.bf16.mxu0 %v15504_v39  ;;  %v15646_v39 = vcombine.high %v3753_v56, %v3765_v32  ;;  %v3885_v23 = vld [vmem:[#allocation14 + $0x2470] sm:$0xff] }
 0x4ec   :  { %12482 = vmatpush1.bf16.msra.mxu1 %v15501_v48  ;;  %v3790_v48 = vld [vmem:[#allocation14 + $0x2178] sm:$0xff] }
 0x4ed   :  { %12646 = vmatpush1.bf16.msra.mxu0 %v15503_v49  ;;  %12483 = vmatprep.subr.bf16.mxu1 %v15526_v52  ;;  %v15645_v49 = vcombine.low %v3753_v56, %v3765_v32  ;;  %v15647_v52 = vcombine.low %v3754_v35, %v3766_v36  ;;  %v15672_v57 = vcombine.high %v3778_v47, %v3790_v48  ;;  %v3897_v32 = vld [vmem:[#allocation14 + $0x24d0] sm:$0xff] }
 0x4ee   :  { %12647 = vmatprep.subr.bf16.mxu0 %v15528_v53  ;;  %v15670_v53 = vcombine.high %v3777_v43, %v3789_v44  ;;  %v3909_v35 = vld [vmem:[#allocation14 + $0x2530] sm:$0xff]  ;;  %v15765_v36 = vcombine.low %v3873_v22, %v3885_v23 }
 0x4f0   :  { %12484 = vmatpush1.bf16.msra.mxu1 %v15525_v63  ;;  %v3814_v63 = vld [vmem:[#allocation14 + $0x2238] sm:$0xff] }
 0x4f1   :  { %12648 = vmatpush1.bf16.msra.mxu0 %v15527_v0  ;;  %12485 = vmatprep.subr.bf16.mxu1 %v15550_v1  ;;  %v15669_v0 = vcombine.low %v3777_v43, %v3789_v44  ;;  %v15671_v1 = vcombine.low %v3778_v47, %v3790_v48  ;;  %v15696_v3 = vcombine.high %v3802_v60, %v3814_v63  ;;  %v3921_v43 = vld [vmem:[#allocation14 + $0x2590] sm:$0xff]  ;;  %v3922_v48 = vld [vmem:[#allocation14 + $0x2598] sm:$0xff] }
 0x4f2   :  { %12649 = vmatprep.subr.bf16.mxu0 %v15552_v2  ;;  %v15694_v2 = vcombine.high %v3801_v13, %v3813_v9  ;;  %v3933_v44 = vld [vmem:[#allocation14 + $0x25f0] sm:$0xff] }
 0x4f4   :  { %12486 = vmatpush1.bf16.msra.mxu1 %v15549_v7  ;;  %v3838_v7 = vld [vmem:[#allocation14 + $0x22f8] sm:$0xff] }
 0x4f5   :  { %12650 = vmatpush1.bf16.msra.mxu0 %v15551_v8  ;;  %12487 = vmatprep.subr.bf16.mxu1 %v15574_v11  ;;  %v15693_v8 = vcombine.low %v3801_v13, %v3813_v9  ;;  %v15695_v11 = vcombine.low %v3802_v60, %v3814_v63  ;;  %v15720_v17 = vcombine.high %v3826_v10, %v3838_v7  ;;  %v3945_v9 = vld [vmem:[#allocation14 + $0x2650] sm:$0xff]  ;;  %v3946_v63 = vld [vmem:[#allocation14 + $0x2658] sm:$0xff] }
 0x4f6   :  { %12651 = vmatprep.subr.bf16.mxu0 %v15576_v12  ;;  %v15718_v12 = vcombine.high %v3825_v4, %v3837_v5  ;;  %v3957_v60 = vld [vmem:[#allocation14 + $0x26b0] sm:$0xff] }
 0x4f8   :  { %12488 = vmatpush1.bf16.msra.mxu1 %v15573_v18  ;;  %v3862_v18 = vld [vmem:[#allocation14 + $0x23b8] sm:$0xff] }
 0x4f9   :  { %12652 = vmatpush1.bf16.msra.mxu0 %v15575_v50  ;;  %12489 = vmatprep.subr.bf16.mxu1 %v15598_v34  ;;  %v15717_v50 = vcombine.low %v3825_v4, %v3837_v5  ;;  %v15719_v34 = vcombine.low %v3826_v10, %v3838_v7  ;;  %v15744_v21 = vcombine.high %v3850_v16, %v3862_v18  ;;  %v3969_v5 = vld [vmem:[#allocation14 + $0x2710] sm:$0xff]  ;;  %v3970_v7 = vld [vmem:[#allocation14 + $0x2718] sm:$0xff] }
 0x4fa   :  { %12653 = vmatprep.subr.bf16.mxu0 %v15600_v20  ;;  %v15742_v20 = vcombine.high %v3849_v14, %v3861_v15  ;;  %v3981_v10 = vld [vmem:[#allocation14 + $0x2770] sm:$0xff] }
 0x4fc   :  { %12490 = vmatpush1.bf16.msra.mxu1 %v15597_v24  ;;  %v3886_v24 = vld [vmem:[#allocation14 + $0x2478] sm:$0xff] }
 0x4fd   :  { %12654 = vmatpush1.bf16.msra.mxu0 %v15599_v6  ;;  %12491 = vmatprep.subr.bf16.mxu1 %v15622_v26  ;;  %v15741_v6 = vcombine.low %v3849_v14, %v3861_v15  ;;  %v15743_v26 = vcombine.low %v3850_v16, %v3862_v18  ;;  %v15768_v56 = vcombine.high %v3874_v19, %v3886_v24  ;;  %v3993_v15 = vld [vmem:[#allocation14 + $0x27d0] sm:$0xff]  ;;  %v3994_v18 = vld [vmem:[#allocation14 + $0x27d8] sm:$0xff] }
 0x4fe   :  { %12655 = vmatprep.subr.bf16.mxu0 %v15624_v27  ;;  %v15766_v27 = vcombine.high %v3873_v22, %v3885_v23  ;;  %v4005_v16 = vld [vmem:[#allocation14 + $0x2830] sm:$0xff] }
 0x4ff   :  { %v15886_v22 = vcombine.high %v3993_v15, %v4005_v16 }
 0x500   :  { %12492 = vmatpush1.bf16.msra.mxu1 %v15621_v37  ;;  %v3898_v37 = vld [vmem:[#allocation14 + $0x24d8] sm:$0xff] }
 0x501   :  { %12656 = vmatpush1.bf16.msra.mxu0 %v15623_v38  ;;  %12493 = vmatprep.subr.bf16.mxu1 %v15646_v39  ;;  %v3910_v38 = vld [vmem:[#allocation14 + $0x2538] sm:$0xff]  ;;  %v15767_v39 = vcombine.low %v3874_v19, %v3886_v24  ;;  %v4017_v19 = vld [vmem:[#allocation14 + $0x2890] sm:$0xff] }
 0x502   :  { %12657 = vmatprep.subr.bf16.mxu0 %v15648_v40  ;;  %v15790_v40 = vcombine.high %v3897_v32, %v3909_v35  ;;  %v15792_v47 = vcombine.high %v3898_v37, %v3910_v38  ;;  %v4029_v24 = vld [vmem:[#allocation14 + $0x28f0] sm:$0xff] }
 0x504   :  { %12494 = vmatpush1.bf16.msra.mxu1 %v15645_v49  ;;  %v3934_v49 = vld [vmem:[#allocation14 + $0x25f8] sm:$0xff] }
 0x505   :  { %12658 = vmatpush1.bf16.msra.mxu0 %v15647_v52  ;;  %12495 = vmatprep.subr.bf16.mxu1 %v15670_v53  ;;  %v15789_v52 = vcombine.low %v3897_v32, %v3909_v35  ;;  %v15791_v53 = vcombine.low %v3898_v37, %v3910_v38  ;;  %v15816_v13 = vcombine.high %v3922_v48, %v3934_v49 }
 0x506   :  { %12659 = vmatprep.subr.bf16.mxu0 %v15672_v57  ;;  %v15814_v57 = vcombine.high %v3921_v43, %v3933_v44  ;;  %v15910_v38 = vcombine.high %v4017_v19, %v4029_v24 }
 0x508   :  { %12496 = vmatpush1.bf16.msra.mxu1 %v15669_v0  ;;  %v3958_v0 = vld [vmem:[#allocation14 + $0x26b8] sm:$0xff] }
 0x509   :  { %12660 = vmatpush1.bf16.msra.mxu0 %v15671_v1  ;;  %12497 = vmatprep.subr.bf16.mxu1 %v15694_v2  ;;  %v15813_v1 = vcombine.low %v3921_v43, %v3933_v44  ;;  %v15815_v2 = vcombine.low %v3922_v48, %v3934_v49  ;;  %v15840_v4 = vcombine.high %v3946_v63, %v3958_v0  ;;  %v4041_v44 = vld [vmem:[#allocation14 + $0x2950] sm:$0xff] }
 0x50a   :  { %12661 = vmatprep.subr.bf16.mxu0 %v15696_v3  ;;  %v15838_v3 = vcombine.high %v3945_v9, %v3957_v60 }
 0x50c   :  { %12498 = vmatpush1.bf16.msra.mxu1 %v15693_v8  ;;  %v3982_v8 = vld [vmem:[#allocation14 + $0x2778] sm:$0xff] }
 0x50d   :  { %12662 = vmatpush1.bf16.msra.mxu0 %v15695_v11  ;;  %12499 = vmatprep.subr.bf16.mxu1 %v15718_v12  ;;  %v15837_v11 = vcombine.low %v3945_v9, %v3957_v60  ;;  %v15839_v12 = vcombine.low %v3946_v63, %v3958_v0  ;;  %v15864_v14 = vcombine.high %v3970_v7, %v3982_v8 }
 0x50e   :  { %12663 = vmatprep.subr.bf16.mxu0 %v15720_v17  ;;  %v15862_v17 = vcombine.high %v3969_v5, %v3981_v10 }
 0x510   :  { %12500 = vmatpush1.bf16.msra.mxu1 %v15717_v50  ;;  %v4006_v50 = vld [vmem:[#allocation14 + $0x2838] sm:$0xff] }
 0x511   :  { %12664 = vmatpush1.bf16.msra.mxu0 %v15719_v34  ;;  %12501 = vmatprep.subr.bf16.mxu1 %v15742_v20  ;;  %v15861_v34 = vcombine.low %v3969_v5, %v3981_v10  ;;  %v4255_v20 = vld [vmem:[#allocation16] sm:$0xff]  ;;  %v15888_v23 = vcombine.high %v3994_v18, %v4006_v50  ;;  %v15887_v37 = vcombine.low %v3994_v18, %v4006_v50 }
 0x512   :  { %12665 = vmatprep.subr.bf16.mxu0 %v15744_v21  ;;  %v15863_v21 = vcombine.low %v3970_v7, %v3982_v8  ;;  %v4268_v32 = vrot.slane %v4255_v20, %v16956_v31  ;;  %v4276_v35 = vrot.slane %v4255_v20, %v16963_v51  ;;  %v4065_v7 = vld [vmem:[#allocation14 + $0x2a10] sm:$0xff] }
 0x513   :  { %v4077_v8 = vld [vmem:[#allocation14 + $0x2a70] sm:$0xff] }
 0x514   :  { %12502 = vmatpush1.bf16.msra.mxu1 %v15741_v6  ;;  %v4264_v6 = vrot.slane %v4255_v20, %v16953_v29  ;;  %v15958_v18 = vcombine.high %v4065_v7, %v4077_v8 }
 0x515   :  { %12666 = vmatpush1.bf16.msra.mxu0 %v15743_v26  ;;  %12512 = vmatprep.subr.bf16.mxu1 %v15766_v27  ;;  %v4272_v26 = vrot.slane %v4255_v20, %v16986_v59  ;;  %v4018_v27 = vld [vmem:[#allocation14 + $0x2898] sm:$0xff]  ;;  %v4101_v20 = vld [vmem:[#allocation14 + $0x2b30] sm:$0xff] }
 0x516   :  { %12676 = vmatprep.subr.bf16.mxu0 %v15768_v56  ;;  %v4030_v56 = vld [vmem:[#allocation14 + $0x28f8] sm:$0xff] }
 0x517   :  { %12504 = vmatmul.mubr.bf16.vlgmr.msra.gmra.mrb[16].mxu1 %v17051_v45  ;;  %v15912_v43 = vcombine.high %v4018_v27, %v4030_v56 }
 0x518   :  { %12668 = vmatmul.mubr.bf16.vlgmr.msra.gmra.mrb[20].mxu0 %v17051_v45  ;;  %12513 = vmatpush1.bf16.msra.mxu1 %v15765_v36  ;;  %v15885_v36 = vcombine.low %v3993_v15, %v4005_v16 }
 0x519   :  { %12544 = vmatprep.mubr.bf16.mxu1 %v17055_v54  ;;  %12677 = vmatpush1.bf16.msra.mxu0 %v15767_v39 }
 0x51a   :  { %12708 = vmatprep.mubr.bf16.mxu0 %v17055_v54  ;;  %12514 = vmatprep.subr.bf16.mxu1 %v15790_v40 }
 0x51b   :  { %12678 = vmatprep.subr.bf16.mxu0 %v15792_v47  ;;  %v4053_v47 = vld [vmem:[#allocation14 + $0x29b0] sm:$0xff] }
 0x51c   :  { %12515 = vmatpush1.bf16.msra.mxu1 %v15789_v52  ;;  %v15934_v5 = vcombine.high %v4041_v44, %v4053_v47  ;;  %v15933_v15 = vcombine.low %v4041_v44, %v4053_v47 }
 0x51d   :  { %12679 = vmatpush1.bf16.msra.mxu0 %v15791_v53  ;;  %12516 = vmatprep.subr.bf16.mxu1 %v15814_v57  ;;  %v4042_v57 = vld [vmem:[#allocation14 + $0x2958] sm:$0xff] }
 0x51e   :  { %12680 = vmatprep.subr.bf16.mxu0 %v15816_v13  ;;  %v4054_v13 = vld [vmem:[#allocation14 + $0x29b8] sm:$0xff] }
 0x51f   :  { %v15936_v10 = vcombine.high %v4042_v57, %v4054_v13  ;;  %v15935_v16 = vcombine.low %v4042_v57, %v4054_v13  ;;  %v4138_v13 = vld [vmem:[#allocation14 + $0x2c58] sm:$0xff] }
 0x520   :  { %12517 = vmatpush1.bf16.msra.mxu1 %v15813_v1  ;;  %v15909_v1 = vcombine.low %v4017_v19, %v4029_v24  ;;  %v15957_v19 = vcombine.low %v4065_v7, %v4077_v8 }
 0x521   :  { %12681 = vmatpush1.bf16.msra.mxu0 %v15815_v2  ;;  %12518 = vmatprep.subr.bf16.mxu1 %v15838_v3 }
 0x522   :  { %12682 = vmatprep.subr.bf16.mxu0 %v15840_v4  ;;  %v15911_v4 = vcombine.low %v4018_v27, %v4030_v56  ;;  %v4113_v27 = vld [vmem:[#allocation14 + $0x2b90] sm:$0xff] }
 0x523   :  { %v4125_v56 = vld [vmem:[#allocation14 + $0x2bf0] sm:$0xff] }
 0x524   :  { %12519 = vmatpush1.bf16.msra.mxu1 %v15837_v11  ;;  %v4066_v11 = vld [vmem:[#allocation14 + $0x2a18] sm:$0xff]  ;;  %v16006_v44 = vcombine.high %v4113_v27, %v4125_v56 }
 0x525   :  { %12683 = vmatpush1.bf16.msra.mxu0 %v15839_v12  ;;  %12520 = vmatprep.subr.bf16.mxu1 %v15862_v17  ;;  %v4078_v12 = vld [vmem:[#allocation14 + $0x2a78] sm:$0xff]  ;;  %v16790_v17 = vmov 1966171168  }
 0x526   :  { %12684 = vmatprep.subr.bf16.mxu0 %v15864_v14  ;;  %v14106_v14 = vunpack.c.l.s4 %v16790_v17  ;;  %v15960_v50 = vcombine.high %v4066_v11, %v4078_v12  ;;  %v15959_v24 = vcombine.low %v4066_v11, %v4078_v12 }
 0x528   :  { %12521 = vmatpush1.bf16.msra.mxu1 %v15861_v34  ;;  %v4089_v34 = vld [vmem:[#allocation14 + $0x2ad0] sm:$0xff] }
 0x529   :  { %12685 = vmatpush1.bf16.msra.mxu0 %v15863_v21  ;;  %12522 = vmatprep.subr.bf16.mxu1 %v15886_v22  ;;  %v4090_v21 = vld [vmem:[#allocation14 + $0x2ad8] sm:$0xff] }
 0x52a   :  { %v12218_v39 = vpop.f32.mrb[12].mxu1  ;;  %v12382_v40 = vpop.f32.mrb[16].mxu0  ;;  %12686 = vmatprep.subr.bf16.mxu0 %v15888_v23  ;;  %v4102_v22 = vld [vmem:[#allocation14 + $0x2b38] sm:$0xff]  ;;  %v14107_v23 = vunpack.c.0.s8 %v14106_v14  ;;  %v4185_v14 = vld [vmem:[#allocation14 + $0x2dd0] sm:$0xff] }
 0x52b   :  { %v16165_v48 = vadd.f32 %v12218_v39, %v4264_v6  ;;  %v16167_v49 = vadd.f32 %v12382_v40, %v4272_v26  ;;  %v12220_v52 = vpop.f32.mrb[13].mxu1  ;;  %v12384_v53 = vpop.f32.mrb[17].mxu0  ;;  %v15982_v6 = vcombine.high %v4089_v34, %v4101_v20  ;;  %v15984_v26 = vcombine.high %v4090_v21, %v4102_v22 }
 0x52c   :  { %v16166_v9 = vadd.f32 %v12220_v52, %v4268_v32  ;;  %v16168_v60 = vadd.f32 %v12384_v53, %v4276_v35  ;;  %v12222_v63 = vpop.f32.mrb[14].mxu1  ;;  %v12386_v0 = vpop.f32.mrb[18].mxu0  ;;  %12523 = vmatpush1.bf16.msra.mxu1 %v15885_v36  ;;  %v4114_v35 = vld [vmem:[#allocation14 + $0x2b98] sm:$0xff]  ;;  %v15981_v39 = vcombine.low %v4089_v34, %v4101_v20  ;;  %v4137_v52 = vld [vmem:[#allocation14 + $0x2c50] sm:$0xff] }
 0x52d   :  { %16489 = vtanh.f32 %v16165_v48  ;;  %12687 = vmatpush1.bf16.msra.mxu0 %v15887_v37  ;;  %v12223_v2 = vpop.f32.mrb[15].mxu1  ;;  %v12387_v3 = vpop.f32.mrb[19].mxu0  ;;  %12524 = vmatprep.subr.bf16.mxu1 %v15910_v38  ;;  %v4126_v36 = vld [vmem:[#allocation14 + $0x2bf8] sm:$0xff]  ;;  %v17089_v38 = vsub.s32 %v14107_v23, %v16950_v28  ;;  %v4149_v53 = vld [vmem:[#allocation14 + $0x2cb0] sm:$0xff] }
 0x52e   :  { %16491 = vtanh.f32 %v16167_v49  ;;  %12688 = vmatprep.subr.bf16.mxu0 %v15912_v43  ;;  %v15983_v43 = vcombine.low %v4090_v21, %v4102_v22  ;;  %v16008_v49 = vcombine.high %v4114_v35, %v4126_v36  ;;  %v16007_v63 = vcombine.low %v4114_v35, %v4126_v36  ;;  %v4161_v3 = vld [vmem:[#allocation14 + $0x2d10] sm:$0xff]  ;;  %v4234_v36 = vld [vmem:[#allocation14 + $0x2f58] sm:$0xff] }
 0x52f   :  { %16493 = vtanh.f32 %v16166_v9  ;;  %v4150_v9 = vld [vmem:[#allocation14 + $0x2cb8] sm:$0xff]  ;;  %v16030_v0 = vcombine.high %v4137_v52, %v4149_v53  ;;  %v16029_v8 = vcombine.low %v4137_v52, %v4149_v53  ;;  %v4209_v22 = vld [vmem:[#allocation14 + $0x2e90] sm:$0xff]  ;;  %v2736_v52 = vld [vmem:[#allocation14 + $0x88] sm:$0xff] }
 0x530   :  { %16495 = vtanh.f32 %v16168_v60  ;;  %12525 = vmatpush1.bf16.msra.mxu1 %v15909_v1  ;;  %v16005_v60 = vcombine.low %v4113_v27, %v4125_v56  ;;  %v16032_v2 = vcombine.high %v4138_v13, %v4150_v9  ;;  %v16031_v11 = vcombine.low %v4138_v13, %v4150_v9  ;;  %v4221_v23 = vld [vmem:[#allocation14 + $0x2ef0] sm:$0xff] }
 0x531   :  { %12689 = vmatpush1.bf16.msra.mxu0 %v15911_v4  ;;  %12526 = vmatprep.subr.bf16.mxu1 %v15934_v5  ;;  %v4173_v4 = vld [vmem:[#allocation14 + $0x2d70] sm:$0xff]  ;;  %v4162_v5 = vld [vmem:[#allocation14 + $0x2d18] sm:$0xff]  ;;  %v16102_v27 = vcombine.high %v4209_v22, %v4221_v23 }
 0x532   :  { %12690 = vmatprep.subr.bf16.mxu0 %v15936_v10  ;;  %v4174_v10 = vld [vmem:[#allocation14 + $0x2d78] sm:$0xff]  ;;  %v16054_v12 = vcombine.high %v4161_v3, %v4173_v4  ;;  %v4245_v35 = vld [vmem:[#allocation14 + $0x2fb0] sm:$0xff] }
 0x533   :  { %v16056_v17 = vcombine.high %v4162_v5, %v4174_v10  ;;  %v16055_v34 = vcombine.low %v4162_v5, %v4174_v10  ;;  %v2771_v10 = vld [vmem:[#allocation14 + $0x1a0] sm:$0xff] }
 0x534   :  { %12527 = vmatpush1.bf16.msra.mxu1 %v15933_v15  ;;  %v4197_v15 = vld [vmem:[#allocation14 + $0x2e30] sm:$0xff] }
 0x535   :  { %12691 = vmatpush1.bf16.msra.mxu0 %v15935_v16  ;;  %12528 = vmatprep.subr.bf16.mxu1 %v15958_v18  ;;  %v4186_v16 = vld [vmem:[#allocation14 + $0x2dd8] sm:$0xff]  ;;  %v16078_v20 = vcombine.high %v4185_v14, %v4197_v15 }
 0x536   :  { %12692 = vmatprep.subr.bf16.mxu0 %v15960_v50  ;;  %v4198_v18 = vld [vmem:[#allocation14 + $0x2e38] sm:$0xff]  ;;  %v16053_v50 = vcombine.low %v4161_v3, %v4173_v4  ;;  %v2760_v3 = vld [vmem:[#allocation14 + $0x148] sm:$0xff] }
 0x537   :  { %v16490_v32 = vpop.eup %16489  ;;  %v16080_v21 = vcombine.high %v4186_v16, %v4198_v18 }
 0x538   :  { %v16492_v37 = vpop.eup %16491  ;;  %12529 = vmatpush1.bf16.msra.mxu1 %v15957_v19  ;;  %v4210_v19 = vld [vmem:[#allocation14 + $0x2e98] sm:$0xff] }
 0x539   :  { %v16494_v40 = vpop.eup %16493  ;;  %12693 = vmatpush1.bf16.msra.mxu0 %v15959_v24  ;;  %12530 = vmatprep.subr.bf16.mxu1 %v15982_v6  ;;  %v4222_v24 = vld [vmem:[#allocation14 + $0x2ef8] sm:$0xff]  ;;  %v16077_v6 = vcombine.low %v4185_v14, %v4197_v15 }
 0x53a   :  { %v16496_v47 = vpop.eup %16495  ;;  %v16145_v48 = vpack.c.bf16 %v16494_v40, %v16490_v32  ;;  %12694 = vmatprep.subr.bf16.mxu0 %v15984_v26  ;;  %v16079_v26 = vcombine.low %v4186_v16, %v4198_v18  ;;  %v16104_v56 = vcombine.high %v4210_v19, %v4222_v24  ;;  %v4233_v32 = vld [vmem:[#allocation14 + $0x2f50] sm:$0xff]  ;;  %v16103_v40 = vcombine.low %v4210_v19, %v4222_v24 }
 0x53b   :  { %v16146_v57 = vpack.c.bf16 %v16496_v47, %v16492_v37  ;;  %v4246_v37 = vld [vmem:[#allocation14 + $0x2fb8] sm:$0xff]  ;;  %v2723_v47 = vld [vmem:[#allocation14 + $0x20] sm:$0xff]  ;;  %v16125_v53 = vcombine.low %v4233_v32, %v4245_v35 }
 0x53c   :  { %12531 = vmatpush1.bf16.msra.mxu1 %v15981_v39  ;;  %v17092_v28 = vrot.slane %v16145_v48, %v17089_v38  ;;  %v16101_v39 = vcombine.low %v4209_v22, %v4221_v23  ;;  %v2735_v48 = vld [vmem:[#allocation14 + $0x80] sm:$0xff] }
 0x53d   :  { %12695 = vmatpush1.bf16.msra.mxu0 %v15983_v43  ;;  %12532 = vmatprep.subr.bf16.mxu1 %v16006_v44  ;;  %v17095_v1 = vrot.slane %v16146_v57, %v17089_v38  ;;  %v16126_v43 = vcombine.high %v4233_v32, %v4245_v35  ;;  %v16128_v44 = vcombine.high %v4234_v36, %v4246_v37 }
 0x53e   :  { %12696 = vmatprep.subr.bf16.mxu0 %v16008_v49  ;;  %v2724_v49 = vld [vmem:[#allocation14 + $0x28] sm:$0xff]  ;;  %v16127_v57 = vcombine.low %v4234_v36, %v4246_v37  ;;  %v14618_v13 = vcombine.high %v2723_v47, %v2735_v48 }
 0x53f   :  { %v14133_v7 = vcombine.low %v17092_v28, %v17095_v1  ;;  %v14620_v9 = vcombine.high %v2724_v49, %v2736_v52  ;;  %v14619_v4 = vcombine.low %v2724_v49, %v2736_v52 }
 0x540   :  { %12533 = vmatpush1.bf16.msra.mxu1 %v16005_v60  ;;  %v2747_v60 = vld [vmem:[#allocation14 + $0xe0] sm:$0xff] }
 0x541   :  { %12697 = vmatpush1.bf16.msra.mxu0 %v16007_v63  ;;  %12534 = vmatprep.subr.bf16.mxu1 %v16030_v0  ;;  %v2759_v63 = vld [vmem:[#allocation14 + $0x140] sm:$0xff]  ;;  %v14617_v0 = vcombine.low %v2723_v47, %v2735_v48 }
 0x542   :  { %12698 = vmatprep.subr.bf16.mxu0 %v16032_v2  ;;  %v2748_v2 = vld [vmem:[#allocation14 + $0xe8] sm:$0xff]  ;;  %v14642_v5 = vcombine.high %v2747_v60, %v2759_v63  ;;  %v14641_v14 = vcombine.low %v2747_v60, %v2759_v63 }
 0x543   :  { %v14643_v15 = vcombine.low %v2748_v2, %v2760_v3 }
 0x544   :  { %12535 = vmatpush1.bf16.msra.mxu1 %v16029_v8  ;;  %v2783_v8 = vld [vmem:[#allocation14 + $0x200] sm:$0xff] }
 0x545   :  { %12699 = vmatpush1.bf16.msra.mxu0 %v16031_v11  ;;  %12536 = vmatprep.subr.bf16.mxu1 %v16054_v12  ;;  %v14644_v11 = vcombine.high %v2748_v2, %v2760_v3  ;;  %v2772_v12 = vld [vmem:[#allocation14 + $0x1a8] sm:$0xff]  ;;  %v14666_v16 = vcombine.high %v2771_v10, %v2783_v8  ;;  %v14665_v22 = vcombine.low %v2771_v10, %v2783_v8  ;;  %v2891_v3 = vld [vmem:[#allocation14 + $0x560] sm:$0xff] }
 0x546   :  { %12700 = vmatprep.subr.bf16.mxu0 %v16056_v17  ;;  %v2784_v17 = vld [vmem:[#allocation14 + $0x208] sm:$0xff] }
 0x547   :  { %v14668_v18 = vcombine.high %v2772_v12, %v2784_v17  ;;  %v14667_v23 = vcombine.low %v2772_v12, %v2784_v17  ;;  %v2904_v10 = vld [vmem:[#allocation14 + $0x5c8] sm:$0xff] }
 0x548   :  { %12537 = vmatpush1.bf16.msra.mxu1 %v16053_v50  ;;  %v2795_v50 = vld [vmem:[#allocation14 + $0x260] sm:$0xff] }
 0x549   :  { %12701 = vmatpush1.bf16.msra.mxu0 %v16055_v34  ;;  %12538 = vmatprep.subr.bf16.mxu1 %v16078_v20  ;;  %v2807_v34 = vld [vmem:[#allocation14 + $0x2c0] sm:$0xff]  ;;  %v2796_v20 = vld [vmem:[#allocation14 + $0x268] sm:$0xff] }
 0x54a   :  { %12702 = vmatprep.subr.bf16.mxu0 %v16080_v21  ;;  %v2808_v21 = vld [vmem:[#allocation14 + $0x2c8] sm:$0xff]  ;;  %v14690_v19 = vcombine.high %v2795_v50, %v2807_v34  ;;  %v14689_v32 = vcombine.low %v2795_v50, %v2807_v34 }
 0x54b   :  { %v14692_v24 = vcombine.high %v2796_v20, %v2808_v21  ;;  %v14691_v35 = vcombine.low %v2796_v20, %v2808_v21 }
 0x54c   :  { %12539 = vmatpush1.bf16.msra.mxu1 %v16077_v6  ;;  %v2819_v6 = vld [vmem:[#allocation14 + $0x320] sm:$0xff] }
 0x54d   :  { %12703 = vmatpush1.bf16.msra.mxu0 %v16079_v26  ;;  %12540 = vmatprep.subr.bf16.mxu1 %v16102_v27  ;;  %v2831_v26 = vld [vmem:[#allocation14 + $0x380] sm:$0xff]  ;;  %v2820_v27 = vld [vmem:[#allocation14 + $0x328] sm:$0xff] }
 0x54e   :  { %12704 = vmatprep.subr.bf16.mxu0 %v16104_v56  ;;  %v2832_v56 = vld [vmem:[#allocation14 + $0x388] sm:$0xff]  ;;  %v14714_v36 = vcombine.high %v2819_v6, %v2831_v26  ;;  %v14713_v47 = vcombine.low %v2819_v6, %v2831_v26 }
 0x54f   :  { %v14716_v37 = vcombine.high %v2820_v27, %v2832_v56  ;;  %v14715_v48 = vcombine.low %v2820_v27, %v2832_v56 }
 0x550   :  { %12541 = vmatpush1.bf16.msra.mxu1 %v16101_v39  ;;  %v2843_v39 = vld [vmem:[#allocation14 + $0x3e0] sm:$0xff] }
 0x551   :  { %12705 = vmatpush1.bf16.msra.mxu0 %v16103_v40  ;;  %12542 = vmatprep.subr.bf16.mxu1 %v16126_v43  ;;  %v2855_v40 = vld [vmem:[#allocation14 + $0x440] sm:$0xff]  ;;  %v2844_v43 = vld [vmem:[#allocation14 + $0x3e8] sm:$0xff] }
 0x552   :  { %12706 = vmatprep.subr.bf16.mxu0 %v16128_v44  ;;  %v2856_v44 = vld [vmem:[#allocation14 + $0x448] sm:$0xff]  ;;  %v14738_v49 = vcombine.high %v2843_v39, %v2855_v40  ;;  %v14737_v60 = vcombine.low %v2843_v39, %v2855_v40 }
 0x553   :  { %v14740_v52 = vcombine.high %v2844_v43, %v2856_v44  ;;  %v14739_v63 = vcombine.low %v2844_v43, %v2856_v44 }
 0x554   :  { %12543 = vmatpush1.bf16.msra.mxu1 %v16125_v53  ;;  %v2867_v53 = vld [vmem:[#allocation14 + $0x4a0] sm:$0xff] }
 0x555   :  { %12707 = vmatpush1.bf16.msra.mxu0 %v16127_v57  ;;  %12717 = vmatprep.subr.bf16.mxu1 %v14618_v13  ;;  %v2879_v57 = vld [vmem:[#allocation14 + $0x500] sm:$0xff]  ;;  %v2868_v13 = vld [vmem:[#allocation14 + $0x4a8] sm:$0xff] }
 0x556   :  { %12881 = vmatprep.subr.bf16.mxu0 %v14620_v9  ;;  %v2880_v9 = vld [vmem:[#allocation14 + $0x508] sm:$0xff]  ;;  %v14761_v8 = vcombine.low %v2867_v53, %v2879_v57 }
 0x557   :  { %12545 = vmatmul.mubr.bf16.vlgmr.msra.gmra.mrb[16].mxu1 %v17066_v25  ;;  %v14764_v2 = vcombine.high %v2868_v13, %v2880_v9 }
 0x558   :  { %12709 = vmatmul.mubr.bf16.vlgmr.msra.gmra.mrb[20].mxu0 %v17066_v25  ;;  %12718 = vmatpush1.bf16.msra.mxu1 %v14617_v0  ;;  %v14762_v0 = vcombine.high %v2867_v53, %v2879_v57 }
 0x559   :  { %12749 = vmatprep.mubr.bf16.mxu1 %v17013_v30  ;;  %12882 = vmatpush1.bf16.msra.mxu0 %v14619_v4  ;;  %v2903_v4 = vld [vmem:[#allocation14 + $0x5c0] sm:$0xff] }
 0x55a   :  { %12913 = vmatprep.mubr.bf16.mxu0 %v17013_v30  ;;  %12719 = vmatprep.subr.bf16.mxu1 %v14642_v5  ;;  %v2892_v5 = vld [vmem:[#allocation14 + $0x568] sm:$0xff]  ;;  %v14786_v12 = vcombine.high %v2891_v3, %v2903_v4  ;;  %v14785_v50 = vcombine.low %v2891_v3, %v2903_v4 }
 0x55b   :  { %12883 = vmatprep.subr.bf16.mxu0 %v14644_v11  ;;  %v14763_v11 = vcombine.low %v2868_v13, %v2880_v9  ;;  %v14788_v17 = vcombine.high %v2892_v5, %v2904_v10  ;;  %v14787_v34 = vcombine.low %v2892_v5, %v2904_v10 }
 0x55c   :  { %12720 = vmatpush1.bf16.msra.mxu1 %v14641_v14  ;;  %v2915_v14 = vld [vmem:[#allocation14 + $0x620] sm:$0xff] }
 0x55d   :  { %12884 = vmatpush1.bf16.msra.mxu0 %v14643_v15  ;;  %12721 = vmatprep.subr.bf16.mxu1 %v14666_v16  ;;  %v2927_v15 = vld [vmem:[#allocation14 + $0x680] sm:$0xff]  ;;  %v2916_v16 = vld [vmem:[#allocation14 + $0x628] sm:$0xff] }
 0x55e   :  { %12885 = vmatprep.subr.bf16.mxu0 %v14668_v18  ;;  %v2928_v18 = vld [vmem:[#allocation14 + $0x688] sm:$0xff]  ;;  %v14810_v20 = vcombine.high %v2915_v14, %v2927_v15  ;;  %v14809_v6 = vcombine.low %v2915_v14, %v2927_v15 }
 0x55f   :  { %v14812_v21 = vcombine.high %v2916_v16, %v2928_v18  ;;  %v14811_v26 = vcombine.low %v2916_v16, %v2928_v18 }
 0x560   :  { %12722 = vmatpush1.bf16.msra.mxu1 %v14665_v22  ;;  %v2939_v22 = vld [vmem:[#allocation14 + $0x6e0] sm:$0xff] }
 0x561   :  { %12886 = vmatpush1.bf16.msra.mxu0 %v14667_v23  ;;  %12723 = vmatprep.subr.bf16.mxu1 %v14690_v19  ;;  %v2951_v23 = vld [vmem:[#allocation14 + $0x740] sm:$0xff]  ;;  %v2940_v19 = vld [vmem:[#allocation14 + $0x6e8] sm:$0xff] }
 0x562   :  { %12887 = vmatprep.subr.bf16.mxu0 %v14692_v24  ;;  %v2952_v24 = vld [vmem:[#allocation14 + $0x748] sm:$0xff]  ;;  %v14834_v27 = vcombine.high %v2939_v22, %v2951_v23  ;;  %v14833_v39 = vcombine.low %v2939_v22, %v2951_v23 }
 0x563   :  { %v14836_v56 = vcombine.high %v2940_v19, %v2952_v24  ;;  %v14835_v40 = vcombine.low %v2940_v19, %v2952_v24 }
 0x564   :  { %12724 = vmatpush1.bf16.msra.mxu1 %v14689_v32  ;;  %v2963_v32 = vld [vmem:[#allocation14 + $0x7a0] sm:$0xff] }
 0x565   :  { %12888 = vmatpush1.bf16.msra.mxu0 %v14691_v35  ;;  %12725 = vmatprep.subr.bf16.mxu1 %v14714_v36  ;;  %v2975_v35 = vld [vmem:[#allocation14 + $0x800] sm:$0xff]  ;;  %v2964_v36 = vld [vmem:[#allocation14 + $0x7a8] sm:$0xff] }
 0x566   :  { %12889 = vmatprep.subr.bf16.mxu0 %v14716_v37  ;;  %v2976_v37 = vld [vmem:[#allocation14 + $0x808] sm:$0xff]  ;;  %v14858_v43 = vcombine.high %v2963_v32, %v2975_v35  ;;  %v14857_v53 = vcombine.low %v2963_v32, %v2975_v35 }
 0x567   :  { %v14860_v44 = vcombine.high %v2964_v36, %v2976_v37  ;;  %v14859_v57 = vcombine.low %v2964_v36, %v2976_v37 }
 0x568   :  { %12726 = vmatpush1.bf16.msra.mxu1 %v14713_v47  ;;  %v2987_v47 = vld [vmem:[#allocation14 + $0x860] sm:$0xff] }
 0x569   :  { %12890 = vmatpush1.bf16.msra.mxu0 %v14715_v48  ;;  %12727 = vmatprep.subr.bf16.mxu1 %v14738_v49  ;;  %v2999_v48 = vld [vmem:[#allocation14 + $0x8c0] sm:$0xff]  ;;  %v2988_v49 = vld [vmem:[#allocation14 + $0x868] sm:$0xff] }
 0x56a   :  { %12891 = vmatprep.subr.bf16.mxu0 %v14740_v52  ;;  %v3000_v52 = vld [vmem:[#allocation14 + $0x8c8] sm:$0xff]  ;;  %v14882_v13 = vcombine.high %v2987_v47, %v2999_v48  ;;  %v14881_v3 = vcombine.low %v2987_v47, %v2999_v48 }
 0x56b   :  { %v14884_v9 = vcombine.high %v2988_v49, %v3000_v52  ;;  %v14883_v4 = vcombine.low %v2988_v49, %v3000_v52 }
 0x56c   :  { %12728 = vmatpush1.bf16.msra.mxu1 %v14737_v60  ;;  %v3011_v60 = vld [vmem:[#allocation14 + $0x920] sm:$0xff] }
 0x56d   :  { %12892 = vmatpush1.bf16.msra.mxu0 %v14739_v63  ;;  %12729 = vmatprep.subr.bf16.mxu1 %v14762_v0  ;;  %v3023_v63 = vld [vmem:[#allocation14 + $0x980] sm:$0xff]  ;;  %v3012_v0 = vld [vmem:[#allocation14 + $0x928] sm:$0xff] }
 0x56e   :  { %12893 = vmatprep.subr.bf16.mxu0 %v14764_v2  ;;  %v3024_v2 = vld [vmem:[#allocation14 + $0x988] sm:$0xff]  ;;  %v14906_v5 = vcombine.high %v3011_v60, %v3023_v63  ;;  %v14905_v14 = vcombine.low %v3011_v60, %v3023_v63 }
 0x56f   :  { %v14908_v10 = vcombine.high %v3012_v0, %v3024_v2  ;;  %v14907_v15 = vcombine.low %v3012_v0, %v3024_v2  ;;  %v3144_v60 = vld [vmem:[#allocation14 + $0xd48] sm:$0xff]  ;;  %v3155_v2 = vld [vmem:[#allocation14 + $0xda0] sm:$0xff] }
 0x570   :  { %12730 = vmatpush1.bf16.msra.mxu1 %v14761_v8  ;;  %v3035_v8 = vld [vmem:[#allocation14 + $0x9e0] sm:$0xff] }
 0x571   :  { %12894 = vmatpush1.bf16.msra.mxu0 %v14763_v11  ;;  %12731 = vmatprep.subr.bf16.mxu1 %v14786_v12  ;;  %v3047_v11 = vld [vmem:[#allocation14 + $0xa40] sm:$0xff]  ;;  %v3036_v12 = vld [vmem:[#allocation14 + $0x9e8] sm:$0xff] }
 0x572   :  { %12895 = vmatprep.subr.bf16.mxu0 %v14788_v17  ;;  %v3048_v17 = vld [vmem:[#allocation14 + $0xa48] sm:$0xff]  ;;  %v14930_v16 = vcombine.high %v3035_v8, %v3047_v11  ;;  %v14929_v22 = vcombine.low %v3035_v8, %v3047_v11 }
 0x573   :  { %v14932_v18 = vcombine.high %v3036_v12, %v3048_v17  ;;  %v14931_v23 = vcombine.low %v3036_v12, %v3048_v17 }
 0x574   :  { %12732 = vmatpush1.bf16.msra.mxu1 %v14785_v50  ;;  %v3059_v50 = vld [vmem:[#allocation14 + $0xaa0] sm:$0xff] }
 0x575   :  { %12896 = vmatpush1.bf16.msra.mxu0 %v14787_v34  ;;  %12733 = vmatprep.subr.bf16.mxu1 %v14810_v20  ;;  %v3071_v34 = vld [vmem:[#allocation14 + $0xb00] sm:$0xff]  ;;  %v3060_v20 = vld [vmem:[#allocation14 + $0xaa8] sm:$0xff] }
 0x576   :  { %12897 = vmatprep.subr.bf16.mxu0 %v14812_v21  ;;  %v3072_v21 = vld [vmem:[#allocation14 + $0xb08] sm:$0xff]  ;;  %v14954_v19 = vcombine.high %v3059_v50, %v3071_v34  ;;  %v14953_v32 = vcombine.low %v3059_v50, %v3071_v34 }
 0x577   :  { %v14956_v24 = vcombine.high %v3060_v20, %v3072_v21  ;;  %v14955_v35 = vcombine.low %v3060_v20, %v3072_v21 }
 0x578   :  { %12734 = vmatpush1.bf16.msra.mxu1 %v14809_v6  ;;  %v3083_v6 = vld [vmem:[#allocation14 + $0xb60] sm:$0xff] }
 0x579   :  { %12898 = vmatpush1.bf16.msra.mxu0 %v14811_v26  ;;  %12735 = vmatprep.subr.bf16.mxu1 %v14834_v27  ;;  %v3095_v26 = vld [vmem:[#allocation14 + $0xbc0] sm:$0xff]  ;;  %v3084_v27 = vld [vmem:[#allocation14 + $0xb68] sm:$0xff] }
 0x57a   :  { %12899 = vmatprep.subr.bf16.mxu0 %v14836_v56  ;;  %v3096_v56 = vld [vmem:[#allocation14 + $0xbc8] sm:$0xff]  ;;  %v14978_v36 = vcombine.high %v3083_v6, %v3095_v26  ;;  %v14977_v47 = vcombine.low %v3083_v6, %v3095_v26 }
 0x57b   :  { %v14980_v37 = vcombine.high %v3084_v27, %v3096_v56  ;;  %v14979_v48 = vcombine.low %v3084_v27, %v3096_v56 }
 0x57c   :  { %12736 = vmatpush1.bf16.msra.mxu1 %v14833_v39  ;;  %v3107_v39 = vld [vmem:[#allocation14 + $0xc20] sm:$0xff] }
 0x57d   :  { %12900 = vmatpush1.bf16.msra.mxu0 %v14835_v40  ;;  %12737 = vmatprep.subr.bf16.mxu1 %v14858_v43  ;;  %v3119_v40 = vld [vmem:[#allocation14 + $0xc80] sm:$0xff]  ;;  %v3108_v43 = vld [vmem:[#allocation14 + $0xc28] sm:$0xff] }
 0x57e   :  { %12901 = vmatprep.subr.bf16.mxu0 %v14860_v44  ;;  %v3120_v44 = vld [vmem:[#allocation14 + $0xc88] sm:$0xff]  ;;  %v15002_v49 = vcombine.high %v3107_v39, %v3119_v40 }
 0x57f   :  { %v15004_v52 = vcombine.high %v3108_v43, %v3120_v44  ;;  %v15003_v63 = vcombine.low %v3108_v43, %v3120_v44 }
 0x580   :  { %12738 = vmatpush1.bf16.msra.mxu1 %v14857_v53  ;;  %v3131_v53 = vld [vmem:[#allocation14 + $0xce0] sm:$0xff] }
 0x581   :  { %12902 = vmatpush1.bf16.msra.mxu0 %v14859_v57  ;;  %12739 = vmatprep.subr.bf16.mxu1 %v14882_v13  ;;  %v3143_v57 = vld [vmem:[#allocation14 + $0xd40] sm:$0xff]  ;;  %v15001_v13 = vcombine.low %v3107_v39, %v3119_v40 }
 0x582   :  { %12903 = vmatprep.subr.bf16.mxu0 %v14884_v9  ;;  %v3132_v9 = vld [vmem:[#allocation14 + $0xce8] sm:$0xff]  ;;  %v15026_v0 = vcombine.high %v3131_v53, %v3143_v57  ;;  %v15025_v8 = vcombine.low %v3131_v53, %v3143_v57 }
 0x583   :  { %v15027_v11 = vcombine.low %v3132_v9, %v3144_v60 }
 0x584   :  { %12740 = vmatpush1.bf16.msra.mxu1 %v14881_v3  ;;  %v3167_v3 = vld [vmem:[#allocation14 + $0xe00] sm:$0xff] }
 0x585   :  { %12904 = vmatpush1.bf16.msra.mxu0 %v14883_v4  ;;  %12741 = vmatprep.subr.bf16.mxu1 %v14906_v5  ;;  %v15028_v4 = vcombine.high %v3132_v9, %v3144_v60  ;;  %v3156_v5 = vld [vmem:[#allocation14 + $0xda8] sm:$0xff]  ;;  %v15050_v12 = vcombine.high %v3155_v2, %v3167_v3  ;;  %v15049_v50 = vcombine.low %v3155_v2, %v3167_v3  ;;  %v3275_v60 = vld [vmem:[#allocation14 + $0x1160] sm:$0xff] }
 0x586   :  { %12905 = vmatprep.subr.bf16.mxu0 %v14908_v10  ;;  %v3168_v10 = vld [vmem:[#allocation14 + $0xe08] sm:$0xff] }
 0x587   :  { %v15052_v17 = vcombine.high %v3156_v5, %v3168_v10  ;;  %v15051_v34 = vcombine.low %v3156_v5, %v3168_v10  ;;  %v3288_v2 = vld [vmem:[#allocation14 + $0x11c8] sm:$0xff] }
 0x588   :  { %12742 = vmatpush1.bf16.msra.mxu1 %v14905_v14  ;;  %v3179_v14 = vld [vmem:[#allocation14 + $0xe60] sm:$0xff] }
 0x589   :  { %12906 = vmatpush1.bf16.msra.mxu0 %v14907_v15  ;;  %12743 = vmatprep.subr.bf16.mxu1 %v14930_v16  ;;  %v3191_v15 = vld [vmem:[#allocation14 + $0xec0] sm:$0xff]  ;;  %v3180_v16 = vld [vmem:[#allocation14 + $0xe68] sm:$0xff] }
 0x58a   :  { %12907 = vmatprep.subr.bf16.mxu0 %v14932_v18  ;;  %v3192_v18 = vld [vmem:[#allocation14 + $0xec8] sm:$0xff]  ;;  %v15074_v20 = vcombine.high %v3179_v14, %v3191_v15  ;;  %v15073_v6 = vcombine.low %v3179_v14, %v3191_v15 }
 0x58b   :  { %v15076_v21 = vcombine.high %v3180_v16, %v3192_v18  ;;  %v15075_v26 = vcombine.low %v3180_v16, %v3192_v18 }
 0x58c   :  { %12744 = vmatpush1.bf16.msra.mxu1 %v14929_v22  ;;  %v3203_v22 = vld [vmem:[#allocation14 + $0xf20] sm:$0xff] }
 0x58d   :  { %12908 = vmatpush1.bf16.msra.mxu0 %v14931_v23  ;;  %12745 = vmatprep.subr.bf16.mxu1 %v14954_v19  ;;  %v3215_v23 = vld [vmem:[#allocation14 + $0xf80] sm:$0xff]  ;;  %v3204_v19 = vld [vmem:[#allocation14 + $0xf28] sm:$0xff] }
 0x58e   :  { %12909 = vmatprep.subr.bf16.mxu0 %v14956_v24  ;;  %v3216_v24 = vld [vmem:[#allocation14 + $0xf88] sm:$0xff]  ;;  %v15098_v27 = vcombine.high %v3203_v22, %v3215_v23  ;;  %v15097_v39 = vcombine.low %v3203_v22, %v3215_v23 }
 0x58f   :  { %v15100_v56 = vcombine.high %v3204_v19, %v3216_v24  ;;  %v15099_v40 = vcombine.low %v3204_v19, %v3216_v24 }
 0x590   :  { %12746 = vmatpush1.bf16.msra.mxu1 %v14953_v32  ;;  %v3227_v32 = vld [vmem:[#allocation14 + $0xfe0] sm:$0xff] }
 0x591   :  { %12910 = vmatpush1.bf16.msra.mxu0 %v14955_v35  ;;  %12747 = vmatprep.subr.bf16.mxu1 %v14978_v36  ;;  %v3239_v35 = vld [vmem:[#allocation14 + $0x1040] sm:$0xff]  ;;  %v3228_v36 = vld [vmem:[#allocation14 + $0xfe8] sm:$0xff] }
 0x592   :  { %12911 = vmatprep.subr.bf16.mxu0 %v14980_v37  ;;  %v3240_v37 = vld [vmem:[#allocation14 + $0x1048] sm:$0xff]  ;;  %v15122_v43 = vcombine.high %v3227_v32, %v3239_v35  ;;  %v15121_v53 = vcombine.low %v3227_v32, %v3239_v35 }
 0x593   :  { %v15124_v44 = vcombine.high %v3228_v36, %v3240_v37  ;;  %v15123_v57 = vcombine.low %v3228_v36, %v3240_v37 }
 0x594   :  { %12748 = vmatpush1.bf16.msra.mxu1 %v14977_v47  ;;  %v3251_v47 = vld [vmem:[#allocation14 + $0x10a0] sm:$0xff] }
 0x595   :  { %12912 = vmatpush1.bf16.msra.mxu0 %v14979_v48  ;;  %12758 = vmatprep.subr.bf16.mxu1 %v15002_v49  ;;  %v3263_v48 = vld [vmem:[#allocation14 + $0x1100] sm:$0xff]  ;;  %v3252_v49 = vld [vmem:[#allocation14 + $0x10a8] sm:$0xff] }
 0x596   :  { %12922 = vmatprep.subr.bf16.mxu0 %v15004_v52  ;;  %v3264_v52 = vld [vmem:[#allocation14 + $0x1108] sm:$0xff]  ;;  %v15145_v3 = vcombine.low %v3251_v47, %v3263_v48 }
 0x597   :  { %12750 = vmatmul.mubr.bf16.vlgmr.msra.gmra.mrb[20].mxu1 %v17015_v33  ;;  %v15148_v9 = vcombine.high %v3252_v49, %v3264_v52 }
 0x598   :  { %12914 = vmatmul.mubr.bf16.vlgmr.msra.gmra.mrb[24].mxu0 %v17015_v33  ;;  %12759 = vmatpush1.bf16.msra.mxu1 %v15001_v13  ;;  %v15146_v13 = vcombine.high %v3251_v47, %v3263_v48 }
 0x599   :  { %12790 = vmatprep.mubr.bf16.mxu1 %v17019_v41  ;;  %12923 = vmatpush1.bf16.msra.mxu0 %v15003_v63  ;;  %v3287_v63 = vld [vmem:[#allocation14 + $0x11c0] sm:$0xff] }
 0x59a   :  { %12954 = vmatprep.mubr.bf16.mxu0 %v17019_v41  ;;  %12760 = vmatprep.subr.bf16.mxu1 %v15026_v0  ;;  %v3276_v0 = vld [vmem:[#allocation14 + $0x1168] sm:$0xff]  ;;  %v15170_v5 = vcombine.high %v3275_v60, %v3287_v63  ;;  %v15169_v14 = vcombine.low %v3275_v60, %v3287_v63 }
 0x59b   :  { %12924 = vmatprep.subr.bf16.mxu0 %v15028_v4  ;;  %v15147_v4 = vcombine.low %v3252_v49, %v3264_v52  ;;  %v15172_v10 = vcombine.high %v3276_v0, %v3288_v2  ;;  %v15171_v15 = vcombine.low %v3276_v0, %v3288_v2 }
 0x59c   :  { %12761 = vmatpush1.bf16.msra.mxu1 %v15025_v8  ;;  %v3299_v8 = vld [vmem:[#allocation14 + $0x1220] sm:$0xff] }
 0x59d   :  { %12925 = vmatpush1.bf16.msra.mxu0 %v15027_v11  ;;  %12762 = vmatprep.subr.bf16.mxu1 %v15050_v12  ;;  %v3311_v11 = vld [vmem:[#allocation14 + $0x1280] sm:$0xff]  ;;  %v3300_v12 = vld [vmem:[#allocation14 + $0x1228] sm:$0xff] }
 0x59e   :  { %12926 = vmatprep.subr.bf16.mxu0 %v15052_v17  ;;  %v3312_v17 = vld [vmem:[#allocation14 + $0x1288] sm:$0xff]  ;;  %v15194_v16 = vcombine.high %v3299_v8, %v3311_v11  ;;  %v15193_v22 = vcombine.low %v3299_v8, %v3311_v11 }
 0x59f   :  { %v15196_v18 = vcombine.high %v3300_v12, %v3312_v17  ;;  %v15195_v23 = vcombine.low %v3300_v12, %v3312_v17 }
 0x5a0   :  { %12763 = vmatpush1.bf16.msra.mxu1 %v15049_v50  ;;  %v3323_v50 = vld [vmem:[#allocation14 + $0x12e0] sm:$0xff] }
 0x5a1   :  { %12927 = vmatpush1.bf16.msra.mxu0 %v15051_v34  ;;  %12764 = vmatprep.subr.bf16.mxu1 %v15074_v20  ;;  %v3335_v34 = vld [vmem:[#allocation14 + $0x1340] sm:$0xff]  ;;  %v3324_v20 = vld [vmem:[#allocation14 + $0x12e8] sm:$0xff] }
 0x5a2   :  { %12928 = vmatprep.subr.bf16.mxu0 %v15076_v21  ;;  %v3336_v21 = vld [vmem:[#allocation14 + $0x1348] sm:$0xff]  ;;  %v15218_v19 = vcombine.high %v3323_v50, %v3335_v34  ;;  %v15217_v32 = vcombine.low %v3323_v50, %v3335_v34 }
 0x5a3   :  { %v15220_v24 = vcombine.high %v3324_v20, %v3336_v21  ;;  %v15219_v35 = vcombine.low %v3324_v20, %v3336_v21 }
 0x5a4   :  { %12765 = vmatpush1.bf16.msra.mxu1 %v15073_v6  ;;  %v3347_v6 = vld [vmem:[#allocation14 + $0x13a0] sm:$0xff] }
 0x5a5   :  { %12929 = vmatpush1.bf16.msra.mxu0 %v15075_v26  ;;  %12766 = vmatprep.subr.bf16.mxu1 %v15098_v27  ;;  %v3359_v26 = vld [vmem:[#allocation14 + $0x1400] sm:$0xff]  ;;  %v3348_v27 = vld [vmem:[#allocation14 + $0x13a8] sm:$0xff] }
 0x5a6   :  { %12930 = vmatprep.subr.bf16.mxu0 %v15100_v56  ;;  %v3360_v56 = vld [vmem:[#allocation14 + $0x1408] sm:$0xff]  ;;  %v15242_v36 = vcombine.high %v3347_v6, %v3359_v26  ;;  %v15241_v47 = vcombine.low %v3347_v6, %v3359_v26 }
 0x5a7   :  { %v15244_v37 = vcombine.high %v3348_v27, %v3360_v56  ;;  %v15243_v48 = vcombine.low %v3348_v27, %v3360_v56 }
 0x5a8   :  { %12767 = vmatpush1.bf16.msra.mxu1 %v15097_v39  ;;  %v3371_v39 = vld [vmem:[#allocation14 + $0x1460] sm:$0xff] }
 0x5a9   :  { %12931 = vmatpush1.bf16.msra.mxu0 %v15099_v40  ;;  %12768 = vmatprep.subr.bf16.mxu1 %v15122_v43  ;;  %v3383_v40 = vld [vmem:[#allocation14 + $0x14c0] sm:$0xff]  ;;  %v3372_v43 = vld [vmem:[#allocation14 + $0x1468] sm:$0xff] }
 0x5aa   :  { %12932 = vmatprep.subr.bf16.mxu0 %v15124_v44  ;;  %v3384_v44 = vld [vmem:[#allocation14 + $0x14c8] sm:$0xff]  ;;  %v15266_v49 = vcombine.high %v3371_v39, %v3383_v40  ;;  %v15265_v60 = vcombine.low %v3371_v39, %v3383_v40 }
 0x5ab   :  { %v15268_v52 = vcombine.high %v3372_v43, %v3384_v44  ;;  %v15267_v63 = vcombine.low %v3372_v43, %v3384_v44 }
 0x5ac   :  { %12769 = vmatpush1.bf16.msra.mxu1 %v15121_v53  ;;  %v3395_v53 = vld [vmem:[#allocation14 + $0x1520] sm:$0xff] }
 0x5ad   :  { %12933 = vmatpush1.bf16.msra.mxu0 %v15123_v57  ;;  %12770 = vmatprep.subr.bf16.mxu1 %v15146_v13  ;;  %v3407_v57 = vld [vmem:[#allocation14 + $0x1580] sm:$0xff]  ;;  %v3396_v13 = vld [vmem:[#allocation14 + $0x1528] sm:$0xff] }
 0x5ae   :  { %12934 = vmatprep.subr.bf16.mxu0 %v15148_v9  ;;  %v3408_v9 = vld [vmem:[#allocation14 + $0x1588] sm:$0xff]  ;;  %v15290_v0 = vcombine.high %v3395_v53, %v3407_v57  ;;  %v15289_v8 = vcombine.low %v3395_v53, %v3407_v57 }
 0x5af   :  { %v15292_v2 = vcombine.high %v3396_v13, %v3408_v9  ;;  %v15291_v11 = vcombine.low %v3396_v13, %v3408_v9  ;;  %v3528_v53 = vld [vmem:[#allocation14 + $0x1948] sm:$0xff]  ;;  %v3539_v9 = vld [vmem:[#allocation14 + $0x19a0] sm:$0xff] }
 0x5b0   :  { %12771 = vmatpush1.bf16.msra.mxu1 %v15145_v3  ;;  %v3419_v3 = vld [vmem:[#allocation14 + $0x15e0] sm:$0xff] }
 0x5b1   :  { %12935 = vmatpush1.bf16.msra.mxu0 %v15147_v4  ;;  %12772 = vmatprep.subr.bf16.mxu1 %v15170_v5  ;;  %v3431_v4 = vld [vmem:[#allocation14 + $0x1640] sm:$0xff]  ;;  %v3420_v5 = vld [vmem:[#allocation14 + $0x15e8] sm:$0xff] }
 0x5b2   :  { %12936 = vmatprep.subr.bf16.mxu0 %v15172_v10  ;;  %v3432_v10 = vld [vmem:[#allocation14 + $0x1648] sm:$0xff]  ;;  %v15314_v12 = vcombine.high %v3419_v3, %v3431_v4  ;;  %v15313_v50 = vcombine.low %v3419_v3, %v3431_v4 }
 0x5b3   :  { %v15316_v17 = vcombine.high %v3420_v5, %v3432_v10  ;;  %v15315_v34 = vcombine.low %v3420_v5, %v3432_v10 }
 0x5b4   :  { %12773 = vmatpush1.bf16.msra.mxu1 %v15169_v14  ;;  %v3443_v14 = vld [vmem:[#allocation14 + $0x16a0] sm:$0xff] }
 0x5b5   :  { %12937 = vmatpush1.bf16.msra.mxu0 %v15171_v15  ;;  %12774 = vmatprep.subr.bf16.mxu1 %v15194_v16  ;;  %v3455_v15 = vld [vmem:[#allocation14 + $0x1700] sm:$0xff]  ;;  %v3444_v16 = vld [vmem:[#allocation14 + $0x16a8] sm:$0xff] }
 0x5b6   :  { %12938 = vmatprep.subr.bf16.mxu0 %v15196_v18  ;;  %v3456_v18 = vld [vmem:[#allocation14 + $0x1708] sm:$0xff]  ;;  %v15338_v20 = vcombine.high %v3443_v14, %v3455_v15  ;;  %v15337_v6 = vcombine.low %v3443_v14, %v3455_v15 }
 0x5b7   :  { %v15340_v21 = vcombine.high %v3444_v16, %v3456_v18  ;;  %v15339_v26 = vcombine.low %v3444_v16, %v3456_v18 }
 0x5b8   :  { %12775 = vmatpush1.bf16.msra.mxu1 %v15193_v22  ;;  %v3467_v22 = vld [vmem:[#allocation14 + $0x1760] sm:$0xff] }
 0x5b9   :  { %12939 = vmatpush1.bf16.msra.mxu0 %v15195_v23  ;;  %12776 = vmatprep.subr.bf16.mxu1 %v15218_v19  ;;  %v3479_v23 = vld [vmem:[#allocation14 + $0x17c0] sm:$0xff]  ;;  %v3468_v19 = vld [vmem:[#allocation14 + $0x1768] sm:$0xff] }
 0x5ba   :  { %12940 = vmatprep.subr.bf16.mxu0 %v15220_v24  ;;  %v3480_v24 = vld [vmem:[#allocation14 + $0x17c8] sm:$0xff]  ;;  %v15362_v27 = vcombine.high %v3467_v22, %v3479_v23  ;;  %v15361_v39 = vcombine.low %v3467_v22, %v3479_v23 }
 0x5bb   :  { %v15364_v56 = vcombine.high %v3468_v19, %v3480_v24  ;;  %v15363_v40 = vcombine.low %v3468_v19, %v3480_v24 }
 0x5bc   :  { %12777 = vmatpush1.bf16.msra.mxu1 %v15217_v32  ;;  %v3491_v32 = vld [vmem:[#allocation14 + $0x1820] sm:$0xff] }
 0x5bd   :  { %12941 = vmatpush1.bf16.msra.mxu0 %v15219_v35  ;;  %12778 = vmatprep.subr.bf16.mxu1 %v15242_v36  ;;  %v3503_v35 = vld [vmem:[#allocation14 + $0x1880] sm:$0xff]  ;;  %v3492_v36 = vld [vmem:[#allocation14 + $0x1828] sm:$0xff] }
 0x5be   :  { %12942 = vmatprep.subr.bf16.mxu0 %v15244_v37  ;;  %v3504_v37 = vld [vmem:[#allocation14 + $0x1888] sm:$0xff]  ;;  %v15386_v43 = vcombine.high %v3491_v32, %v3503_v35 }
 0x5bf   :  { %v15388_v44 = vcombine.high %v3492_v36, %v3504_v37  ;;  %v15387_v57 = vcombine.low %v3492_v36, %v3504_v37 }
 0x5c0   :  { %12779 = vmatpush1.bf16.msra.mxu1 %v15241_v47  ;;  %v3515_v47 = vld [vmem:[#allocation14 + $0x18e0] sm:$0xff] }
 0x5c1   :  { %12943 = vmatpush1.bf16.msra.mxu0 %v15243_v48  ;;  %12780 = vmatprep.subr.bf16.mxu1 %v15266_v49  ;;  %v3527_v48 = vld [vmem:[#allocation14 + $0x1940] sm:$0xff]  ;;  %v15385_v49 = vcombine.low %v3491_v32, %v3503_v35 }
 0x5c2   :  { %12944 = vmatprep.subr.bf16.mxu0 %v15268_v52  ;;  %v3516_v52 = vld [vmem:[#allocation14 + $0x18e8] sm:$0xff]  ;;  %v15410_v13 = vcombine.high %v3515_v47, %v3527_v48  ;;  %v15409_v3 = vcombine.low %v3515_v47, %v3527_v48 }
 0x5c3   :  { %v15411_v4 = vcombine.low %v3516_v52, %v3528_v53 }
 0x5c4   :  { %12781 = vmatpush1.bf16.msra.mxu1 %v15265_v60  ;;  %v3551_v60 = vld [vmem:[#allocation14 + $0x1a00] sm:$0xff] }
 0x5c5   :  { %12945 = vmatpush1.bf16.msra.mxu0 %v15267_v63  ;;  %12782 = vmatprep.subr.bf16.mxu1 %v15290_v0  ;;  %v15412_v63 = vcombine.high %v3516_v52, %v3528_v53  ;;  %v3540_v0 = vld [vmem:[#allocation14 + $0x19a8] sm:$0xff]  ;;  %v15434_v5 = vcombine.high %v3539_v9, %v3551_v60  ;;  %v15433_v14 = vcombine.low %v3539_v9, %v3551_v60  ;;  %v3659_v53 = vld [vmem:[#allocation14 + $0x1d60] sm:$0xff] }
 0x5c6   :  { %12946 = vmatprep.subr.bf16.mxu0 %v15292_v2  ;;  %v3552_v2 = vld [vmem:[#allocation14 + $0x1a08] sm:$0xff] }
 0x5c7   :  { %v15436_v10 = vcombine.high %v3540_v0, %v3552_v2  ;;  %v15435_v15 = vcombine.low %v3540_v0, %v3552_v2  ;;  %v3672_v9 = vld [vmem:[#allocation14 + $0x1dc8] sm:$0xff] }
 0x5c8   :  { %12783 = vmatpush1.bf16.msra.mxu1 %v15289_v8  ;;  %v3563_v8 = vld [vmem:[#allocation14 + $0x1a60] sm:$0xff] }
 0x5c9   :  { %12947 = vmatpush1.bf16.msra.mxu0 %v15291_v11  ;;  %12784 = vmatprep.subr.bf16.mxu1 %v15314_v12  ;;  %v3575_v11 = vld [vmem:[#allocation14 + $0x1ac0] sm:$0xff]  ;;  %v3564_v12 = vld [vmem:[#allocation14 + $0x1a68] sm:$0xff] }
 0x5ca   :  { %12948 = vmatprep.subr.bf16.mxu0 %v15316_v17  ;;  %v3576_v17 = vld [vmem:[#allocation14 + $0x1ac8] sm:$0xff]  ;;  %v15458_v16 = vcombine.high %v3563_v8, %v3575_v11  ;;  %v15457_v22 = vcombine.low %v3563_v8, %v3575_v11 }
 0x5cb   :  { %v15460_v18 = vcombine.high %v3564_v12, %v3576_v17  ;;  %v15459_v23 = vcombine.low %v3564_v12, %v3576_v17 }
 0x5cc   :  { %12785 = vmatpush1.bf16.msra.mxu1 %v15313_v50  ;;  %v3587_v50 = vld [vmem:[#allocation14 + $0x1b20] sm:$0xff] }
 0x5cd   :  { %12949 = vmatpush1.bf16.msra.mxu0 %v15315_v34  ;;  %12786 = vmatprep.subr.bf16.mxu1 %v15338_v20  ;;  %v3599_v34 = vld [vmem:[#allocation14 + $0x1b80] sm:$0xff]  ;;  %v3588_v20 = vld [vmem:[#allocation14 + $0x1b28] sm:$0xff] }
 0x5ce   :  { %12950 = vmatprep.subr.bf16.mxu0 %v15340_v21  ;;  %v3600_v21 = vld [vmem:[#allocation14 + $0x1b88] sm:$0xff]  ;;  %v15482_v19 = vcombine.high %v3587_v50, %v3599_v34  ;;  %v15481_v32 = vcombine.low %v3587_v50, %v3599_v34 }
 0x5cf   :  { %v15484_v24 = vcombine.high %v3588_v20, %v3600_v21  ;;  %v15483_v35 = vcombine.low %v3588_v20, %v3600_v21 }
 0x5d0   :  { %12787 = vmatpush1.bf16.msra.mxu1 %v15337_v6  ;;  %v3611_v6 = vld [vmem:[#allocation14 + $0x1be0] sm:$0xff] }
 0x5d1   :  { %12951 = vmatpush1.bf16.msra.mxu0 %v15339_v26  ;;  %12788 = vmatprep.subr.bf16.mxu1 %v15362_v27  ;;  %v3623_v26 = vld [vmem:[#allocation14 + $0x1c40] sm:$0xff]  ;;  %v3612_v27 = vld [vmem:[#allocation14 + $0x1be8] sm:$0xff] }
 0x5d2   :  { %12952 = vmatprep.subr.bf16.mxu0 %v15364_v56  ;;  %v3624_v56 = vld [vmem:[#allocation14 + $0x1c48] sm:$0xff]  ;;  %v15506_v36 = vcombine.high %v3611_v6, %v3623_v26  ;;  %v15505_v47 = vcombine.low %v3611_v6, %v3623_v26 }
 0x5d3   :  { %v15508_v37 = vcombine.high %v3612_v27, %v3624_v56  ;;  %v15507_v48 = vcombine.low %v3612_v27, %v3624_v56 }
 0x5d4   :  { %12789 = vmatpush1.bf16.msra.mxu1 %v15361_v39  ;;  %v3635_v39 = vld [vmem:[#allocation14 + $0x1ca0] sm:$0xff] }
 0x5d5   :  { %12953 = vmatpush1.bf16.msra.mxu0 %v15363_v40  ;;  %12799 = vmatprep.subr.bf16.mxu1 %v15386_v43  ;;  %v3647_v40 = vld [vmem:[#allocation14 + $0x1d00] sm:$0xff]  ;;  %v3636_v43 = vld [vmem:[#allocation14 + $0x1ca8] sm:$0xff] }
 0x5d6   :  { %12963 = vmatprep.subr.bf16.mxu0 %v15388_v44  ;;  %v3648_v44 = vld [vmem:[#allocation14 + $0x1d08] sm:$0xff]  ;;  %v15529_v60 = vcombine.low %v3635_v39, %v3647_v40 }
 0x5d7   :  { %12791 = vmatmul.mubr.bf16.vlgmr.msra.gmra.mrb[20].mxu1 %v17028_v61  ;;  %v15532_v52 = vcombine.high %v3636_v43, %v3648_v44 }
 0x5d8   :  { %12955 = vmatmul.mubr.bf16.vlgmr.msra.gmra.mrb[24].mxu0 %v17028_v61  ;;  %12800 = vmatpush1.bf16.msra.mxu1 %v15385_v49  ;;  %v15530_v49 = vcombine.high %v3635_v39, %v3647_v40 }
 0x5d9   :  { %12831 = vmatprep.mubr.bf16.mxu1 %v17049_v42  ;;  %12964 = vmatpush1.bf16.msra.mxu0 %v15387_v57  ;;  %v3671_v57 = vld [vmem:[#allocation14 + $0x1dc0] sm:$0xff] }
 0x5da   :  { %12995 = vmatprep.mubr.bf16.mxu0 %v17049_v42  ;;  %12801 = vmatprep.subr.bf16.mxu1 %v15410_v13  ;;  %v3660_v13 = vld [vmem:[#allocation14 + $0x1d68] sm:$0xff]  ;;  %v15554_v0 = vcombine.high %v3659_v53, %v3671_v57  ;;  %v15553_v8 = vcombine.low %v3659_v53, %v3671_v57 }
 0x5db   :  { %12965 = vmatprep.subr.bf16.mxu0 %v15412_v63  ;;  %v15531_v63 = vcombine.low %v3636_v43, %v3648_v44  ;;  %v15556_v2 = vcombine.high %v3660_v13, %v3672_v9  ;;  %v15555_v11 = vcombine.low %v3660_v13, %v3672_v9 }
 0x5dc   :  { %12802 = vmatpush1.bf16.msra.mxu1 %v15409_v3  ;;  %v3683_v3 = vld [vmem:[#allocation14 + $0x1e20] sm:$0xff] }
 0x5dd   :  { %12966 = vmatpush1.bf16.msra.mxu0 %v15411_v4  ;;  %12803 = vmatprep.subr.bf16.mxu1 %v15434_v5  ;;  %v3695_v4 = vld [vmem:[#allocation14 + $0x1e80] sm:$0xff]  ;;  %v3684_v5 = vld [vmem:[#allocation14 + $0x1e28] sm:$0xff] }
 0x5de   :  { %12967 = vmatprep.subr.bf16.mxu0 %v15436_v10  ;;  %v3696_v10 = vld [vmem:[#allocation14 + $0x1e88] sm:$0xff]  ;;  %v15578_v12 = vcombine.high %v3683_v3, %v3695_v4  ;;  %v15577_v50 = vcombine.low %v3683_v3, %v3695_v4 }
 0x5df   :  { %v15580_v17 = vcombine.high %v3684_v5, %v3696_v10  ;;  %v15579_v34 = vcombine.low %v3684_v5, %v3696_v10 }
 0x5e0   :  { %12804 = vmatpush1.bf16.msra.mxu1 %v15433_v14  ;;  %v3707_v14 = vld [vmem:[#allocation14 + $0x1ee0] sm:$0xff] }
 0x5e1   :  { %12968 = vmatpush1.bf16.msra.mxu0 %v15435_v15  ;;  %12805 = vmatprep.subr.bf16.mxu1 %v15458_v16  ;;  %v3719_v15 = vld [vmem:[#allocation14 + $0x1f40] sm:$0xff]  ;;  %v3708_v16 = vld [vmem:[#allocation14 + $0x1ee8] sm:$0xff] }
 0x5e2   :  { %12969 = vmatprep.subr.bf16.mxu0 %v15460_v18  ;;  %v3720_v18 = vld [vmem:[#allocation14 + $0x1f48] sm:$0xff]  ;;  %v15602_v20 = vcombine.high %v3707_v14, %v3719_v15  ;;  %v15601_v6 = vcombine.low %v3707_v14, %v3719_v15 }
 0x5e3   :  { %v15604_v21 = vcombine.high %v3708_v16, %v3720_v18  ;;  %v15603_v26 = vcombine.low %v3708_v16, %v3720_v18 }
 0x5e4   :  { %12806 = vmatpush1.bf16.msra.mxu1 %v15457_v22  ;;  %v3731_v22 = vld [vmem:[#allocation14 + $0x1fa0] sm:$0xff] }
 0x5e5   :  { %12970 = vmatpush1.bf16.msra.mxu0 %v15459_v23  ;;  %12807 = vmatprep.subr.bf16.mxu1 %v15482_v19  ;;  %v3743_v23 = vld [vmem:[#allocation14 + $0x2000] sm:$0xff]  ;;  %v3732_v19 = vld [vmem:[#allocation14 + $0x1fa8] sm:$0xff] }
 0x5e6   :  { %12971 = vmatprep.subr.bf16.mxu0 %v15484_v24  ;;  %v3744_v24 = vld [vmem:[#allocation14 + $0x2008] sm:$0xff]  ;;  %v15626_v27 = vcombine.high %v3731_v22, %v3743_v23  ;;  %v15625_v39 = vcombine.low %v3731_v22, %v3743_v23 }
 0x5e7   :  { %v15628_v56 = vcombine.high %v3732_v19, %v3744_v24  ;;  %v15627_v40 = vcombine.low %v3732_v19, %v3744_v24 }
 0x5e8   :  { %12808 = vmatpush1.bf16.msra.mxu1 %v15481_v32  ;;  %v3755_v32 = vld [vmem:[#allocation14 + $0x2060] sm:$0xff] }
 0x5e9   :  { %12972 = vmatpush1.bf16.msra.mxu0 %v15483_v35  ;;  %12809 = vmatprep.subr.bf16.mxu1 %v15506_v36  ;;  %v3767_v35 = vld [vmem:[#allocation14 + $0x20c0] sm:$0xff]  ;;  %v3756_v36 = vld [vmem:[#allocation14 + $0x2068] sm:$0xff] }
 0x5ea   :  { %12973 = vmatprep.subr.bf16.mxu0 %v15508_v37  ;;  %v3768_v37 = vld [vmem:[#allocation14 + $0x20c8] sm:$0xff]  ;;  %v15650_v43 = vcombine.high %v3755_v32, %v3767_v35  ;;  %v15649_v53 = vcombine.low %v3755_v32, %v3767_v35 }
 0x5eb   :  { %v15652_v44 = vcombine.high %v3756_v36, %v3768_v37  ;;  %v15651_v57 = vcombine.low %v3756_v36, %v3768_v37 }
 0x5ec   :  { %12810 = vmatpush1.bf16.msra.mxu1 %v15505_v47  ;;  %v3779_v47 = vld [vmem:[#allocation14 + $0x2120] sm:$0xff] }
 0x5ed   :  { %12974 = vmatpush1.bf16.msra.mxu0 %v15507_v48  ;;  %12811 = vmatprep.subr.bf16.mxu1 %v15530_v49  ;;  %v3791_v48 = vld [vmem:[#allocation14 + $0x2180] sm:$0xff]  ;;  %v3780_v49 = vld [vmem:[#allocation14 + $0x2128] sm:$0xff] }
 0x5ee   :  { %12975 = vmatprep.subr.bf16.mxu0 %v15532_v52  ;;  %v3792_v52 = vld [vmem:[#allocation14 + $0x2188] sm:$0xff]  ;;  %v15674_v13 = vcombine.high %v3779_v47, %v3791_v48  ;;  %v15673_v3 = vcombine.low %v3779_v47, %v3791_v48 }
 0x5ef   :  { %v15676_v9 = vcombine.high %v3780_v49, %v3792_v52  ;;  %v15675_v4 = vcombine.low %v3780_v49, %v3792_v52  ;;  %v3912_v47 = vld [vmem:[#allocation14 + $0x2548] sm:$0xff]  ;;  %v3923_v52 = vld [vmem:[#allocation14 + $0x25a0] sm:$0xff] }
 0x5f0   :  { %12812 = vmatpush1.bf16.msra.mxu1 %v15529_v60  ;;  %v3803_v60 = vld [vmem:[#allocation14 + $0x21e0] sm:$0xff] }
 0x5f1   :  { %12976 = vmatpush1.bf16.msra.mxu0 %v15531_v63  ;;  %12813 = vmatprep.subr.bf16.mxu1 %v15554_v0  ;;  %v3815_v63 = vld [vmem:[#allocation14 + $0x2240] sm:$0xff]  ;;  %v3804_v0 = vld [vmem:[#allocation14 + $0x21e8] sm:$0xff] }
 0x5f2   :  { %12977 = vmatprep.subr.bf16.mxu0 %v15556_v2  ;;  %v3816_v2 = vld [vmem:[#allocation14 + $0x2248] sm:$0xff]  ;;  %v15698_v5 = vcombine.high %v3803_v60, %v3815_v63  ;;  %v15697_v14 = vcombine.low %v3803_v60, %v3815_v63 }
 0x5f3   :  { %v15700_v10 = vcombine.high %v3804_v0, %v3816_v2  ;;  %v15699_v15 = vcombine.low %v3804_v0, %v3816_v2 }
 0x5f4   :  { %12814 = vmatpush1.bf16.msra.mxu1 %v15553_v8  ;;  %v3827_v8 = vld [vmem:[#allocation14 + $0x22a0] sm:$0xff] }
 0x5f5   :  { %12978 = vmatpush1.bf16.msra.mxu0 %v15555_v11  ;;  %12815 = vmatprep.subr.bf16.mxu1 %v15578_v12  ;;  %v3839_v11 = vld [vmem:[#allocation14 + $0x2300] sm:$0xff]  ;;  %v3828_v12 = vld [vmem:[#allocation14 + $0x22a8] sm:$0xff] }
 0x5f6   :  { %12979 = vmatprep.subr.bf16.mxu0 %v15580_v17  ;;  %v3840_v17 = vld [vmem:[#allocation14 + $0x2308] sm:$0xff]  ;;  %v15722_v16 = vcombine.high %v3827_v8, %v3839_v11  ;;  %v15721_v22 = vcombine.low %v3827_v8, %v3839_v11 }
 0x5f7   :  { %v15724_v18 = vcombine.high %v3828_v12, %v3840_v17  ;;  %v15723_v23 = vcombine.low %v3828_v12, %v3840_v17 }
 0x5f8   :  { %12816 = vmatpush1.bf16.msra.mxu1 %v15577_v50  ;;  %v3851_v50 = vld [vmem:[#allocation14 + $0x2360] sm:$0xff] }
 0x5f9   :  { %12980 = vmatpush1.bf16.msra.mxu0 %v15579_v34  ;;  %12817 = vmatprep.subr.bf16.mxu1 %v15602_v20  ;;  %v3863_v34 = vld [vmem:[#allocation14 + $0x23c0] sm:$0xff]  ;;  %v3852_v20 = vld [vmem:[#allocation14 + $0x2368] sm:$0xff] }
 0x5fa   :  { %12981 = vmatprep.subr.bf16.mxu0 %v15604_v21  ;;  %v3864_v21 = vld [vmem:[#allocation14 + $0x23c8] sm:$0xff]  ;;  %v15746_v19 = vcombine.high %v3851_v50, %v3863_v34  ;;  %v15745_v32 = vcombine.low %v3851_v50, %v3863_v34 }
 0x5fb   :  { %v15748_v24 = vcombine.high %v3852_v20, %v3864_v21  ;;  %v15747_v35 = vcombine.low %v3852_v20, %v3864_v21 }
 0x5fc   :  { %12818 = vmatpush1.bf16.msra.mxu1 %v15601_v6  ;;  %v3875_v6 = vld [vmem:[#allocation14 + $0x2420] sm:$0xff] }
 0x5fd   :  { %12982 = vmatpush1.bf16.msra.mxu0 %v15603_v26  ;;  %12819 = vmatprep.subr.bf16.mxu1 %v15626_v27  ;;  %v3887_v26 = vld [vmem:[#allocation14 + $0x2480] sm:$0xff]  ;;  %v3876_v27 = vld [vmem:[#allocation14 + $0x2428] sm:$0xff] }
 0x5fe   :  { %12983 = vmatprep.subr.bf16.mxu0 %v15628_v56  ;;  %v3888_v56 = vld [vmem:[#allocation14 + $0x2488] sm:$0xff]  ;;  %v15770_v36 = vcombine.high %v3875_v6, %v3887_v26 }
 0x5ff   :  { %v15772_v37 = vcombine.high %v3876_v27, %v3888_v56  ;;  %v15771_v48 = vcombine.low %v3876_v27, %v3888_v56 }
 0x600   :  { %12820 = vmatpush1.bf16.msra.mxu1 %v15625_v39  ;;  %v3899_v39 = vld [vmem:[#allocation14 + $0x24e0] sm:$0xff] }
 0x601   :  { %12984 = vmatpush1.bf16.msra.mxu0 %v15627_v40  ;;  %12821 = vmatprep.subr.bf16.mxu1 %v15650_v43  ;;  %v3911_v40 = vld [vmem:[#allocation14 + $0x2540] sm:$0xff]  ;;  %v15769_v43 = vcombine.low %v3875_v6, %v3887_v26 }
 0x602   :  { %12985 = vmatprep.subr.bf16.mxu0 %v15652_v44  ;;  %v3900_v44 = vld [vmem:[#allocation14 + $0x24e8] sm:$0xff]  ;;  %v15794_v49 = vcombine.high %v3899_v39, %v3911_v40  ;;  %v15793_v60 = vcombine.low %v3899_v39, %v3911_v40 }
 0x603   :  { %v15795_v63 = vcombine.low %v3900_v44, %v3912_v47  ;;  %v4020_v39 = vld [vmem:[#allocation14 + $0x28a8] sm:$0xff] }
 0x604   :  { %12822 = vmatpush1.bf16.msra.mxu1 %v15649_v53  ;;  %v3935_v53 = vld [vmem:[#allocation14 + $0x2600] sm:$0xff]  ;;  %v4032_v40 = vld [vmem:[#allocation14 + $0x2908] sm:$0xff] }
 0x605   :  { %12986 = vmatpush1.bf16.msra.mxu0 %v15651_v57  ;;  %12823 = vmatprep.subr.bf16.mxu1 %v15674_v13  ;;  %v15796_v57 = vcombine.high %v3900_v44, %v3912_v47  ;;  %v3924_v13 = vld [vmem:[#allocation14 + $0x25a8] sm:$0xff]  ;;  %v15818_v0 = vcombine.high %v3923_v52, %v3935_v53  ;;  %v15817_v8 = vcombine.low %v3923_v52, %v3935_v53 }
 0x606   :  { %12987 = vmatprep.subr.bf16.mxu0 %v15676_v9  ;;  %v3936_v9 = vld [vmem:[#allocation14 + $0x2608] sm:$0xff] }
 0x607   :  { %v15820_v2 = vcombine.high %v3924_v13, %v3936_v9  ;;  %v15819_v11 = vcombine.low %v3924_v13, %v3936_v9  ;;  %v4043_v13 = vld [vmem:[#allocation14 + $0x2960] sm:$0xff] }
 0x608   :  { %12824 = vmatpush1.bf16.msra.mxu1 %v15673_v3  ;;  %v3947_v3 = vld [vmem:[#allocation14 + $0x2660] sm:$0xff] }
 0x609   :  { %12988 = vmatpush1.bf16.msra.mxu0 %v15675_v4  ;;  %12825 = vmatprep.subr.bf16.mxu1 %v15698_v5  ;;  %v3959_v4 = vld [vmem:[#allocation14 + $0x26c0] sm:$0xff]  ;;  %v3948_v5 = vld [vmem:[#allocation14 + $0x2668] sm:$0xff] }
 0x60a   :  { %12989 = vmatprep.subr.bf16.mxu0 %v15700_v10  ;;  %v3960_v10 = vld [vmem:[#allocation14 + $0x26c8] sm:$0xff]  ;;  %v15842_v12 = vcombine.high %v3947_v3, %v3959_v4  ;;  %v15841_v50 = vcombine.low %v3947_v3, %v3959_v4  ;;  %v4055_v9 = vld [vmem:[#allocation14 + $0x29c0] sm:$0xff] }
 0x60b   :  { %v15844_v17 = vcombine.high %v3948_v5, %v3960_v10  ;;  %v15843_v34 = vcombine.low %v3948_v5, %v3960_v10  ;;  %v4056_v3 = vld [vmem:[#allocation14 + $0x29c8] sm:$0xff] }
 0x60c   :  { %12826 = vmatpush1.bf16.msra.mxu1 %v15697_v14  ;;  %v3971_v14 = vld [vmem:[#allocation14 + $0x2720] sm:$0xff] }
 0x60d   :  { %12990 = vmatpush1.bf16.msra.mxu0 %v15699_v15  ;;  %12827 = vmatprep.subr.bf16.mxu1 %v15722_v16  ;;  %v3983_v15 = vld [vmem:[#allocation14 + $0x2780] sm:$0xff]  ;;  %v3972_v16 = vld [vmem:[#allocation14 + $0x2728] sm:$0xff] }
 0x60e   :  { %12991 = vmatprep.subr.bf16.mxu0 %v15724_v18  ;;  %v3984_v18 = vld [vmem:[#allocation14 + $0x2788] sm:$0xff]  ;;  %v15866_v20 = vcombine.high %v3971_v14, %v3983_v15  ;;  %v15865_v6 = vcombine.low %v3971_v14, %v3983_v15  ;;  %v15915_v15 = vcombine.low %v4020_v39, %v4032_v40 }
 0x60f   :  { %v15868_v21 = vcombine.high %v3972_v16, %v3984_v18  ;;  %v15867_v26 = vcombine.low %v3972_v16, %v3984_v18  ;;  %v15938_v16 = vcombine.high %v4043_v13, %v4055_v9 }
 0x610   :  { %12828 = vmatpush1.bf16.msra.mxu1 %v15721_v22  ;;  %v3995_v22 = vld [vmem:[#allocation14 + $0x27e0] sm:$0xff] }
 0x611   :  { %12992 = vmatpush1.bf16.msra.mxu0 %v15723_v23  ;;  %12829 = vmatprep.subr.bf16.mxu1 %v15746_v19  ;;  %v4007_v23 = vld [vmem:[#allocation14 + $0x2840] sm:$0xff]  ;;  %v3996_v19 = vld [vmem:[#allocation14 + $0x27e8] sm:$0xff] }
 0x612   :  { %12993 = vmatprep.subr.bf16.mxu0 %v15748_v24  ;;  %v4008_v24 = vld [vmem:[#allocation14 + $0x2848] sm:$0xff]  ;;  %v15890_v27 = vcombine.high %v3995_v22, %v4007_v23  ;;  %v15889_v47 = vcombine.low %v3995_v22, %v4007_v23  ;;  %v15937_v23 = vcombine.low %v4043_v13, %v4055_v9 }
 0x613   :  { %v15892_v56 = vcombine.high %v3996_v19, %v4008_v24  ;;  %v4080_v22 = vld [vmem:[#allocation14 + $0x2a88] sm:$0xff] }
 0x614   :  { %12830 = vmatpush1.bf16.msra.mxu1 %v15745_v32  ;;  %v4019_v32 = vld [vmem:[#allocation14 + $0x28a0] sm:$0xff] }
 0x615   :  { %12994 = vmatpush1.bf16.msra.mxu0 %v15747_v35  ;;  %12840 = vmatprep.subr.bf16.mxu1 %v15770_v36  ;;  %v4031_v35 = vld [vmem:[#allocation14 + $0x2900] sm:$0xff] }
 0x616   :  { %13004 = vmatprep.subr.bf16.mxu0 %v15772_v37  ;;  %v16538_v36 = vld [vmem:[#allocation16] sm:$0xff]  ;;  %v15914_v52 = vcombine.high %v4019_v32, %v4031_v35 }
 0x617   :  { %12832 = vmatmul.mubr.bf16.vlgmr.msra.gmra.mrb[20].mxu1 %v17051_v45  ;;  %v4280_v37 = vrot.slane %v16538_v36, %v17033_v55  ;;  %v4284_v44 = vrot.slane %v16538_v36, %v17036_v58 }
 0x618   :  { %12996 = vmatmul.mubr.bf16.vlgmr.msra.gmra.mrb[24].mxu0 %v17051_v45  ;;  %12841 = vmatpush1.bf16.msra.mxu1 %v15769_v43  ;;  %v4288_v43 = vrot.slane %v16538_v36, %v17062_v46 }
 0x619   :  { %12872 = vmatprep.mubr.bf16.mxu1 %v17055_v54  ;;  %13005 = vmatpush1.bf16.msra.mxu0 %v15771_v48  ;;  %v4292_v48 = vrot.slane %v16538_v36, %v17039_v62 }
 0x61a   :  { %13036 = vmatprep.mubr.bf16.mxu0 %v17055_v54  ;;  %12842 = vmatprep.subr.bf16.mxu1 %v15794_v49  ;;  %v15891_v49 = vcombine.low %v3996_v19, %v4008_v24 }
 0x61b   :  { %13006 = vmatprep.subr.bf16.mxu0 %v15796_v57  ;;  %v15916_v57 = vcombine.high %v4020_v39, %v4032_v40  ;;  %v4115_v40 = vld [vmem:[#allocation14 + $0x2ba0] sm:$0xff] }
 0x61c   :  { %12843 = vmatpush1.bf16.msra.mxu1 %v15793_v60 }
 0x61d   :  { %13007 = vmatpush1.bf16.msra.mxu0 %v15795_v63  ;;  %12844 = vmatprep.subr.bf16.mxu1 %v15818_v0 }
 0x61e   :  { %13008 = vmatprep.subr.bf16.mxu0 %v15820_v2  ;;  %v4044_v2 = vld [vmem:[#allocation14 + $0x2968] sm:$0xff] }
 0x61f   :  { %v15939_v19 = vcombine.low %v4044_v2, %v4056_v3 }
 0x620   :  { %12845 = vmatpush1.bf16.msra.mxu1 %v15817_v8 }
 0x621   :  { %13009 = vmatpush1.bf16.msra.mxu0 %v15819_v11  ;;  %12846 = vmatprep.subr.bf16.mxu1 %v15842_v12  ;;  %v15913_v11 = vcombine.low %v4019_v32, %v4031_v35  ;;  %v4104_v32 = vld [vmem:[#allocation14 + $0x2b48] sm:$0xff] }
 0x622   :  { %13010 = vmatprep.subr.bf16.mxu0 %v15844_v17 }
 0x624   :  { %12847 = vmatpush1.bf16.msra.mxu1 %v15841_v50  ;;  %v15940_v50 = vcombine.high %v4044_v2, %v4056_v3  ;;  %v4151_v2 = vld [vmem:[#allocation14 + $0x2cc0] sm:$0xff] }
 0x625   :  { %13011 = vmatpush1.bf16.msra.mxu0 %v15843_v34  ;;  %12848 = vmatprep.subr.bf16.mxu1 %v15866_v20  ;;  %v4067_v34 = vld [vmem:[#allocation14 + $0x2a20] sm:$0xff] }
 0x626   :  { %13012 = vmatprep.subr.bf16.mxu0 %v15868_v21  ;;  %v4079_v20 = vld [vmem:[#allocation14 + $0x2a80] sm:$0xff]  ;;  %v4068_v21 = vld [vmem:[#allocation14 + $0x2a28] sm:$0xff] }
 0x627   :  { %v15962_v24 = vcombine.high %v4067_v34, %v4079_v20  ;;  %v15961_v35 = vcombine.low %v4067_v34, %v4079_v20  ;;  %v15963_v36 = vcombine.low %v4068_v21, %v4080_v22 }
 0x628   :  { %12849 = vmatpush1.bf16.msra.mxu1 %v15865_v6  ;;  %v15964_v6 = vcombine.high %v4068_v21, %v4080_v22  ;;  %v14141_v21 = vrot.slane %v14133_v7, %v17089_v38  ;;  %v4211_v7 = vld [vmem:[#allocation14 + $0x2ea0] sm:$0xff] }
 0x629   :  { %13013 = vmatpush1.bf16.msra.mxu0 %v15867_v26  ;;  %12850 = vmatprep.subr.bf16.mxu1 %v15890_v27  ;;  %v4091_v26 = vld [vmem:[#allocation14 + $0x2ae0] sm:$0xff] }
 0x62a   :  { %v12546_v53 = vpop.f32.mrb[16].mxu1  ;;  %13014 = vmatprep.subr.bf16.mxu0 %v15892_v56  ;;  %v4103_v27 = vld [vmem:[#allocation14 + $0x2b40] sm:$0xff]  ;;  %v4092_v56 = vld [vmem:[#allocation14 + $0x2ae8] sm:$0xff] }
 0x62b   :  { %v16169_v60 = vadd.f32 %v12546_v53, %v4280_v37  ;;  %v12710_v63 = vpop.f32.mrb[20].mxu0  ;;  %v12548_v0 = vpop.f32.mrb[17].mxu1  ;;  %v15986_v37 = vcombine.high %v4091_v26, %v4103_v27  ;;  %v15988_v39 = vcombine.high %v4092_v56, %v4104_v32 }
 0x62c   :  { %v16171_v4 = vadd.f32 %v12710_v63, %v4288_v43  ;;  %v16170_v5 = vadd.f32 %v12548_v0, %v4284_v44  ;;  %v12712_v10 = vpop.f32.mrb[21].mxu0  ;;  %v12550_v8 = vpop.f32.mrb[18].mxu1  ;;  %12851 = vmatpush1.bf16.msra.mxu1 %v15889_v47  ;;  %v4127_v43 = vld [vmem:[#allocation14 + $0x2c00] sm:$0xff]  ;;  %v4116_v47 = vld [vmem:[#allocation14 + $0x2ba8] sm:$0xff] }
 0x62d   :  { %16497 = vtanh.f32 %v16169_v60  ;;  %v16172_v12 = vadd.f32 %v12712_v10, %v4292_v48  ;;  %v12714_v17 = vpop.f32.mrb[22].mxu0  ;;  %13015 = vmatpush1.bf16.msra.mxu0 %v15891_v49  ;;  %v12551_v14 = vpop.f32.mrb[19].mxu1  ;;  %12852 = vmatprep.subr.bf16.mxu1 %v15914_v52  ;;  %v4128_v48 = vld [vmem:[#allocation14 + $0x2c08] sm:$0xff]  ;;  %v15985_v52 = vcombine.low %v4091_v26, %v4103_v27  ;;  %v16010_v13 = vcombine.high %v4115_v40, %v4127_v43  ;;  %v4139_v0 = vld [vmem:[#allocation14 + $0x2c60] sm:$0xff] }
 0x62e   :  { %16499 = vtanh.f32 %v16171_v4  ;;  %v12715_v18 = vpop.f32.mrb[23].mxu0  ;;  %13016 = vmatprep.subr.bf16.mxu0 %v15916_v57  ;;  %v15987_v57 = vcombine.low %v4092_v56, %v4104_v32  ;;  %v16012_v63 = vcombine.high %v4116_v47, %v4128_v48  ;;  %v4140_v4 = vld [vmem:[#allocation14 + $0x2c68] sm:$0xff]  ;;  %v16009_v10 = vcombine.low %v4115_v40, %v4127_v43  ;;  %v4199_v26 = vld [vmem:[#allocation14 + $0x2e40] sm:$0xff] }
 0x62f   :  { %16501 = vtanh.f32 %v16170_v5  ;;  %v4152_v5 = vld [vmem:[#allocation14 + $0x2cc8] sm:$0xff]  ;;  %v16033_v20 = vcombine.low %v4139_v0, %v4151_v2 }
 0x630   :  { %16503 = vtanh.f32 %v16172_v12  ;;  %12853 = vmatpush1.bf16.msra.mxu1 %v15913_v11  ;;  %v16011_v11 = vcombine.low %v4116_v47, %v4128_v48  ;;  %v16034_v12 = vcombine.high %v4139_v0, %v4151_v2  ;;  %v16036_v14 = vcombine.high %v4140_v4, %v4152_v5  ;;  %v4164_v18 = vld [vmem:[#allocation14 + $0x2d28] sm:$0xff]  ;;  %v2725_v0 = vld [vmem:[#allocation14 + $0x30] sm:$0xff] }
 0x631   :  { %13017 = vmatpush1.bf16.msra.mxu0 %v15915_v15  ;;  %12854 = vmatprep.subr.bf16.mxu1 %v15938_v16  ;;  %v4163_v15 = vld [vmem:[#allocation14 + $0x2d20] sm:$0xff]  ;;  %v16035_v22 = vcombine.low %v4140_v4, %v4152_v5  ;;  %v4188_v27 = vld [vmem:[#allocation14 + $0x2de8] sm:$0xff]  ;;  %v2737_v2 = vld [vmem:[#allocation14 + $0x90] sm:$0xff] }
 0x632   :  { %13018 = vmatprep.subr.bf16.mxu0 %v15940_v50  ;;  %v4175_v16 = vld [vmem:[#allocation14 + $0x2d80] sm:$0xff]  ;;  %v4176_v50 = vld [vmem:[#allocation14 + $0x2d88] sm:$0xff]  ;;  %v2738_v4 = vld [vmem:[#allocation14 + $0x98] sm:$0xff] }
 0x633   :  { %v4200_v56 = vld [vmem:[#allocation14 + $0x2e48] sm:$0xff] }
 0x634   :  { %12855 = vmatpush1.bf16.msra.mxu1 %v15937_v23  ;;  %v16058_v23 = vcombine.high %v4163_v15, %v4175_v16  ;;  %v16084_v1 = vcombine.high %v4188_v27, %v4200_v56  ;;  %v4224_v40 = vld [vmem:[#allocation14 + $0x2f08] sm:$0xff] }
 0x635   :  { %13019 = vmatpush1.bf16.msra.mxu0 %v15939_v19  ;;  %12856 = vmatprep.subr.bf16.mxu1 %v15962_v24  ;;  %v16060_v24 = vcombine.high %v4164_v18, %v4176_v50 }
 0x636   :  { %13020 = vmatprep.subr.bf16.mxu0 %v15964_v6  ;;  %v4187_v6 = vld [vmem:[#allocation14 + $0x2de0] sm:$0xff] }
 0x637   :  { %v16498_v44 = vpop.eup %16497  ;;  %v16082_v28 = vcombine.high %v4187_v6, %v4199_v26  ;;  %v16081_v43 = vcombine.low %v4187_v6, %v4199_v26 }
 0x638   :  { %v16500_v49 = vpop.eup %16499  ;;  %12857 = vmatpush1.bf16.msra.mxu1 %v15961_v35  ;;  %v16057_v35 = vcombine.low %v4163_v15, %v4175_v16  ;;  %v2750_v15 = vld [vmem:[#allocation14 + $0xf8] sm:$0xff] }
 0x639   :  { %v16502_v53 = vpop.eup %16501  ;;  %13021 = vmatpush1.bf16.msra.mxu0 %v15963_v36  ;;  %12858 = vmatprep.subr.bf16.mxu1 %v15986_v37  ;;  %v16059_v36 = vcombine.low %v4164_v18, %v4176_v50  ;;  %v4223_v37 = vld [vmem:[#allocation14 + $0x2f00] sm:$0xff]  ;;  %v2762_v16 = vld [vmem:[#allocation14 + $0x158] sm:$0xff] }
 0x63a   :  { %v16504_v9 = vpop.eup %16503  ;;  %v16147_v60 = vpack.c.bf16 %v16502_v53, %v16498_v44  ;;  %13022 = vmatprep.subr.bf16.mxu0 %v15988_v39  ;;  %v4212_v39 = vld [vmem:[#allocation14 + $0x2ea8] sm:$0xff]  ;;  %v16083_v44 = vcombine.low %v4188_v27, %v4200_v56  ;;  %v16106_v47 = vcombine.high %v4211_v7, %v4223_v37  ;;  %v2797_v27 = vld [vmem:[#allocation14 + $0x270] sm:$0xff] }
 0x63b   :  { %v16148_v3 = vpack.c.bf16 %v16504_v9, %v16500_v49  ;;  %v16108_v48 = vcombine.high %v4212_v39, %v4224_v40  ;;  %v4235_v49 = vld [vmem:[#allocation14 + $0x2f60] sm:$0xff]  ;;  %v4236_v53 = vld [vmem:[#allocation14 + $0x2f68] sm:$0xff]  ;;  %v16107_v9 = vcombine.low %v4212_v39, %v4224_v40  ;;  %v2809_v56 = vld [vmem:[#allocation14 + $0x2d0] sm:$0xff] }
 0x63c   :  { %12859 = vmatpush1.bf16.msra.mxu1 %v15985_v52  ;;  %v14125_v8 = vrot.slane %v16147_v60, %v17089_v38  ;;  %v4247_v52 = vld [vmem:[#allocation14 + $0x2fc0] sm:$0xff]  ;;  %v2833_v39 = vld [vmem:[#allocation14 + $0x390] sm:$0xff]  ;;  %v2822_v40 = vld [vmem:[#allocation14 + $0x338] sm:$0xff] }
 0x63d   :  { %13023 = vmatpush1.bf16.msra.mxu0 %v15987_v57  ;;  %12860 = vmatprep.subr.bf16.mxu1 %v16010_v13  ;;  %v14132_v17 = vrot.slane %v16148_v3, %v17089_v38  ;;  %v4248_v57 = vld [vmem:[#allocation14 + $0x2fc8] sm:$0xff]  ;;  %v16105_v13 = vcombine.low %v4211_v7, %v4223_v37  ;;  %v16130_v60 = vcombine.high %v4235_v49, %v4247_v52  ;;  %v2726_v3 = vld [vmem:[#allocation14 + $0x38] sm:$0xff]  ;;  %v2821_v37 = vld [vmem:[#allocation14 + $0x330] sm:$0xff] }
 0x63e   :  { %13024 = vmatprep.subr.bf16.mxu0 %v16012_v63  ;;  %v16132_v63 = vcombine.high %v4236_v53, %v4248_v57  ;;  %v16129_v5 = vcombine.low %v4235_v49, %v4247_v52  ;;  %v14623_v18 = vcombine.low %v2726_v3, %v2738_v4  ;;  %v2845_v52 = vld [vmem:[#allocation14 + $0x3f0] sm:$0xff] }
 0x63f   :  { %v14134_v34 = vcombine.low %v14125_v8, %v14132_v17  ;;  %v14622_v8 = vcombine.high %v2725_v0, %v2737_v2  ;;  %v2761_v17 = vld [vmem:[#allocation14 + $0x150] sm:$0xff] }
 0x640   :  { %12861 = vmatpush1.bf16.msra.mxu1 %v16009_v10  ;;  %v16131_v10 = vcombine.low %v4236_v53, %v4248_v57  ;;  %v2857_v53 = vld [vmem:[#allocation14 + $0x450] sm:$0xff]  ;;  %v2846_v57 = vld [vmem:[#allocation14 + $0x3f8] sm:$0xff] }
 0x641   :  { %13025 = vmatpush1.bf16.msra.mxu0 %v16011_v11  ;;  %12862 = vmatprep.subr.bf16.mxu1 %v16034_v12  ;;  %v14148_v19 = vrot.slane %v14134_v34, %v17089_v38  ;;  %v14624_v11 = vcombine.high %v2726_v3, %v2738_v4  ;;  %v2749_v12 = vld [vmem:[#allocation14 + $0xf0] sm:$0xff]  ;;  %v2870_v4 = vld [vmem:[#allocation14 + $0x4b8] sm:$0xff] }
 0x642   :  { %13026 = vmatprep.subr.bf16.mxu0 %v16036_v14  ;;  %v14621_v14 = vcombine.low %v2725_v0, %v2737_v2  ;;  %v14646_v50 = vcombine.high %v2749_v12, %v2761_v17  ;;  %v2773_v34 = vld [vmem:[#allocation14 + $0x1b0] sm:$0xff] }
 0x643   :  { %v14149_v32 = vcombine.low %v14141_v21, %v14148_v19  ;;  %v14648_v21 = vcombine.high %v2750_v15, %v2762_v16  ;;  %v14645_v19 = vcombine.low %v2749_v12, %v2761_v17  ;;  %v2869_v2 = vld [vmem:[#allocation14 + $0x4b0] sm:$0xff] }
 0x644   :  { %12863 = vmatpush1.bf16.msra.mxu1 %v16033_v20  ;;  %v2785_v20 = vld [vmem:[#allocation14 + $0x210] sm:$0xff] }
 0x645   :  { %13027 = vmatpush1.bf16.msra.mxu0 %v16035_v22  ;;  %12864 = vmatprep.subr.bf16.mxu1 %v16058_v23  ;;  %14251 = vst [vmem:[#allocation17] sm:$0xff] %v14149_v32  ;;  %v2774_v22 = vld [vmem:[#allocation14 + $0x1b8] sm:$0xff]  ;;  %v14670_v6 = vcombine.high %v2773_v34, %v2785_v20  ;;  %v2881_v3 = vld [vmem:[#allocation14 + $0x510] sm:$0xff] }
 0x646   :  { %13028 = vmatprep.subr.bf16.mxu0 %v16060_v24  ;;  %v2786_v23 = vld [vmem:[#allocation14 + $0x218] sm:$0xff]  ;;  %v14647_v24 = vcombine.low %v2750_v15, %v2762_v16  ;;  %v2893_v17 = vld [vmem:[#allocation14 + $0x570] sm:$0xff] }
 0x647   :  { %v14672_v26 = vcombine.high %v2774_v22, %v2786_v23  ;;  %v2798_v32 = vld [vmem:[#allocation14 + $0x278] sm:$0xff] }
 0x648   :  { %12865 = vmatpush1.bf16.msra.mxu1 %v16057_v35  ;;  %v2810_v35 = vld [vmem:[#allocation14 + $0x2d8] sm:$0xff] }
 0x649   :  { %13029 = vmatpush1.bf16.msra.mxu0 %v16059_v36  ;;  %12866 = vmatprep.subr.bf16.mxu1 %v16082_v28  ;;  %v14669_v36 = vcombine.low %v2773_v34, %v2785_v20  ;;  %v14671_v28 = vcombine.low %v2774_v22, %v2786_v23  ;;  %v14696_v7 = vcombine.high %v2798_v32, %v2810_v35  ;;  %v2894_v15 = vld [vmem:[#allocation14 + $0x578] sm:$0xff]  ;;  %v2929_v22 = vld [vmem:[#allocation14 + $0x690] sm:$0xff] }
 0x64a   :  { %13030 = vmatprep.subr.bf16.mxu0 %v16084_v1  ;;  %v14694_v1 = vcombine.high %v2797_v27, %v2809_v56  ;;  %v2906_v16 = vld [vmem:[#allocation14 + $0x5d8] sm:$0xff] }
 0x64b   :  { %v14792_v20 = vcombine.high %v2894_v15, %v2906_v16  ;;  %v2918_v23 = vld [vmem:[#allocation14 + $0x638] sm:$0xff] }
 0x64c   :  { %12867 = vmatpush1.bf16.msra.mxu1 %v16081_v43  ;;  %v2834_v43 = vld [vmem:[#allocation14 + $0x398] sm:$0xff] }
 0x64d   :  { %13031 = vmatpush1.bf16.msra.mxu0 %v16083_v44  ;;  %12868 = vmatprep.subr.bf16.mxu1 %v16106_v47  ;;  %v14693_v44 = vcombine.low %v2797_v27, %v2809_v56  ;;  %v14695_v47 = vcombine.low %v2798_v32, %v2810_v35  ;;  %v14720_v49 = vcombine.high %v2822_v40, %v2834_v43  ;;  %v2941_v56 = vld [vmem:[#allocation14 + $0x6f0] sm:$0xff]  ;;  %v2942_v35 = vld [vmem:[#allocation14 + $0x6f8] sm:$0xff] }
 0x64e   :  { %13032 = vmatprep.subr.bf16.mxu0 %v16108_v48  ;;  %v14718_v48 = vcombine.high %v2821_v37, %v2833_v39  ;;  %v2953_v32 = vld [vmem:[#allocation14 + $0x750] sm:$0xff] }
 0x650   :  { %12869 = vmatpush1.bf16.msra.mxu1 %v16105_v13  ;;  %v2858_v13 = vld [vmem:[#allocation14 + $0x458] sm:$0xff] }
 0x651   :  { %13033 = vmatpush1.bf16.msra.mxu0 %v16107_v9  ;;  %12870 = vmatprep.subr.bf16.mxu1 %v16130_v60  ;;  %v14717_v9 = vcombine.low %v2821_v37, %v2833_v39  ;;  %v14719_v60 = vcombine.low %v2822_v40, %v2834_v43  ;;  %v14744_v0 = vcombine.high %v2846_v57, %v2858_v13  ;;  %v2965_v39 = vld [vmem:[#allocation14 + $0x7b0] sm:$0xff]  ;;  %v2966_v43 = vld [vmem:[#allocation14 + $0x7b8] sm:$0xff] }
 0x652   :  { %13034 = vmatprep.subr.bf16.mxu0 %v16132_v63  ;;  %v14742_v63 = vcombine.high %v2845_v52, %v2857_v53  ;;  %v2977_v40 = vld [vmem:[#allocation14 + $0x810] sm:$0xff] }
 0x654   :  { %12871 = vmatpush1.bf16.msra.mxu1 %v16129_v5  ;;  %v2882_v5 = vld [vmem:[#allocation14 + $0x518] sm:$0xff] }
 0x655   :  { %13035 = vmatpush1.bf16.msra.mxu0 %v16131_v10  ;;  %13045 = vmatprep.subr.bf16.mxu1 %v14622_v8  ;;  %v14741_v10 = vcombine.low %v2845_v52, %v2857_v53  ;;  %v14743_v8 = vcombine.low %v2846_v57, %v2858_v13  ;;  %v14768_v12 = vcombine.high %v2870_v4, %v2882_v5  ;;  %v2989_v53 = vld [vmem:[#allocation14 + $0x870] sm:$0xff]  ;;  %v2990_v13 = vld [vmem:[#allocation14 + $0x878] sm:$0xff] }
 0x656   :  { %13209 = vmatprep.subr.bf16.mxu0 %v14624_v11  ;;  %v14766_v11 = vcombine.high %v2869_v2, %v2881_v3  ;;  %v3001_v57 = vld [vmem:[#allocation14 + $0x8d0] sm:$0xff] }
 0x657   :  { %12873 = vmatmul.mubr.bf16.vlgmr.msra.gmra.mrb[20].mxu1 %v17066_v25 }
 0x658   :  { %13037 = vmatmul.mubr.bf16.vlgmr.msra.gmra.mrb[24].mxu0 %v17066_v25  ;;  %13046 = vmatpush1.bf16.msra.mxu1 %v14621_v14  ;;  %v2905_v14 = vld [vmem:[#allocation14 + $0x5d0] sm:$0xff] }
 0x659   :  { %13077 = vmatprep.mubr.bf16.mxu1 %v17013_v30  ;;  %13210 = vmatpush1.bf16.msra.mxu0 %v14623_v18  ;;  %v14765_v18 = vcombine.low %v2869_v2, %v2881_v3  ;;  %v14790_v34 = vcombine.high %v2893_v17, %v2905_v14  ;;  %v3013_v3 = vld [vmem:[#allocation14 + $0x930] sm:$0xff] }
 0x65a   :  { %13241 = vmatprep.mubr.bf16.mxu0 %v17013_v30  ;;  %13047 = vmatprep.subr.bf16.mxu1 %v14646_v50  ;;  %v14767_v50 = vcombine.low %v2870_v4, %v2882_v5  ;;  %v3025_v4 = vld [vmem:[#allocation14 + $0x990] sm:$0xff]  ;;  %v3014_v5 = vld [vmem:[#allocation14 + $0x938] sm:$0xff] }
 0x65b   :  { %13211 = vmatprep.subr.bf16.mxu0 %v14648_v21  ;;  %v2917_v21 = vld [vmem:[#allocation14 + $0x630] sm:$0xff] }
 0x65c   :  { %13048 = vmatpush1.bf16.msra.mxu1 %v14645_v19  ;;  %v2930_v19 = vld [vmem:[#allocation14 + $0x698] sm:$0xff] }
 0x65d   :  { %13212 = vmatpush1.bf16.msra.mxu0 %v14647_v24  ;;  %13049 = vmatprep.subr.bf16.mxu1 %v14670_v6  ;;  %v14789_v24 = vcombine.low %v2893_v17, %v2905_v14  ;;  %v14791_v6 = vcombine.low %v2894_v15, %v2906_v16  ;;  %v14816_v27 = vcombine.high %v2918_v23, %v2930_v19  ;;  %v3037_v14 = vld [vmem:[#allocation14 + $0x9f0] sm:$0xff]  ;;  %v3038_v16 = vld [vmem:[#allocation14 + $0x9f8] sm:$0xff] }
 0x65e   :  { %13213 = vmatprep.subr.bf16.mxu0 %v14672_v26  ;;  %v14814_v26 = vcombine.high %v2917_v21, %v2929_v22  ;;  %v3049_v15 = vld [vmem:[#allocation14 + $0xa50] sm:$0xff] }
 0x660   :  { %13050 = vmatpush1.bf16.msra.mxu1 %v14669_v36  ;;  %v2954_v36 = vld [vmem:[#allocation14 + $0x758] sm:$0xff] }
 0x661   :  { %13214 = vmatpush1.bf16.msra.mxu0 %v14671_v28  ;;  %13051 = vmatprep.subr.bf16.mxu1 %v14694_v1  ;;  %v14813_v28 = vcombine.low %v2917_v21, %v2929_v22  ;;  %v14815_v1 = vcombine.low %v2918_v23, %v2930_v19  ;;  %v14840_v37 = vcombine.high %v2942_v35, %v2954_v36  ;;  %v3061_v22 = vld [vmem:[#allocation14 + $0xab0] sm:$0xff]  ;;  %v3062_v19 = vld [vmem:[#allocation14 + $0xab8] sm:$0xff] }
 0x662   :  { %13215 = vmatprep.subr.bf16.mxu0 %v14696_v7  ;;  %v14838_v7 = vcombine.high %v2941_v56, %v2953_v32  ;;  %v3073_v23 = vld [vmem:[#allocation14 + $0xb10] sm:$0xff] }
 0x664   :  { %13052 = vmatpush1.bf16.msra.mxu1 %v14693_v44  ;;  %v2978_v44 = vld [vmem:[#allocation14 + $0x818] sm:$0xff] }
 0x665   :  { %13216 = vmatpush1.bf16.msra.mxu0 %v14695_v47  ;;  %13053 = vmatprep.subr.bf16.mxu1 %v14718_v48  ;;  %v14837_v47 = vcombine.low %v2941_v56, %v2953_v32  ;;  %v14839_v48 = vcombine.low %v2942_v35, %v2954_v36  ;;  %v14864_v52 = vcombine.high %v2966_v43, %v2978_v44  ;;  %v3085_v32 = vld [vmem:[#allocation14 + $0xb70] sm:$0xff]  ;;  %v3086_v36 = vld [vmem:[#allocation14 + $0xb78] sm:$0xff] }
 0x666   :  { %13217 = vmatprep.subr.bf16.mxu0 %v14720_v49  ;;  %v14862_v49 = vcombine.high %v2965_v39, %v2977_v40  ;;  %v3097_v35 = vld [vmem:[#allocation14 + $0xbd0] sm:$0xff] }
 0x668   :  { %13054 = vmatpush1.bf16.msra.mxu1 %v14717_v9  ;;  %v3002_v9 = vld [vmem:[#allocation14 + $0x8d8] sm:$0xff] }
 0x669   :  { %13218 = vmatpush1.bf16.msra.mxu0 %v14719_v60  ;;  %13055 = vmatprep.subr.bf16.mxu1 %v14742_v63  ;;  %v14861_v60 = vcombine.low %v2965_v39, %v2977_v40  ;;  %v14863_v63 = vcombine.low %v2966_v43, %v2978_v44  ;;  %v14888_v2 = vcombine.high %v2990_v13, %v3002_v9  ;;  %v3109_v40 = vld [vmem:[#allocation14 + $0xc30] sm:$0xff]  ;;  %v3110_v44 = vld [vmem:[#allocation14 + $0xc38] sm:$0xff] }
 0x66a   :  { %13219 = vmatprep.subr.bf16.mxu0 %v14744_v0  ;;  %v14886_v0 = vcombine.high %v2989_v53, %v3001_v57  ;;  %v3121_v43 = vld [vmem:[#allocation14 + $0xc90] sm:$0xff] }
 0x66c   :  { %13056 = vmatpush1.bf16.msra.mxu1 %v14741_v10  ;;  %v3026_v10 = vld [vmem:[#allocation14 + $0x998] sm:$0xff] }
 0x66d   :  { %13220 = vmatpush1.bf16.msra.mxu0 %v14743_v8  ;;  %13057 = vmatprep.subr.bf16.mxu1 %v14766_v11  ;;  %v14885_v8 = vcombine.low %v2989_v53, %v3001_v57  ;;  %v14887_v11 = vcombine.low %v2990_v13, %v3002_v9  ;;  %v14912_v17 = vcombine.high %v3014_v5, %v3026_v10  ;;  %v3133_v57 = vld [vmem:[#allocation14 + $0xcf0] sm:$0xff] }
 0x66e   :  { %13221 = vmatprep.subr.bf16.mxu0 %v14768_v12  ;;  %v14910_v12 = vcombine.high %v3013_v3, %v3025_v4  ;;  %v3145_v13 = vld [vmem:[#allocation14 + $0xd50] sm:$0xff]  ;;  %v15005_v9 = vcombine.low %v3109_v40, %v3121_v43 }
 0x670   :  { %13058 = vmatpush1.bf16.msra.mxu1 %v14765_v18  ;;  %v3050_v18 = vld [vmem:[#allocation14 + $0xa58] sm:$0xff] }
 0x671   :  { %13222 = vmatpush1.bf16.msra.mxu0 %v14767_v50  ;;  %13059 = vmatprep.subr.bf16.mxu1 %v14790_v34  ;;  %v14909_v50 = vcombine.low %v3013_v3, %v3025_v4  ;;  %v14911_v34 = vcombine.low %v3014_v5, %v3026_v10  ;;  %v14936_v21 = vcombine.high %v3038_v16, %v3050_v18  ;;  %v3157_v3 = vld [vmem:[#allocation14 + $0xdb0] sm:$0xff]  ;;  %v3158_v10 = vld [vmem:[#allocation14 + $0xdb8] sm:$0xff] }
 0x672   :  { %13223 = vmatprep.subr.bf16.mxu0 %v14792_v20  ;;  %v14934_v20 = vcombine.high %v3037_v14, %v3049_v15  ;;  %v3169_v4 = vld [vmem:[#allocation14 + $0xe10] sm:$0xff] }
 0x674   :  { %13060 = vmatpush1.bf16.msra.mxu1 %v14789_v24  ;;  %v3074_v24 = vld [vmem:[#allocation14 + $0xb18] sm:$0xff] }
 0x675   :  { %13224 = vmatpush1.bf16.msra.mxu0 %v14791_v6  ;;  %13061 = vmatprep.subr.bf16.mxu1 %v14814_v26  ;;  %v14933_v6 = vcombine.low %v3037_v14, %v3049_v15  ;;  %v14935_v26 = vcombine.low %v3038_v16, %v3050_v18  ;;  %v14960_v56 = vcombine.high %v3062_v19, %v3074_v24  ;;  %v3181_v15 = vld [vmem:[#allocation14 + $0xe70] sm:$0xff]  ;;  %v3182_v18 = vld [vmem:[#allocation14 + $0xe78] sm:$0xff] }
 0x676   :  { %13225 = vmatprep.subr.bf16.mxu0 %v14816_v27  ;;  %v14958_v27 = vcombine.high %v3061_v22, %v3073_v23  ;;  %v3193_v16 = vld [vmem:[#allocation14 + $0xed0] sm:$0xff] }
 0x678   :  { %13062 = vmatpush1.bf16.msra.mxu1 %v14813_v28  ;;  %v3098_v28 = vld [vmem:[#allocation14 + $0xbd8] sm:$0xff] }
 0x679   :  { %13226 = vmatpush1.bf16.msra.mxu0 %v14815_v1  ;;  %13063 = vmatprep.subr.bf16.mxu1 %v14838_v7  ;;  %v14957_v1 = vcombine.low %v3061_v22, %v3073_v23  ;;  %v14959_v7 = vcombine.low %v3062_v19, %v3074_v24  ;;  %v14984_v39 = vcombine.high %v3086_v36, %v3098_v28  ;;  %v3205_v23 = vld [vmem:[#allocation14 + $0xf30] sm:$0xff]  ;;  %v3206_v24 = vld [vmem:[#allocation14 + $0xf38] sm:$0xff] }
 0x67a   :  { %13227 = vmatprep.subr.bf16.mxu0 %v14840_v37  ;;  %v14982_v37 = vcombine.high %v3085_v32, %v3097_v35  ;;  %v3217_v19 = vld [vmem:[#allocation14 + $0xf90] sm:$0xff] }
 0x67c   :  { %13064 = vmatpush1.bf16.msra.mxu1 %v14837_v47  ;;  %v3122_v47 = vld [vmem:[#allocation14 + $0xc98] sm:$0xff] }
 0x67d   :  { %13228 = vmatpush1.bf16.msra.mxu0 %v14839_v48  ;;  %13065 = vmatprep.subr.bf16.mxu1 %v14862_v49  ;;  %v14981_v48 = vcombine.low %v3085_v32, %v3097_v35  ;;  %v14983_v49 = vcombine.low %v3086_v36, %v3098_v28  ;;  %v15008_v53 = vcombine.high %v3110_v44, %v3122_v47  ;;  %v3229_v35 = vld [vmem:[#allocation14 + $0xff0] sm:$0xff]  ;;  %v3230_v28 = vld [vmem:[#allocation14 + $0xff8] sm:$0xff] }
 0x67e   :  { %13229 = vmatprep.subr.bf16.mxu0 %v14864_v52  ;;  %v15006_v52 = vcombine.high %v3109_v40, %v3121_v43  ;;  %v3241_v36 = vld [vmem:[#allocation14 + $0x1050] sm:$0xff] }
 0x67f   :  { %v3253_v43 = vld [vmem:[#allocation14 + $0x10b0] sm:$0xff] }
 0x680   :  { %13066 = vmatpush1.bf16.msra.mxu1 %v14861_v60  ;;  %v3134_v60 = vld [vmem:[#allocation14 + $0xcf8] sm:$0xff] }
 0x681   :  { %13230 = vmatpush1.bf16.msra.mxu0 %v14863_v63  ;;  %13067 = vmatprep.subr.bf16.mxu1 %v14886_v0  ;;  %v3146_v63 = vld [vmem:[#allocation14 + $0xd58] sm:$0xff]  ;;  %v15007_v0 = vcombine.low %v3110_v44, %v3122_v47  ;;  %v3265_v44 = vld [vmem:[#allocation14 + $0x1110] sm:$0xff] }
 0x682   :  { %13231 = vmatprep.subr.bf16.mxu0 %v14888_v2  ;;  %v15030_v2 = vcombine.high %v3133_v57, %v3145_v13  ;;  %v15032_v5 = vcombine.high %v3134_v60, %v3146_v63  ;;  %v3254_v47 = vld [vmem:[#allocation14 + $0x10b8] sm:$0xff] }
 0x684   :  { %13068 = vmatpush1.bf16.msra.mxu1 %v14885_v8  ;;  %v3170_v8 = vld [vmem:[#allocation14 + $0xe18] sm:$0xff] }
 0x685   :  { %13232 = vmatpush1.bf16.msra.mxu0 %v14887_v11  ;;  %13069 = vmatprep.subr.bf16.mxu1 %v14910_v12  ;;  %v15029_v11 = vcombine.low %v3133_v57, %v3145_v13  ;;  %v15031_v12 = vcombine.low %v3134_v60, %v3146_v63  ;;  %v15056_v14 = vcombine.high %v3158_v10, %v3170_v8  ;;  %v3277_v13 = vld [vmem:[#allocation14 + $0x1170] sm:$0xff]  ;;  %v3278_v60 = vld [vmem:[#allocation14 + $0x1178] sm:$0xff] }
 0x686   :  { %13233 = vmatprep.subr.bf16.mxu0 %v14912_v17  ;;  %v15054_v17 = vcombine.high %v3157_v3, %v3169_v4  ;;  %v3290_v63 = vld [vmem:[#allocation14 + $0x11d8] sm:$0xff] }
 0x688   :  { %13070 = vmatpush1.bf16.msra.mxu1 %v14909_v50  ;;  %v3194_v50 = vld [vmem:[#allocation14 + $0xed8] sm:$0xff] }
 0x689   :  { %13234 = vmatpush1.bf16.msra.mxu0 %v14911_v34  ;;  %13071 = vmatprep.subr.bf16.mxu1 %v14934_v20  ;;  %v15053_v34 = vcombine.low %v3157_v3, %v3169_v4  ;;  %v15055_v20 = vcombine.low %v3158_v10, %v3170_v8  ;;  %v15080_v22 = vcombine.high %v3182_v18, %v3194_v50  ;;  %v3313_v10 = vld [vmem:[#allocation14 + $0x1290] sm:$0xff]  ;;  %v3302_v8 = vld [vmem:[#allocation14 + $0x1238] sm:$0xff] }
 0x68a   :  { %13235 = vmatprep.subr.bf16.mxu0 %v14936_v21  ;;  %v15078_v21 = vcombine.high %v3181_v15, %v3193_v16  ;;  %v15176_v4 = vcombine.high %v3278_v60, %v3290_v63 }
 0x68c   :  { %13072 = vmatpush1.bf16.msra.mxu1 %v14933_v6  ;;  %v3218_v6 = vld [vmem:[#allocation14 + $0xf98] sm:$0xff] }
 0x68d   :  { %13236 = vmatpush1.bf16.msra.mxu0 %v14935_v26  ;;  %13073 = vmatprep.subr.bf16.mxu1 %v14958_v27  ;;  %v15077_v26 = vcombine.low %v3181_v15, %v3193_v16  ;;  %v15079_v27 = vcombine.low %v3182_v18, %v3194_v50  ;;  %v15104_v32 = vcombine.high %v3206_v24, %v3218_v6  ;;  %v3325_v16 = vld [vmem:[#allocation14 + $0x12f0] sm:$0xff]  ;;  %v3326_v50 = vld [vmem:[#allocation14 + $0x12f8] sm:$0xff] }
 0x68e   :  { %13237 = vmatprep.subr.bf16.mxu0 %v14960_v56  ;;  %v15102_v56 = vcombine.high %v3205_v23, %v3217_v19  ;;  %v3337_v18 = vld [vmem:[#allocation14 + $0x1350] sm:$0xff] }
 0x690   :  { %13074 = vmatpush1.bf16.msra.mxu1 %v14957_v1  ;;  %v3242_v1 = vld [vmem:[#allocation14 + $0x1058] sm:$0xff] }
 0x691   :  { %13238 = vmatpush1.bf16.msra.mxu0 %v14959_v7  ;;  %13075 = vmatprep.subr.bf16.mxu1 %v14982_v37  ;;  %v15101_v7 = vcombine.low %v3205_v23, %v3217_v19  ;;  %v15103_v37 = vcombine.low %v3206_v24, %v3218_v6  ;;  %v15128_v40 = vcombine.high %v3230_v28, %v3242_v1  ;;  %v3349_v19 = vld [vmem:[#allocation14 + $0x13b0] sm:$0xff]  ;;  %v3350_v6 = vld [vmem:[#allocation14 + $0x13b8] sm:$0xff] }
 0x692   :  { %13239 = vmatprep.subr.bf16.mxu0 %v14984_v39  ;;  %v15126_v39 = vcombine.high %v3229_v35, %v3241_v36  ;;  %v3361_v24 = vld [vmem:[#allocation14 + $0x1410] sm:$0xff] }
 0x694   :  { %13076 = vmatpush1.bf16.msra.mxu1 %v14981_v48  ;;  %v3266_v48 = vld [vmem:[#allocation14 + $0x1118] sm:$0xff] }
 0x695   :  { %13240 = vmatpush1.bf16.msra.mxu0 %v14983_v49  ;;  %13086 = vmatprep.subr.bf16.mxu1 %v15006_v52  ;;  %v15125_v49 = vcombine.low %v3229_v35, %v3241_v36  ;;  %v15127_v52 = vcombine.low %v3230_v28, %v3242_v1  ;;  %v15152_v57 = vcombine.high %v3254_v47, %v3266_v48  ;;  %v3373_v36 = vld [vmem:[#allocation14 + $0x1470] sm:$0xff]  ;;  %v3374_v1 = vld [vmem:[#allocation14 + $0x1478] sm:$0xff] }
 0x696   :  { %13250 = vmatprep.subr.bf16.mxu0 %v15008_v53  ;;  %v15150_v53 = vcombine.high %v3253_v43, %v3265_v44  ;;  %v3385_v28 = vld [vmem:[#allocation14 + $0x14d0] sm:$0xff] }
 0x697   :  { %13078 = vmatmul.mubr.bf16.vlgmr.msra.gmra.mrb[24].mxu1 %v17015_v33 }
 0x698   :  { %13242 = vmatmul.mubr.bf16.vlgmr.msra.gmra.mrb[28].mxu0 %v17015_v33  ;;  %13087 = vmatpush1.bf16.msra.mxu1 %v15005_v9  ;;  %v3289_v9 = vld [vmem:[#allocation14 + $0x11d0] sm:$0xff] }
 0x699   :  { %13118 = vmatprep.mubr.bf16.mxu1 %v17019_v41  ;;  %13251 = vmatpush1.bf16.msra.mxu0 %v15007_v0  ;;  %v15149_v0 = vcombine.low %v3253_v43, %v3265_v44  ;;  %v15174_v3 = vcombine.high %v3277_v13, %v3289_v9  ;;  %v3397_v44 = vld [vmem:[#allocation14 + $0x1530] sm:$0xff] }
 0x69a   :  { %13282 = vmatprep.mubr.bf16.mxu0 %v17019_v41  ;;  %13088 = vmatprep.subr.bf16.mxu1 %v15030_v2  ;;  %v15151_v2 = vcombine.low %v3254_v47, %v3266_v48  ;;  %v3409_v47 = vld [vmem:[#allocation14 + $0x1590] sm:$0xff]  ;;  %v3398_v48 = vld [vmem:[#allocation14 + $0x1538] sm:$0xff] }
 0x69b   :  { %13252 = vmatprep.subr.bf16.mxu0 %v15032_v5  ;;  %v3301_v5 = vld [vmem:[#allocation14 + $0x1230] sm:$0xff] }
 0x69c   :  { %13089 = vmatpush1.bf16.msra.mxu1 %v15029_v11  ;;  %v3314_v11 = vld [vmem:[#allocation14 + $0x1298] sm:$0xff] }
 0x69d   :  { %13253 = vmatpush1.bf16.msra.mxu0 %v15031_v12  ;;  %13090 = vmatprep.subr.bf16.mxu1 %v15054_v17  ;;  %v15173_v12 = vcombine.low %v3277_v13, %v3289_v9  ;;  %v15175_v17 = vcombine.low %v3278_v60, %v3290_v63  ;;  %v15200_v15 = vcombine.high %v3302_v8, %v3314_v11  ;;  %v3421_v9 = vld [vmem:[#allocation14 + $0x15f0] sm:$0xff]  ;;  %v3422_v63 = vld [vmem:[#allocation14 + $0x15f8] sm:$0xff] }
 0x69e   :  { %13254 = vmatprep.subr.bf16.mxu0 %v15056_v14  ;;  %v15198_v14 = vcombine.high %v3301_v5, %v3313_v10  ;;  %v3433_v60 = vld [vmem:[#allocation14 + $0x1650] sm:$0xff] }
 0x6a0   :  { %13091 = vmatpush1.bf16.msra.mxu1 %v15053_v34  ;;  %v3338_v34 = vld [vmem:[#allocation14 + $0x1358] sm:$0xff] }
 0x6a1   :  { %13255 = vmatpush1.bf16.msra.mxu0 %v15055_v20  ;;  %13092 = vmatprep.subr.bf16.mxu1 %v15078_v21  ;;  %v15197_v20 = vcombine.low %v3301_v5, %v3313_v10  ;;  %v15199_v21 = vcombine.low %v3302_v8, %v3314_v11  ;;  %v15224_v23 = vcombine.high %v3326_v50, %v3338_v34  ;;  %v3445_v10 = vld [vmem:[#allocation14 + $0x16b0] sm:$0xff]  ;;  %v3446_v11 = vld [vmem:[#allocation14 + $0x16b8] sm:$0xff] }
 0x6a2   :  { %13256 = vmatprep.subr.bf16.mxu0 %v15080_v22  ;;  %v15222_v22 = vcombine.high %v3325_v16, %v3337_v18  ;;  %v3457_v8 = vld [vmem:[#allocation14 + $0x1710] sm:$0xff] }
 0x6a4   :  { %13093 = vmatpush1.bf16.msra.mxu1 %v15077_v26  ;;  %v3362_v26 = vld [vmem:[#allocation14 + $0x1418] sm:$0xff] }
 0x6a5   :  { %13257 = vmatpush1.bf16.msra.mxu0 %v15079_v27  ;;  %13094 = vmatprep.subr.bf16.mxu1 %v15102_v56  ;;  %v15221_v27 = vcombine.low %v3325_v16, %v3337_v18  ;;  %v15223_v56 = vcombine.low %v3326_v50, %v3338_v34  ;;  %v15248_v35 = vcombine.high %v3350_v6, %v3362_v26  ;;  %v3469_v18 = vld [vmem:[#allocation14 + $0x1770] sm:$0xff]  ;;  %v3470_v34 = vld [vmem:[#allocation14 + $0x1778] sm:$0xff] }
 0x6a6   :  { %13258 = vmatprep.subr.bf16.mxu0 %v15104_v32  ;;  %v15246_v32 = vcombine.high %v3349_v19, %v3361_v24  ;;  %v3481_v50 = vld [vmem:[#allocation14 + $0x17d0] sm:$0xff] }
 0x6a8   :  { %13095 = vmatpush1.bf16.msra.mxu1 %v15101_v7  ;;  %v3386_v7 = vld [vmem:[#allocation14 + $0x14d8] sm:$0xff] }
 0x6a9   :  { %13259 = vmatpush1.bf16.msra.mxu0 %v15103_v37  ;;  %13096 = vmatprep.subr.bf16.mxu1 %v15126_v39  ;;  %v15245_v37 = vcombine.low %v3349_v19, %v3361_v24  ;;  %v15247_v39 = vcombine.low %v3350_v6, %v3362_v26  ;;  %v15272_v43 = vcombine.high %v3374_v1, %v3386_v7  ;;  %v3493_v24 = vld [vmem:[#allocation14 + $0x1830] sm:$0xff]  ;;  %v3494_v26 = vld [vmem:[#allocation14 + $0x1838] sm:$0xff] }
 0x6aa   :  { %13260 = vmatprep.subr.bf16.mxu0 %v15128_v40  ;;  %v15270_v40 = vcombine.high %v3373_v36, %v3385_v28  ;;  %v3505_v6 = vld [vmem:[#allocation14 + $0x1890] sm:$0xff] }
 0x6ac   :  { %13097 = vmatpush1.bf16.msra.mxu1 %v15125_v49  ;;  %v3410_v49 = vld [vmem:[#allocation14 + $0x1598] sm:$0xff] }
 0x6ad   :  { %13261 = vmatpush1.bf16.msra.mxu0 %v15127_v52  ;;  %13098 = vmatprep.subr.bf16.mxu1 %v15150_v53  ;;  %v15269_v52 = vcombine.low %v3373_v36, %v3385_v28  ;;  %v15271_v53 = vcombine.low %v3374_v1, %v3386_v7  ;;  %v15296_v13 = vcombine.high %v3398_v48, %v3410_v49  ;;  %v3517_v28 = vld [vmem:[#allocation14 + $0x18f0] sm:$0xff] }
 0x6ae   :  { %13262 = vmatprep.subr.bf16.mxu0 %v15152_v57  ;;  %v15294_v57 = vcombine.high %v3397_v44, %v3409_v47  ;;  %v3529_v1 = vld [vmem:[#allocation14 + $0x1950] sm:$0xff]  ;;  %v15389_v7 = vcombine.low %v3493_v24, %v3505_v6 }
 0x6b0   :  { %13099 = vmatpush1.bf16.msra.mxu1 %v15149_v0  ;;  %v3434_v0 = vld [vmem:[#allocation14 + $0x1658] sm:$0xff] }
 0x6b1   :  { %13263 = vmatpush1.bf16.msra.mxu0 %v15151_v2  ;;  %13100 = vmatprep.subr.bf16.mxu1 %v15174_v3  ;;  %v15293_v2 = vcombine.low %v3397_v44, %v3409_v47  ;;  %v15295_v3 = vcombine.low %v3398_v48, %v3410_v49  ;;  %v15320_v5 = vcombine.high %v3422_v63, %v3434_v0  ;;  %v3541_v44 = vld [vmem:[#allocation14 + $0x19b0] sm:$0xff]  ;;  %v3542_v49 = vld [vmem:[#allocation14 + $0x19b8] sm:$0xff] }
 0x6b2   :  { %13264 = vmatprep.subr.bf16.mxu0 %v15176_v4  ;;  %v15318_v4 = vcombine.high %v3421_v9, %v3433_v60  ;;  %v3553_v47 = vld [vmem:[#allocation14 + $0x1a10] sm:$0xff] }
 0x6b4   :  { %13101 = vmatpush1.bf16.msra.mxu1 %v15173_v12  ;;  %v3458_v12 = vld [vmem:[#allocation14 + $0x1718] sm:$0xff] }
 0x6b5   :  { %13265 = vmatpush1.bf16.msra.mxu0 %v15175_v17  ;;  %13102 = vmatprep.subr.bf16.mxu1 %v15198_v14  ;;  %v15317_v17 = vcombine.low %v3421_v9, %v3433_v60  ;;  %v15319_v14 = vcombine.low %v3422_v63, %v3434_v0  ;;  %v15344_v16 = vcombine.high %v3446_v11, %v3458_v12  ;;  %v3565_v60 = vld [vmem:[#allocation14 + $0x1a70] sm:$0xff]  ;;  %v3566_v0 = vld [vmem:[#allocation14 + $0x1a78] sm:$0xff] }
 0x6b6   :  { %13266 = vmatprep.subr.bf16.mxu0 %v15200_v15  ;;  %v15342_v15 = vcombine.high %v3445_v10, %v3457_v8  ;;  %v3577_v63 = vld [vmem:[#allocation14 + $0x1ad0] sm:$0xff] }
 0x6b8   :  { %13103 = vmatpush1.bf16.msra.mxu1 %v15197_v20  ;;  %v3482_v20 = vld [vmem:[#allocation14 + $0x17d8] sm:$0xff] }
 0x6b9   :  { %13267 = vmatpush1.bf16.msra.mxu0 %v15199_v21  ;;  %13104 = vmatprep.subr.bf16.mxu1 %v15222_v22  ;;  %v15341_v21 = vcombine.low %v3445_v10, %v3457_v8  ;;  %v15343_v22 = vcombine.low %v3446_v11, %v3458_v12  ;;  %v15368_v19 = vcombine.high %v3470_v34, %v3482_v20  ;;  %v3589_v8 = vld [vmem:[#allocation14 + $0x1b30] sm:$0xff]  ;;  %v3590_v12 = vld [vmem:[#allocation14 + $0x1b38] sm:$0xff] }
 0x6ba   :  { %13268 = vmatprep.subr.bf16.mxu0 %v15224_v23  ;;  %v15366_v23 = vcombine.high %v3469_v18, %v3481_v50  ;;  %v3601_v11 = vld [vmem:[#allocation14 + $0x1b90] sm:$0xff] }
 0x6bc   :  { %13105 = vmatpush1.bf16.msra.mxu1 %v15221_v27  ;;  %v3506_v27 = vld [vmem:[#allocation14 + $0x1898] sm:$0xff] }
 0x6bd   :  { %13269 = vmatpush1.bf16.msra.mxu0 %v15223_v56  ;;  %13106 = vmatprep.subr.bf16.mxu1 %v15246_v32  ;;  %v15365_v56 = vcombine.low %v3469_v18, %v3481_v50  ;;  %v15367_v32 = vcombine.low %v3470_v34, %v3482_v20  ;;  %v15392_v36 = vcombine.high %v3494_v26, %v3506_v27  ;;  %v3613_v50 = vld [vmem:[#allocation14 + $0x1bf0] sm:$0xff]  ;;  %v3614_v20 = vld [vmem:[#allocation14 + $0x1bf8] sm:$0xff] }
 0x6be   :  { %13270 = vmatprep.subr.bf16.mxu0 %v15248_v35  ;;  %v15390_v35 = vcombine.high %v3493_v24, %v3505_v6  ;;  %v3625_v34 = vld [vmem:[#allocation14 + $0x1c50] sm:$0xff] }
 0x6bf   :  { %v3637_v6 = vld [vmem:[#allocation14 + $0x1cb0] sm:$0xff] }
 0x6c0   :  { %13107 = vmatpush1.bf16.msra.mxu1 %v15245_v37  ;;  %v3518_v37 = vld [vmem:[#allocation14 + $0x18f8] sm:$0xff] }
 0x6c1   :  { %13271 = vmatpush1.bf16.msra.mxu0 %v15247_v39  ;;  %13108 = vmatprep.subr.bf16.mxu1 %v15270_v40  ;;  %v3530_v39 = vld [vmem:[#allocation14 + $0x1958] sm:$0xff]  ;;  %v15391_v40 = vcombine.low %v3494_v26, %v3506_v27  ;;  %v3649_v26 = vld [vmem:[#allocation14 + $0x1d10] sm:$0xff] }
 0x6c2   :  { %13272 = vmatprep.subr.bf16.mxu0 %v15272_v43  ;;  %v15414_v43 = vcombine.high %v3517_v28, %v3529_v1  ;;  %v15416_v48 = vcombine.high %v3518_v37, %v3530_v39  ;;  %v3638_v27 = vld [vmem:[#allocation14 + $0x1cb8] sm:$0xff] }
 0x6c4   :  { %13109 = vmatpush1.bf16.msra.mxu1 %v15269_v52  ;;  %v3554_v52 = vld [vmem:[#allocation14 + $0x1a18] sm:$0xff] }
 0x6c5   :  { %13273 = vmatpush1.bf16.msra.mxu0 %v15271_v53  ;;  %13110 = vmatprep.subr.bf16.mxu1 %v15294_v57  ;;  %v15413_v53 = vcombine.low %v3517_v28, %v3529_v1  ;;  %v15415_v57 = vcombine.low %v3518_v37, %v3530_v39  ;;  %v15440_v9 = vcombine.high %v3542_v49, %v3554_v52  ;;  %v3661_v1 = vld [vmem:[#allocation14 + $0x1d70] sm:$0xff]  ;;  %v3662_v37 = vld [vmem:[#allocation14 + $0x1d78] sm:$0xff] }
 0x6c6   :  { %13274 = vmatprep.subr.bf16.mxu0 %v15296_v13  ;;  %v15438_v13 = vcombine.high %v3541_v44, %v3553_v47  ;;  %v3674_v39 = vld [vmem:[#allocation14 + $0x1dd8] sm:$0xff] }
 0x6c8   :  { %13111 = vmatpush1.bf16.msra.mxu1 %v15293_v2  ;;  %v3578_v2 = vld [vmem:[#allocation14 + $0x1ad8] sm:$0xff] }
 0x6c9   :  { %13275 = vmatpush1.bf16.msra.mxu0 %v15295_v3  ;;  %13112 = vmatprep.subr.bf16.mxu1 %v15318_v4  ;;  %v15437_v3 = vcombine.low %v3541_v44, %v3553_v47  ;;  %v15439_v4 = vcombine.low %v3542_v49, %v3554_v52  ;;  %v15464_v10 = vcombine.high %v3566_v0, %v3578_v2  ;;  %v3697_v49 = vld [vmem:[#allocation14 + $0x1e90] sm:$0xff]  ;;  %v3686_v52 = vld [vmem:[#allocation14 + $0x1e38] sm:$0xff] }
 0x6ca   :  { %13276 = vmatprep.subr.bf16.mxu0 %v15320_v5  ;;  %v15462_v5 = vcombine.high %v3565_v60, %v3577_v63  ;;  %v15560_v47 = vcombine.high %v3662_v37, %v3674_v39 }
 0x6cc   :  { %13113 = vmatpush1.bf16.msra.mxu1 %v15317_v17  ;;  %v3602_v17 = vld [vmem:[#allocation14 + $0x1b98] sm:$0xff] }
 0x6cd   :  { %13277 = vmatpush1.bf16.msra.mxu0 %v15319_v14  ;;  %13114 = vmatprep.subr.bf16.mxu1 %v15342_v15  ;;  %v15461_v14 = vcombine.low %v3565_v60, %v3577_v63  ;;  %v15463_v15 = vcombine.low %v3566_v0, %v3578_v2  ;;  %v15488_v18 = vcombine.high %v3590_v12, %v3602_v17  ;;  %v3709_v63 = vld [vmem:[#allocation14 + $0x1ef0] sm:$0xff]  ;;  %v3710_v2 = vld [vmem:[#allocation14 + $0x1ef8] sm:$0xff] }
 0x6ce   :  { %13278 = vmatprep.subr.bf16.mxu0 %v15344_v16  ;;  %v15486_v16 = vcombine.high %v3589_v8, %v3601_v11  ;;  %v3721_v0 = vld [vmem:[#allocation14 + $0x1f50] sm:$0xff] }
 0x6d0   :  { %13115 = vmatpush1.bf16.msra.mxu1 %v15341_v21  ;;  %v3626_v21 = vld [vmem:[#allocation14 + $0x1c58] sm:$0xff] }
 0x6d1   :  { %13279 = vmatpush1.bf16.msra.mxu0 %v15343_v22  ;;  %13116 = vmatprep.subr.bf16.mxu1 %v15366_v23  ;;  %v15485_v22 = vcombine.low %v3589_v8, %v3601_v11  ;;  %v15487_v23 = vcombine.low %v3590_v12, %v3602_v17  ;;  %v15512_v24 = vcombine.high %v3614_v20, %v3626_v21  ;;  %v3733_v11 = vld [vmem:[#allocation14 + $0x1fb0] sm:$0xff]  ;;  %v3734_v17 = vld [vmem:[#allocation14 + $0x1fb8] sm:$0xff] }
 0x6d2   :  { %13280 = vmatprep.subr.bf16.mxu0 %v15368_v19  ;;  %v15510_v19 = vcombine.high %v3613_v50, %v3625_v34  ;;  %v3745_v12 = vld [vmem:[#allocation14 + $0x2010] sm:$0xff] }
 0x6d4   :  { %13117 = vmatpush1.bf16.msra.mxu1 %v15365_v56  ;;  %v3650_v56 = vld [vmem:[#allocation14 + $0x1d18] sm:$0xff] }
 0x6d5   :  { %13281 = vmatpush1.bf16.msra.mxu0 %v15367_v32  ;;  %13127 = vmatprep.subr.bf16.mxu1 %v15390_v35  ;;  %v15509_v32 = vcombine.low %v3613_v50, %v3625_v34  ;;  %v15511_v35 = vcombine.low %v3614_v20, %v3626_v21  ;;  %v15536_v28 = vcombine.high %v3638_v27, %v3650_v56  ;;  %v3757_v34 = vld [vmem:[#allocation14 + $0x2070] sm:$0xff]  ;;  %v3758_v21 = vld [vmem:[#allocation14 + $0x2078] sm:$0xff] }
 0x6d6   :  { %13291 = vmatprep.subr.bf16.mxu0 %v15392_v36  ;;  %v15534_v36 = vcombine.high %v3637_v6, %v3649_v26  ;;  %v3769_v20 = vld [vmem:[#allocation14 + $0x20d0] sm:$0xff] }
 0x6d7   :  { %13119 = vmatmul.mubr.bf16.vlgmr.msra.gmra.mrb[24].mxu1 %v17028_v61 }
 0x6d8   :  { %13283 = vmatmul.mubr.bf16.vlgmr.msra.gmra.mrb[28].mxu0 %v17028_v61  ;;  %13128 = vmatpush1.bf16.msra.mxu1 %v15389_v7  ;;  %v3673_v7 = vld [vmem:[#allocation14 + $0x1dd0] sm:$0xff] }
 0x6d9   :  { %13159 = vmatprep.mubr.bf16.mxu1 %v17049_v42  ;;  %13292 = vmatpush1.bf16.msra.mxu0 %v15391_v40  ;;  %v15533_v40 = vcombine.low %v3637_v6, %v3649_v26  ;;  %v15558_v44 = vcombine.high %v3661_v1, %v3673_v7  ;;  %v3781_v26 = vld [vmem:[#allocation14 + $0x2130] sm:$0xff] }
 0x6da   :  { %13323 = vmatprep.mubr.bf16.mxu0 %v17049_v42  ;;  %13129 = vmatprep.subr.bf16.mxu1 %v15414_v43  ;;  %v15535_v43 = vcombine.low %v3638_v27, %v3650_v56  ;;  %v3793_v27 = vld [vmem:[#allocation14 + $0x2190] sm:$0xff]  ;;  %v3782_v56 = vld [vmem:[#allocation14 + $0x2138] sm:$0xff] }
 0x6db   :  { %13293 = vmatprep.subr.bf16.mxu0 %v15416_v48  ;;  %v3685_v48 = vld [vmem:[#allocation14 + $0x1e30] sm:$0xff] }
 0x6dc   :  { %13130 = vmatpush1.bf16.msra.mxu1 %v15413_v53  ;;  %v3698_v53 = vld [vmem:[#allocation14 + $0x1e98] sm:$0xff] }
 0x6dd   :  { %13294 = vmatpush1.bf16.msra.mxu0 %v15415_v57  ;;  %13131 = vmatprep.subr.bf16.mxu1 %v15438_v13  ;;  %v15557_v57 = vcombine.low %v3661_v1, %v3673_v7  ;;  %v15559_v13 = vcombine.low %v3662_v37, %v3674_v39  ;;  %v15584_v60 = vcombine.high %v3686_v52, %v3698_v53  ;;  %v3805_v7 = vld [vmem:[#allocation14 + $0x21f0] sm:$0xff]  ;;  %v3806_v39 = vld [vmem:[#allocation14 + $0x21f8] sm:$0xff] }
 0x6de   :  { %13295 = vmatprep.subr.bf16.mxu0 %v15440_v9  ;;  %v15582_v9 = vcombine.high %v3685_v48, %v3697_v49  ;;  %v3817_v37 = vld [vmem:[#allocation14 + $0x2250] sm:$0xff] }
 0x6e0   :  { %13132 = vmatpush1.bf16.msra.mxu1 %v15437_v3  ;;  %v3722_v3 = vld [vmem:[#allocation14 + $0x1f58] sm:$0xff] }
 0x6e1   :  { %13296 = vmatpush1.bf16.msra.mxu0 %v15439_v4  ;;  %13133 = vmatprep.subr.bf16.mxu1 %v15462_v5  ;;  %v15581_v4 = vcombine.low %v3685_v48, %v3697_v49  ;;  %v15583_v5 = vcombine.low %v3686_v52, %v3698_v53  ;;  %v15608_v8 = vcombine.high %v3710_v2, %v3722_v3  ;;  %v3829_v49 = vld [vmem:[#allocation14 + $0x22b0] sm:$0xff]  ;;  %v3830_v53 = vld [vmem:[#allocation14 + $0x22b8] sm:$0xff] }
 0x6e2   :  { %13297 = vmatprep.subr.bf16.mxu0 %v15464_v10  ;;  %v15606_v10 = vcombine.high %v3709_v63, %v3721_v0  ;;  %v3841_v52 = vld [vmem:[#allocation14 + $0x2310] sm:$0xff] }
 0x6e4   :  { %13134 = vmatpush1.bf16.msra.mxu1 %v15461_v14  ;;  %v3746_v14 = vld [vmem:[#allocation14 + $0x2018] sm:$0xff] }
 0x6e5   :  { %13298 = vmatpush1.bf16.msra.mxu0 %v15463_v15  ;;  %13135 = vmatprep.subr.bf16.mxu1 %v15486_v16  ;;  %v15605_v15 = vcombine.low %v3709_v63, %v3721_v0  ;;  %v15607_v16 = vcombine.low %v3710_v2, %v3722_v3  ;;  %v15632_v50 = vcombine.high %v3734_v17, %v3746_v14  ;;  %v3853_v0 = vld [vmem:[#allocation14 + $0x2370] sm:$0xff]  ;;  %v3854_v3 = vld [vmem:[#allocation14 + $0x2378] sm:$0xff] }
 0x6e6   :  { %13299 = vmatprep.subr.bf16.mxu0 %v15488_v18  ;;  %v15630_v18 = vcombine.high %v3733_v11, %v3745_v12  ;;  %v3865_v2 = vld [vmem:[#allocation14 + $0x23d0] sm:$0xff] }
 0x6e8   :  { %13136 = vmatpush1.bf16.msra.mxu1 %v15485_v22  ;;  %v3770_v22 = vld [vmem:[#allocation14 + $0x20d8] sm:$0xff] }
 0x6e9   :  { %13300 = vmatpush1.bf16.msra.mxu0 %v15487_v23  ;;  %13137 = vmatprep.subr.bf16.mxu1 %v15510_v19  ;;  %v15629_v23 = vcombine.low %v3733_v11, %v3745_v12  ;;  %v15631_v19 = vcombine.low %v3734_v17, %v3746_v14  ;;  %v15656_v6 = vcombine.high %v3758_v21, %v3770_v22  ;;  %v3877_v12 = vld [vmem:[#allocation14 + $0x2430] sm:$0xff]  ;;  %v3878_v14 = vld [vmem:[#allocation14 + $0x2438] sm:$0xff] }
 0x6ea   :  { %13301 = vmatprep.subr.bf16.mxu0 %v15512_v24  ;;  %v15654_v24 = vcombine.high %v3757_v34, %v3769_v20  ;;  %v3889_v17 = vld [vmem:[#allocation14 + $0x2490] sm:$0xff] }
 0x6ec   :  { %13138 = vmatpush1.bf16.msra.mxu1 %v15509_v32  ;;  %v3794_v32 = vld [vmem:[#allocation14 + $0x2198] sm:$0xff] }
 0x6ed   :  { %13302 = vmatpush1.bf16.msra.mxu0 %v15511_v35  ;;  %13139 = vmatprep.subr.bf16.mxu1 %v15534_v36  ;;  %v15653_v35 = vcombine.low %v3757_v34, %v3769_v20  ;;  %v15655_v36 = vcombine.low %v3758_v21, %v3770_v22  ;;  %v15680_v1 = vcombine.high %v3782_v56, %v3794_v32  ;;  %v3901_v20 = vld [vmem:[#allocation14 + $0x24f0] sm:$0xff] }
 0x6ee   :  { %13303 = vmatprep.subr.bf16.mxu0 %v15536_v28  ;;  %v15678_v28 = vcombine.high %v3781_v26, %v3793_v27  ;;  %v3913_v21 = vld [vmem:[#allocation14 + $0x2550] sm:$0xff]  ;;  %v15773_v22 = vcombine.low %v3877_v12, %v3889_v17 }
 0x6f0   :  { %13140 = vmatpush1.bf16.msra.mxu1 %v15533_v40  ;;  %v3818_v40 = vld [vmem:[#allocation14 + $0x2258] sm:$0xff] }
 0x6f1   :  { %13304 = vmatpush1.bf16.msra.mxu0 %v15535_v43  ;;  %13141 = vmatprep.subr.bf16.mxu1 %v15558_v44  ;;  %v15677_v43 = vcombine.low %v3781_v26, %v3793_v27  ;;  %v15679_v44 = vcombine.low %v3782_v56, %v3794_v32  ;;  %v15704_v48 = vcombine.high %v3806_v39, %v3818_v40  ;;  %v3925_v26 = vld [vmem:[#allocation14 + $0x25b0] sm:$0xff]  ;;  %v3926_v32 = vld [vmem:[#allocation14 + $0x25b8] sm:$0xff] }
 0x6f2   :  { %13305 = vmatprep.subr.bf16.mxu0 %v15560_v47  ;;  %v15702_v47 = vcombine.high %v3805_v7, %v3817_v37  ;;  %v3937_v27 = vld [vmem:[#allocation14 + $0x2610] sm:$0xff] }
 0x6f4   :  { %13142 = vmatpush1.bf16.msra.mxu1 %v15557_v57  ;;  %v3842_v57 = vld [vmem:[#allocation14 + $0x2318] sm:$0xff] }
 0x6f5   :  { %13306 = vmatpush1.bf16.msra.mxu0 %v15559_v13  ;;  %13143 = vmatprep.subr.bf16.mxu1 %v15582_v9  ;;  %v15701_v13 = vcombine.low %v3805_v7, %v3817_v37  ;;  %v15703_v9 = vcombine.low %v3806_v39, %v3818_v40  ;;  %v15728_v63 = vcombine.high %v3830_v53, %v3842_v57  ;;  %v3949_v37 = vld [vmem:[#allocation14 + $0x2670] sm:$0xff]  ;;  %v3950_v40 = vld [vmem:[#allocation14 + $0x2678] sm:$0xff] }
 0x6f6   :  { %13307 = vmatprep.subr.bf16.mxu0 %v15584_v60  ;;  %v15726_v60 = vcombine.high %v3829_v49, %v3841_v52  ;;  %v3961_v39 = vld [vmem:[#allocation14 + $0x26d0] sm:$0xff] }
 0x6f8   :  { %13144 = vmatpush1.bf16.msra.mxu1 %v15581_v4  ;;  %v3866_v4 = vld [vmem:[#allocation14 + $0x23d8] sm:$0xff] }
 0x6f9   :  { %13308 = vmatpush1.bf16.msra.mxu0 %v15583_v5  ;;  %13145 = vmatprep.subr.bf16.mxu1 %v15606_v10  ;;  %v15725_v5 = vcombine.low %v3829_v49, %v3841_v52  ;;  %v15727_v10 = vcombine.low %v3830_v53, %v3842_v57  ;;  %v15752_v11 = vcombine.high %v3854_v3, %v3866_v4  ;;  %v3973_v52 = vld [vmem:[#allocation14 + $0x2730] sm:$0xff]  ;;  %v3974_v57 = vld [vmem:[#allocation14 + $0x2738] sm:$0xff] }
 0x6fa   :  { %13309 = vmatprep.subr.bf16.mxu0 %v15608_v8  ;;  %v15750_v8 = vcombine.high %v3853_v0, %v3865_v2  ;;  %v3985_v53 = vld [vmem:[#allocation14 + $0x2790] sm:$0xff] }
 0x6fc   :  { %13146 = vmatpush1.bf16.msra.mxu1 %v15605_v15  ;;  %v3890_v15 = vld [vmem:[#allocation14 + $0x2498] sm:$0xff] }
 0x6fd   :  { %13310 = vmatpush1.bf16.msra.mxu0 %v15607_v16  ;;  %13147 = vmatprep.subr.bf16.mxu1 %v15630_v18  ;;  %v15749_v16 = vcombine.low %v3853_v0, %v3865_v2  ;;  %v15751_v18 = vcombine.low %v3854_v3, %v3866_v4  ;;  %v15776_v34 = vcombine.high %v3878_v14, %v3890_v15  ;;  %v3997_v2 = vld [vmem:[#allocation14 + $0x27f0] sm:$0xff]  ;;  %v3998_v4 = vld [vmem:[#allocation14 + $0x27f8] sm:$0xff] }
 0x6fe   :  { %13311 = vmatprep.subr.bf16.mxu0 %v15632_v50  ;;  %v15774_v50 = vcombine.high %v3877_v12, %v3889_v17  ;;  %v4009_v3 = vld [vmem:[#allocation14 + $0x2850] sm:$0xff] }
 0x6ff   :  { %v15894_v12 = vcombine.high %v3997_v2, %v4009_v3 }
 0x700   :  { %13148 = vmatpush1.bf16.msra.mxu1 %v15629_v23  ;;  %v3902_v23 = vld [vmem:[#allocation14 + $0x24f8] sm:$0xff] }
 0x701   :  { %13312 = vmatpush1.bf16.msra.mxu0 %v15631_v19  ;;  %13149 = vmatprep.subr.bf16.mxu1 %v15654_v24  ;;  %v3914_v19 = vld [vmem:[#allocation14 + $0x2558] sm:$0xff]  ;;  %v15775_v24 = vcombine.low %v3878_v14, %v3890_v15  ;;  %v4021_v14 = vld [vmem:[#allocation14 + $0x28b0] sm:$0xff] }
 0x702   :  { %13313 = vmatprep.subr.bf16.mxu0 %v15656_v6  ;;  %v15798_v6 = vcombine.high %v3901_v20, %v3913_v21  ;;  %v15800_v56 = vcombine.high %v3902_v23, %v3914_v19  ;;  %v4033_v15 = vld [vmem:[#allocation14 + $0x2910] sm:$0xff] }
 0x704   :  { %13150 = vmatpush1.bf16.msra.mxu1 %v15653_v35  ;;  %v3938_v35 = vld [vmem:[#allocation14 + $0x2618] sm:$0xff] }
 0x705   :  { %13314 = vmatpush1.bf16.msra.mxu0 %v15655_v36  ;;  %13151 = vmatprep.subr.bf16.mxu1 %v15678_v28  ;;  %v15797_v36 = vcombine.low %v3901_v20, %v3913_v21  ;;  %v15799_v28 = vcombine.low %v3902_v23, %v3914_v19  ;;  %v15824_v7 = vcombine.high %v3926_v32, %v3938_v35 }
 0x706   :  { %13315 = vmatprep.subr.bf16.mxu0 %v15680_v1  ;;  %v15822_v1 = vcombine.high %v3925_v26, %v3937_v27  ;;  %v15893_v21 = vcombine.low %v3997_v2, %v4009_v3  ;;  %v15918_v19 = vcombine.high %v4021_v14, %v4033_v15 }
 0x708   :  { %13152 = vmatpush1.bf16.msra.mxu1 %v15677_v43  ;;  %v3962_v43 = vld [vmem:[#allocation14 + $0x26d8] sm:$0xff] }
 0x709   :  { %13316 = vmatpush1.bf16.msra.mxu0 %v15679_v44  ;;  %13153 = vmatprep.subr.bf16.mxu1 %v15702_v47  ;;  %v15821_v44 = vcombine.low %v3925_v26, %v3937_v27  ;;  %v15823_v47 = vcombine.low %v3926_v32, %v3938_v35  ;;  %v15848_v49 = vcombine.high %v3950_v40, %v3962_v43  ;;  %v4045_v26 = vld [vmem:[#allocation14 + $0x2970] sm:$0xff] }
 0x70a   :  { %13317 = vmatprep.subr.bf16.mxu0 %v15704_v48  ;;  %v15846_v48 = vcombine.high %v3949_v37, %v3961_v39  ;;  %v4057_v27 = vld [vmem:[#allocation14 + $0x29d0] sm:$0xff] }
 0x70c   :  { %13154 = vmatpush1.bf16.msra.mxu1 %v15701_v13  ;;  %v3986_v13 = vld [vmem:[#allocation14 + $0x2798] sm:$0xff] }
 0x70d   :  { %13318 = vmatpush1.bf16.msra.mxu0 %v15703_v9  ;;  %13155 = vmatprep.subr.bf16.mxu1 %v15726_v60  ;;  %v15845_v9 = vcombine.low %v3949_v37, %v3961_v39  ;;  %v15847_v60 = vcombine.low %v3950_v40, %v3962_v43  ;;  %v15872_v0 = vcombine.high %v3974_v57, %v3986_v13 }
 0x70e   :  { %13319 = vmatprep.subr.bf16.mxu0 %v15728_v63  ;;  %v15870_v63 = vcombine.high %v3973_v52, %v3985_v53  ;;  %v15917_v40 = vcombine.low %v4021_v14, %v4033_v15  ;;  %v4117_v15 = vld [vmem:[#allocation14 + $0x2bb0] sm:$0xff] }
 0x710   :  { %13156 = vmatpush1.bf16.msra.mxu1 %v15725_v5  ;;  %v4010_v5 = vld [vmem:[#allocation14 + $0x2858] sm:$0xff] }
 0x711   :  { %13320 = vmatpush1.bf16.msra.mxu0 %v15727_v10  ;;  %13157 = vmatprep.subr.bf16.mxu1 %v15750_v8  ;;  %v15869_v10 = vcombine.low %v3973_v52, %v3985_v53  ;;  %v4256_v8 = vld [vmem:[#allocation16 + $0x8] sm:$0xff]  ;;  %v15896_v17 = vcombine.high %v3998_v4, %v4010_v5  ;;  %v15895_v23 = vcombine.low %v3998_v4, %v4010_v5  ;;  %v4093_v4 = vld [vmem:[#allocation14 + $0x2af0] sm:$0xff] }
 0x712   :  { %13321 = vmatprep.subr.bf16.mxu0 %v15752_v11  ;;  %v15871_v11 = vcombine.low %v3974_v57, %v3986_v13  ;;  %v4300_v20 = vrot.slane %v4256_v8, %v16956_v31  ;;  %v4069_v57 = vld [vmem:[#allocation14 + $0x2a30] sm:$0xff] }
 0x713   :  { %v4081_v13 = vld [vmem:[#allocation14 + $0x2a90] sm:$0xff] }
 0x714   :  { %13158 = vmatpush1.bf16.msra.mxu1 %v15749_v16  ;;  %v4296_v16 = vrot.slane %v4256_v8, %v16953_v29  ;;  %v15966_v2 = vcombine.high %v4069_v57, %v4081_v13  ;;  %v4105_v5 = vld [vmem:[#allocation14 + $0x2b50] sm:$0xff] }
 0x715   :  { %13322 = vmatpush1.bf16.msra.mxu0 %v15751_v18  ;;  %13168 = vmatprep.subr.bf16.mxu1 %v15774_v50  ;;  %v4022_v18 = vld [vmem:[#allocation14 + $0x28b8] sm:$0xff] }
 0x716   :  { %13332 = vmatprep.subr.bf16.mxu0 %v15776_v34  ;;  %v4034_v50 = vld [vmem:[#allocation14 + $0x2918] sm:$0xff]  ;;  %v4304_v34 = vrot.slane %v4256_v8, %v16986_v59 }
 0x717   :  { %13160 = vmatmul.mubr.bf16.vlgmr.msra.gmra.mrb[24].mxu1 %v17051_v45 }
 0x718   :  { %13324 = vmatmul.mubr.bf16.vlgmr.msra.gmra.mrb[28].mxu0 %v17051_v45  ;;  %13169 = vmatpush1.bf16.msra.mxu1 %v15773_v22  ;;  %v4308_v22 = vrot.slane %v4256_v8, %v16963_v51  ;;  %v4106_v8 = vld [vmem:[#allocation14 + $0x2b58] sm:$0xff] }
 0x719   :  { %13200 = vmatprep.mubr.bf16.mxu1 %v17055_v54  ;;  %13333 = vmatpush1.bf16.msra.mxu0 %v15775_v24 }
 0x71a   :  { %13364 = vmatprep.mubr.bf16.mxu0 %v17055_v54  ;;  %13170 = vmatprep.subr.bf16.mxu1 %v15798_v6  ;;  %v15920_v6 = vcombine.high %v4022_v18, %v4034_v50 }
 0x71b   :  { %13334 = vmatprep.subr.bf16.mxu0 %v15800_v56 }
 0x71c   :  { %13171 = vmatpush1.bf16.msra.mxu1 %v15797_v36  ;;  %v4046_v36 = vld [vmem:[#allocation14 + $0x2978] sm:$0xff] }
 0x71d   :  { %13335 = vmatpush1.bf16.msra.mxu0 %v15799_v28  ;;  %13172 = vmatprep.subr.bf16.mxu1 %v15822_v1  ;;  %v4058_v28 = vld [vmem:[#allocation14 + $0x29d8] sm:$0xff] }
 0x71e   :  { %13336 = vmatprep.subr.bf16.mxu0 %v15824_v7  ;;  %v15944_v53 = vcombine.high %v4046_v36, %v4058_v28 }
 0x720   :  { %13173 = vmatpush1.bf16.msra.mxu1 %v15821_v44 }
 0x721   :  { %13337 = vmatpush1.bf16.msra.mxu0 %v15823_v47  ;;  %13174 = vmatprep.subr.bf16.mxu1 %v15846_v48  ;;  %v15919_v48 = vcombine.low %v4022_v18, %v4034_v50  ;;  %v4118_v50 = vld [vmem:[#allocation14 + $0x2bb8] sm:$0xff] }
 0x722   :  { %13338 = vmatprep.subr.bf16.mxu0 %v15848_v49  ;;  %v15942_v49 = vcombine.high %v4045_v26, %v4057_v27 }
 0x724   :  { %13175 = vmatpush1.bf16.msra.mxu1 %v15845_v9  ;;  %v4070_v9 = vld [vmem:[#allocation14 + $0x2a38] sm:$0xff] }
 0x725   :  { %13339 = vmatpush1.bf16.msra.mxu0 %v15847_v60  ;;  %13176 = vmatprep.subr.bf16.mxu1 %v15870_v63  ;;  %v4082_v60 = vld [vmem:[#allocation14 + $0x2a98] sm:$0xff]  ;;  %v15941_v63 = vcombine.low %v4045_v26, %v4057_v27  ;;  %v4141_v27 = vld [vmem:[#allocation14 + $0x2c70] sm:$0xff] }
 0x726   :  { %13340 = vmatprep.subr.bf16.mxu0 %v15872_v0  ;;  %v15943_v0 = vcombine.low %v4046_v36, %v4058_v28  ;;  %v15968_v3 = vcombine.high %v4070_v9, %v4082_v60  ;;  %v4154_v36 = vld [vmem:[#allocation14 + $0x2cd8] sm:$0xff] }
 0x728   :  { %13177 = vmatpush1.bf16.msra.mxu1 %v15869_v10  ;;  %v4094_v10 = vld [vmem:[#allocation14 + $0x2af8] sm:$0xff] }
 0x729   :  { %13341 = vmatpush1.bf16.msra.mxu0 %v15871_v11  ;;  %13178 = vmatprep.subr.bf16.mxu1 %v15894_v12  ;;  %v15965_v11 = vcombine.low %v4069_v57, %v4081_v13  ;;  %v15967_v12 = vcombine.low %v4070_v9, %v4082_v60  ;;  %v15992_v14 = vcombine.high %v4094_v10, %v4106_v8  ;;  %v4189_v9 = vld [vmem:[#allocation14 + $0x2df0] sm:$0xff] }
 0x72a   :  { %v12874_v24 = vpop.f32.mrb[20].mxu1  ;;  %13342 = vmatprep.subr.bf16.mxu0 %v15896_v17  ;;  %v15990_v17 = vcombine.high %v4093_v4, %v4105_v5  ;;  %v4201_v60 = vld [vmem:[#allocation14 + $0x2e50] sm:$0xff] }
 0x72b   :  { %v16173_v56 = vadd.f32 %v12874_v24, %v4296_v16  ;;  %v13038_v32 = vpop.f32.mrb[24].mxu0  ;;  %v12876_v35 = vpop.f32.mrb[21].mxu1  ;;  %v4129_v16 = vld [vmem:[#allocation14 + $0x2c10] sm:$0xff] }
 0x72c   :  { %v16175_v1 = vadd.f32 %v13038_v32, %v4304_v34  ;;  %v16174_v7 = vadd.f32 %v12876_v35, %v4300_v20  ;;  %v13040_v37 = vpop.f32.mrb[25].mxu0  ;;  %v12878_v39 = vpop.f32.mrb[22].mxu1  ;;  %13179 = vmatpush1.bf16.msra.mxu1 %v15893_v21  ;;  %v4130_v34 = vld [vmem:[#allocation14 + $0x2c18] sm:$0xff]  ;;  %v15989_v21 = vcombine.low %v4093_v4, %v4105_v5  ;;  %v16013_v28 = vcombine.low %v4117_v15, %v4129_v16 }
 0x72d   :  { %16505 = vtanh.f32 %v16173_v56  ;;  %v16176_v43 = vadd.f32 %v13040_v37, %v4308_v22  ;;  %v13042_v44 = vpop.f32.mrb[26].mxu0  ;;  %13343 = vmatpush1.bf16.msra.mxu0 %v15895_v23  ;;  %v12879_v47 = vpop.f32.mrb[23].mxu1  ;;  %13180 = vmatprep.subr.bf16.mxu1 %v15918_v19  ;;  %v15991_v23 = vcombine.low %v4094_v10, %v4106_v8  ;;  %v16014_v19 = vcombine.high %v4117_v15, %v4129_v16  ;;  %v4153_v56 = vld [vmem:[#allocation14 + $0x2cd0] sm:$0xff]  ;;  %v4142_v35 = vld [vmem:[#allocation14 + $0x2c78] sm:$0xff] }
 0x72e   :  { %16507 = vtanh.f32 %v16175_v1  ;;  %v13043_v52 = vpop.f32.mrb[27].mxu0  ;;  %13344 = vmatprep.subr.bf16.mxu0 %v15920_v6  ;;  %v16016_v26 = vcombine.high %v4118_v50, %v4130_v34  ;;  %v16038_v37 = vcombine.high %v4141_v27, %v4153_v56  ;;  %v4177_v44 = vld [vmem:[#allocation14 + $0x2d90] sm:$0xff]  ;;  %v4166_v47 = vld [vmem:[#allocation14 + $0x2d38] sm:$0xff]  ;;  %v16086_v4 = vcombine.high %v4189_v9, %v4201_v60 }
 0x72f   :  { %16509 = vtanh.f32 %v16174_v7  ;;  %v16015_v7 = vcombine.low %v4118_v50, %v4130_v34  ;;  %v16037_v52 = vcombine.low %v4141_v27, %v4153_v56  ;;  %v4213_v10 = vld [vmem:[#allocation14 + $0x2eb0] sm:$0xff]  ;;  %v4238_v34 = vld [vmem:[#allocation14 + $0x2f78] sm:$0xff]  ;;  %v2740_v27 = vld [vmem:[#allocation14 + $0xa8] sm:$0xff] }
 0x730   :  { %16511 = vtanh.f32 %v16176_v43  ;;  %13181 = vmatpush1.bf16.msra.mxu1 %v15917_v40  ;;  %v16040_v40 = vcombine.high %v4142_v35, %v4154_v36  ;;  %v4165_v43 = vld [vmem:[#allocation14 + $0x2d30] sm:$0xff] }
 0x731   :  { %13345 = vmatpush1.bf16.msra.mxu0 %v15919_v48  ;;  %13182 = vmatprep.subr.bf16.mxu1 %v15942_v49  ;;  %v4178_v48 = vld [vmem:[#allocation14 + $0x2d98] sm:$0xff]  ;;  %v16062_v57 = vcombine.high %v4165_v43, %v4177_v44  ;;  %v4225_v8 = vld [vmem:[#allocation14 + $0x2f10] sm:$0xff] }
 0x732   :  { %13346 = vmatprep.subr.bf16.mxu0 %v15944_v53  ;;  %v16039_v53 = vcombine.low %v4142_v35, %v4154_v36  ;;  %v16064_v13 = vcombine.high %v4166_v47, %v4178_v48  ;;  %v16110_v15 = vcombine.high %v4213_v10, %v4225_v8  ;;  %v4249_v50 = vld [vmem:[#allocation14 + $0x2fd0] sm:$0xff] }
 0x734   :  { %13183 = vmatpush1.bf16.msra.mxu1 %v15941_v63  ;;  %v4190_v63 = vld [vmem:[#allocation14 + $0x2df8] sm:$0xff] }
 0x735   :  { %13347 = vmatpush1.bf16.msra.mxu0 %v15943_v0  ;;  %13184 = vmatprep.subr.bf16.mxu1 %v15966_v2  ;;  %v4202_v0 = vld [vmem:[#allocation14 + $0x2e58] sm:$0xff]  ;;  %v16061_v2 = vcombine.low %v4165_v43, %v4177_v44  ;;  %v2764_v43 = vld [vmem:[#allocation14 + $0x168] sm:$0xff] }
 0x736   :  { %13348 = vmatprep.subr.bf16.mxu0 %v15968_v3  ;;  %v16063_v3 = vcombine.low %v4166_v47, %v4178_v48  ;;  %v16088_v5 = vcombine.high %v4190_v63, %v4202_v0  ;;  %v2775_v48 = vld [vmem:[#allocation14 + $0x1c0] sm:$0xff] }
 0x737   :  { %v16506_v18 = vpop.eup %16505 }
 0x738   :  { %v16508_v20 = vpop.eup %16507  ;;  %13185 = vmatpush1.bf16.msra.mxu1 %v15965_v11  ;;  %v4214_v11 = vld [vmem:[#allocation14 + $0x2eb8] sm:$0xff] }
 0x739   :  { %v16510_v22 = vpop.eup %16509  ;;  %13349 = vmatpush1.bf16.msra.mxu0 %v15967_v12  ;;  %13186 = vmatprep.subr.bf16.mxu1 %v15990_v17  ;;  %v4226_v12 = vld [vmem:[#allocation14 + $0x2f18] sm:$0xff]  ;;  %v16085_v17 = vcombine.low %v4189_v9, %v4201_v60 }
 0x73a   :  { %v16512_v24 = vpop.eup %16511  ;;  %v16149_v6 = vpack.c.bf16 %v16510_v22, %v16506_v18  ;;  %13350 = vmatprep.subr.bf16.mxu0 %v15992_v14  ;;  %v16087_v14 = vcombine.low %v4190_v63, %v4202_v0  ;;  %v16112_v16 = vcombine.high %v4214_v11, %v4226_v12  ;;  %v4237_v18 = vld [vmem:[#allocation14 + $0x2f70] sm:$0xff]  ;;  %v16111_v22 = vcombine.low %v4214_v11, %v4226_v12 }
 0x73b   :  { %v16150_v32 = vpack.c.bf16 %v16512_v24, %v16508_v20  ;;  %v4250_v20 = vld [vmem:[#allocation14 + $0x2fd8] sm:$0xff]  ;;  %v2727_v24 = vld [vmem:[#allocation14 + $0x40] sm:$0xff]  ;;  %v16133_v56 = vcombine.low %v4237_v18, %v4249_v50 }
 0x73c   :  { %13187 = vmatpush1.bf16.msra.mxu1 %v15989_v21  ;;  %v17147_v1 = vrot.slane %v16149_v6, %v17089_v38  ;;  %v16109_v21 = vcombine.low %v4213_v10, %v4225_v8  ;;  %v2739_v6 = vld [vmem:[#allocation14 + $0xa0] sm:$0xff] }
 0x73d   :  { %13351 = vmatpush1.bf16.msra.mxu0 %v15991_v23  ;;  %13188 = vmatprep.subr.bf16.mxu1 %v16014_v19  ;;  %v17150_v39 = vrot.slane %v16150_v32, %v17089_v38  ;;  %v16134_v23 = vcombine.high %v4237_v18, %v4249_v50  ;;  %v16136_v19 = vcombine.high %v4238_v34, %v4250_v20 }
 0x73e   :  { %13352 = vmatprep.subr.bf16.mxu0 %v16016_v26  ;;  %v2728_v26 = vld [vmem:[#allocation14 + $0x48] sm:$0xff]  ;;  %v16135_v32 = vcombine.low %v4238_v34, %v4250_v20  ;;  %v14626_v35 = vcombine.high %v2727_v24, %v2739_v6 }
 0x73f   :  { %v14182_v49 = vcombine.low %v17147_v1, %v17150_v39  ;;  %v14628_v36 = vcombine.high %v2728_v26, %v2740_v27  ;;  %v14627_v44 = vcombine.low %v2728_v26, %v2740_v27 }
 0x740   :  { %13189 = vmatpush1.bf16.msra.mxu1 %v16013_v28  ;;  %v2751_v28 = vld [vmem:[#allocation14 + $0x100] sm:$0xff] }
 0x741   :  { %13353 = vmatpush1.bf16.msra.mxu0 %v16015_v7  ;;  %13190 = vmatprep.subr.bf16.mxu1 %v16038_v37  ;;  %v2763_v7 = vld [vmem:[#allocation14 + $0x160] sm:$0xff]  ;;  %v14625_v37 = vcombine.low %v2727_v24, %v2739_v6 }
 0x742   :  { %13354 = vmatprep.subr.bf16.mxu0 %v16040_v40  ;;  %v2752_v40 = vld [vmem:[#allocation14 + $0x108] sm:$0xff]  ;;  %v14650_v47 = vcombine.high %v2751_v28, %v2763_v7  ;;  %v14649_v9 = vcombine.low %v2751_v28, %v2763_v7 }
 0x743   :  { %v14651_v60 = vcombine.low %v2752_v40, %v2764_v43 }
 0x744   :  { %13191 = vmatpush1.bf16.msra.mxu1 %v16037_v52  ;;  %v2787_v52 = vld [vmem:[#allocation14 + $0x220] sm:$0xff] }
 0x745   :  { %13355 = vmatpush1.bf16.msra.mxu0 %v16039_v53  ;;  %13192 = vmatprep.subr.bf16.mxu1 %v16062_v57  ;;  %v14652_v53 = vcombine.high %v2752_v40, %v2764_v43  ;;  %v2776_v57 = vld [vmem:[#allocation14 + $0x1c8] sm:$0xff]  ;;  %v14674_v63 = vcombine.high %v2775_v48, %v2787_v52  ;;  %v14673_v10 = vcombine.low %v2775_v48, %v2787_v52  ;;  %v2895_v43 = vld [vmem:[#allocation14 + $0x580] sm:$0xff] }
 0x746   :  { %13356 = vmatprep.subr.bf16.mxu0 %v16064_v13  ;;  %v2788_v13 = vld [vmem:[#allocation14 + $0x228] sm:$0xff] }
 0x747   :  { %v14676_v0 = vcombine.high %v2776_v57, %v2788_v13  ;;  %v14675_v8 = vcombine.low %v2776_v57, %v2788_v13  ;;  %v2908_v48 = vld [vmem:[#allocation14 + $0x5e8] sm:$0xff] }
 0x748   :  { %13193 = vmatpush1.bf16.msra.mxu1 %v16061_v2  ;;  %v2799_v2 = vld [vmem:[#allocation14 + $0x280] sm:$0xff] }
 0x749   :  { %13357 = vmatpush1.bf16.msra.mxu0 %v16063_v3  ;;  %13194 = vmatprep.subr.bf16.mxu1 %v16086_v4  ;;  %v2811_v3 = vld [vmem:[#allocation14 + $0x2e0] sm:$0xff]  ;;  %v2800_v4 = vld [vmem:[#allocation14 + $0x288] sm:$0xff] }
 0x74a   :  { %13358 = vmatprep.subr.bf16.mxu0 %v16088_v5  ;;  %v2812_v5 = vld [vmem:[#allocation14 + $0x2e8] sm:$0xff]  ;;  %v14698_v11 = vcombine.high %v2799_v2, %v2811_v3  ;;  %v14697_v18 = vcombine.low %v2799_v2, %v2811_v3 }
 0x74b   :  { %v14700_v12 = vcombine.high %v2800_v4, %v2812_v5  ;;  %v14699_v50 = vcombine.low %v2800_v4, %v2812_v5 }
 0x74c   :  { %13195 = vmatpush1.bf16.msra.mxu1 %v16085_v17  ;;  %v2823_v17 = vld [vmem:[#allocation14 + $0x340] sm:$0xff] }
 0x74d   :  { %13359 = vmatpush1.bf16.msra.mxu0 %v16087_v14  ;;  %13196 = vmatprep.subr.bf16.mxu1 %v16110_v15  ;;  %v2835_v14 = vld [vmem:[#allocation14 + $0x3a0] sm:$0xff]  ;;  %v2824_v15 = vld [vmem:[#allocation14 + $0x348] sm:$0xff] }
 0x74e   :  { %13360 = vmatprep.subr.bf16.mxu0 %v16112_v16  ;;  %v2836_v16 = vld [vmem:[#allocation14 + $0x3a8] sm:$0xff]  ;;  %v14722_v34 = vcombine.high %v2823_v17, %v2835_v14  ;;  %v14721_v24 = vcombine.low %v2823_v17, %v2835_v14 }
 0x74f   :  { %v14724_v20 = vcombine.high %v2824_v15, %v2836_v16  ;;  %v14723_v6 = vcombine.low %v2824_v15, %v2836_v16 }
 0x750   :  { %13197 = vmatpush1.bf16.msra.mxu1 %v16109_v21  ;;  %v2847_v21 = vld [vmem:[#allocation14 + $0x400] sm:$0xff] }
 0x751   :  { %13361 = vmatpush1.bf16.msra.mxu0 %v16111_v22  ;;  %13198 = vmatprep.subr.bf16.mxu1 %v16134_v23  ;;  %v2859_v22 = vld [vmem:[#allocation14 + $0x460] sm:$0xff]  ;;  %v2848_v23 = vld [vmem:[#allocation14 + $0x408] sm:$0xff] }
 0x752   :  { %13362 = vmatprep.subr.bf16.mxu0 %v16136_v19  ;;  %v2860_v19 = vld [vmem:[#allocation14 + $0x468] sm:$0xff]  ;;  %v14746_v26 = vcombine.high %v2847_v21, %v2859_v22  ;;  %v14745_v28 = vcombine.low %v2847_v21, %v2859_v22 }
 0x753   :  { %v14748_v27 = vcombine.high %v2848_v23, %v2860_v19  ;;  %v14747_v7 = vcombine.low %v2848_v23, %v2860_v19 }
 0x754   :  { %13199 = vmatpush1.bf16.msra.mxu1 %v16133_v56  ;;  %v2871_v56 = vld [vmem:[#allocation14 + $0x4c0] sm:$0xff] }
 0x755   :  { %13363 = vmatpush1.bf16.msra.mxu0 %v16135_v32  ;;  %13373 = vmatprep.subr.bf16.mxu1 %v14626_v35  ;;  %v2883_v32 = vld [vmem:[#allocation14 + $0x520] sm:$0xff]  ;;  %v2872_v35 = vld [vmem:[#allocation14 + $0x4c8] sm:$0xff] }
 0x756   :  { %13537 = vmatprep.subr.bf16.mxu0 %v14628_v36  ;;  %v2884_v36 = vld [vmem:[#allocation14 + $0x528] sm:$0xff]  ;;  %v14769_v52 = vcombine.low %v2871_v56, %v2883_v32 }
 0x757   :  { %13201 = vmatmul.mubr.bf16.vlgmr.msra.gmra.mrb[24].mxu1 %v17066_v25  ;;  %v14772_v40 = vcombine.high %v2872_v35, %v2884_v36 }
 0x758   :  { %13365 = vmatmul.mubr.bf16.vlgmr.msra.gmra.mrb[28].mxu0 %v17066_v25  ;;  %13374 = vmatpush1.bf16.msra.mxu1 %v14625_v37  ;;  %v14770_v37 = vcombine.high %v2871_v56, %v2883_v32 }
 0x759   :  { %13405 = vmatprep.mubr.bf16.mxu1 %v17013_v30  ;;  %13538 = vmatpush1.bf16.msra.mxu0 %v14627_v44  ;;  %v2907_v44 = vld [vmem:[#allocation14 + $0x5e0] sm:$0xff] }
 0x75a   :  { %13569 = vmatprep.mubr.bf16.mxu0 %v17013_v30  ;;  %13375 = vmatprep.subr.bf16.mxu1 %v14650_v47  ;;  %v2896_v47 = vld [vmem:[#allocation14 + $0x588] sm:$0xff]  ;;  %v14794_v57 = vcombine.high %v2895_v43, %v2907_v44  ;;  %v14793_v2 = vcombine.low %v2895_v43, %v2907_v44 }
 0x75b   :  { %13539 = vmatprep.subr.bf16.mxu0 %v14652_v53  ;;  %v14771_v53 = vcombine.low %v2872_v35, %v2884_v36  ;;  %v14796_v13 = vcombine.high %v2896_v47, %v2908_v48  ;;  %v14795_v3 = vcombine.low %v2896_v47, %v2908_v48 }
 0x75c   :  { %13376 = vmatpush1.bf16.msra.mxu1 %v14649_v9  ;;  %v2919_v9 = vld [vmem:[#allocation14 + $0x640] sm:$0xff] }
 0x75d   :  { %13540 = vmatpush1.bf16.msra.mxu0 %v14651_v60  ;;  %13377 = vmatprep.subr.bf16.mxu1 %v14674_v63  ;;  %v2931_v60 = vld [vmem:[#allocation14 + $0x6a0] sm:$0xff]  ;;  %v2920_v63 = vld [vmem:[#allocation14 + $0x648] sm:$0xff] }
 0x75e   :  { %13541 = vmatprep.subr.bf16.mxu0 %v14676_v0  ;;  %v2932_v0 = vld [vmem:[#allocation14 + $0x6a8] sm:$0xff]  ;;  %v14818_v4 = vcombine.high %v2919_v9, %v2931_v60  ;;  %v14817_v17 = vcombine.low %v2919_v9, %v2931_v60 }
 0x75f   :  { %v14820_v5 = vcombine.high %v2920_v63, %v2932_v0  ;;  %v14819_v14 = vcombine.low %v2920_v63, %v2932_v0 }
 0x760   :  { %13378 = vmatpush1.bf16.msra.mxu1 %v14673_v10  ;;  %v2943_v10 = vld [vmem:[#allocation14 + $0x700] sm:$0xff] }
 0x761   :  { %13542 = vmatpush1.bf16.msra.mxu0 %v14675_v8  ;;  %13379 = vmatprep.subr.bf16.mxu1 %v14698_v11  ;;  %v2955_v8 = vld [vmem:[#allocation14 + $0x760] sm:$0xff]  ;;  %v2944_v11 = vld [vmem:[#allocation14 + $0x708] sm:$0xff] }
 0x762   :  { %13543 = vmatprep.subr.bf16.mxu0 %v14700_v12  ;;  %v2956_v12 = vld [vmem:[#allocation14 + $0x768] sm:$0xff]  ;;  %v14842_v15 = vcombine.high %v2943_v10, %v2955_v8  ;;  %v14841_v21 = vcombine.low %v2943_v10, %v2955_v8 }
 0x763   :  { %v14844_v16 = vcombine.high %v2944_v11, %v2956_v12  ;;  %v14843_v22 = vcombine.low %v2944_v11, %v2956_v12 }
 0x764   :  { %13380 = vmatpush1.bf16.msra.mxu1 %v14697_v18  ;;  %v2967_v18 = vld [vmem:[#allocation14 + $0x7c0] sm:$0xff] }
 0x765   :  { %13544 = vmatpush1.bf16.msra.mxu0 %v14699_v50  ;;  %13381 = vmatprep.subr.bf16.mxu1 %v14722_v34  ;;  %v2979_v50 = vld [vmem:[#allocation14 + $0x820] sm:$0xff]  ;;  %v2968_v34 = vld [vmem:[#allocation14 + $0x7c8] sm:$0xff] }
 0x766   :  { %13545 = vmatprep.subr.bf16.mxu0 %v14724_v20  ;;  %v2980_v20 = vld [vmem:[#allocation14 + $0x828] sm:$0xff]  ;;  %v14866_v23 = vcombine.high %v2967_v18, %v2979_v50  ;;  %v14865_v56 = vcombine.low %v2967_v18, %v2979_v50 }
 0x767   :  { %v14868_v19 = vcombine.high %v2968_v34, %v2980_v20  ;;  %v14867_v32 = vcombine.low %v2968_v34, %v2980_v20 }
 0x768   :  { %13382 = vmatpush1.bf16.msra.mxu1 %v14721_v24  ;;  %v2991_v24 = vld [vmem:[#allocation14 + $0x880] sm:$0xff] }
 0x769   :  { %13546 = vmatpush1.bf16.msra.mxu0 %v14723_v6  ;;  %13383 = vmatprep.subr.bf16.mxu1 %v14746_v26  ;;  %v3003_v6 = vld [vmem:[#allocation14 + $0x8e0] sm:$0xff]  ;;  %v2992_v26 = vld [vmem:[#allocation14 + $0x888] sm:$0xff] }
 0x76a   :  { %13547 = vmatprep.subr.bf16.mxu0 %v14748_v27  ;;  %v3004_v27 = vld [vmem:[#allocation14 + $0x8e8] sm:$0xff]  ;;  %v14890_v35 = vcombine.high %v2991_v24, %v3003_v6  ;;  %v14889_v43 = vcombine.low %v2991_v24, %v3003_v6 }
 0x76b   :  { %v14892_v36 = vcombine.high %v2992_v26, %v3004_v27  ;;  %v14891_v44 = vcombine.low %v2992_v26, %v3004_v27 }
 0x76c   :  { %13384 = vmatpush1.bf16.msra.mxu1 %v14745_v28  ;;  %v3015_v28 = vld [vmem:[#allocation14 + $0x940] sm:$0xff] }
 0x76d   :  { %13548 = vmatpush1.bf16.msra.mxu0 %v14747_v7  ;;  %13385 = vmatprep.subr.bf16.mxu1 %v14770_v37  ;;  %v3027_v7 = vld [vmem:[#allocation14 + $0x9a0] sm:$0xff]  ;;  %v3016_v37 = vld [vmem:[#allocation14 + $0x948] sm:$0xff] }
 0x76e   :  { %13549 = vmatprep.subr.bf16.mxu0 %v14772_v40  ;;  %v3028_v40 = vld [vmem:[#allocation14 + $0x9a8] sm:$0xff]  ;;  %v14914_v47 = vcombine.high %v3015_v28, %v3027_v7  ;;  %v14913_v9 = vcombine.low %v3015_v28, %v3027_v7 }
 0x76f   :  { %v14916_v48 = vcombine.high %v3016_v37, %v3028_v40  ;;  %v14915_v60 = vcombine.low %v3016_v37, %v3028_v40  ;;  %v3148_v28 = vld [vmem:[#allocation14 + $0xd68] sm:$0xff]  ;;  %v3159_v40 = vld [vmem:[#allocation14 + $0xdc0] sm:$0xff] }
 0x770   :  { %13386 = vmatpush1.bf16.msra.mxu1 %v14769_v52  ;;  %v3039_v52 = vld [vmem:[#allocation14 + $0xa00] sm:$0xff] }
 0x771   :  { %13550 = vmatpush1.bf16.msra.mxu0 %v14771_v53  ;;  %13387 = vmatprep.subr.bf16.mxu1 %v14794_v57  ;;  %v3051_v53 = vld [vmem:[#allocation14 + $0xa60] sm:$0xff]  ;;  %v3040_v57 = vld [vmem:[#allocation14 + $0xa08] sm:$0xff] }
 0x772   :  { %13551 = vmatprep.subr.bf16.mxu0 %v14796_v13  ;;  %v3052_v13 = vld [vmem:[#allocation14 + $0xa68] sm:$0xff]  ;;  %v14938_v63 = vcombine.high %v3039_v52, %v3051_v53  ;;  %v14937_v10 = vcombine.low %v3039_v52, %v3051_v53 }
 0x773   :  { %v14940_v0 = vcombine.high %v3040_v57, %v3052_v13  ;;  %v14939_v8 = vcombine.low %v3040_v57, %v3052_v13 }
 0x774   :  { %13388 = vmatpush1.bf16.msra.mxu1 %v14793_v2  ;;  %v3063_v2 = vld [vmem:[#allocation14 + $0xac0] sm:$0xff] }
 0x775   :  { %13552 = vmatpush1.bf16.msra.mxu0 %v14795_v3  ;;  %13389 = vmatprep.subr.bf16.mxu1 %v14818_v4  ;;  %v3075_v3 = vld [vmem:[#allocation14 + $0xb20] sm:$0xff]  ;;  %v3064_v4 = vld [vmem:[#allocation14 + $0xac8] sm:$0xff] }
 0x776   :  { %13553 = vmatprep.subr.bf16.mxu0 %v14820_v5  ;;  %v3076_v5 = vld [vmem:[#allocation14 + $0xb28] sm:$0xff]  ;;  %v14962_v11 = vcombine.high %v3063_v2, %v3075_v3  ;;  %v14961_v18 = vcombine.low %v3063_v2, %v3075_v3 }
 0x777   :  { %v14964_v12 = vcombine.high %v3064_v4, %v3076_v5  ;;  %v14963_v50 = vcombine.low %v3064_v4, %v3076_v5 }
 0x778   :  { %13390 = vmatpush1.bf16.msra.mxu1 %v14817_v17  ;;  %v3087_v17 = vld [vmem:[#allocation14 + $0xb80] sm:$0xff] }
 0x779   :  { %13554 = vmatpush1.bf16.msra.mxu0 %v14819_v14  ;;  %13391 = vmatprep.subr.bf16.mxu1 %v14842_v15  ;;  %v3099_v14 = vld [vmem:[#allocation14 + $0xbe0] sm:$0xff]  ;;  %v3088_v15 = vld [vmem:[#allocation14 + $0xb88] sm:$0xff] }
 0x77a   :  { %13555 = vmatprep.subr.bf16.mxu0 %v14844_v16  ;;  %v3100_v16 = vld [vmem:[#allocation14 + $0xbe8] sm:$0xff]  ;;  %v14986_v34 = vcombine.high %v3087_v17, %v3099_v14  ;;  %v14985_v24 = vcombine.low %v3087_v17, %v3099_v14 }
 0x77b   :  { %v14988_v20 = vcombine.high %v3088_v15, %v3100_v16  ;;  %v14987_v6 = vcombine.low %v3088_v15, %v3100_v16 }
 0x77c   :  { %13392 = vmatpush1.bf16.msra.mxu1 %v14841_v21  ;;  %v3111_v21 = vld [vmem:[#allocation14 + $0xc40] sm:$0xff] }
 0x77d   :  { %13556 = vmatpush1.bf16.msra.mxu0 %v14843_v22  ;;  %13393 = vmatprep.subr.bf16.mxu1 %v14866_v23  ;;  %v3123_v22 = vld [vmem:[#allocation14 + $0xca0] sm:$0xff]  ;;  %v3112_v23 = vld [vmem:[#allocation14 + $0xc48] sm:$0xff] }
 0x77e   :  { %13557 = vmatprep.subr.bf16.mxu0 %v14868_v19  ;;  %v3124_v19 = vld [vmem:[#allocation14 + $0xca8] sm:$0xff]  ;;  %v15010_v26 = vcombine.high %v3111_v21, %v3123_v22 }
 0x77f   :  { %v15012_v27 = vcombine.high %v3112_v23, %v3124_v19  ;;  %v15011_v7 = vcombine.low %v3112_v23, %v3124_v19 }
 0x780   :  { %13394 = vmatpush1.bf16.msra.mxu1 %v14865_v56  ;;  %v3135_v56 = vld [vmem:[#allocation14 + $0xd00] sm:$0xff] }
 0x781   :  { %13558 = vmatpush1.bf16.msra.mxu0 %v14867_v32  ;;  %13395 = vmatprep.subr.bf16.mxu1 %v14890_v35  ;;  %v3147_v32 = vld [vmem:[#allocation14 + $0xd60] sm:$0xff]  ;;  %v15009_v35 = vcombine.low %v3111_v21, %v3123_v22 }
 0x782   :  { %13559 = vmatprep.subr.bf16.mxu0 %v14892_v36  ;;  %v3136_v36 = vld [vmem:[#allocation14 + $0xd08] sm:$0xff]  ;;  %v15034_v37 = vcombine.high %v3135_v56, %v3147_v32  ;;  %v15033_v52 = vcombine.low %v3135_v56, %v3147_v32 }
 0x783   :  { %v15035_v53 = vcombine.low %v3136_v36, %v3148_v28 }
 0x784   :  { %13396 = vmatpush1.bf16.msra.mxu1 %v14889_v43  ;;  %v3171_v43 = vld [vmem:[#allocation14 + $0xe20] sm:$0xff] }
 0x785   :  { %13560 = vmatpush1.bf16.msra.mxu0 %v14891_v44  ;;  %13397 = vmatprep.subr.bf16.mxu1 %v14914_v47  ;;  %v15036_v44 = vcombine.high %v3136_v36, %v3148_v28  ;;  %v3160_v47 = vld [vmem:[#allocation14 + $0xdc8] sm:$0xff]  ;;  %v15058_v57 = vcombine.high %v3159_v40, %v3171_v43  ;;  %v15057_v2 = vcombine.low %v3159_v40, %v3171_v43  ;;  %v3279_v28 = vld [vmem:[#allocation14 + $0x1180] sm:$0xff] }
 0x786   :  { %13561 = vmatprep.subr.bf16.mxu0 %v14916_v48  ;;  %v3172_v48 = vld [vmem:[#allocation14 + $0xe28] sm:$0xff] }
 0x787   :  { %v15060_v13 = vcombine.high %v3160_v47, %v3172_v48  ;;  %v15059_v3 = vcombine.low %v3160_v47, %v3172_v48  ;;  %v3292_v40 = vld [vmem:[#allocation14 + $0x11e8] sm:$0xff] }
 0x788   :  { %13398 = vmatpush1.bf16.msra.mxu1 %v14913_v9  ;;  %v3183_v9 = vld [vmem:[#allocation14 + $0xe80] sm:$0xff] }
 0x789   :  { %13562 = vmatpush1.bf16.msra.mxu0 %v14915_v60  ;;  %13399 = vmatprep.subr.bf16.mxu1 %v14938_v63  ;;  %v3195_v60 = vld [vmem:[#allocation14 + $0xee0] sm:$0xff]  ;;  %v3184_v63 = vld [vmem:[#allocation14 + $0xe88] sm:$0xff] }
 0x78a   :  { %13563 = vmatprep.subr.bf16.mxu0 %v14940_v0  ;;  %v3196_v0 = vld [vmem:[#allocation14 + $0xee8] sm:$0xff]  ;;  %v15082_v4 = vcombine.high %v3183_v9, %v3195_v60  ;;  %v15081_v17 = vcombine.low %v3183_v9, %v3195_v60 }
 0x78b   :  { %v15084_v5 = vcombine.high %v3184_v63, %v3196_v0  ;;  %v15083_v14 = vcombine.low %v3184_v63, %v3196_v0 }
 0x78c   :  { %13400 = vmatpush1.bf16.msra.mxu1 %v14937_v10  ;;  %v3207_v10 = vld [vmem:[#allocation14 + $0xf40] sm:$0xff] }
 0x78d   :  { %13564 = vmatpush1.bf16.msra.mxu0 %v14939_v8  ;;  %13401 = vmatprep.subr.bf16.mxu1 %v14962_v11  ;;  %v3219_v8 = vld [vmem:[#allocation14 + $0xfa0] sm:$0xff]  ;;  %v3208_v11 = vld [vmem:[#allocation14 + $0xf48] sm:$0xff] }
 0x78e   :  { %13565 = vmatprep.subr.bf16.mxu0 %v14964_v12  ;;  %v3220_v12 = vld [vmem:[#allocation14 + $0xfa8] sm:$0xff]  ;;  %v15106_v15 = vcombine.high %v3207_v10, %v3219_v8  ;;  %v15105_v21 = vcombine.low %v3207_v10, %v3219_v8 }
 0x78f   :  { %v15108_v16 = vcombine.high %v3208_v11, %v3220_v12  ;;  %v15107_v22 = vcombine.low %v3208_v11, %v3220_v12 }
 0x790   :  { %13402 = vmatpush1.bf16.msra.mxu1 %v14961_v18  ;;  %v3231_v18 = vld [vmem:[#allocation14 + $0x1000] sm:$0xff] }
 0x791   :  { %13566 = vmatpush1.bf16.msra.mxu0 %v14963_v50  ;;  %13403 = vmatprep.subr.bf16.mxu1 %v14986_v34  ;;  %v3243_v50 = vld [vmem:[#allocation14 + $0x1060] sm:$0xff]  ;;  %v3232_v34 = vld [vmem:[#allocation14 + $0x1008] sm:$0xff] }
 0x792   :  { %13567 = vmatprep.subr.bf16.mxu0 %v14988_v20  ;;  %v3244_v20 = vld [vmem:[#allocation14 + $0x1068] sm:$0xff]  ;;  %v15130_v23 = vcombine.high %v3231_v18, %v3243_v50  ;;  %v15129_v56 = vcombine.low %v3231_v18, %v3243_v50 }
 0x793   :  { %v15132_v19 = vcombine.high %v3232_v34, %v3244_v20  ;;  %v15131_v32 = vcombine.low %v3232_v34, %v3244_v20 }
 0x794   :  { %13404 = vmatpush1.bf16.msra.mxu1 %v14985_v24  ;;  %v3255_v24 = vld [vmem:[#allocation14 + $0x10c0] sm:$0xff] }
 0x795   :  { %13568 = vmatpush1.bf16.msra.mxu0 %v14987_v6  ;;  %13414 = vmatprep.subr.bf16.mxu1 %v15010_v26  ;;  %v3267_v6 = vld [vmem:[#allocation14 + $0x1120] sm:$0xff]  ;;  %v3256_v26 = vld [vmem:[#allocation14 + $0x10c8] sm:$0xff] }
 0x796   :  { %13578 = vmatprep.subr.bf16.mxu0 %v15012_v27  ;;  %v3268_v27 = vld [vmem:[#allocation14 + $0x1128] sm:$0xff]  ;;  %v15153_v43 = vcombine.low %v3255_v24, %v3267_v6 }
 0x797   :  { %13406 = vmatmul.mubr.bf16.vlgmr.msra.gmra.mrb[28].mxu1 %v17015_v33  ;;  %v15156_v36 = vcombine.high %v3256_v26, %v3268_v27 }
 0x798   :  { %13570 = vmatmul.mubr.bf16.vlgmr.msra.gmra.mrb[32].mxu0 %v17015_v33  ;;  %13415 = vmatpush1.bf16.msra.mxu1 %v15009_v35  ;;  %v15154_v35 = vcombine.high %v3255_v24, %v3267_v6 }
 0x799   :  { %13446 = vmatprep.mubr.bf16.mxu1 %v17019_v41  ;;  %13579 = vmatpush1.bf16.msra.mxu0 %v15011_v7  ;;  %v3291_v7 = vld [vmem:[#allocation14 + $0x11e0] sm:$0xff] }
 0x79a   :  { %13610 = vmatprep.mubr.bf16.mxu0 %v17019_v41  ;;  %13416 = vmatprep.subr.bf16.mxu1 %v15034_v37  ;;  %v3280_v37 = vld [vmem:[#allocation14 + $0x1188] sm:$0xff]  ;;  %v15178_v47 = vcombine.high %v3279_v28, %v3291_v7  ;;  %v15177_v9 = vcombine.low %v3279_v28, %v3291_v7 }
 0x79b   :  { %13580 = vmatprep.subr.bf16.mxu0 %v15036_v44  ;;  %v15155_v44 = vcombine.low %v3256_v26, %v3268_v27  ;;  %v15180_v48 = vcombine.high %v3280_v37, %v3292_v40  ;;  %v15179_v60 = vcombine.low %v3280_v37, %v3292_v40 }
 0x79c   :  { %13417 = vmatpush1.bf16.msra.mxu1 %v15033_v52  ;;  %v3303_v52 = vld [vmem:[#allocation14 + $0x1240] sm:$0xff] }
 0x79d   :  { %13581 = vmatpush1.bf16.msra.mxu0 %v15035_v53  ;;  %13418 = vmatprep.subr.bf16.mxu1 %v15058_v57  ;;  %v3315_v53 = vld [vmem:[#allocation14 + $0x12a0] sm:$0xff]  ;;  %v3304_v57 = vld [vmem:[#allocation14 + $0x1248] sm:$0xff] }
 0x79e   :  { %13582 = vmatprep.subr.bf16.mxu0 %v15060_v13  ;;  %v3316_v13 = vld [vmem:[#allocation14 + $0x12a8] sm:$0xff]  ;;  %v15202_v63 = vcombine.high %v3303_v52, %v3315_v53  ;;  %v15201_v10 = vcombine.low %v3303_v52, %v3315_v53 }
 0x79f   :  { %v15204_v0 = vcombine.high %v3304_v57, %v3316_v13  ;;  %v15203_v8 = vcombine.low %v3304_v57, %v3316_v13 }
 0x7a0   :  { %13419 = vmatpush1.bf16.msra.mxu1 %v15057_v2  ;;  %v3327_v2 = vld [vmem:[#allocation14 + $0x1300] sm:$0xff] }
 0x7a1   :  { %13583 = vmatpush1.bf16.msra.mxu0 %v15059_v3  ;;  %13420 = vmatprep.subr.bf16.mxu1 %v15082_v4  ;;  %v3339_v3 = vld [vmem:[#allocation14 + $0x1360] sm:$0xff]  ;;  %v3328_v4 = vld [vmem:[#allocation14 + $0x1308] sm:$0xff] }
 0x7a2   :  { %13584 = vmatprep.subr.bf16.mxu0 %v15084_v5  ;;  %v3340_v5 = vld [vmem:[#allocation14 + $0x1368] sm:$0xff]  ;;  %v15226_v11 = vcombine.high %v3327_v2, %v3339_v3  ;;  %v15225_v18 = vcombine.low %v3327_v2, %v3339_v3 }
 0x7a3   :  { %v15228_v12 = vcombine.high %v3328_v4, %v3340_v5  ;;  %v15227_v50 = vcombine.low %v3328_v4, %v3340_v5 }
 0x7a4   :  { %13421 = vmatpush1.bf16.msra.mxu1 %v15081_v17  ;;  %v3351_v17 = vld [vmem:[#allocation14 + $0x13c0] sm:$0xff] }
 0x7a5   :  { %13585 = vmatpush1.bf16.msra.mxu0 %v15083_v14  ;;  %13422 = vmatprep.subr.bf16.mxu1 %v15106_v15  ;;  %v3363_v14 = vld [vmem:[#allocation14 + $0x1420] sm:$0xff]  ;;  %v3352_v15 = vld [vmem:[#allocation14 + $0x13c8] sm:$0xff] }
 0x7a6   :  { %13586 = vmatprep.subr.bf16.mxu0 %v15108_v16  ;;  %v3364_v16 = vld [vmem:[#allocation14 + $0x1428] sm:$0xff]  ;;  %v15250_v34 = vcombine.high %v3351_v17, %v3363_v14  ;;  %v15249_v24 = vcombine.low %v3351_v17, %v3363_v14 }
 0x7a7   :  { %v15252_v20 = vcombine.high %v3352_v15, %v3364_v16  ;;  %v15251_v6 = vcombine.low %v3352_v15, %v3364_v16 }
 0x7a8   :  { %13423 = vmatpush1.bf16.msra.mxu1 %v15105_v21  ;;  %v3375_v21 = vld [vmem:[#allocation14 + $0x1480] sm:$0xff] }
 0x7a9   :  { %13587 = vmatpush1.bf16.msra.mxu0 %v15107_v22  ;;  %13424 = vmatprep.subr.bf16.mxu1 %v15130_v23  ;;  %v3387_v22 = vld [vmem:[#allocation14 + $0x14e0] sm:$0xff]  ;;  %v3376_v23 = vld [vmem:[#allocation14 + $0x1488] sm:$0xff] }
 0x7aa   :  { %13588 = vmatprep.subr.bf16.mxu0 %v15132_v19  ;;  %v3388_v19 = vld [vmem:[#allocation14 + $0x14e8] sm:$0xff]  ;;  %v15274_v26 = vcombine.high %v3375_v21, %v3387_v22  ;;  %v15273_v28 = vcombine.low %v3375_v21, %v3387_v22 }
 0x7ab   :  { %v15276_v27 = vcombine.high %v3376_v23, %v3388_v19  ;;  %v15275_v7 = vcombine.low %v3376_v23, %v3388_v19 }
 0x7ac   :  { %13425 = vmatpush1.bf16.msra.mxu1 %v15129_v56  ;;  %v3399_v56 = vld [vmem:[#allocation14 + $0x1540] sm:$0xff] }
 0x7ad   :  { %13589 = vmatpush1.bf16.msra.mxu0 %v15131_v32  ;;  %13426 = vmatprep.subr.bf16.mxu1 %v15154_v35  ;;  %v3411_v32 = vld [vmem:[#allocation14 + $0x15a0] sm:$0xff]  ;;  %v3400_v35 = vld [vmem:[#allocation14 + $0x1548] sm:$0xff] }
 0x7ae   :  { %13590 = vmatprep.subr.bf16.mxu0 %v15156_v36  ;;  %v3412_v36 = vld [vmem:[#allocation14 + $0x15a8] sm:$0xff]  ;;  %v15298_v37 = vcombine.high %v3399_v56, %v3411_v32  ;;  %v15297_v52 = vcombine.low %v3399_v56, %v3411_v32 }
 0x7af   :  { %v15300_v40 = vcombine.high %v3400_v35, %v3412_v36  ;;  %v15299_v53 = vcombine.low %v3400_v35, %v3412_v36  ;;  %v3532_v56 = vld [vmem:[#allocation14 + $0x1968] sm:$0xff]  ;;  %v3543_v36 = vld [vmem:[#allocation14 + $0x19c0] sm:$0xff] }
 0x7b0   :  { %13427 = vmatpush1.bf16.msra.mxu1 %v15153_v43  ;;  %v3423_v43 = vld [vmem:[#allocation14 + $0x1600] sm:$0xff] }
 0x7b1   :  { %13591 = vmatpush1.bf16.msra.mxu0 %v15155_v44  ;;  %13428 = vmatprep.subr.bf16.mxu1 %v15178_v47  ;;  %v3435_v44 = vld [vmem:[#allocation14 + $0x1660] sm:$0xff]  ;;  %v3424_v47 = vld [vmem:[#allocation14 + $0x1608] sm:$0xff] }
 0x7b2   :  { %13592 = vmatprep.subr.bf16.mxu0 %v15180_v48  ;;  %v3436_v48 = vld [vmem:[#allocation14 + $0x1668] sm:$0xff]  ;;  %v15322_v57 = vcombine.high %v3423_v43, %v3435_v44  ;;  %v15321_v2 = vcombine.low %v3423_v43, %v3435_v44 }
 0x7b3   :  { %v15324_v13 = vcombine.high %v3424_v47, %v3436_v48  ;;  %v15323_v3 = vcombine.low %v3424_v47, %v3436_v48 }
 0x7b4   :  { %13429 = vmatpush1.bf16.msra.mxu1 %v15177_v9  ;;  %v3447_v9 = vld [vmem:[#allocation14 + $0x16c0] sm:$0xff] }
 0x7b5   :  { %13593 = vmatpush1.bf16.msra.mxu0 %v15179_v60  ;;  %13430 = vmatprep.subr.bf16.mxu1 %v15202_v63  ;;  %v3459_v60 = vld [vmem:[#allocation14 + $0x1720] sm:$0xff]  ;;  %v3448_v63 = vld [vmem:[#allocation14 + $0x16c8] sm:$0xff] }
 0x7b6   :  { %13594 = vmatprep.subr.bf16.mxu0 %v15204_v0  ;;  %v3460_v0 = vld [vmem:[#allocation14 + $0x1728] sm:$0xff]  ;;  %v15346_v4 = vcombine.high %v3447_v9, %v3459_v60  ;;  %v15345_v17 = vcombine.low %v3447_v9, %v3459_v60 }
 0x7b7   :  { %v15348_v5 = vcombine.high %v3448_v63, %v3460_v0  ;;  %v15347_v14 = vcombine.low %v3448_v63, %v3460_v0 }
 0x7b8   :  { %13431 = vmatpush1.bf16.msra.mxu1 %v15201_v10  ;;  %v3471_v10 = vld [vmem:[#allocation14 + $0x1780] sm:$0xff] }
 0x7b9   :  { %13595 = vmatpush1.bf16.msra.mxu0 %v15203_v8  ;;  %13432 = vmatprep.subr.bf16.mxu1 %v15226_v11  ;;  %v3483_v8 = vld [vmem:[#allocation14 + $0x17e0] sm:$0xff]  ;;  %v3472_v11 = vld [vmem:[#allocation14 + $0x1788] sm:$0xff] }
 0x7ba   :  { %13596 = vmatprep.subr.bf16.mxu0 %v15228_v12  ;;  %v3484_v12 = vld [vmem:[#allocation14 + $0x17e8] sm:$0xff]  ;;  %v15370_v15 = vcombine.high %v3471_v10, %v3483_v8  ;;  %v15369_v21 = vcombine.low %v3471_v10, %v3483_v8 }
 0x7bb   :  { %v15372_v16 = vcombine.high %v3472_v11, %v3484_v12  ;;  %v15371_v22 = vcombine.low %v3472_v11, %v3484_v12 }
 0x7bc   :  { %13433 = vmatpush1.bf16.msra.mxu1 %v15225_v18  ;;  %v3495_v18 = vld [vmem:[#allocation14 + $0x1840] sm:$0xff] }
 0x7bd   :  { %13597 = vmatpush1.bf16.msra.mxu0 %v15227_v50  ;;  %13434 = vmatprep.subr.bf16.mxu1 %v15250_v34  ;;  %v3507_v50 = vld [vmem:[#allocation14 + $0x18a0] sm:$0xff]  ;;  %v3496_v34 = vld [vmem:[#allocation14 + $0x1848] sm:$0xff] }
 0x7be   :  { %13598 = vmatprep.subr.bf16.mxu0 %v15252_v20  ;;  %v3508_v20 = vld [vmem:[#allocation14 + $0x18a8] sm:$0xff]  ;;  %v15394_v23 = vcombine.high %v3495_v18, %v3507_v50 }
 0x7bf   :  { %v15396_v19 = vcombine.high %v3496_v34, %v3508_v20  ;;  %v15395_v32 = vcombine.low %v3496_v34, %v3508_v20 }
 0x7c0   :  { %13435 = vmatpush1.bf16.msra.mxu1 %v15249_v24  ;;  %v3519_v24 = vld [vmem:[#allocation14 + $0x1900] sm:$0xff] }
 0x7c1   :  { %13599 = vmatpush1.bf16.msra.mxu0 %v15251_v6  ;;  %13436 = vmatprep.subr.bf16.mxu1 %v15274_v26  ;;  %v3531_v6 = vld [vmem:[#allocation14 + $0x1960] sm:$0xff]  ;;  %v15393_v26 = vcombine.low %v3495_v18, %v3507_v50 }
 0x7c2   :  { %13600 = vmatprep.subr.bf16.mxu0 %v15276_v27  ;;  %v3520_v27 = vld [vmem:[#allocation14 + $0x1908] sm:$0xff]  ;;  %v15418_v35 = vcombine.high %v3519_v24, %v3531_v6  ;;  %v15417_v43 = vcombine.low %v3519_v24, %v3531_v6 }
 0x7c3   :  { %v15419_v44 = vcombine.low %v3520_v27, %v3532_v56 }
 0x7c4   :  { %13437 = vmatpush1.bf16.msra.mxu1 %v15273_v28  ;;  %v3555_v28 = vld [vmem:[#allocation14 + $0x1a20] sm:$0xff] }
 0x7c5   :  { %13601 = vmatpush1.bf16.msra.mxu0 %v15275_v7  ;;  %13438 = vmatprep.subr.bf16.mxu1 %v15298_v37  ;;  %v15420_v7 = vcombine.high %v3520_v27, %v3532_v56  ;;  %v3544_v37 = vld [vmem:[#allocation14 + $0x19c8] sm:$0xff]  ;;  %v15442_v47 = vcombine.high %v3543_v36, %v3555_v28  ;;  %v15441_v9 = vcombine.low %v3543_v36, %v3555_v28  ;;  %v3663_v56 = vld [vmem:[#allocation14 + $0x1d80] sm:$0xff] }
 0x7c6   :  { %13602 = vmatprep.subr.bf16.mxu0 %v15300_v40  ;;  %v3556_v40 = vld [vmem:[#allocation14 + $0x1a28] sm:$0xff] }
 0x7c7   :  { %v15444_v48 = vcombine.high %v3544_v37, %v3556_v40  ;;  %v15443_v60 = vcombine.low %v3544_v37, %v3556_v40  ;;  %v3676_v36 = vld [vmem:[#allocation14 + $0x1de8] sm:$0xff] }
 0x7c8   :  { %13439 = vmatpush1.bf16.msra.mxu1 %v15297_v52  ;;  %v3567_v52 = vld [vmem:[#allocation14 + $0x1a80] sm:$0xff] }
 0x7c9   :  { %13603 = vmatpush1.bf16.msra.mxu0 %v15299_v53  ;;  %13440 = vmatprep.subr.bf16.mxu1 %v15322_v57  ;;  %v3579_v53 = vld [vmem:[#allocation14 + $0x1ae0] sm:$0xff]  ;;  %v3568_v57 = vld [vmem:[#allocation14 + $0x1a88] sm:$0xff] }
 0x7ca   :  { %13604 = vmatprep.subr.bf16.mxu0 %v15324_v13  ;;  %v3580_v13 = vld [vmem:[#allocation14 + $0x1ae8] sm:$0xff]  ;;  %v15466_v63 = vcombine.high %v3567_v52, %v3579_v53  ;;  %v15465_v10 = vcombine.low %v3567_v52, %v3579_v53 }
 0x7cb   :  { %v15468_v0 = vcombine.high %v3568_v57, %v3580_v13  ;;  %v15467_v8 = vcombine.low %v3568_v57, %v3580_v13 }
 0x7cc   :  { %13441 = vmatpush1.bf16.msra.mxu1 %v15321_v2  ;;  %v3591_v2 = vld [vmem:[#allocation14 + $0x1b40] sm:$0xff] }
 0x7cd   :  { %13605 = vmatpush1.bf16.msra.mxu0 %v15323_v3  ;;  %13442 = vmatprep.subr.bf16.mxu1 %v15346_v4  ;;  %v3603_v3 = vld [vmem:[#allocation14 + $0x1ba0] sm:$0xff]  ;;  %v3592_v4 = vld [vmem:[#allocation14 + $0x1b48] sm:$0xff] }
 0x7ce   :  { %13606 = vmatprep.subr.bf16.mxu0 %v15348_v5  ;;  %v3604_v5 = vld [vmem:[#allocation14 + $0x1ba8] sm:$0xff]  ;;  %v15490_v11 = vcombine.high %v3591_v2, %v3603_v3  ;;  %v15489_v18 = vcombine.low %v3591_v2, %v3603_v3 }
 0x7cf   :  { %v15492_v12 = vcombine.high %v3592_v4, %v3604_v5  ;;  %v15491_v50 = vcombine.low %v3592_v4, %v3604_v5 }
 0x7d0   :  { %13443 = vmatpush1.bf16.msra.mxu1 %v15345_v17  ;;  %v3615_v17 = vld [vmem:[#allocation14 + $0x1c00] sm:$0xff] }
 0x7d1   :  { %13607 = vmatpush1.bf16.msra.mxu0 %v15347_v14  ;;  %13444 = vmatprep.subr.bf16.mxu1 %v15370_v15  ;;  %v3627_v14 = vld [vmem:[#allocation14 + $0x1c60] sm:$0xff]  ;;  %v3616_v15 = vld [vmem:[#allocation14 + $0x1c08] sm:$0xff] }
 0x7d2   :  { %13608 = vmatprep.subr.bf16.mxu0 %v15372_v16  ;;  %v3628_v16 = vld [vmem:[#allocation14 + $0x1c68] sm:$0xff]  ;;  %v15514_v34 = vcombine.high %v3615_v17, %v3627_v14  ;;  %v15513_v24 = vcombine.low %v3615_v17, %v3627_v14 }
 0x7d3   :  { %v15516_v20 = vcombine.high %v3616_v15, %v3628_v16  ;;  %v15515_v6 = vcombine.low %v3616_v15, %v3628_v16 }
 0x7d4   :  { %13445 = vmatpush1.bf16.msra.mxu1 %v15369_v21  ;;  %v3639_v21 = vld [vmem:[#allocation14 + $0x1cc0] sm:$0xff] }
 0x7d5   :  { %13609 = vmatpush1.bf16.msra.mxu0 %v15371_v22  ;;  %13455 = vmatprep.subr.bf16.mxu1 %v15394_v23  ;;  %v3651_v22 = vld [vmem:[#allocation14 + $0x1d20] sm:$0xff]  ;;  %v3640_v23 = vld [vmem:[#allocation14 + $0x1cc8] sm:$0xff] }
 0x7d6   :  { %13619 = vmatprep.subr.bf16.mxu0 %v15396_v19  ;;  %v3652_v19 = vld [vmem:[#allocation14 + $0x1d28] sm:$0xff]  ;;  %v15537_v28 = vcombine.low %v3639_v21, %v3651_v22 }
 0x7d7   :  { %13447 = vmatmul.mubr.bf16.vlgmr.msra.gmra.mrb[28].mxu1 %v17028_v61  ;;  %v15540_v27 = vcombine.high %v3640_v23, %v3652_v19 }
 0x7d8   :  { %13611 = vmatmul.mubr.bf16.vlgmr.msra.gmra.mrb[32].mxu0 %v17028_v61  ;;  %13456 = vmatpush1.bf16.msra.mxu1 %v15393_v26  ;;  %v15538_v26 = vcombine.high %v3639_v21, %v3651_v22 }
 0x7d9   :  { %13487 = vmatprep.mubr.bf16.mxu1 %v17049_v42  ;;  %13620 = vmatpush1.bf16.msra.mxu0 %v15395_v32  ;;  %v3675_v32 = vld [vmem:[#allocation14 + $0x1de0] sm:$0xff] }
 0x7da   :  { %13651 = vmatprep.mubr.bf16.mxu0 %v17049_v42  ;;  %13457 = vmatprep.subr.bf16.mxu1 %v15418_v35  ;;  %v3664_v35 = vld [vmem:[#allocation14 + $0x1d88] sm:$0xff]  ;;  %v15562_v37 = vcombine.high %v3663_v56, %v3675_v32  ;;  %v15561_v52 = vcombine.low %v3663_v56, %v3675_v32 }
 0x7db   :  { %13621 = vmatprep.subr.bf16.mxu0 %v15420_v7  ;;  %v15539_v7 = vcombine.low %v3640_v23, %v3652_v19  ;;  %v15564_v40 = vcombine.high %v3664_v35, %v3676_v36  ;;  %v15563_v53 = vcombine.low %v3664_v35, %v3676_v36 }
 0x7dc   :  { %13458 = vmatpush1.bf16.msra.mxu1 %v15417_v43  ;;  %v3687_v43 = vld [vmem:[#allocation14 + $0x1e40] sm:$0xff] }
 0x7dd   :  { %13622 = vmatpush1.bf16.msra.mxu0 %v15419_v44  ;;  %13459 = vmatprep.subr.bf16.mxu1 %v15442_v47  ;;  %v3699_v44 = vld [vmem:[#allocation14 + $0x1ea0] sm:$0xff]  ;;  %v3688_v47 = vld [vmem:[#allocation14 + $0x1e48] sm:$0xff] }
 0x7de   :  { %13623 = vmatprep.subr.bf16.mxu0 %v15444_v48  ;;  %v3700_v48 = vld [vmem:[#allocation14 + $0x1ea8] sm:$0xff]  ;;  %v15586_v57 = vcombine.high %v3687_v43, %v3699_v44  ;;  %v15585_v2 = vcombine.low %v3687_v43, %v3699_v44 }
 0x7df   :  { %v15588_v13 = vcombine.high %v3688_v47, %v3700_v48  ;;  %v15587_v3 = vcombine.low %v3688_v47, %v3700_v48 }
 0x7e0   :  { %13460 = vmatpush1.bf16.msra.mxu1 %v15441_v9  ;;  %v3711_v9 = vld [vmem:[#allocation14 + $0x1f00] sm:$0xff] }
 0x7e1   :  { %13624 = vmatpush1.bf16.msra.mxu0 %v15443_v60  ;;  %13461 = vmatprep.subr.bf16.mxu1 %v15466_v63  ;;  %v3723_v60 = vld [vmem:[#allocation14 + $0x1f60] sm:$0xff]  ;;  %v3712_v63 = vld [vmem:[#allocation14 + $0x1f08] sm:$0xff] }
 0x7e2   :  { %13625 = vmatprep.subr.bf16.mxu0 %v15468_v0  ;;  %v3724_v0 = vld [vmem:[#allocation14 + $0x1f68] sm:$0xff]  ;;  %v15610_v4 = vcombine.high %v3711_v9, %v3723_v60  ;;  %v15609_v17 = vcombine.low %v3711_v9, %v3723_v60 }
 0x7e3   :  { %v15612_v5 = vcombine.high %v3712_v63, %v3724_v0  ;;  %v15611_v14 = vcombine.low %v3712_v63, %v3724_v0 }
 0x7e4   :  { %13462 = vmatpush1.bf16.msra.mxu1 %v15465_v10  ;;  %v3735_v10 = vld [vmem:[#allocation14 + $0x1fc0] sm:$0xff] }
 0x7e5   :  { %13626 = vmatpush1.bf16.msra.mxu0 %v15467_v8  ;;  %13463 = vmatprep.subr.bf16.mxu1 %v15490_v11  ;;  %v3747_v8 = vld [vmem:[#allocation14 + $0x2020] sm:$0xff]  ;;  %v3736_v11 = vld [vmem:[#allocation14 + $0x1fc8] sm:$0xff] }
 0x7e6   :  { %13627 = vmatprep.subr.bf16.mxu0 %v15492_v12  ;;  %v3748_v12 = vld [vmem:[#allocation14 + $0x2028] sm:$0xff]  ;;  %v15634_v15 = vcombine.high %v3735_v10, %v3747_v8  ;;  %v15633_v21 = vcombine.low %v3735_v10, %v3747_v8 }
 0x7e7   :  { %v15636_v16 = vcombine.high %v3736_v11, %v3748_v12  ;;  %v15635_v22 = vcombine.low %v3736_v11, %v3748_v12 }
 0x7e8   :  { %13464 = vmatpush1.bf16.msra.mxu1 %v15489_v18  ;;  %v3759_v18 = vld [vmem:[#allocation14 + $0x2080] sm:$0xff] }
 0x7e9   :  { %13628 = vmatpush1.bf16.msra.mxu0 %v15491_v50  ;;  %13465 = vmatprep.subr.bf16.mxu1 %v15514_v34  ;;  %v3771_v50 = vld [vmem:[#allocation14 + $0x20e0] sm:$0xff]  ;;  %v3760_v34 = vld [vmem:[#allocation14 + $0x2088] sm:$0xff] }
 0x7ea   :  { %13629 = vmatprep.subr.bf16.mxu0 %v15516_v20  ;;  %v3772_v20 = vld [vmem:[#allocation14 + $0x20e8] sm:$0xff]  ;;  %v15658_v23 = vcombine.high %v3759_v18, %v3771_v50  ;;  %v15657_v56 = vcombine.low %v3759_v18, %v3771_v50 }
 0x7eb   :  { %v15660_v19 = vcombine.high %v3760_v34, %v3772_v20  ;;  %v15659_v32 = vcombine.low %v3760_v34, %v3772_v20 }
 0x7ec   :  { %13466 = vmatpush1.bf16.msra.mxu1 %v15513_v24  ;;  %v3783_v24 = vld [vmem:[#allocation14 + $0x2140] sm:$0xff] }
 0x7ed   :  { %13630 = vmatpush1.bf16.msra.mxu0 %v15515_v6  ;;  %13467 = vmatprep.subr.bf16.mxu1 %v15538_v26  ;;  %v3795_v6 = vld [vmem:[#allocation14 + $0x21a0] sm:$0xff]  ;;  %v3784_v26 = vld [vmem:[#allocation14 + $0x2148] sm:$0xff] }
 0x7ee   :  { %13631 = vmatprep.subr.bf16.mxu0 %v15540_v27  ;;  %v3796_v27 = vld [vmem:[#allocation14 + $0x21a8] sm:$0xff]  ;;  %v15682_v35 = vcombine.high %v3783_v24, %v3795_v6  ;;  %v15681_v43 = vcombine.low %v3783_v24, %v3795_v6 }
 0x7ef   :  { %v15684_v36 = vcombine.high %v3784_v26, %v3796_v27  ;;  %v15683_v44 = vcombine.low %v3784_v26, %v3796_v27  ;;  %v3916_v24 = vld [vmem:[#allocation14 + $0x2568] sm:$0xff]  ;;  %v3927_v27 = vld [vmem:[#allocation14 + $0x25c0] sm:$0xff] }
 0x7f0   :  { %13468 = vmatpush1.bf16.msra.mxu1 %v15537_v28  ;;  %v3807_v28 = vld [vmem:[#allocation14 + $0x2200] sm:$0xff] }
 0x7f1   :  { %13632 = vmatpush1.bf16.msra.mxu0 %v15539_v7  ;;  %13469 = vmatprep.subr.bf16.mxu1 %v15562_v37  ;;  %v3819_v7 = vld [vmem:[#allocation14 + $0x2260] sm:$0xff]  ;;  %v3808_v37 = vld [vmem:[#allocation14 + $0x2208] sm:$0xff] }
 0x7f2   :  { %13633 = vmatprep.subr.bf16.mxu0 %v15564_v40  ;;  %v3820_v40 = vld [vmem:[#allocation14 + $0x2268] sm:$0xff]  ;;  %v15706_v47 = vcombine.high %v3807_v28, %v3819_v7  ;;  %v15705_v9 = vcombine.low %v3807_v28, %v3819_v7 }
 0x7f3   :  { %v15708_v48 = vcombine.high %v3808_v37, %v3820_v40  ;;  %v15707_v60 = vcombine.low %v3808_v37, %v3820_v40 }
 0x7f4   :  { %13470 = vmatpush1.bf16.msra.mxu1 %v15561_v52  ;;  %v3831_v52 = vld [vmem:[#allocation14 + $0x22c0] sm:$0xff] }
 0x7f5   :  { %13634 = vmatpush1.bf16.msra.mxu0 %v15563_v53  ;;  %13471 = vmatprep.subr.bf16.mxu1 %v15586_v57  ;;  %v3843_v53 = vld [vmem:[#allocation14 + $0x2320] sm:$0xff]  ;;  %v3832_v57 = vld [vmem:[#allocation14 + $0x22c8] sm:$0xff] }
 0x7f6   :  { %13635 = vmatprep.subr.bf16.mxu0 %v15588_v13  ;;  %v3844_v13 = vld [vmem:[#allocation14 + $0x2328] sm:$0xff]  ;;  %v15730_v63 = vcombine.high %v3831_v52, %v3843_v53  ;;  %v15729_v10 = vcombine.low %v3831_v52, %v3843_v53 }
 0x7f7   :  { %v15732_v0 = vcombine.high %v3832_v57, %v3844_v13  ;;  %v15731_v8 = vcombine.low %v3832_v57, %v3844_v13 }
 0x7f8   :  { %13472 = vmatpush1.bf16.msra.mxu1 %v15585_v2  ;;  %v3855_v2 = vld [vmem:[#allocation14 + $0x2380] sm:$0xff] }
 0x7f9   :  { %13636 = vmatpush1.bf16.msra.mxu0 %v15587_v3  ;;  %13473 = vmatprep.subr.bf16.mxu1 %v15610_v4  ;;  %v3867_v3 = vld [vmem:[#allocation14 + $0x23e0] sm:$0xff]  ;;  %v3856_v4 = vld [vmem:[#allocation14 + $0x2388] sm:$0xff] }
 0x7fa   :  { %13637 = vmatprep.subr.bf16.mxu0 %v15612_v5  ;;  %v3868_v5 = vld [vmem:[#allocation14 + $0x23e8] sm:$0xff]  ;;  %v15754_v11 = vcombine.high %v3855_v2, %v3867_v3  ;;  %v15753_v18 = vcombine.low %v3855_v2, %v3867_v3 }
 0x7fb   :  { %v15756_v12 = vcombine.high %v3856_v4, %v3868_v5  ;;  %v15755_v50 = vcombine.low %v3856_v4, %v3868_v5 }
 0x7fc   :  { %13474 = vmatpush1.bf16.msra.mxu1 %v15609_v17  ;;  %v3879_v17 = vld [vmem:[#allocation14 + $0x2440] sm:$0xff] }
 0x7fd   :  { %13638 = vmatpush1.bf16.msra.mxu0 %v15611_v14  ;;  %13475 = vmatprep.subr.bf16.mxu1 %v15634_v15  ;;  %v3891_v14 = vld [vmem:[#allocation14 + $0x24a0] sm:$0xff]  ;;  %v3880_v15 = vld [vmem:[#allocation14 + $0x2448] sm:$0xff] }
 0x7fe   :  { %13639 = vmatprep.subr.bf16.mxu0 %v15636_v16  ;;  %v3892_v16 = vld [vmem:[#allocation14 + $0x24a8] sm:$0xff]  ;;  %v15778_v34 = vcombine.high %v3879_v17, %v3891_v14 }
 0x7ff   :  { %v15780_v20 = vcombine.high %v3880_v15, %v3892_v16  ;;  %v15779_v6 = vcombine.low %v3880_v15, %v3892_v16 }
 0x800   :  { %13476 = vmatpush1.bf16.msra.mxu1 %v15633_v21  ;;  %v3903_v21 = vld [vmem:[#allocation14 + $0x2500] sm:$0xff] }
 0x801   :  { %13640 = vmatpush1.bf16.msra.mxu0 %v15635_v22  ;;  %13477 = vmatprep.subr.bf16.mxu1 %v15658_v23  ;;  %v3915_v22 = vld [vmem:[#allocation14 + $0x2560] sm:$0xff]  ;;  %v15777_v23 = vcombine.low %v3879_v17, %v3891_v14 }
 0x802   :  { %13641 = vmatprep.subr.bf16.mxu0 %v15660_v19  ;;  %v3904_v19 = vld [vmem:[#allocation14 + $0x2508] sm:$0xff]  ;;  %v15802_v26 = vcombine.high %v3903_v21, %v3915_v22  ;;  %v15801_v28 = vcombine.low %v3903_v21, %v3915_v22 }
 0x803   :  { %v15803_v7 = vcombine.low %v3904_v19, %v3916_v24  ;;  %v4024_v21 = vld [vmem:[#allocation14 + $0x28c8] sm:$0xff] }
 0x804   :  { %13478 = vmatpush1.bf16.msra.mxu1 %v15657_v56  ;;  %v3939_v56 = vld [vmem:[#allocation14 + $0x2620] sm:$0xff]  ;;  %v4036_v22 = vld [vmem:[#allocation14 + $0x2928] sm:$0xff] }
 0x805   :  { %13642 = vmatpush1.bf16.msra.mxu0 %v15659_v32  ;;  %13479 = vmatprep.subr.bf16.mxu1 %v15682_v35  ;;  %v15804_v32 = vcombine.high %v3904_v19, %v3916_v24  ;;  %v3928_v35 = vld [vmem:[#allocation14 + $0x25c8] sm:$0xff]  ;;  %v15826_v37 = vcombine.high %v3927_v27, %v3939_v56  ;;  %v15825_v52 = vcombine.low %v3927_v27, %v3939_v56 }
 0x806   :  { %13643 = vmatprep.subr.bf16.mxu0 %v15684_v36  ;;  %v3940_v36 = vld [vmem:[#allocation14 + $0x2628] sm:$0xff] }
 0x807   :  { %v15828_v40 = vcombine.high %v3928_v35, %v3940_v36  ;;  %v15827_v53 = vcombine.low %v3928_v35, %v3940_v36  ;;  %v4047_v35 = vld [vmem:[#allocation14 + $0x2980] sm:$0xff] }
 0x808   :  { %13480 = vmatpush1.bf16.msra.mxu1 %v15681_v43  ;;  %v3951_v43 = vld [vmem:[#allocation14 + $0x2680] sm:$0xff] }
 0x809   :  { %13644 = vmatpush1.bf16.msra.mxu0 %v15683_v44  ;;  %13481 = vmatprep.subr.bf16.mxu1 %v15706_v47  ;;  %v3963_v44 = vld [vmem:[#allocation14 + $0x26e0] sm:$0xff]  ;;  %v3952_v47 = vld [vmem:[#allocation14 + $0x2688] sm:$0xff] }
 0x80a   :  { %13645 = vmatprep.subr.bf16.mxu0 %v15708_v48  ;;  %v3964_v48 = vld [vmem:[#allocation14 + $0x26e8] sm:$0xff]  ;;  %v15850_v57 = vcombine.high %v3951_v43, %v3963_v44  ;;  %v15849_v2 = vcombine.low %v3951_v43, %v3963_v44  ;;  %v4059_v36 = vld [vmem:[#allocation14 + $0x29e0] sm:$0xff] }
 0x80b   :  { %v15852_v13 = vcombine.high %v3952_v47, %v3964_v48  ;;  %v15851_v3 = vcombine.low %v3952_v47, %v3964_v48  ;;  %v4060_v43 = vld [vmem:[#allocation14 + $0x29e8] sm:$0xff] }
 0x80c   :  { %13482 = vmatpush1.bf16.msra.mxu1 %v15705_v9  ;;  %v3975_v9 = vld [vmem:[#allocation14 + $0x2740] sm:$0xff] }
 0x80d   :  { %13646 = vmatpush1.bf16.msra.mxu0 %v15707_v60  ;;  %13483 = vmatprep.subr.bf16.mxu1 %v15730_v63  ;;  %v3987_v60 = vld [vmem:[#allocation14 + $0x27a0] sm:$0xff]  ;;  %v3976_v63 = vld [vmem:[#allocation14 + $0x2748] sm:$0xff] }
 0x80e   :  { %13647 = vmatprep.subr.bf16.mxu0 %v15732_v0  ;;  %v3988_v0 = vld [vmem:[#allocation14 + $0x27a8] sm:$0xff]  ;;  %v15874_v4 = vcombine.high %v3975_v9, %v3987_v60  ;;  %v15873_v17 = vcombine.low %v3975_v9, %v3987_v60  ;;  %v15923_v60 = vcombine.low %v4024_v21, %v4036_v22 }
 0x80f   :  { %v15876_v5 = vcombine.high %v3976_v63, %v3988_v0  ;;  %v15875_v14 = vcombine.low %v3976_v63, %v3988_v0  ;;  %v15946_v63 = vcombine.high %v4047_v35, %v4059_v36 }
 0x810   :  { %13484 = vmatpush1.bf16.msra.mxu1 %v15729_v10  ;;  %v3999_v10 = vld [vmem:[#allocation14 + $0x2800] sm:$0xff] }
 0x811   :  { %13648 = vmatpush1.bf16.msra.mxu0 %v15731_v8  ;;  %13485 = vmatprep.subr.bf16.mxu1 %v15754_v11  ;;  %v4011_v8 = vld [vmem:[#allocation14 + $0x2860] sm:$0xff]  ;;  %v4000_v11 = vld [vmem:[#allocation14 + $0x2808] sm:$0xff] }
 0x812   :  { %13649 = vmatprep.subr.bf16.mxu0 %v15756_v12  ;;  %v4012_v12 = vld [vmem:[#allocation14 + $0x2868] sm:$0xff]  ;;  %v15898_v15 = vcombine.high %v3999_v10, %v4011_v8  ;;  %v15897_v24 = vcombine.low %v3999_v10, %v4011_v8  ;;  %v15945_v8 = vcombine.low %v4047_v35, %v4059_v36 }
 0x813   :  { %v15900_v16 = vcombine.high %v4000_v11, %v4012_v12  ;;  %v4084_v10 = vld [vmem:[#allocation14 + $0x2aa8] sm:$0xff] }
 0x814   :  { %13486 = vmatpush1.bf16.msra.mxu1 %v15753_v18  ;;  %v4023_v18 = vld [vmem:[#allocation14 + $0x28c0] sm:$0xff] }
 0x815   :  { %13650 = vmatpush1.bf16.msra.mxu0 %v15755_v50  ;;  %13496 = vmatprep.subr.bf16.mxu1 %v15778_v34  ;;  %v4035_v50 = vld [vmem:[#allocation14 + $0x2920] sm:$0xff]  ;;  %v16539_v34 = vld [vmem:[#allocation16 + $0x8] sm:$0xff] }
 0x816   :  { %13660 = vmatprep.subr.bf16.mxu0 %v15780_v20  ;;  %v4312_v20 = vrot.slane %v16539_v34, %v17033_v55  ;;  %v4316_v19 = vrot.slane %v16539_v34, %v17036_v58  ;;  %v15922_v27 = vcombine.high %v4023_v18, %v4035_v50 }
 0x817   :  { %13488 = vmatmul.mubr.bf16.vlgmr.msra.gmra.mrb[28].mxu1 %v17051_v45 }
 0x818   :  { %13652 = vmatmul.mubr.bf16.vlgmr.msra.gmra.mrb[32].mxu0 %v17051_v45  ;;  %13497 = vmatpush1.bf16.msra.mxu1 %v15777_v23  ;;  %v4320_v23 = vrot.slane %v16539_v34, %v17062_v46 }
 0x819   :  { %13528 = vmatprep.mubr.bf16.mxu1 %v17055_v54  ;;  %13661 = vmatpush1.bf16.msra.mxu0 %v15779_v6  ;;  %v4324_v6 = vrot.slane %v16539_v34, %v17039_v62 }
 0x81a   :  { %13692 = vmatprep.mubr.bf16.mxu0 %v17055_v54  ;;  %13498 = vmatprep.subr.bf16.mxu1 %v15802_v26  ;;  %v15899_v26 = vcombine.low %v4000_v11, %v4012_v12 }
 0x81b   :  { %13662 = vmatprep.subr.bf16.mxu0 %v15804_v32  ;;  %v15924_v32 = vcombine.high %v4024_v21, %v4036_v22  ;;  %v4119_v22 = vld [vmem:[#allocation14 + $0x2bc0] sm:$0xff] }
 0x81c   :  { %13499 = vmatpush1.bf16.msra.mxu1 %v15801_v28 }
 0x81d   :  { %13663 = vmatpush1.bf16.msra.mxu0 %v15803_v7  ;;  %13500 = vmatprep.subr.bf16.mxu1 %v15826_v37 }
 0x81e   :  { %13664 = vmatprep.subr.bf16.mxu0 %v15828_v40  ;;  %v4048_v40 = vld [vmem:[#allocation14 + $0x2988] sm:$0xff] }
 0x81f   :  { %v15947_v11 = vcombine.low %v4048_v40, %v4060_v43 }
 0x820   :  { %13501 = vmatpush1.bf16.msra.mxu1 %v15825_v52 }
 0x821   :  { %13665 = vmatpush1.bf16.msra.mxu0 %v15827_v53  ;;  %13502 = vmatprep.subr.bf16.mxu1 %v15850_v57  ;;  %v15921_v53 = vcombine.low %v4023_v18, %v4035_v50  ;;  %v4108_v18 = vld [vmem:[#allocation14 + $0x2b68] sm:$0xff] }
 0x822   :  { %13666 = vmatprep.subr.bf16.mxu0 %v15852_v13 }
 0x824   :  { %13503 = vmatpush1.bf16.msra.mxu1 %v15849_v2  ;;  %v15948_v2 = vcombine.high %v4048_v40, %v4060_v43  ;;  %v4155_v40 = vld [vmem:[#allocation14 + $0x2ce0] sm:$0xff] }
 0x825   :  { %13667 = vmatpush1.bf16.msra.mxu0 %v15851_v3  ;;  %13504 = vmatprep.subr.bf16.mxu1 %v15874_v4  ;;  %v4071_v3 = vld [vmem:[#allocation14 + $0x2a40] sm:$0xff] }
 0x826   :  { %13668 = vmatprep.subr.bf16.mxu0 %v15876_v5  ;;  %v4083_v4 = vld [vmem:[#allocation14 + $0x2aa0] sm:$0xff]  ;;  %v4072_v5 = vld [vmem:[#allocation14 + $0x2a48] sm:$0xff] }
 0x827   :  { %v15970_v12 = vcombine.high %v4071_v3, %v4083_v4  ;;  %v15969_v50 = vcombine.low %v4071_v3, %v4083_v4  ;;  %v15971_v34 = vcombine.low %v4072_v5, %v4084_v10 }
 0x828   :  { %13505 = vmatpush1.bf16.msra.mxu1 %v15873_v17  ;;  %v15972_v17 = vcombine.high %v4072_v5, %v4084_v10  ;;  %v14190_v5 = vrot.slane %v14182_v49, %v17089_v38  ;;  %v4215_v49 = vld [vmem:[#allocation14 + $0x2ec0] sm:$0xff] }
 0x829   :  { %13669 = vmatpush1.bf16.msra.mxu0 %v15875_v14  ;;  %13506 = vmatprep.subr.bf16.mxu1 %v15898_v15  ;;  %v4095_v14 = vld [vmem:[#allocation14 + $0x2b00] sm:$0xff] }
 0x82a   :  { %v13202_v56 = vpop.f32.mrb[24].mxu1  ;;  %13670 = vmatprep.subr.bf16.mxu0 %v15900_v16  ;;  %v4107_v15 = vld [vmem:[#allocation14 + $0x2b60] sm:$0xff]  ;;  %v4096_v16 = vld [vmem:[#allocation14 + $0x2b08] sm:$0xff] }
 0x82b   :  { %v16177_v28 = vadd.f32 %v13202_v56, %v4312_v20  ;;  %v13366_v7 = vpop.f32.mrb[28].mxu0  ;;  %v13204_v37 = vpop.f32.mrb[25].mxu1  ;;  %v15994_v20 = vcombine.high %v4095_v14, %v4107_v15  ;;  %v15996_v21 = vcombine.high %v4096_v16, %v4108_v18 }
 0x82c   :  { %v16179_v44 = vadd.f32 %v13366_v7, %v4320_v23  ;;  %v16178_v47 = vadd.f32 %v13204_v37, %v4316_v19  ;;  %v13368_v48 = vpop.f32.mrb[29].mxu0  ;;  %v13206_v52 = vpop.f32.mrb[26].mxu1  ;;  %13507 = vmatpush1.bf16.msra.mxu1 %v15897_v24  ;;  %v4131_v23 = vld [vmem:[#allocation14 + $0x2c20] sm:$0xff]  ;;  %v4120_v24 = vld [vmem:[#allocation14 + $0x2bc8] sm:$0xff] }
 0x82d   :  { %16513 = vtanh.f32 %v16177_v28  ;;  %v16180_v57 = vadd.f32 %v13368_v48, %v4324_v6  ;;  %v13370_v13 = vpop.f32.mrb[30].mxu0  ;;  %13671 = vmatpush1.bf16.msra.mxu0 %v15899_v26  ;;  %v13207_v9 = vpop.f32.mrb[27].mxu1  ;;  %13508 = vmatprep.subr.bf16.mxu1 %v15922_v27  ;;  %v4132_v6 = vld [vmem:[#allocation14 + $0x2c28] sm:$0xff]  ;;  %v15993_v27 = vcombine.low %v4095_v14, %v4107_v15  ;;  %v16018_v35 = vcombine.high %v4119_v22, %v4131_v23  ;;  %v4143_v37 = vld [vmem:[#allocation14 + $0x2c80] sm:$0xff] }
 0x82e   :  { %16515 = vtanh.f32 %v16179_v44  ;;  %v13371_v0 = vpop.f32.mrb[31].mxu0  ;;  %13672 = vmatprep.subr.bf16.mxu0 %v15924_v32  ;;  %v15995_v32 = vcombine.low %v4096_v16, %v4108_v18  ;;  %v16020_v7 = vcombine.high %v4120_v24, %v4132_v6  ;;  %v4144_v44 = vld [vmem:[#allocation14 + $0x2c88] sm:$0xff]  ;;  %v16017_v48 = vcombine.low %v4119_v22, %v4131_v23  ;;  %v4203_v14 = vld [vmem:[#allocation14 + $0x2e60] sm:$0xff] }
 0x82f   :  { %16517 = vtanh.f32 %v16178_v47  ;;  %v4156_v47 = vld [vmem:[#allocation14 + $0x2ce8] sm:$0xff]  ;;  %v16041_v4 = vcombine.low %v4143_v37, %v4155_v40 }
 0x830   :  { %16519 = vtanh.f32 %v16180_v57  ;;  %13509 = vmatpush1.bf16.msra.mxu1 %v15921_v53  ;;  %v16019_v53 = vcombine.low %v4120_v24, %v4132_v6  ;;  %v16042_v57 = vcombine.high %v4143_v37, %v4155_v40  ;;  %v16044_v9 = vcombine.high %v4144_v44, %v4156_v47  ;;  %v4168_v0 = vld [vmem:[#allocation14 + $0x2d48] sm:$0xff]  ;;  %v2729_v37 = vld [vmem:[#allocation14 + $0x50] sm:$0xff] }
 0x831   :  { %13673 = vmatpush1.bf16.msra.mxu0 %v15923_v60  ;;  %13510 = vmatprep.subr.bf16.mxu1 %v15946_v63  ;;  %v4167_v60 = vld [vmem:[#allocation14 + $0x2d40] sm:$0xff]  ;;  %v16043_v10 = vcombine.low %v4144_v44, %v4156_v47  ;;  %v4192_v15 = vld [vmem:[#allocation14 + $0x2e08] sm:$0xff]  ;;  %v2741_v40 = vld [vmem:[#allocation14 + $0xb0] sm:$0xff] }
 0x832   :  { %13674 = vmatprep.subr.bf16.mxu0 %v15948_v2  ;;  %v4179_v63 = vld [vmem:[#allocation14 + $0x2da0] sm:$0xff]  ;;  %v4180_v2 = vld [vmem:[#allocation14 + $0x2da8] sm:$0xff]  ;;  %v2742_v44 = vld [vmem:[#allocation14 + $0xb8] sm:$0xff] }
 0x833   :  { %v4204_v16 = vld [vmem:[#allocation14 + $0x2e68] sm:$0xff] }
 0x834   :  { %13511 = vmatpush1.bf16.msra.mxu1 %v15945_v8  ;;  %v16066_v8 = vcombine.high %v4167_v60, %v4179_v63  ;;  %v16092_v39 = vcombine.high %v4192_v15, %v4204_v16  ;;  %v4228_v22 = vld [vmem:[#allocation14 + $0x2f28] sm:$0xff] }
 0x835   :  { %13675 = vmatpush1.bf16.msra.mxu0 %v15947_v11  ;;  %13512 = vmatprep.subr.bf16.mxu1 %v15970_v12  ;;  %v16068_v12 = vcombine.high %v4168_v0, %v4180_v2 }
 0x836   :  { %13676 = vmatprep.subr.bf16.mxu0 %v15972_v17  ;;  %v4191_v17 = vld [vmem:[#allocation14 + $0x2e00] sm:$0xff] }
 0x837   :  { %v16514_v19 = vpop.eup %16513  ;;  %v16090_v1 = vcombine.high %v4191_v17, %v4203_v14  ;;  %v16089_v23 = vcombine.low %v4191_v17, %v4203_v14 }
 0x838   :  { %v16516_v26 = vpop.eup %16515  ;;  %13513 = vmatpush1.bf16.msra.mxu1 %v15969_v50  ;;  %v16065_v50 = vcombine.low %v4167_v60, %v4179_v63  ;;  %v2754_v60 = vld [vmem:[#allocation14 + $0x118] sm:$0xff] }
 0x839   :  { %v16518_v56 = vpop.eup %16517  ;;  %13677 = vmatpush1.bf16.msra.mxu0 %v15971_v34  ;;  %13514 = vmatprep.subr.bf16.mxu1 %v15994_v20  ;;  %v16067_v34 = vcombine.low %v4168_v0, %v4180_v2  ;;  %v4227_v20 = vld [vmem:[#allocation14 + $0x2f20] sm:$0xff]  ;;  %v2766_v63 = vld [vmem:[#allocation14 + $0x178] sm:$0xff] }
 0x83a   :  { %v16520_v36 = vpop.eup %16519  ;;  %v16151_v28 = vpack.c.bf16 %v16518_v56, %v16514_v19  ;;  %13678 = vmatprep.subr.bf16.mxu0 %v15996_v21  ;;  %v4216_v21 = vld [vmem:[#allocation14 + $0x2ec8] sm:$0xff]  ;;  %v16091_v19 = vcombine.low %v4192_v15, %v4204_v16  ;;  %v16114_v24 = vcombine.high %v4215_v49, %v4227_v20  ;;  %v2801_v15 = vld [vmem:[#allocation14 + $0x290] sm:$0xff] }
 0x83b   :  { %v16152_v43 = vpack.c.bf16 %v16520_v36, %v16516_v26  ;;  %v16116_v6 = vcombine.high %v4216_v21, %v4228_v22  ;;  %v4239_v26 = vld [vmem:[#allocation14 + $0x2f80] sm:$0xff]  ;;  %v4240_v56 = vld [vmem:[#allocation14 + $0x2f88] sm:$0xff]  ;;  %v16115_v36 = vcombine.low %v4216_v21, %v4228_v22  ;;  %v2813_v16 = vld [vmem:[#allocation14 + $0x2f0] sm:$0xff] }
 0x83c   :  { %13515 = vmatpush1.bf16.msra.mxu1 %v15993_v27  ;;  %v14174_v52 = vrot.slane %v16151_v28, %v17089_v38  ;;  %v4251_v27 = vld [vmem:[#allocation14 + $0x2fe0] sm:$0xff]  ;;  %v2837_v21 = vld [vmem:[#allocation14 + $0x3b0] sm:$0xff]  ;;  %v2826_v22 = vld [vmem:[#allocation14 + $0x358] sm:$0xff] }
 0x83d   :  { %13679 = vmatpush1.bf16.msra.mxu0 %v15995_v32  ;;  %13516 = vmatprep.subr.bf16.mxu1 %v16018_v35  ;;  %v14181_v13 = vrot.slane %v16152_v43, %v17089_v38  ;;  %v4252_v32 = vld [vmem:[#allocation14 + $0x2fe8] sm:$0xff]  ;;  %v16113_v35 = vcombine.low %v4215_v49, %v4227_v20  ;;  %v16138_v28 = vcombine.high %v4239_v26, %v4251_v27  ;;  %v2730_v43 = vld [vmem:[#allocation14 + $0x58] sm:$0xff]  ;;  %v2825_v20 = vld [vmem:[#allocation14 + $0x350] sm:$0xff] }
 0x83e   :  { %13680 = vmatprep.subr.bf16.mxu0 %v16020_v7  ;;  %v16140_v7 = vcombine.high %v4240_v56, %v4252_v32  ;;  %v16137_v47 = vcombine.low %v4239_v26, %v4251_v27  ;;  %v14631_v0 = vcombine.low %v2730_v43, %v2742_v44  ;;  %v2849_v26 = vld [vmem:[#allocation14 + $0x410] sm:$0xff] }
 0x83f   :  { %v14183_v3 = vcombine.low %v14174_v52, %v14181_v13  ;;  %v14630_v52 = vcombine.high %v2729_v37, %v2741_v40  ;;  %v2765_v13 = vld [vmem:[#allocation14 + $0x170] sm:$0xff] }
 0x840   :  { %13517 = vmatpush1.bf16.msra.mxu1 %v16017_v48  ;;  %v16139_v48 = vcombine.low %v4240_v56, %v4252_v32  ;;  %v2861_v27 = vld [vmem:[#allocation14 + $0x470] sm:$0xff]  ;;  %v2850_v56 = vld [vmem:[#allocation14 + $0x418] sm:$0xff] }
 0x841   :  { %13681 = vmatpush1.bf16.msra.mxu0 %v16019_v53  ;;  %13518 = vmatprep.subr.bf16.mxu1 %v16042_v57  ;;  %v14197_v11 = vrot.slane %v14183_v3, %v17089_v38  ;;  %v14632_v53 = vcombine.high %v2730_v43, %v2742_v44  ;;  %v2753_v57 = vld [vmem:[#allocation14 + $0x110] sm:$0xff]  ;;  %v2862_v32 = vld [vmem:[#allocation14 + $0x478] sm:$0xff] }
 0x842   :  { %13682 = vmatprep.subr.bf16.mxu0 %v16044_v9  ;;  %v14629_v9 = vcombine.low %v2729_v37, %v2741_v40  ;;  %v14654_v2 = vcombine.high %v2753_v57, %v2765_v13  ;;  %v2777_v3 = vld [vmem:[#allocation14 + $0x1d0] sm:$0xff]  ;;  %v2874_v43 = vld [vmem:[#allocation14 + $0x4d8] sm:$0xff] }
 0x843   :  { %v14198_v18 = vcombine.low %v14190_v5, %v14197_v11  ;;  %v14656_v5 = vcombine.high %v2754_v60, %v2766_v63  ;;  %v14653_v11 = vcombine.low %v2753_v57, %v2765_v13  ;;  %v2873_v37 = vld [vmem:[#allocation14 + $0x4d0] sm:$0xff]  ;;  %v2886_v44 = vld [vmem:[#allocation14 + $0x538] sm:$0xff] }
 0x844   :  { %13519 = vmatpush1.bf16.msra.mxu1 %v16041_v4  ;;  %v2789_v4 = vld [vmem:[#allocation14 + $0x230] sm:$0xff] }
 0x845   :  { %13683 = vmatpush1.bf16.msra.mxu0 %v16043_v10  ;;  %13520 = vmatprep.subr.bf16.mxu1 %v16066_v8  ;;  %14252 = vst [vmem:[#allocation17 + $0x8] sm:$0xff] %v14198_v18  ;;  %v2778_v10 = vld [vmem:[#allocation14 + $0x1d8] sm:$0xff]  ;;  %v14678_v17 = vcombine.high %v2777_v3, %v2789_v4  ;;  %v2885_v40 = vld [vmem:[#allocation14 + $0x530] sm:$0xff] }
 0x846   :  { %13684 = vmatprep.subr.bf16.mxu0 %v16068_v12  ;;  %v2790_v8 = vld [vmem:[#allocation14 + $0x238] sm:$0xff]  ;;  %v14655_v12 = vcombine.low %v2754_v60, %v2766_v63  ;;  %v2897_v57 = vld [vmem:[#allocation14 + $0x590] sm:$0xff]  ;;  %v14773_v63 = vcombine.low %v2873_v37, %v2885_v40 }
 0x847   :  { %v14680_v14 = vcombine.high %v2778_v10, %v2790_v8  ;;  %v2802_v18 = vld [vmem:[#allocation14 + $0x298] sm:$0xff]  ;;  %v2909_v13 = vld [vmem:[#allocation14 + $0x5f0] sm:$0xff] }
 0x848   :  { %13521 = vmatpush1.bf16.msra.mxu1 %v16065_v50  ;;  %v2814_v50 = vld [vmem:[#allocation14 + $0x2f8] sm:$0xff] }
 0x849   :  { %13685 = vmatpush1.bf16.msra.mxu0 %v16067_v34  ;;  %13522 = vmatprep.subr.bf16.mxu1 %v16090_v1  ;;  %v14677_v34 = vcombine.low %v2777_v3, %v2789_v4  ;;  %v14679_v1 = vcombine.low %v2778_v10, %v2790_v8  ;;  %v14704_v49 = vcombine.high %v2802_v18, %v2814_v50  ;;  %v2910_v60 = vld [vmem:[#allocation14 + $0x5f8] sm:$0xff]  ;;  %v2921_v4 = vld [vmem:[#allocation14 + $0x650] sm:$0xff] }
 0x84a   :  { %13686 = vmatprep.subr.bf16.mxu0 %v16092_v39  ;;  %v14702_v39 = vcombine.high %v2801_v15, %v2813_v16  ;;  %v2922_v10 = vld [vmem:[#allocation14 + $0x658] sm:$0xff] }
 0x84b   :  { %v2934_v8 = vld [vmem:[#allocation14 + $0x6b8] sm:$0xff] }
 0x84c   :  { %13523 = vmatpush1.bf16.msra.mxu1 %v16089_v23  ;;  %v2838_v23 = vld [vmem:[#allocation14 + $0x3b8] sm:$0xff] }
 0x84d   :  { %13687 = vmatpush1.bf16.msra.mxu0 %v16091_v19  ;;  %13524 = vmatprep.subr.bf16.mxu1 %v16114_v24  ;;  %v14703_v19 = vcombine.low %v2802_v18, %v2814_v50  ;;  %v14726_v24 = vcombine.high %v2825_v20, %v2837_v21  ;;  %v2946_v18 = vld [vmem:[#allocation14 + $0x718] sm:$0xff] }
 0x84e   :  { %13688 = vmatprep.subr.bf16.mxu0 %v16116_v6  ;;  %v14728_v6 = vcombine.high %v2826_v22, %v2838_v23  ;;  %v2958_v50 = vld [vmem:[#allocation14 + $0x778] sm:$0xff] }
 0x850   :  { %13525 = vmatpush1.bf16.msra.mxu1 %v16113_v35  ;;  %v14725_v35 = vcombine.low %v2825_v20, %v2837_v21  ;;  %v2969_v20 = vld [vmem:[#allocation14 + $0x7d0] sm:$0xff] }
 0x851   :  { %13689 = vmatpush1.bf16.msra.mxu0 %v16115_v36  ;;  %13526 = vmatprep.subr.bf16.mxu1 %v16138_v28  ;;  %v14727_v36 = vcombine.low %v2826_v22, %v2838_v23  ;;  %v14750_v28 = vcombine.high %v2849_v26, %v2861_v27  ;;  %v2981_v21 = vld [vmem:[#allocation14 + $0x830] sm:$0xff]  ;;  %v2970_v22 = vld [vmem:[#allocation14 + $0x7d8] sm:$0xff] }
 0x852   :  { %13690 = vmatprep.subr.bf16.mxu0 %v16140_v7  ;;  %v14752_v7 = vcombine.high %v2850_v56, %v2862_v32  ;;  %v2982_v23 = vld [vmem:[#allocation14 + $0x838] sm:$0xff] }
 0x854   :  { %13527 = vmatpush1.bf16.msra.mxu1 %v16137_v47  ;;  %v14749_v47 = vcombine.low %v2849_v26, %v2861_v27  ;;  %v2993_v26 = vld [vmem:[#allocation14 + $0x890] sm:$0xff] }
 0x855   :  { %13691 = vmatpush1.bf16.msra.mxu0 %v16139_v48  ;;  %13701 = vmatprep.subr.bf16.mxu1 %v14630_v52  ;;  %v14751_v48 = vcombine.low %v2850_v56, %v2862_v32  ;;  %v14774_v52 = vcombine.high %v2873_v37, %v2885_v40  ;;  %v3005_v27 = vld [vmem:[#allocation14 + $0x8f0] sm:$0xff]  ;;  %v2994_v56 = vld [vmem:[#allocation14 + $0x898] sm:$0xff] }
 0x856   :  { %13865 = vmatprep.subr.bf16.mxu0 %v14632_v53  ;;  %v14776_v53 = vcombine.high %v2874_v43, %v2886_v44  ;;  %v3006_v32 = vld [vmem:[#allocation14 + $0x8f8] sm:$0xff]  ;;  %v3017_v37 = vld [vmem:[#allocation14 + $0x950] sm:$0xff] }
 0x857   :  { %13529 = vmatmul.mubr.bf16.vlgmr.msra.gmra.mrb[28].mxu1 %v17066_v25  ;;  %v3029_v40 = vld [vmem:[#allocation14 + $0x9b0] sm:$0xff] }
 0x858   :  { %13693 = vmatmul.mubr.bf16.vlgmr.msra.gmra.mrb[32].mxu0 %v17066_v25  ;;  %13702 = vmatpush1.bf16.msra.mxu1 %v14629_v9  ;;  %v2898_v9 = vld [vmem:[#allocation14 + $0x598] sm:$0xff] }
 0x859   :  { %13733 = vmatprep.mubr.bf16.mxu1 %v17013_v30  ;;  %13866 = vmatpush1.bf16.msra.mxu0 %v14631_v0  ;;  %v14775_v0 = vcombine.low %v2874_v43, %v2886_v44  ;;  %v14800_v3 = vcombine.high %v2898_v9, %v2910_v60  ;;  %v3018_v43 = vld [vmem:[#allocation14 + $0x958] sm:$0xff] }
 0x85a   :  { %13897 = vmatprep.mubr.bf16.mxu0 %v17013_v30  ;;  %13703 = vmatprep.subr.bf16.mxu1 %v14654_v2  ;;  %v14701_v30 = vcombine.low %v2801_v15, %v2813_v16  ;;  %v14798_v2 = vcombine.high %v2897_v57, %v2909_v13  ;;  %v2945_v15 = vld [vmem:[#allocation14 + $0x710] sm:$0xff]  ;;  %v3030_v44 = vld [vmem:[#allocation14 + $0x9b8] sm:$0xff] }
 0x85b   :  { %13867 = vmatprep.subr.bf16.mxu0 %v14656_v5  ;;  %v2933_v5 = vld [vmem:[#allocation14 + $0x6b0] sm:$0xff] }
 0x85c   :  { %13704 = vmatpush1.bf16.msra.mxu1 %v14653_v11  ;;  %v14797_v11 = vcombine.low %v2897_v57, %v2909_v13  ;;  %v2957_v16 = vld [vmem:[#allocation14 + $0x770] sm:$0xff] }
 0x85d   :  { %13868 = vmatpush1.bf16.msra.mxu0 %v14655_v12  ;;  %13705 = vmatprep.subr.bf16.mxu1 %v14678_v17  ;;  %v14799_v12 = vcombine.low %v2898_v9, %v2910_v60  ;;  %v14822_v17 = vcombine.high %v2921_v4, %v2933_v5  ;;  %v3041_v57 = vld [vmem:[#allocation14 + $0xa10] sm:$0xff]  ;;  %v3042_v9 = vld [vmem:[#allocation14 + $0xa18] sm:$0xff] }
 0x85e   :  { %13869 = vmatprep.subr.bf16.mxu0 %v14680_v14  ;;  %v14824_v14 = vcombine.high %v2922_v10, %v2934_v8  ;;  %v3053_v13 = vld [vmem:[#allocation14 + $0xa70] sm:$0xff]  ;;  %v3054_v60 = vld [vmem:[#allocation14 + $0xa78] sm:$0xff] }
 0x860   :  { %13706 = vmatpush1.bf16.msra.mxu1 %v14677_v34  ;;  %v14821_v34 = vcombine.low %v2921_v4, %v2933_v5  ;;  %v3065_v4 = vld [vmem:[#allocation14 + $0xad0] sm:$0xff] }
 0x861   :  { %13870 = vmatpush1.bf16.msra.mxu0 %v14679_v1  ;;  %13707 = vmatprep.subr.bf16.mxu1 %v14702_v39  ;;  %v14823_v1 = vcombine.low %v2922_v10, %v2934_v8  ;;  %v14846_v39 = vcombine.high %v2945_v15, %v2957_v16  ;;  %v3077_v5 = vld [vmem:[#allocation14 + $0xb30] sm:$0xff]  ;;  %v3066_v10 = vld [vmem:[#allocation14 + $0xad8] sm:$0xff] }
 0x862   :  { %13871 = vmatprep.subr.bf16.mxu0 %v14704_v49  ;;  %v14848_v49 = vcombine.high %v2946_v18, %v2958_v50  ;;  %v3078_v8 = vld [vmem:[#allocation14 + $0xb38] sm:$0xff] }
 0x864   :  { %13708 = vmatpush1.bf16.msra.mxu1 %v14701_v30  ;;  %v14845_v30 = vcombine.low %v2945_v15, %v2957_v16  ;;  %v3089_v15 = vld [vmem:[#allocation14 + $0xb90] sm:$0xff] }
 0x865   :  { %13872 = vmatpush1.bf16.msra.mxu0 %v14703_v19  ;;  %13709 = vmatprep.subr.bf16.mxu1 %v14726_v24  ;;  %v14847_v19 = vcombine.low %v2946_v18, %v2958_v50  ;;  %v14870_v24 = vcombine.high %v2969_v20, %v2981_v21  ;;  %v3101_v16 = vld [vmem:[#allocation14 + $0xbf0] sm:$0xff]  ;;  %v3090_v18 = vld [vmem:[#allocation14 + $0xb98] sm:$0xff] }
 0x866   :  { %13873 = vmatprep.subr.bf16.mxu0 %v14728_v6  ;;  %v14872_v6 = vcombine.high %v2970_v22, %v2982_v23  ;;  %v3102_v50 = vld [vmem:[#allocation14 + $0xbf8] sm:$0xff] }
 0x868   :  { %13710 = vmatpush1.bf16.msra.mxu1 %v14725_v35  ;;  %v14869_v35 = vcombine.low %v2969_v20, %v2981_v21  ;;  %v3113_v20 = vld [vmem:[#allocation14 + $0xc50] sm:$0xff] }
 0x869   :  { %13874 = vmatpush1.bf16.msra.mxu0 %v14727_v36  ;;  %13711 = vmatprep.subr.bf16.mxu1 %v14750_v28  ;;  %v14871_v36 = vcombine.low %v2970_v22, %v2982_v23  ;;  %v14894_v28 = vcombine.high %v2993_v26, %v3005_v27  ;;  %v3125_v21 = vld [vmem:[#allocation14 + $0xcb0] sm:$0xff]  ;;  %v3114_v22 = vld [vmem:[#allocation14 + $0xc58] sm:$0xff] }
 0x86a   :  { %13875 = vmatprep.subr.bf16.mxu0 %v14752_v7  ;;  %v14896_v7 = vcombine.high %v2994_v56, %v3006_v32  ;;  %v3126_v23 = vld [vmem:[#allocation14 + $0xcb8] sm:$0xff] }
 0x86c   :  { %13712 = vmatpush1.bf16.msra.mxu1 %v14749_v47  ;;  %v14893_v47 = vcombine.low %v2993_v26, %v3005_v27  ;;  %v3137_v26 = vld [vmem:[#allocation14 + $0xd10] sm:$0xff] }
 0x86d   :  { %13876 = vmatpush1.bf16.msra.mxu0 %v14751_v48  ;;  %13713 = vmatprep.subr.bf16.mxu1 %v14774_v52  ;;  %v14895_v48 = vcombine.low %v2994_v56, %v3006_v32  ;;  %v14918_v52 = vcombine.high %v3017_v37, %v3029_v40  ;;  %v3149_v27 = vld [vmem:[#allocation14 + $0xd70] sm:$0xff]  ;;  %v15013_v56 = vcombine.low %v3113_v20, %v3125_v21  ;;  %v3138_v32 = vld [vmem:[#allocation14 + $0xd18] sm:$0xff] }
 0x86e   :  { %13877 = vmatprep.subr.bf16.mxu0 %v14776_v53  ;;  %v14920_v53 = vcombine.high %v3018_v43, %v3030_v44 }
 0x870   :  { %13714 = vmatpush1.bf16.msra.mxu1 %v14773_v63  ;;  %v14917_v63 = vcombine.low %v3017_v37, %v3029_v40  ;;  %v3173_v37 = vld [vmem:[#allocation14 + $0xe30] sm:$0xff] }
 0x871   :  { %13878 = vmatpush1.bf16.msra.mxu0 %v14775_v0  ;;  %13715 = vmatprep.subr.bf16.mxu1 %v14798_v2  ;;  %v14919_v0 = vcombine.low %v3018_v43, %v3030_v44  ;;  %v14942_v2 = vcombine.high %v3041_v57, %v3053_v13  ;;  %v3162_v43 = vld [vmem:[#allocation14 + $0xdd8] sm:$0xff] }
 0x872   :  { %13879 = vmatprep.subr.bf16.mxu0 %v14800_v3  ;;  %v14944_v3 = vcombine.high %v3042_v9, %v3054_v60  ;;  %v3174_v44 = vld [vmem:[#allocation14 + $0xe38] sm:$0xff] }
 0x874   :  { %13716 = vmatpush1.bf16.msra.mxu1 %v14797_v11  ;;  %v14941_v11 = vcombine.low %v3041_v57, %v3053_v13  ;;  %v3185_v57 = vld [vmem:[#allocation14 + $0xe90] sm:$0xff] }
 0x875   :  { %13880 = vmatpush1.bf16.msra.mxu0 %v14799_v12  ;;  %13717 = vmatprep.subr.bf16.mxu1 %v14822_v17  ;;  %v14943_v12 = vcombine.low %v3042_v9, %v3054_v60  ;;  %v14966_v17 = vcombine.high %v3065_v4, %v3077_v5  ;;  %v3197_v13 = vld [vmem:[#allocation14 + $0xef0] sm:$0xff]  ;;  %v3186_v9 = vld [vmem:[#allocation14 + $0xe98] sm:$0xff] }
 0x876   :  { %13881 = vmatprep.subr.bf16.mxu0 %v14824_v14  ;;  %v14968_v14 = vcombine.high %v3066_v10, %v3078_v8  ;;  %v3198_v60 = vld [vmem:[#allocation14 + $0xef8] sm:$0xff] }
 0x878   :  { %13718 = vmatpush1.bf16.msra.mxu1 %v14821_v34  ;;  %v14965_v34 = vcombine.low %v3065_v4, %v3077_v5  ;;  %v3221_v4 = vld [vmem:[#allocation14 + $0xfb0] sm:$0xff]  ;;  %v3210_v5 = vld [vmem:[#allocation14 + $0xf58] sm:$0xff] }
 0x879   :  { %13882 = vmatpush1.bf16.msra.mxu0 %v14823_v1  ;;  %13719 = vmatprep.subr.bf16.mxu1 %v14846_v39  ;;  %v14967_v1 = vcombine.low %v3066_v10, %v3078_v8  ;;  %v14990_v39 = vcombine.high %v3089_v15, %v3101_v16  ;;  %v3222_v10 = vld [vmem:[#allocation14 + $0xfb8] sm:$0xff]  ;;  %v15087_v8 = vcombine.low %v3186_v9, %v3198_v60 }
 0x87a   :  { %13883 = vmatprep.subr.bf16.mxu0 %v14848_v49  ;;  %v14992_v49 = vcombine.high %v3090_v18, %v3102_v50 }
 0x87c   :  { %13720 = vmatpush1.bf16.msra.mxu1 %v14845_v30  ;;  %v14989_v30 = vcombine.low %v3089_v15, %v3101_v16  ;;  %v3234_v15 = vld [vmem:[#allocation14 + $0x1018] sm:$0xff] }
 0x87d   :  { %13884 = vmatpush1.bf16.msra.mxu0 %v14847_v19  ;;  %13721 = vmatprep.subr.bf16.mxu1 %v14870_v24  ;;  %v14991_v19 = vcombine.low %v3090_v18, %v3102_v50  ;;  %v15014_v24 = vcombine.high %v3113_v20, %v3125_v21  ;;  %v3246_v16 = vld [vmem:[#allocation14 + $0x1078] sm:$0xff]  ;;  %v15111_v50 = vcombine.low %v3210_v5, %v3222_v10 }
 0x87e   :  { %13885 = vmatprep.subr.bf16.mxu0 %v14872_v6  ;;  %v15016_v6 = vcombine.high %v3114_v22, %v3126_v23  ;;  %v3258_v20 = vld [vmem:[#allocation14 + $0x10d8] sm:$0xff] }
 0x87f   :  { %v3270_v21 = vld [vmem:[#allocation14 + $0x1138] sm:$0xff] }
 0x880   :  { %13722 = vmatpush1.bf16.msra.mxu1 %v14869_v35  ;;  %v3150_v35 = vld [vmem:[#allocation14 + $0xd78] sm:$0xff] }
 0x881   :  { %13886 = vmatpush1.bf16.msra.mxu0 %v14871_v36  ;;  %13723 = vmatprep.subr.bf16.mxu1 %v14894_v28  ;;  %v15015_v36 = vcombine.low %v3114_v22, %v3126_v23  ;;  %v15038_v28 = vcombine.high %v3137_v26, %v3149_v27  ;;  %v15040_v40 = vcombine.high %v3138_v32, %v3150_v35 }
 0x882   :  { %13887 = vmatprep.subr.bf16.mxu0 %v14896_v7  ;;  %v3161_v7 = vld [vmem:[#allocation14 + $0xdd0] sm:$0xff]  ;;  %v15135_v23 = vcombine.low %v3234_v15, %v3246_v16 }
 0x884   :  { %13724 = vmatpush1.bf16.msra.mxu1 %v14893_v47  ;;  %v15037_v47 = vcombine.low %v3137_v26, %v3149_v27  ;;  %v3282_v26 = vld [vmem:[#allocation14 + $0x1198] sm:$0xff] }
 0x885   :  { %13888 = vmatpush1.bf16.msra.mxu0 %v14895_v48  ;;  %13725 = vmatprep.subr.bf16.mxu1 %v14918_v52  ;;  %v15039_v48 = vcombine.low %v3138_v32, %v3150_v35  ;;  %v15062_v52 = vcombine.high %v3161_v7, %v3173_v37  ;;  %v3294_v27 = vld [vmem:[#allocation14 + $0x11f8] sm:$0xff]  ;;  %v15159_v32 = vcombine.low %v3258_v20, %v3270_v21 }
 0x886   :  { %13889 = vmatprep.subr.bf16.mxu0 %v14920_v53  ;;  %v15064_v53 = vcombine.high %v3162_v43, %v3174_v44 }
 0x888   :  { %13726 = vmatpush1.bf16.msra.mxu1 %v14917_v63  ;;  %v15061_v63 = vcombine.low %v3161_v7, %v3173_v37  ;;  %v3317_v7 = vld [vmem:[#allocation14 + $0x12b0] sm:$0xff]  ;;  %v3306_v37 = vld [vmem:[#allocation14 + $0x1258] sm:$0xff] }
 0x889   :  { %13890 = vmatpush1.bf16.msra.mxu0 %v14919_v0  ;;  %13727 = vmatprep.subr.bf16.mxu1 %v14942_v2  ;;  %v15086_v0 = vcombine.high %v3185_v57, %v3197_v13  ;;  %v15088_v2 = vcombine.high %v3186_v9, %v3198_v60 }
 0x88a   :  { %13891 = vmatprep.subr.bf16.mxu0 %v14944_v3  ;;  %v3209_v3 = vld [vmem:[#allocation14 + $0xf50] sm:$0xff] }
 0x88b   :  { %v15109_v18 = vcombine.low %v3209_v3, %v3221_v4 }
 0x88c   :  { %13728 = vmatpush1.bf16.msra.mxu1 %v14941_v11  ;;  %v15110_v11 = vcombine.high %v3209_v3, %v3221_v4  ;;  %v3354_v3 = vld [vmem:[#allocation14 + $0x13d8] sm:$0xff] }
 0x88d   :  { %13892 = vmatpush1.bf16.msra.mxu0 %v14943_v12  ;;  %13729 = vmatprep.subr.bf16.mxu1 %v14966_v17  ;;  %v15112_v12 = vcombine.high %v3210_v5, %v3222_v10  ;;  %v3233_v17 = vld [vmem:[#allocation14 + $0x1010] sm:$0xff]  ;;  %v3366_v4 = vld [vmem:[#allocation14 + $0x1438] sm:$0xff] }
 0x88e   :  { %13893 = vmatprep.subr.bf16.mxu0 %v14968_v14  ;;  %v3245_v14 = vld [vmem:[#allocation14 + $0x1070] sm:$0xff] }
 0x88f   :  { %v15133_v22 = vcombine.low %v3233_v17, %v3245_v14 }
 0x890   :  { %13730 = vmatpush1.bf16.msra.mxu1 %v14965_v34  ;;  %v15134_v34 = vcombine.high %v3233_v17, %v3245_v14  ;;  %v3378_v17 = vld [vmem:[#allocation14 + $0x1498] sm:$0xff] }
 0x891   :  { %13894 = vmatpush1.bf16.msra.mxu0 %v14967_v1  ;;  %13731 = vmatprep.subr.bf16.mxu1 %v14990_v39  ;;  %v15136_v1 = vcombine.high %v3234_v15, %v3246_v16  ;;  %v3257_v39 = vld [vmem:[#allocation14 + $0x10d0] sm:$0xff]  ;;  %v3390_v14 = vld [vmem:[#allocation14 + $0x14f8] sm:$0xff]  ;;  %v15255_v16 = vcombine.low %v3354_v3, %v3366_v4 }
 0x892   :  { %13895 = vmatprep.subr.bf16.mxu0 %v14992_v49  ;;  %v3269_v49 = vld [vmem:[#allocation14 + $0x1130] sm:$0xff] }
 0x894   :  { %13732 = vmatpush1.bf16.msra.mxu1 %v14989_v30  ;;  %v15158_v30 = vcombine.high %v3257_v39, %v3269_v49 }
 0x895   :  { %13896 = vmatpush1.bf16.msra.mxu0 %v14991_v19  ;;  %13742 = vmatprep.subr.bf16.mxu1 %v15014_v24  ;;  %v15160_v19 = vcombine.high %v3258_v20, %v3270_v21  ;;  %v3281_v24 = vld [vmem:[#allocation14 + $0x1190] sm:$0xff]  ;;  %v15279_v21 = vcombine.low %v3378_v17, %v3390_v14 }
 0x896   :  { %13906 = vmatprep.subr.bf16.mxu0 %v15016_v6  ;;  %v3293_v6 = vld [vmem:[#allocation14 + $0x11f0] sm:$0xff] }
 0x897   :  { %13734 = vmatmul.mubr.bf16.vlgmr.msra.gmra.mrb[32].mxu1 %v17015_v33  ;;  %v15182_v35 = vcombine.high %v3281_v24, %v3293_v6 }
 0x898   :  { %13898 = vmatmul.mubr.bf16.vlgmr.msra.gmra.mrb[36].mxu0 %v17015_v33  ;;  %13743 = vmatpush1.bf16.msra.mxu1 %v15013_v56  ;;  %v15063_v33 = vcombine.low %v3162_v43, %v3174_v44  ;;  %v15157_v56 = vcombine.low %v3257_v39, %v3269_v49  ;;  %v15181_v43 = vcombine.low %v3281_v24, %v3293_v6  ;;  %v3402_v39 = vld [vmem:[#allocation14 + $0x1558] sm:$0xff] }
 0x899   :  { %13774 = vmatprep.mubr.bf16.mxu1 %v17019_v41  ;;  %13907 = vmatpush1.bf16.msra.mxu0 %v15015_v36  ;;  %v15184_v36 = vcombine.high %v3282_v26, %v3294_v27  ;;  %v15183_v44 = vcombine.low %v3282_v26, %v3294_v27  ;;  %v3414_v49 = vld [vmem:[#allocation14 + $0x15b8] sm:$0xff] }
 0x89a   :  { %13938 = vmatprep.mubr.bf16.mxu0 %v17019_v41  ;;  %13744 = vmatprep.subr.bf16.mxu1 %v15038_v28  ;;  %v15085_v41 = vcombine.low %v3185_v57, %v3197_v13  ;;  %v3305_v28 = vld [vmem:[#allocation14 + $0x1250] sm:$0xff]  ;;  %v3330_v57 = vld [vmem:[#allocation14 + $0x1318] sm:$0xff]  ;;  %v15303_v27 = vcombine.low %v3402_v39, %v3414_v49 }
 0x89b   :  { %13908 = vmatprep.subr.bf16.mxu0 %v15040_v40  ;;  %v3318_v40 = vld [vmem:[#allocation14 + $0x12b8] sm:$0xff]  ;;  %v15205_v9 = vcombine.low %v3305_v28, %v3317_v7 }
 0x89c   :  { %13745 = vmatpush1.bf16.msra.mxu1 %v15037_v47  ;;  %v15206_v47 = vcombine.high %v3305_v28, %v3317_v7  ;;  %v3342_v13 = vld [vmem:[#allocation14 + $0x1378] sm:$0xff]  ;;  %v15207_v60 = vcombine.low %v3306_v37, %v3318_v40 }
 0x89d   :  { %13909 = vmatpush1.bf16.msra.mxu0 %v15039_v48  ;;  %13746 = vmatprep.subr.bf16.mxu1 %v15062_v52  ;;  %v15208_v48 = vcombine.high %v3306_v37, %v3318_v40  ;;  %v3329_v52 = vld [vmem:[#allocation14 + $0x1310] sm:$0xff]  ;;  %v15231_v10 = vcombine.low %v3330_v57, %v3342_v13  ;;  %v3426_v24 = vld [vmem:[#allocation14 + $0x1618] sm:$0xff] }
 0x89e   :  { %13910 = vmatprep.subr.bf16.mxu0 %v15064_v53  ;;  %v3341_v53 = vld [vmem:[#allocation14 + $0x1370] sm:$0xff]  ;;  %v3438_v6 = vld [vmem:[#allocation14 + $0x1678] sm:$0xff] }
 0x89f   :  { %v15229_v5 = vcombine.low %v3329_v52, %v3341_v53  ;;  %v3450_v28 = vld [vmem:[#allocation14 + $0x16d8] sm:$0xff]  ;;  %v15327_v40 = vcombine.low %v3426_v24, %v3438_v6 }
 0x8a0   :  { %13747 = vmatpush1.bf16.msra.mxu1 %v15061_v63  ;;  %v15230_v63 = vcombine.high %v3329_v52, %v3341_v53  ;;  %v3462_v7 = vld [vmem:[#allocation14 + $0x1738] sm:$0xff] }
 0x8a1   :  { %13911 = vmatpush1.bf16.msra.mxu0 %v15063_v33  ;;  %13748 = vmatprep.subr.bf16.mxu1 %v15086_v0  ;;  %v15232_v33 = vcombine.high %v3330_v57, %v3342_v13  ;;  %v3353_v0 = vld [vmem:[#allocation14 + $0x13d0] sm:$0xff]  ;;  %v3474_v52 = vld [vmem:[#allocation14 + $0x1798] sm:$0xff]  ;;  %v15351_v13 = vcombine.low %v3450_v28, %v3462_v7 }
 0x8a2   :  { %13912 = vmatprep.subr.bf16.mxu0 %v15088_v2  ;;  %v3365_v2 = vld [vmem:[#allocation14 + $0x1430] sm:$0xff]  ;;  %v3486_v53 = vld [vmem:[#allocation14 + $0x17f8] sm:$0xff] }
 0x8a3   :  { %v15253_v15 = vcombine.low %v3353_v0, %v3365_v2 }
 0x8a4   :  { %13749 = vmatpush1.bf16.msra.mxu1 %v15085_v41  ;;  %v15254_v41 = vcombine.high %v3353_v0, %v3365_v2  ;;  %v3498_v0 = vld [vmem:[#allocation14 + $0x1858] sm:$0xff] }
 0x8a5   :  { %13913 = vmatpush1.bf16.msra.mxu0 %v15087_v8  ;;  %13750 = vmatprep.subr.bf16.mxu1 %v15110_v11  ;;  %v15256_v8 = vcombine.high %v3354_v3, %v3366_v4  ;;  %v3377_v11 = vld [vmem:[#allocation14 + $0x1490] sm:$0xff]  ;;  %v3510_v2 = vld [vmem:[#allocation14 + $0x18b8] sm:$0xff]  ;;  %v15375_v4 = vcombine.low %v3474_v52, %v3486_v53 }
 0x8a6   :  { %13914 = vmatprep.subr.bf16.mxu0 %v15112_v12  ;;  %v3389_v12 = vld [vmem:[#allocation14 + $0x14f0] sm:$0xff] }
 0x8a7   :  { %v15277_v20 = vcombine.low %v3377_v11, %v3389_v12 }
 0x8a8   :  { %13751 = vmatpush1.bf16.msra.mxu1 %v15109_v18  ;;  %v15278_v18 = vcombine.high %v3377_v11, %v3389_v12  ;;  %v3522_v12 = vld [vmem:[#allocation14 + $0x1918] sm:$0xff] }
 0x8a9   :  { %13915 = vmatpush1.bf16.msra.mxu0 %v15111_v50  ;;  %13752 = vmatprep.subr.bf16.mxu1 %v15134_v34  ;;  %v15280_v50 = vcombine.high %v3378_v17, %v3390_v14  ;;  %v3401_v34 = vld [vmem:[#allocation14 + $0x1550] sm:$0xff]  ;;  %v3534_v17 = vld [vmem:[#allocation14 + $0x1978] sm:$0xff]  ;;  %v15399_v14 = vcombine.low %v3498_v0, %v3510_v2 }
 0x8aa   :  { %13916 = vmatprep.subr.bf16.mxu0 %v15136_v1  ;;  %v3413_v1 = vld [vmem:[#allocation14 + $0x15b0] sm:$0xff] }
 0x8ab   :  { %v15301_v26 = vcombine.low %v3401_v34, %v3413_v1 }
 0x8ac   :  { %13753 = vmatpush1.bf16.msra.mxu1 %v15133_v22  ;;  %v15302_v22 = vcombine.high %v3401_v34, %v3413_v1  ;;  %v3546_v34 = vld [vmem:[#allocation14 + $0x19d8] sm:$0xff] }
 0x8ad   :  { %13917 = vmatpush1.bf16.msra.mxu0 %v15135_v23  ;;  %13754 = vmatprep.subr.bf16.mxu1 %v15158_v30  ;;  %v15304_v23 = vcombine.high %v3402_v39, %v3414_v49  ;;  %v3425_v30 = vld [vmem:[#allocation14 + $0x1610] sm:$0xff]  ;;  %v3558_v1 = vld [vmem:[#allocation14 + $0x1a38] sm:$0xff]  ;;  %v15423_v49 = vcombine.low %v3522_v12, %v3534_v17 }
 0x8ae   :  { %13918 = vmatprep.subr.bf16.mxu0 %v15160_v19  ;;  %v3437_v19 = vld [vmem:[#allocation14 + $0x1670] sm:$0xff] }
 0x8af   :  { %v15325_v37 = vcombine.low %v3425_v30, %v3437_v19 }
 0x8b0   :  { %13755 = vmatpush1.bf16.msra.mxu1 %v15157_v56  ;;  %v15326_v56 = vcombine.high %v3425_v30, %v3437_v19  ;;  %v3570_v30 = vld [vmem:[#allocation14 + $0x1a98] sm:$0xff] }
 0x8b1   :  { %13919 = vmatpush1.bf16.msra.mxu0 %v15159_v32  ;;  %13756 = vmatprep.subr.bf16.mxu1 %v15182_v35  ;;  %v15328_v32 = vcombine.high %v3426_v24, %v3438_v6  ;;  %v3449_v35 = vld [vmem:[#allocation14 + $0x16d0] sm:$0xff]  ;;  %v3582_v19 = vld [vmem:[#allocation14 + $0x1af8] sm:$0xff] }
 0x8b2   :  { %13920 = vmatprep.subr.bf16.mxu0 %v15184_v36  ;;  %v3461_v36 = vld [vmem:[#allocation14 + $0x1730] sm:$0xff] }
 0x8b3   :  { %v15349_v57 = vcombine.low %v3449_v35, %v3461_v36 }
 0x8b4   :  { %13757 = vmatpush1.bf16.msra.mxu1 %v15181_v43  ;;  %v15350_v43 = vcombine.high %v3449_v35, %v3461_v36  ;;  %v3606_v35 = vld [vmem:[#allocation14 + $0x1bb8] sm:$0xff]  ;;  %v15471_v36 = vcombine.low %v3570_v30, %v3582_v19 }
 0x8b5   :  { %13921 = vmatpush1.bf16.msra.mxu0 %v15183_v44  ;;  %13758 = vmatprep.subr.bf16.mxu1 %v15206_v47  ;;  %v15352_v44 = vcombine.high %v3450_v28, %v3462_v7  ;;  %v3473_v47 = vld [vmem:[#allocation14 + $0x1790] sm:$0xff] }
 0x8b6   :  { %13922 = vmatprep.subr.bf16.mxu0 %v15208_v48  ;;  %v3485_v48 = vld [vmem:[#allocation14 + $0x17f0] sm:$0xff] }
 0x8b7   :  { %v15373_v3 = vcombine.low %v3473_v47, %v3485_v48 }
 0x8b8   :  { %13759 = vmatpush1.bf16.msra.mxu1 %v15205_v9  ;;  %v15374_v9 = vcombine.high %v3473_v47, %v3485_v48 }
 0x8b9   :  { %13923 = vmatpush1.bf16.msra.mxu0 %v15207_v60  ;;  %13760 = vmatprep.subr.bf16.mxu1 %v15230_v63  ;;  %v15376_v60 = vcombine.high %v3474_v52, %v3486_v53  ;;  %v3497_v63 = vld [vmem:[#allocation14 + $0x1850] sm:$0xff] }
 0x8ba   :  { %13924 = vmatprep.subr.bf16.mxu0 %v15232_v33  ;;  %v3509_v33 = vld [vmem:[#allocation14 + $0x18b0] sm:$0xff] }
 0x8bb   :  { %v15397_v11 = vcombine.low %v3497_v63, %v3509_v33 }
 0x8bc   :  { %13761 = vmatpush1.bf16.msra.mxu1 %v15229_v5  ;;  %v15398_v5 = vcombine.high %v3497_v63, %v3509_v33 }
 0x8bd   :  { %13925 = vmatpush1.bf16.msra.mxu0 %v15231_v10  ;;  %13762 = vmatprep.subr.bf16.mxu1 %v15254_v41  ;;  %v15400_v10 = vcombine.high %v3498_v0, %v3510_v2  ;;  %v3521_v41 = vld [vmem:[#allocation14 + $0x1910] sm:$0xff] }
 0x8be   :  { %13926 = vmatprep.subr.bf16.mxu0 %v15256_v8  ;;  %v3533_v8 = vld [vmem:[#allocation14 + $0x1970] sm:$0xff] }
 0x8bf   :  { %v15421_v39 = vcombine.low %v3521_v41, %v3533_v8 }
 0x8c0   :  { %13763 = vmatpush1.bf16.msra.mxu1 %v15253_v15  ;;  %v15422_v15 = vcombine.high %v3521_v41, %v3533_v8 }
 0x8c1   :  { %13927 = vmatpush1.bf16.msra.mxu0 %v15255_v16  ;;  %13764 = vmatprep.subr.bf16.mxu1 %v15278_v18  ;;  %v3545_v16 = vld [vmem:[#allocation14 + $0x19d0] sm:$0xff] }
 0x8c2   :  { %13928 = vmatprep.subr.bf16.mxu0 %v15280_v50  ;;  %v3557_v18 = vld [vmem:[#allocation14 + $0x1a30] sm:$0xff]  ;;  %v15424_v50 = vcombine.high %v3522_v12, %v3534_v17 }
 0x8c3   :  { %v15445_v24 = vcombine.low %v3545_v16, %v3557_v18  ;;  %v3689_v17 = vld [vmem:[#allocation14 + $0x1e50] sm:$0xff] }
 0x8c4   :  { %13765 = vmatpush1.bf16.msra.mxu1 %v15277_v20  ;;  %v15446_v20 = vcombine.high %v3545_v16, %v3557_v18  ;;  %v3702_v16 = vld [vmem:[#allocation14 + $0x1eb8] sm:$0xff] }
 0x8c5   :  { %13929 = vmatpush1.bf16.msra.mxu0 %v15279_v21  ;;  %13766 = vmatprep.subr.bf16.mxu1 %v15302_v22  ;;  %v15448_v21 = vcombine.high %v3546_v34, %v3558_v1  ;;  %v3569_v22 = vld [vmem:[#allocation14 + $0x1a90] sm:$0xff] }
 0x8c6   :  { %13930 = vmatprep.subr.bf16.mxu0 %v15304_v23  ;;  %v3581_v23 = vld [vmem:[#allocation14 + $0x1af0] sm:$0xff] }
 0x8c7   :  { %v15470_v6 = vcombine.high %v3569_v22, %v3581_v23 }
 0x8c8   :  { %13767 = vmatpush1.bf16.msra.mxu1 %v15301_v26  ;;  %v15472_v26 = vcombine.high %v3570_v30, %v3582_v19 }
 0x8c9   :  { %13931 = vmatpush1.bf16.msra.mxu0 %v15303_v27  ;;  %13768 = vmatprep.subr.bf16.mxu1 %v15326_v56  ;;  %v3593_v27 = vld [vmem:[#allocation14 + $0x1b50] sm:$0xff] }
 0x8ca   :  { %13932 = vmatprep.subr.bf16.mxu0 %v15328_v32  ;;  %v3605_v56 = vld [vmem:[#allocation14 + $0x1bb0] sm:$0xff]  ;;  %v3594_v32 = vld [vmem:[#allocation14 + $0x1b58] sm:$0xff] }
 0x8cb   :  { %v15494_v28 = vcombine.high %v3593_v27, %v3605_v56  ;;  %v15496_v7 = vcombine.high %v3594_v32, %v3606_v35  ;;  %v15493_v47 = vcombine.low %v3593_v27, %v3605_v56  ;;  %v15495_v48 = vcombine.low %v3594_v32, %v3606_v35 }
 0x8cc   :  { %13769 = vmatpush1.bf16.msra.mxu1 %v15325_v37  ;;  %v3617_v37 = vld [vmem:[#allocation14 + $0x1c10] sm:$0xff] }
 0x8cd   :  { %13933 = vmatpush1.bf16.msra.mxu0 %v15327_v40  ;;  %13770 = vmatprep.subr.bf16.mxu1 %v15350_v43  ;;  %v3629_v40 = vld [vmem:[#allocation14 + $0x1c70] sm:$0xff]  ;;  %v3618_v43 = vld [vmem:[#allocation14 + $0x1c18] sm:$0xff] }
 0x8ce   :  { %13934 = vmatprep.subr.bf16.mxu0 %v15352_v44  ;;  %v3630_v44 = vld [vmem:[#allocation14 + $0x1c78] sm:$0xff]  ;;  %v15518_v52 = vcombine.high %v3617_v37, %v3629_v40  ;;  %v15517_v63 = vcombine.low %v3617_v37, %v3629_v40 }
 0x8cf   :  { %v15520_v53 = vcombine.high %v3618_v43, %v3630_v44  ;;  %v15519_v33 = vcombine.low %v3618_v43, %v3630_v44 }
 0x8d0   :  { %13771 = vmatpush1.bf16.msra.mxu1 %v15349_v57  ;;  %v3641_v57 = vld [vmem:[#allocation14 + $0x1cd0] sm:$0xff] }
 0x8d1   :  { %13935 = vmatpush1.bf16.msra.mxu0 %v15351_v13  ;;  %13772 = vmatprep.subr.bf16.mxu1 %v15374_v9  ;;  %v3653_v13 = vld [vmem:[#allocation14 + $0x1d30] sm:$0xff]  ;;  %v3642_v9 = vld [vmem:[#allocation14 + $0x1cd8] sm:$0xff] }
 0x8d2   :  { %13936 = vmatprep.subr.bf16.mxu0 %v15376_v60  ;;  %v3654_v60 = vld [vmem:[#allocation14 + $0x1d38] sm:$0xff]  ;;  %v15542_v0 = vcombine.high %v3641_v57, %v3653_v13  ;;  %v15541_v41 = vcombine.low %v3641_v57, %v3653_v13 }
 0x8d3   :  { %v15544_v2 = vcombine.high %v3642_v9, %v3654_v60  ;;  %v15543_v8 = vcombine.low %v3642_v9, %v3654_v60 }
 0x8d4   :  { %13773 = vmatpush1.bf16.msra.mxu1 %v15373_v3  ;;  %v3665_v3 = vld [vmem:[#allocation14 + $0x1d90] sm:$0xff] }
 0x8d5   :  { %13937 = vmatpush1.bf16.msra.mxu0 %v15375_v4  ;;  %13783 = vmatprep.subr.bf16.mxu1 %v15398_v5  ;;  %v3677_v4 = vld [vmem:[#allocation14 + $0x1df0] sm:$0xff]  ;;  %v3666_v5 = vld [vmem:[#allocation14 + $0x1d98] sm:$0xff] }
 0x8d6   :  { %13947 = vmatprep.subr.bf16.mxu0 %v15400_v10  ;;  %v3678_v10 = vld [vmem:[#allocation14 + $0x1df8] sm:$0xff]  ;;  %v15565_v18 = vcombine.low %v3665_v3, %v3677_v4 }
 0x8d7   :  { %13775 = vmatmul.mubr.bf16.vlgmr.msra.gmra.mrb[32].mxu1 %v17028_v61  ;;  %v15568_v12 = vcombine.high %v3666_v5, %v3678_v10 }
 0x8d8   :  { %13939 = vmatmul.mubr.bf16.vlgmr.msra.gmra.mrb[36].mxu0 %v17028_v61  ;;  %13784 = vmatpush1.bf16.msra.mxu1 %v15397_v11  ;;  %v15447_v61 = vcombine.low %v3546_v34, %v3558_v1  ;;  %v15566_v11 = vcombine.high %v3665_v3, %v3677_v4 }
 0x8d9   :  { %13815 = vmatprep.mubr.bf16.mxu1 %v17049_v42  ;;  %13948 = vmatpush1.bf16.msra.mxu0 %v15399_v14  ;;  %v3701_v14 = vld [vmem:[#allocation14 + $0x1eb0] sm:$0xff] }
 0x8da   :  { %13979 = vmatprep.mubr.bf16.mxu0 %v17049_v42  ;;  %13785 = vmatprep.subr.bf16.mxu1 %v15422_v15  ;;  %v15469_v42 = vcombine.low %v3569_v22, %v3581_v23  ;;  %v3690_v15 = vld [vmem:[#allocation14 + $0x1e58] sm:$0xff]  ;;  %v15590_v34 = vcombine.high %v3689_v17, %v3701_v14  ;;  %v15589_v22 = vcombine.low %v3689_v17, %v3701_v14 }
 0x8db   :  { %13949 = vmatprep.subr.bf16.mxu0 %v15424_v50  ;;  %v15567_v50 = vcombine.low %v3666_v5, %v3678_v10  ;;  %v15592_v1 = vcombine.high %v3690_v15, %v3702_v16  ;;  %v15591_v23 = vcombine.low %v3690_v15, %v3702_v16 }
 0x8dc   :  { %13786 = vmatpush1.bf16.msra.mxu1 %v15421_v39  ;;  %v3713_v39 = vld [vmem:[#allocation14 + $0x1f10] sm:$0xff] }
 0x8dd   :  { %13950 = vmatpush1.bf16.msra.mxu0 %v15423_v49  ;;  %13787 = vmatprep.subr.bf16.mxu1 %v15446_v20  ;;  %v3725_v49 = vld [vmem:[#allocation14 + $0x1f70] sm:$0xff]  ;;  %v3714_v20 = vld [vmem:[#allocation14 + $0x1f18] sm:$0xff] }
 0x8de   :  { %13951 = vmatprep.subr.bf16.mxu0 %v15448_v21  ;;  %v3726_v21 = vld [vmem:[#allocation14 + $0x1f78] sm:$0xff]  ;;  %v15614_v30 = vcombine.high %v3713_v39, %v3725_v49  ;;  %v15613_v27 = vcombine.low %v3713_v39, %v3725_v49 }
 0x8df   :  { %v15616_v19 = vcombine.high %v3714_v20, %v3726_v21  ;;  %v15615_v56 = vcombine.low %v3714_v20, %v3726_v21 }
 0x8e0   :  { %13788 = vmatpush1.bf16.msra.mxu1 %v15445_v24  ;;  %v3737_v24 = vld [vmem:[#allocation14 + $0x1fd0] sm:$0xff] }
 0x8e1   :  { %13952 = vmatpush1.bf16.msra.mxu0 %v15447_v61  ;;  %13789 = vmatprep.subr.bf16.mxu1 %v15470_v6  ;;  %v3749_v61 = vld [vmem:[#allocation14 + $0x2030] sm:$0xff]  ;;  %v3738_v6 = vld [vmem:[#allocation14 + $0x1fd8] sm:$0xff] }
 0x8e2   :  { %13953 = vmatprep.subr.bf16.mxu0 %v15472_v26  ;;  %v3750_v26 = vld [vmem:[#allocation14 + $0x2038] sm:$0xff]  ;;  %v15638_v32 = vcombine.high %v3737_v24, %v3749_v61  ;;  %v15637_v37 = vcombine.low %v3737_v24, %v3749_v61 }
 0x8e3   :  { %v15640_v35 = vcombine.high %v3738_v6, %v3750_v26  ;;  %v15639_v40 = vcombine.low %v3738_v6, %v3750_v26 }
 0x8e4   :  { %13790 = vmatpush1.bf16.msra.mxu1 %v15469_v42  ;;  %v3761_v42 = vld [vmem:[#allocation14 + $0x2090] sm:$0xff] }
 0x8e5   :  { %13954 = vmatpush1.bf16.msra.mxu0 %v15471_v36  ;;  %13791 = vmatprep.subr.bf16.mxu1 %v15494_v28  ;;  %v3773_v36 = vld [vmem:[#allocation14 + $0x20f0] sm:$0xff]  ;;  %v3762_v28 = vld [vmem:[#allocation14 + $0x2098] sm:$0xff] }
 0x8e6   :  { %13955 = vmatprep.subr.bf16.mxu0 %v15496_v7  ;;  %v3774_v7 = vld [vmem:[#allocation14 + $0x20f8] sm:$0xff]  ;;  %v15662_v43 = vcombine.high %v3761_v42, %v3773_v36  ;;  %v15661_v57 = vcombine.low %v3761_v42, %v3773_v36 }
 0x8e7   :  { %v15664_v44 = vcombine.high %v3762_v28, %v3774_v7  ;;  %v15663_v13 = vcombine.low %v3762_v28, %v3774_v7  ;;  %v3918_v42 = vld [vmem:[#allocation14 + $0x2578] sm:$0xff]  ;;  %v3929_v7 = vld [vmem:[#allocation14 + $0x25d0] sm:$0xff] }
 0x8e8   :  { %13792 = vmatpush1.bf16.msra.mxu1 %v15493_v47  ;;  %v3785_v47 = vld [vmem:[#allocation14 + $0x2150] sm:$0xff] }
 0x8e9   :  { %13956 = vmatpush1.bf16.msra.mxu0 %v15495_v48  ;;  %13793 = vmatprep.subr.bf16.mxu1 %v15518_v52  ;;  %v3797_v48 = vld [vmem:[#allocation14 + $0x21b0] sm:$0xff]  ;;  %v3786_v52 = vld [vmem:[#allocation14 + $0x2158] sm:$0xff] }
 0x8ea   :  { %13957 = vmatprep.subr.bf16.mxu0 %v15520_v53  ;;  %v3798_v53 = vld [vmem:[#allocation14 + $0x21b8] sm:$0xff]  ;;  %v15686_v9 = vcombine.high %v3785_v47, %v3797_v48  ;;  %v15685_v3 = vcombine.low %v3785_v47, %v3797_v48 }
 0x8eb   :  { %v15688_v60 = vcombine.high %v3786_v52, %v3798_v53  ;;  %v15687_v4 = vcombine.low %v3786_v52, %v3798_v53 }
 0x8ec   :  { %13794 = vmatpush1.bf16.msra.mxu1 %v15517_v63  ;;  %v3809_v63 = vld [vmem:[#allocation14 + $0x2210] sm:$0xff] }
 0x8ed   :  { %13958 = vmatpush1.bf16.msra.mxu0 %v15519_v33  ;;  %13795 = vmatprep.subr.bf16.mxu1 %v15542_v0  ;;  %v3821_v33 = vld [vmem:[#allocation14 + $0x2270] sm:$0xff]  ;;  %v3810_v0 = vld [vmem:[#allocation14 + $0x2218] sm:$0xff] }
 0x8ee   :  { %13959 = vmatprep.subr.bf16.mxu0 %v15544_v2  ;;  %v3822_v2 = vld [vmem:[#allocation14 + $0x2278] sm:$0xff]  ;;  %v15710_v5 = vcombine.high %v3809_v63, %v3821_v33  ;;  %v15709_v17 = vcombine.low %v3809_v63, %v3821_v33 }
 0x8ef   :  { %v15712_v10 = vcombine.high %v3810_v0, %v3822_v2  ;;  %v15711_v14 = vcombine.low %v3810_v0, %v3822_v2  ;;  %v3977_v2 = vld [vmem:[#allocation14 + $0x2750] sm:$0xff] }
 0x8f0   :  { %13796 = vmatpush1.bf16.msra.mxu1 %v15541_v41  ;;  %v3833_v41 = vld [vmem:[#allocation14 + $0x22d0] sm:$0xff] }
 0x8f1   :  { %13960 = vmatpush1.bf16.msra.mxu0 %v15543_v8  ;;  %13797 = vmatprep.subr.bf16.mxu1 %v15566_v11  ;;  %v3845_v8 = vld [vmem:[#allocation14 + $0x2330] sm:$0xff]  ;;  %v3834_v11 = vld [vmem:[#allocation14 + $0x22d8] sm:$0xff] }
 0x8f2   :  { %13961 = vmatprep.subr.bf16.mxu0 %v15568_v12  ;;  %v3846_v12 = vld [vmem:[#allocation14 + $0x2338] sm:$0xff]  ;;  %v15734_v15 = vcombine.high %v3833_v41, %v3845_v8  ;;  %v15733_v39 = vcombine.low %v3833_v41, %v3845_v8 }
 0x8f3   :  { %v15736_v16 = vcombine.high %v3834_v11, %v3846_v12  ;;  %v15735_v49 = vcombine.low %v3834_v11, %v3846_v12  ;;  %v4001_v11 = vld [vmem:[#allocation14 + $0x2810] sm:$0xff] }
 0x8f4   :  { %13798 = vmatpush1.bf16.msra.mxu1 %v15565_v18  ;;  %v3857_v18 = vld [vmem:[#allocation14 + $0x2390] sm:$0xff] }
 0x8f5   :  { %13962 = vmatpush1.bf16.msra.mxu0 %v15567_v50  ;;  %13799 = vmatprep.subr.bf16.mxu1 %v15590_v34  ;;  %v3869_v50 = vld [vmem:[#allocation14 + $0x23f0] sm:$0xff]  ;;  %v3858_v34 = vld [vmem:[#allocation14 + $0x2398] sm:$0xff] }
 0x8f6   :  { %13963 = vmatprep.subr.bf16.mxu0 %v15592_v1  ;;  %v3870_v1 = vld [vmem:[#allocation14 + $0x23f8] sm:$0xff]  ;;  %v15758_v20 = vcombine.high %v3857_v18, %v3869_v50  ;;  %v15757_v24 = vcombine.low %v3857_v18, %v3869_v50  ;;  %v4013_v12 = vld [vmem:[#allocation14 + $0x2870] sm:$0xff] }
 0x8f7   :  { %v15760_v21 = vcombine.high %v3858_v34, %v3870_v1  ;;  %v15759_v61 = vcombine.low %v3858_v34, %v3870_v1  ;;  %v15902_v50 = vcombine.high %v4001_v11, %v4013_v12  ;;  %v4025_v1 = vld [vmem:[#allocation14 + $0x28d0] sm:$0xff] }
 0x8f8   :  { %13800 = vmatpush1.bf16.msra.mxu1 %v15589_v22  ;;  %v3881_v22 = vld [vmem:[#allocation14 + $0x2450] sm:$0xff] }
 0x8f9   :  { %13964 = vmatpush1.bf16.msra.mxu0 %v15591_v23  ;;  %13801 = vmatprep.subr.bf16.mxu1 %v15614_v30  ;;  %v3893_v23 = vld [vmem:[#allocation14 + $0x24b0] sm:$0xff]  ;;  %v3882_v30 = vld [vmem:[#allocation14 + $0x2458] sm:$0xff] }
 0x8fa   :  { %13965 = vmatprep.subr.bf16.mxu0 %v15616_v19  ;;  %v3894_v19 = vld [vmem:[#allocation14 + $0x24b8] sm:$0xff]  ;;  %v15782_v6 = vcombine.high %v3881_v22, %v3893_v23 }
 0x8fb   :  { %v15784_v26 = vcombine.high %v3882_v30, %v3894_v19  ;;  %v15783_v36 = vcombine.low %v3882_v30, %v3894_v19  ;;  %v15901_v30 = vcombine.low %v4001_v11, %v4013_v12  ;;  %v4133_v11 = vld [vmem:[#allocation14 + $0x2c30] sm:$0xff] }
 0x8fc   :  { %13802 = vmatpush1.bf16.msra.mxu1 %v15613_v27  ;;  %v3905_v27 = vld [vmem:[#allocation14 + $0x2510] sm:$0xff] }
 0x8fd   :  { %13966 = vmatpush1.bf16.msra.mxu0 %v15615_v56  ;;  %13803 = vmatprep.subr.bf16.mxu1 %v15638_v32  ;;  %v3917_v56 = vld [vmem:[#allocation14 + $0x2570] sm:$0xff]  ;;  %v15781_v32 = vcombine.low %v3881_v22, %v3893_v23 }
 0x8fe   :  { %13967 = vmatprep.subr.bf16.mxu0 %v15640_v35  ;;  %v3906_v35 = vld [vmem:[#allocation14 + $0x2518] sm:$0xff]  ;;  %v15806_v28 = vcombine.high %v3905_v27, %v3917_v56  ;;  %v15805_v47 = vcombine.low %v3905_v27, %v3917_v56  ;;  %v4061_v27 = vld [vmem:[#allocation14 + $0x29f0] sm:$0xff] }
 0x8ff   :  { %v15807_v48 = vcombine.low %v3906_v35, %v3918_v42 }
 0x900   :  { %13804 = vmatpush1.bf16.msra.mxu1 %v15637_v37  ;;  %v3941_v37 = vld [vmem:[#allocation14 + $0x2630] sm:$0xff] }
 0x901   :  { %13968 = vmatpush1.bf16.msra.mxu0 %v15639_v40  ;;  %13805 = vmatprep.subr.bf16.mxu1 %v15662_v43  ;;  %v15808_v40 = vcombine.high %v3906_v35, %v3918_v42  ;;  %v3930_v43 = vld [vmem:[#allocation14 + $0x25d8] sm:$0xff]  ;;  %v15830_v52 = vcombine.high %v3929_v7, %v3941_v37  ;;  %v15829_v63 = vcombine.low %v3929_v7, %v3941_v37 }
 0x902   :  { %13969 = vmatprep.subr.bf16.mxu0 %v15664_v44  ;;  %v3942_v44 = vld [vmem:[#allocation14 + $0x2638] sm:$0xff] }
 0x903   :  { %v15832_v53 = vcombine.high %v3930_v43, %v3942_v44  ;;  %v4062_v42 = vld [vmem:[#allocation14 + $0x29f8] sm:$0xff] }
 0x904   :  { %13806 = vmatpush1.bf16.msra.mxu1 %v15661_v57  ;;  %v3953_v57 = vld [vmem:[#allocation14 + $0x2690] sm:$0xff] }
 0x905   :  { %13970 = vmatpush1.bf16.msra.mxu0 %v15663_v13  ;;  %13807 = vmatprep.subr.bf16.mxu1 %v15686_v9  ;;  %v3965_v13 = vld [vmem:[#allocation14 + $0x26f0] sm:$0xff]  ;;  %v3954_v9 = vld [vmem:[#allocation14 + $0x2698] sm:$0xff] }
 0x906   :  { %13971 = vmatprep.subr.bf16.mxu0 %v15688_v60  ;;  %v3966_v60 = vld [vmem:[#allocation14 + $0x26f8] sm:$0xff]  ;;  %v15854_v33 = vcombine.high %v3953_v57, %v3965_v13 }
 0x907   :  { %v15856_v0 = vcombine.high %v3954_v9, %v3966_v60 }
 0x908   :  { %13808 = vmatpush1.bf16.msra.mxu1 %v15685_v3  ;;  %v3989_v3 = vld [vmem:[#allocation14 + $0x27b0] sm:$0xff] }
 0x909   :  { %13972 = vmatpush1.bf16.msra.mxu0 %v15687_v4  ;;  %13809 = vmatprep.subr.bf16.mxu1 %v15710_v5  ;;  %v3978_v4 = vld [vmem:[#allocation14 + $0x2758] sm:$0xff]  ;;  %v15878_v41 = vcombine.high %v3977_v2, %v3989_v3 }
 0x90a   :  { %13973 = vmatprep.subr.bf16.mxu0 %v15712_v10  ;;  %v3990_v5 = vld [vmem:[#allocation14 + $0x27b8] sm:$0xff]  ;;  %v15855_v10 = vcombine.low %v3954_v9, %v3966_v60 }
 0x90b   :  { %v15880_v8 = vcombine.high %v3978_v4, %v3990_v5  ;;  %v15879_v18 = vcombine.low %v3978_v4, %v3990_v5  ;;  %v4086_v9 = vld [vmem:[#allocation14 + $0x2ab8] sm:$0xff] }
 0x90c   :  { %13810 = vmatpush1.bf16.msra.mxu1 %v15709_v17  ;;  %v4002_v17 = vld [vmem:[#allocation14 + $0x2818] sm:$0xff] }
 0x90d   :  { %13974 = vmatpush1.bf16.msra.mxu0 %v15711_v14  ;;  %13811 = vmatprep.subr.bf16.mxu1 %v15734_v15  ;;  %v4014_v14 = vld [vmem:[#allocation14 + $0x2878] sm:$0xff]  ;;  %v15877_v15 = vcombine.low %v3977_v2, %v3989_v3  ;;  %v4109_v2 = vld [vmem:[#allocation14 + $0x2b70] sm:$0xff] }
 0x90e   :  { %13975 = vmatprep.subr.bf16.mxu0 %v15736_v16  ;;  %v17197_v16 = vld [vmem:[#allocation16 + $0x10] sm:$0xff]  ;;  %v15904_v34 = vcombine.high %v4002_v17, %v4014_v14  ;;  %v4098_v3 = vld [vmem:[#allocation14 + $0x2b18] sm:$0xff] }
 0x90f   :  { %v4336_v22 = vrot.slane %v17197_v16, %v16986_v59  ;;  %v4332_v23 = vrot.slane %v17197_v16, %v16956_v31  ;;  %v4340_v19 = vrot.slane %v17197_v16, %v16963_v51  ;;  %v4050_v59 = vld [vmem:[#allocation14 + $0x2998] sm:$0xff] }
 0x910   :  { %13812 = vmatpush1.bf16.msra.mxu1 %v15733_v39  ;;  %v4037_v39 = vld [vmem:[#allocation14 + $0x2930] sm:$0xff]  ;;  %v4110_v4 = vld [vmem:[#allocation14 + $0x2b78] sm:$0xff] }
 0x911   :  { %13976 = vmatpush1.bf16.msra.mxu0 %v15735_v49  ;;  %13813 = vmatprep.subr.bf16.mxu1 %v15758_v20  ;;  %v4328_v49 = vrot.slane %v17197_v16, %v16953_v29  ;;  %v4026_v20 = vld [vmem:[#allocation14 + $0x28d8] sm:$0xff]  ;;  %v15925_v37 = vcombine.low %v4025_v1, %v4037_v39 }
 0x912   :  { %13977 = vmatprep.subr.bf16.mxu0 %v15760_v21  ;;  %v4038_v21 = vld [vmem:[#allocation14 + $0x2938] sm:$0xff] }
 0x913   :  { %v15928_v29 = vcombine.high %v4026_v20, %v4038_v21 }
 0x914   :  { %13814 = vmatpush1.bf16.msra.mxu1 %v15757_v24  ;;  %v15903_v24 = vcombine.low %v4002_v17, %v4014_v14  ;;  %v4122_v17 = vld [vmem:[#allocation14 + $0x2bd8] sm:$0xff] }
 0x915   :  { %13978 = vmatpush1.bf16.msra.mxu0 %v15759_v61  ;;  %13824 = vmatprep.subr.bf16.mxu1 %v15782_v6  ;;  %v15926_v61 = vcombine.high %v4025_v1, %v4037_v39  ;;  %v4134_v14 = vld [vmem:[#allocation14 + $0x2c38] sm:$0xff] }
 0x916   :  { %13988 = vmatprep.subr.bf16.mxu0 %v15784_v26  ;;  %v4049_v26 = vld [vmem:[#allocation14 + $0x2990] sm:$0xff] }
 0x917   :  { %13816 = vmatmul.mubr.bf16.vlgmr.msra.gmra.mrb[32].mxu1 %v17051_v45  ;;  %v15949_v60 = vcombine.low %v4049_v26, %v4061_v27 }
 0x918   :  { %13980 = vmatmul.mubr.bf16.vlgmr.msra.gmra.mrb[36].mxu0 %v17051_v45  ;;  %13825 = vmatpush1.bf16.msra.mxu1 %v15781_v32  ;;  %v15831_v45 = vcombine.low %v3930_v43, %v3942_v44  ;;  %v15927_v44 = vcombine.low %v4026_v20, %v4038_v21  ;;  %v16024_v20 = vcombine.high %v4122_v17, %v4134_v14  ;;  %v4145_v21 = vld [vmem:[#allocation14 + $0x2c90] sm:$0xff] }
 0x919   :  { %13856 = vmatprep.mubr.bf16.mxu1 %v17055_v54  ;;  %13989 = vmatpush1.bf16.msra.mxu0 %v15783_v36 }
 0x91a   :  { %14020 = vmatprep.mubr.bf16.mxu0 %v17055_v54  ;;  %13826 = vmatprep.subr.bf16.mxu1 %v15806_v28  ;;  %v15853_v54 = vcombine.low %v3953_v57, %v3965_v13  ;;  %v4085_v57 = vld [vmem:[#allocation14 + $0x2ab0] sm:$0xff]  ;;  %v4074_v13 = vld [vmem:[#allocation14 + $0x2a58] sm:$0xff] }
 0x91b   :  { %13990 = vmatprep.subr.bf16.mxu0 %v15808_v40 }
 0x91c   :  { %13827 = vmatpush1.bf16.msra.mxu1 %v15805_v47  ;;  %v15950_v47 = vcombine.high %v4049_v26, %v4061_v27 }
 0x91d   :  { %13991 = vmatpush1.bf16.msra.mxu0 %v15807_v48  ;;  %13828 = vmatprep.subr.bf16.mxu1 %v15830_v52  ;;  %v15952_v52 = vcombine.high %v4050_v59, %v4062_v42 }
 0x91e   :  { %13992 = vmatprep.subr.bf16.mxu0 %v15832_v53  ;;  %v4073_v53 = vld [vmem:[#allocation14 + $0x2a50] sm:$0xff] }
 0x91f   :  { %v15973_v5 = vcombine.low %v4073_v53, %v4085_v57 }
 0x920   :  { %13829 = vmatpush1.bf16.msra.mxu1 %v15829_v63  ;;  %v15951_v63 = vcombine.low %v4050_v59, %v4062_v42  ;;  %v4182_v59 = vld [vmem:[#allocation14 + $0x2db8] sm:$0xff] }
 0x921   :  { %13993 = vmatpush1.bf16.msra.mxu0 %v15831_v45  ;;  %13830 = vmatprep.subr.bf16.mxu1 %v15854_v33  ;;  %v15974_v45 = vcombine.high %v4073_v53, %v4085_v57  ;;  %v15976_v33 = vcombine.high %v4074_v13, %v4086_v9  ;;  %v4217_v53 = vld [vmem:[#allocation14 + $0x2ed0] sm:$0xff] }
 0x922   :  { %13994 = vmatprep.subr.bf16.mxu0 %v15856_v0  ;;  %v4097_v0 = vld [vmem:[#allocation14 + $0x2b10] sm:$0xff] }
 0x923   :  { %v4229_v57 = vld [vmem:[#allocation14 + $0x2f30] sm:$0xff] }
 0x924   :  { %13831 = vmatpush1.bf16.msra.mxu1 %v15853_v54  ;;  %v15975_v54 = vcombine.low %v4074_v13, %v4086_v9  ;;  %v4218_v13 = vld [vmem:[#allocation14 + $0x2ed8] sm:$0xff] }
 0x925   :  { %13995 = vmatpush1.bf16.msra.mxu0 %v15855_v10  ;;  %13832 = vmatprep.subr.bf16.mxu1 %v15878_v41  ;;  %v15998_v10 = vcombine.high %v4097_v0, %v4109_v2  ;;  %v16000_v41 = vcombine.high %v4098_v3, %v4110_v4  ;;  %v4230_v9 = vld [vmem:[#allocation14 + $0x2f38] sm:$0xff] }
 0x926   :  { %13996 = vmatprep.subr.bf16.mxu0 %v15880_v8  ;;  %v4121_v8 = vld [vmem:[#allocation14 + $0x2bd0] sm:$0xff] }
 0x927   :  { %v16022_v1 = vcombine.high %v4121_v8, %v4133_v11 }
 0x928   :  { %13833 = vmatpush1.bf16.msra.mxu1 %v15877_v15 }
 0x929   :  { %13997 = vmatpush1.bf16.msra.mxu0 %v15879_v18  ;;  %13834 = vmatprep.subr.bf16.mxu1 %v15902_v50  ;;  %v15997_v18 = vcombine.low %v4097_v0, %v4109_v2  ;;  %v4241_v0 = vld [vmem:[#allocation14 + $0x2f90] sm:$0xff] }
 0x92a   :  { %v13530_v6 = vpop.f32.mrb[28].mxu1  ;;  %13998 = vmatprep.subr.bf16.mxu0 %v15904_v34  ;;  %v15999_v34 = vcombine.low %v4098_v3, %v4110_v4  ;;  %v4253_v2 = vld [vmem:[#allocation14 + $0x2ff0] sm:$0xff]  ;;  %v4242_v3 = vld [vmem:[#allocation14 + $0x2f98] sm:$0xff] }
 0x92b   :  { %v16181_v56 = vadd.f32 %v13530_v6, %v4328_v49  ;;  %v13694_v32 = vpop.f32.mrb[32].mxu0  ;;  %v13532_v35 = vpop.f32.mrb[29].mxu1  ;;  %v16023_v6 = vcombine.low %v4122_v17, %v4134_v14  ;;  %v4254_v4 = vld [vmem:[#allocation14 + $0x2ff8] sm:$0xff]  ;;  %v4352_v17 = vrot.slane %v17197_v16, %v17062_v46  ;;  %v4348_v14 = vrot.slane %v17197_v16, %v17036_v58 }
 0x92c   :  { %v16183_v36 = vadd.f32 %v13694_v32, %v4336_v22  ;;  %v16182_v31 = vadd.f32 %v13532_v35, %v4332_v23  ;;  %v13696_v28 = vpop.f32.mrb[33].mxu0  ;;  %v13534_v7 = vpop.f32.mrb[30].mxu1  ;;  %13835 = vmatpush1.bf16.msra.mxu1 %v15901_v30  ;;  %v4157_v22 = vld [vmem:[#allocation14 + $0x2cf0] sm:$0xff]  ;;  %v4146_v30 = vld [vmem:[#allocation14 + $0x2c98] sm:$0xff] }
 0x92d   :  { %16521 = vtanh.f32 %v16181_v56  ;;  %v16184_v51 = vadd.f32 %v13696_v28, %v4340_v19  ;;  %v13698_v40 = vpop.f32.mrb[34].mxu0  ;;  %13999 = vmatpush1.bf16.msra.mxu0 %v15903_v24  ;;  %v13535_v43 = vpop.f32.mrb[31].mxu1  ;;  %13836 = vmatprep.subr.bf16.mxu1 %v15926_v61  ;;  %v4158_v19 = vld [vmem:[#allocation14 + $0x2cf8] sm:$0xff]  ;;  %v16021_v24 = vcombine.low %v4121_v8, %v4133_v11  ;;  %v4169_v56 = vld [vmem:[#allocation14 + $0x2d50] sm:$0xff]  ;;  %v16141_v8 = vcombine.low %v4241_v0, %v4253_v2 }
 0x92e   :  { %16523 = vtanh.f32 %v16183_v36  ;;  %v13699_v48 = vpop.f32.mrb[35].mxu0  ;;  %14000 = vmatprep.subr.bf16.mxu0 %v15928_v29  ;;  %v16046_v29 = vcombine.high %v4145_v21, %v4157_v22  ;;  %v16048_v27 = vcombine.high %v4146_v30, %v4158_v19  ;;  %v4181_v32 = vld [vmem:[#allocation14 + $0x2db0] sm:$0xff]  ;;  %v4170_v35 = vld [vmem:[#allocation14 + $0x2d58] sm:$0xff]  ;;  %v16045_v36 = vcombine.low %v4145_v21, %v4157_v22 }
 0x92f   :  { %16525 = vtanh.f32 %v16182_v31  ;;  %v16047_v31 = vcombine.low %v4146_v30, %v4158_v19  ;;  %v16070_v28 = vcombine.high %v4169_v56, %v4181_v32  ;;  %v16072_v7 = vcombine.high %v4170_v35, %v4182_v59  ;;  %v4194_v40 = vld [vmem:[#allocation14 + $0x2e18] sm:$0xff] }
 0x930   :  { %16527 = vtanh.f32 %v16184_v51  ;;  %13837 = vmatpush1.bf16.msra.mxu1 %v15925_v37  ;;  %v4193_v37 = vld [vmem:[#allocation14 + $0x2e10] sm:$0xff]  ;;  %v4206_v43 = vld [vmem:[#allocation14 + $0x2e78] sm:$0xff]  ;;  %v16143_v11 = vcombine.low %v4242_v3, %v4254_v4 }
 0x931   :  { %14001 = vmatpush1.bf16.msra.mxu0 %v15927_v44  ;;  %13838 = vmatprep.subr.bf16.mxu1 %v15950_v47  ;;  %v4205_v51 = vld [vmem:[#allocation14 + $0x2e70] sm:$0xff]  ;;  %v16069_v44 = vcombine.low %v4169_v56, %v4181_v32  ;;  %v16071_v47 = vcombine.low %v4170_v35, %v4182_v59 }
 0x932   :  { %14002 = vmatprep.subr.bf16.mxu0 %v15952_v52  ;;  %v16094_v48 = vcombine.high %v4193_v37, %v4205_v51  ;;  %v16096_v52 = vcombine.high %v4194_v40, %v4206_v43 }
 0x934   :  { %13839 = vmatpush1.bf16.msra.mxu1 %v15949_v60  ;;  %v16093_v60 = vcombine.low %v4193_v37, %v4205_v51 }
 0x935   :  { %14003 = vmatpush1.bf16.msra.mxu0 %v15951_v63  ;;  %13840 = vmatprep.subr.bf16.mxu1 %v15974_v45  ;;  %v16095_v63 = vcombine.low %v4194_v40, %v4206_v43  ;;  %v16118_v45 = vcombine.high %v4217_v53, %v4229_v57 }
 0x936   :  { %14004 = vmatprep.subr.bf16.mxu0 %v15976_v33  ;;  %v16120_v33 = vcombine.high %v4218_v13, %v4230_v9 }
 0x937   :  { %v16522_v12 = vpop.eup %16521 }
 0x938   :  { %v16524_v15 = vpop.eup %16523  ;;  %13841 = vmatpush1.bf16.msra.mxu1 %v15973_v5  ;;  %v16117_v5 = vcombine.low %v4217_v53, %v4229_v57 }
 0x939   :  { %v16526_v50 = vpop.eup %16525  ;;  %14005 = vmatpush1.bf16.msra.mxu0 %v15975_v54  ;;  %13842 = vmatprep.subr.bf16.mxu1 %v15998_v10  ;;  %v16119_v54 = vcombine.low %v4218_v13, %v4230_v9  ;;  %v16142_v10 = vcombine.high %v4241_v0, %v4253_v2 }
 0x93a   :  { %v16528_v39 = vpop.eup %16527  ;;  %v16153_v49 = vpack.c.bf16 %v16526_v50, %v16522_v12  ;;  %14006 = vmatprep.subr.bf16.mxu0 %v16000_v41  ;;  %v16144_v41 = vcombine.high %v4242_v3, %v4254_v4  ;;  %v4344_v12 = vrot.slane %v17197_v16, %v17033_v55 }
 0x93b   :  { %v16154_v23 = vpack.c.bf16 %v16528_v39, %v16524_v15  ;;  %v4356_v15 = vrot.slane %v17197_v16, %v17039_v62 }
 0x93c   :  { %13843 = vmatpush1.bf16.msra.mxu1 %v15997_v18  ;;  %v17208_v61 = vrot.slane %v16153_v49, %v17089_v38 }
 0x93d   :  { %14007 = vmatpush1.bf16.msra.mxu0 %v15999_v34  ;;  %13844 = vmatprep.subr.bf16.mxu1 %v16022_v1  ;;  %v17211_v26 = vrot.slane %v16154_v23, %v17089_v38 }
 0x93e   :  { %14008 = vmatprep.subr.bf16.mxu0 %v16024_v20 }
 0x93f   :  { %v14231_v42 = vcombine.low %v17208_v61, %v17211_v26 }
 0x940   :  { %13845 = vmatpush1.bf16.msra.mxu1 %v16021_v24 }
 0x941   :  { %14009 = vmatpush1.bf16.msra.mxu0 %v16023_v6  ;;  %13846 = vmatprep.subr.bf16.mxu1 %v16046_v29 }
 0x942   :  { %14010 = vmatprep.subr.bf16.mxu0 %v16048_v27  ;;  %v14239_v27 = vrot.slane %v14231_v42, %v17089_v38 }
 0x944   :  { %13847 = vmatpush1.bf16.msra.mxu1 %v16045_v36 }
 0x945   :  { %14011 = vmatpush1.bf16.msra.mxu0 %v16047_v31  ;;  %13848 = vmatprep.subr.bf16.mxu1 %v16070_v28 }
 0x946   :  { %14012 = vmatprep.subr.bf16.mxu0 %v16072_v7 }
 0x948   :  { %13849 = vmatpush1.bf16.msra.mxu1 %v16069_v44 }
 0x949   :  { %14013 = vmatpush1.bf16.msra.mxu0 %v16071_v47  ;;  %13850 = vmatprep.subr.bf16.mxu1 %v16094_v48 }
 0x94a   :  { %14014 = vmatprep.subr.bf16.mxu0 %v16096_v52 }
 0x94c   :  { %13851 = vmatpush1.bf16.msra.mxu1 %v16093_v60 }
 0x94d   :  { %14015 = vmatpush1.bf16.msra.mxu0 %v16095_v63  ;;  %13852 = vmatprep.subr.bf16.mxu1 %v16118_v45 }
 0x94e   :  { %14016 = vmatprep.subr.bf16.mxu0 %v16120_v33 }
 0x950   :  { %13853 = vmatpush1.bf16.msra.mxu1 %v16117_v5 }
 0x951   :  { %14017 = vmatpush1.bf16.msra.mxu0 %v16119_v54  ;;  %13854 = vmatprep.subr.bf16.mxu1 %v16142_v10 }
 0x952   :  { %14018 = vmatprep.subr.bf16.mxu0 %v16144_v41 }
 0x954   :  { %13855 = vmatpush1.bf16.msra.mxu1 %v16141_v8 }
 0x955   :  { %14019 = vmatpush1.bf16.msra.mxu0 %v16143_v11 }
 0x957   :  { %13857 = vmatmul.mubr.bf16.vlgmr.msra.gmra.mrb[32].mxu1 %v17066_v25 }
 0x958   :  { %14021 = vmatmul.mubr.bf16.vlgmr.msra.gmra.mrb[36].mxu0 %v17066_v25 }
 0xa2a   :  { %v13858_v18 = vpop.f32.mrb[32].mxu1 }
 0xa2b   :  { %v16185_v50 = vadd.f32 %v13858_v18, %v4344_v12  ;;  %v14022_v34 = vpop.f32.mrb[36].mxu0  ;;  %v13860_v1 = vpop.f32.mrb[33].mxu1 }
 0xa2c   :  { %v16187_v39 = vadd.f32 %v14022_v34, %v4352_v17  ;;  %v16186_v49 = vadd.f32 %v13860_v1, %v4348_v14  ;;  %v14024_v20 = vpop.f32.mrb[37].mxu0  ;;  %v13862_v25 = vpop.f32.mrb[34].mxu1 }
 0xa2d   :  { %16529 = vtanh.f32 %v16185_v50  ;;  %v16188_v21 = vadd.f32 %v14024_v20, %v4356_v15  ;;  %v14026_v55 = vpop.f32.mrb[38].mxu0  ;;  %v13863_v22 = vpop.f32.mrb[35].mxu1 }
 0xa2e   :  { %16531 = vtanh.f32 %v16187_v39  ;;  %v14027_v46 = vpop.f32.mrb[39].mxu0 }
 0xa2f   :  { %16533 = vtanh.f32 %v16186_v49 }
 0xa30   :  { %16535 = vtanh.f32 %v16188_v21 }
 0xa37   :  { %v16530_v58 = vpop.eup %16529 }
 0xa38   :  { %v16532_v23 = vpop.eup %16531 }
 0xa39   :  { %v16534_v30 = vpop.eup %16533 }
 0xa3a   :  { %v16536_v62 = vpop.eup %16535  ;;  %v16155_v16 = vpack.c.bf16 %v16534_v30, %v16530_v58 }
 0xa3b   :  { %v16156_v19 = vpack.c.bf16 %v16536_v62, %v16532_v23 }
 0xa3c   :  { %v14223_v24 = vrot.slane %v16155_v16, %v17089_v38 }
 0xa3d   :  { %v14230_v6 = vrot.slane %v16156_v19, %v17089_v38 }
 0xa3f   :  { %v14232_v29 = vcombine.low %v14223_v24, %v14230_v6 }
 0xa41   :  { %v14246_v56 = vrot.slane %v14232_v29, %v17089_v38 }
 0xa43   :  { %v14247_v32 = vcombine.low %v14239_v27, %v14246_v56 }
 0xa45   :  { %14253 = vst [vmem:[#allocation17 + $0x10] sm:$0xff] %v14247_v32 }
 0xa46   :  { %16749 = shalt.err (!%p16746_p6)
}
 0xa47   :  { %s16750_s2 = scalar_lea.hbm %s17253_s9, 384 }
 0xa48   :  { %p16751_p7 = scmp.ne.s32.totalorder %s17253_s9, %s16750_s2  ;;  %p16754_p8 = scmp.lt.u32.totalorder %s16750_s2, %s17253_s9 }
 0xa4a   :  { %p16756_p9 = pnand %p16754_p8, %p16751_p7 }
 0xa4c   :  { %16759 = shalt.err (!%p16756_p9)
}
 0xa4d   :  { %14263 = dma.vmem_to_hbm [thread:$0]  %s14261_s3, 384, %s17253_s9, [#allocation4]  }
 0xa4e   :  { %16770 = dma.done.wait [#allocation4], 384  }
 0xa4f   :  { %16771 = vsyncadd [#allocation4], 4294966912 }
 0xa50   :  { %14267 = vsyncpa [#allocation3], 1 }
 0xa51   :  { %14268 = vsyncpa [#allocation6], 1 }
 0xa52   :  { %14269 = vsyncpa [#allocation9], 1 }
 0xa53   :  { %14270 = vsyncpa [#allocation12], 1 }
 0xa54   :  { %14271 = vsyncpa [#allocation15], 1 }
 0xa55   :  { %14272 = vsyncpa [#allocation4], 1 }

</bundles_post_ra>
